<compile_context>
chip_gen: v7x
topology: tpu7x:2x2x1
jax: 0.10.0
libtpu: 0.0.40
codegen_flags: <defaults>
</compile_context>

<pallas_src>
import jax
import jax.numpy as jnp
import numpy as np
from jax import lax
from jax.experimental import pallas as pl
from jax.experimental.pallas import tpu as pltpu

_BN_EPS = 1e-5
_SQRT_2_OVER_PI = 0.7978845608028654
_VMEM_LIMIT = 32 * 1024 * 1024


# TODO(synk): PyTorch F.gelu / nn.GELU default is erf-exact; the tanh
# approximation is used here (Mosaic-safe; max abs deviation ~1e-3).
# The pure-JAX reference below uses the same approximation.
def _gelu(x):
    return 0.5 * x * (1.0 + jnp.tanh(_SQRT_2_OVER_PI * (x + 0.044715 * x * x * x)))


def _round_up(n, m):
    return (n + m - 1) // m * m


def _choose_row_tile(s, target=512):
    """Row tile (multiple of 8) and padded row count for tiling S."""
    n = max(1, -(-s // target))          # number of tiles
    tm = _round_up(-(-s // n), 8)
    return tm, tm * n


def _choose_k_tile(kp, cap=2048):
    """Largest multiple-of-128 divisor of kp (kp itself a multiple of 128), <= cap."""
    q = kp // 128
    for d in range(min(q, cap // 128), 0, -1):
        if q % d == 0:
            return 128 * d
    return 128


def _choose_lane_tile(m, cap=4096):
    """Lane tile for an output minor dim of size m (multiple of 128 when possible)."""
    if m <= cap or m % 128:
        return m
    q = m // 128
    for d in range(min(q, cap // 128), 0, -1):
        if q % d == 0:
            return 128 * d
    return m


def _largest_divisor(n, cap):
    for d in range(min(n, cap), 0, -1):
        if n % d == 0:
            return d
    return 1


def _extract_patches(x, ksize, stride, padding):
    """im2col for a channels-last 3D conv.

    x: [B, T, H, W, C] -> ([B, To*Ho*Wo, kT*kH*kW*C], (To, Ho, Wo))
    (patch column order matches weight stored as [kT, kH, kW, Cin, Cout]).
    """
    b, t, h, w, c = x.shape
    kt, kh, kw = ksize
    st, sh, sw = stride
    pt, ph, pw = padding
    if pt or ph or pw:
        x = jnp.pad(x, ((0, 0), (pt, pt), (ph, ph), (pw, pw), (0, 0)))
    tp, hp, wp = t + 2 * pt, h + 2 * ph, w + 2 * pw
    to = (tp - kt) // st + 1
    ho = (hp - kh) // sh + 1
    wo = (wp - kw) // sw + 1
    cols = []
    for dt in range(kt):
        for dh in range(kh):
            for dw in range(kw):
                cols.append(x[:, dt:dt + (to - 1) * st + 1:st,
                                dh:dh + (ho - 1) * sh + 1:sh,
                                dw:dw + (wo - 1) * sw + 1:sw, :])
    patches = jnp.concatenate(cols, axis=-1)        # [B, To, Ho, Wo, kT*kH*kW*C]
    return patches.reshape(b, to * ho * wo, kt * kh * kw * c), (to, ho, wo)


def _conv_gemm(patches, weight, scale, shift, *, apply_gelu,
               shortcut=None, sc_weight=None):
    """act((patches @ weight) * scale + shift [+ shortcut @ sc_weight]).

    patches : [B, S, K]        weight    : [K, Cout]
    scale/shift : [1, Cout] f32 (conv bias + inference BN folded in; the fused
                                 1x1x1 shortcut's bias is folded into `shift`)
    shortcut: [B, S, Cin] or None   sc_weight: [Cin, Cout] or None
    Returns [B, S, Cout] bf16.  MXU operands are bf16, accumulation is f32.
    """
    bsz, s, k = patches.shape
    cout = weight.shape[1]
    has_sc = shortcut is not None

    kp = _round_up(k, 128)
    tm, sp = _choose_row_tile(s)
    ns = sp // tm
    tk = _choose_k_tile(kp)
    nk = kp // tk

    if kp != k:
        patches = jnp.pad(patches, ((0, 0), (0, 0), (0, kp - k)))
        weight = jnp.pad(weight, ((0, kp - k), (0, 0)))
    if sp != s:
        patches = jnp.pad(patches, ((0, 0), (0, sp - s), (0, 0)))
        if has_sc:
            shortcut = jnp.pad(shortcut, ((0, 0), (0, sp - s), (0, 0)))

    patches = patches.astype(jnp.bfloat16)
    weight = weight.astype(jnp.bfloat16)
    scale = scale.astype(jnp.float32)
    shift = shift.astype(jnp.float32)
    if has_sc:
        shortcut = shortcut.astype(jnp.bfloat16)
        sc_weight = sc_weight.astype(jnp.bfloat16)
        cin = shortcut.shape[-1]

    def kernel(*refs):
        if has_sc:
            p_ref, w_ref, sc_ref, sh_ref, a_ref, ws_ref, o_ref, acc_ref = refs
        else:
            p_ref, w_ref, sc_ref, sh_ref, o_ref, acc_ref = refs
        kk = pl.program_id(2)

        @pl.when(kk == 0)
        def _init():
            acc_ref[...] = jnp.zeros_like(acc_ref)

        acc_ref[...] += jnp.dot(p_ref[...], w_ref[...],
                                preferred_element_type=jnp.float32)

        @pl.when(kk == nk - 1)
        def _finish():
            y = acc_ref[...] * sc_ref[...] + sh_ref[...]   # conv bias + BN
            if has_sc:
                # fused 1x1x1 shortcut conv + residual add
                y = y + jnp.dot(a_ref[...], ws_ref[...],
                                preferred_element_type=jnp.float32)
            if apply_gelu:
                y = _gelu(y)
            o_ref[...] = y.astype(o_ref.dtype)

    in_specs = [
        pl.BlockSpec((None, tm, tk), lambda b, si, kk: (b, si, kk)),   # patches
        pl.BlockSpec((tk, cout), lambda b, si, kk: (kk, 0)),           # weight
        pl.BlockSpec((1, cout), lambda b, si, kk: (0, 0)),             # BN scale
        pl.BlockSpec((1, cout), lambda b, si, kk: (0, 0)),             # BN shift
    ]
    args = [patches, weight, scale, shift]
    if has_sc:
        in_specs += [
            pl.BlockSpec((None, tm, cin), lambda b, si, kk: (b, si, 0)),  # block input
            pl.BlockSpec((cin, cout), lambda b, si, kk: (0, 0)),          # shortcut W
        ]
        args += [shortcut, sc_weight]

    out = pl.pallas_call(
        kernel,
        out_shape=jax.ShapeDtypeStruct((bsz, sp, cout), jnp.bfloat16),
        grid=(bsz, ns, nk),
        in_specs=in_specs,
        out_specs=pl.BlockSpec((None, tm, cout), lambda b, si, kk: (b, si, 0)),
        scratch_shapes=[pltpu.VMEM((tm, cout), jnp.float32)],
        compiler_params=pltpu.CompilerParams(
            dimension_semantics=("parallel", "parallel", "arbitrary"),
            vmem_limit_bytes=_VMEM_LIMIT),
    )(*args)
    return out[:, :s, :] if sp != s else out


def _maxpool_1x2x2(x5):
    """MaxPool3d((1,2,2)) on a channels-last activation [B, T, H, W, C] (bf16)."""
    b, t, h, w, c = x5.shape
    h2, w2 = h // 2, w // 2
    s2 = t * h2 * w2
    xe = x5[:, :, :2 * h2, :2 * w2, :]
    taps = [xe[:, :, i::2, j::2, :].reshape(b, s2, c)
            for i in (0, 1) for j in (0, 1)]

    tm, sp = _choose_row_tile(s2)
    ns = sp // tm
    if sp != s2:
        taps = [jnp.pad(tp, ((0, 0), (0, sp - s2), (0, 0))) for tp in taps]

    def kernel(a_ref, b_ref, c_ref, d_ref, o_ref):
        o_ref[...] = jnp.maximum(jnp.maximum(a_ref[...], b_ref[...]),
                                 jnp.maximum(c_ref[...], d_ref[...]))

    spec = pl.BlockSpec((None, tm, c), lambda bb, si: (bb, si, 0))
    out = pl.pallas_call(
        kernel,
        out_shape=jax.ShapeDtypeStruct((b, sp, c), jnp.bfloat16),
        grid=(b, ns),
        in_specs=[spec] * 4,
        out_specs=spec,
        compiler_params=pltpu.CompilerParams(
            dimension_semantics=("parallel", "parallel")),
    )(*taps)
    out = out[:, :s2, :] if sp != s2 else out
    return out.reshape(b, t, h2, w2, c)


def _adaptive_pool_matrix(out_size, in_size):
    """Row-stochastic adaptive-average-pool matrix (PyTorch window formula)."""
    m = np.zeros((out_size, in_size), np.float32)
    for o in range(out_size):
        start = (o * in_size) // out_size
        end = -((-(o + 1) * in_size) // out_size)   # ceil
        m[o, start:end] = 1.0 / (end - start)
    return m


def _adaptive_avg_pool(x5, out_thw):
    """Separable AdaptiveAvgPool3d: (T,H) pooled by one GEMM, then W per row."""
    b, t, h, w, c = x5.shape
    ot, oh, ow = out_thw

    # ---- stage A: pool (T, H) jointly:  P_TH [OT*OH, T*H] @ x[b] [T*H, W*C] ----
    p_th = jnp.asarray(
        np.kron(_adaptive_pool_matrix(ot, t), _adaptive_pool_matrix(oh, h)),
        jnp.bfloat16)                                   # [144, T*H]
    ro = ot * oh
    r = t * h
    m = w * c
    xa = x5.reshape(b, r, m).astype(jnp.bfloat16)
    tmm = _choose_lane_tile(m)
    nm = m // tmm

    def kern_a(p_ref, x_ref, o_ref):
        o_ref[...] = jnp.dot(p_ref[...], x_ref[...],
                             preferred_element_type=jnp.float32)

    ya = pl.pallas_call(
        kern_a,
        out_shape=jax.ShapeDtypeStruct((b, ro, m), jnp.float32),
        grid=(b, nm),
        in_specs=[pl.BlockSpec((ro, r), lambda bb, mi: (0, 0)),
                  pl.BlockSpec((None, r, tmm), lambda bb, mi: (bb, 0, mi))],
        out_specs=pl.BlockSpec((None, ro, tmm), lambda bb, mi: (bb, 0, mi)),
        compiler_params=pltpu.CompilerParams(
            dimension_semantics=("parallel", "parallel"),
            vmem_limit_bytes=_VMEM_LIMIT),
    )(p_th, xa)

    # ---- stage B: pool W per (T,H)-output row:  Pw [OW, W] @ y[b, r] [W, C] ----
    p_w = jnp.asarray(_adaptive_pool_matrix(ow, w), jnp.float32)
    yb = ya.reshape(b, ro, w, c)
    rt = _largest_divisor(ro, 16)
    nr = ro // rt

    def kern_b(p_ref, x_ref, o_ref):
        for rr in range(rt):
            o_ref[rr] = jnp.dot(p_ref[...], x_ref[rr],
                                preferred_element_type=jnp.float32)

    out = pl.pallas_call(
        kern_b,
        out_shape=jax.ShapeDtypeStruct((b, ro, ow, c), jnp.float32),
        grid=(b, nr),
        in_specs=[pl.BlockSpec((ow, w), lambda bb, ri: (0, 0)),
                  pl.BlockSpec((None, rt, w, c), lambda bb, ri: (bb, ri, 0, 0))],
        out_specs=pl.BlockSpec((None, rt, ow, c), lambda bb, ri: (bb, ri, 0, 0)),
        compiler_params=pltpu.CompilerParams(
            dimension_semantics=("parallel", "parallel")),
    )(p_w, yb)
    return out.reshape(b, ot, oh, ow, c)


def _fold_bn(prm):
    """Fold conv bias + inference-mode BatchNorm3d into per-channel scale/shift."""
    # TODO(synk): BatchNorm3d implemented in inference mode (running stats);
    # training-mode batch statistics are not computed in-kernel.
    scale = prm["gamma"] / jnp.sqrt(prm["var"] + _BN_EPS)
    shift = (prm["b"] - prm["mean"]) * scale + prm["beta"]
    return scale.reshape(1, -1), shift.reshape(1, -1)


def _residual_block(x5, prm, cin, cout):
    """Residual3DBlock: GELU(BN2(conv2(GELU(BN1(conv1(x))))) + shortcut(x))."""
    b, t, h, w, _ = x5.shape
    s = t * h * w

    p1, _ = _extract_patches(x5, (3, 3, 3), (1, 1, 1), (1, 1, 1))
    sc1, sh1 = _fold_bn(prm["conv1"])
    y1 = _conv_gemm(p1, prm["conv1"]["w"].reshape(-1, cout), sc1, sh1,
                    apply_gelu=True)

    p2, _ = _extract_patches(y1.reshape(b, t, h, w, cout),
                             (3, 3, 3), (1, 1, 1), (1, 1, 1))
    sc2, sh2 = _fold_bn(prm["conv2"])
    # shortcut bias folded into the shift; shortcut GEMM + residual add + final
    # GELU fused into conv2's epilogue.
    sh2 = sh2 + prm["shortcut"]["b"].reshape(1, -1)
    out = _conv_gemm(p2, prm["conv2"]["w"].reshape(-1, cout), sc2, sh2,
                     apply_gelu=True,
                     shortcut=x5.reshape(b, s, cin),
                     sc_weight=prm["shortcut"]["w"].reshape(cin, cout))
    return out.reshape(b, t, h, w, cout)


def spatiotemporal_encoder(x, params):
    """x: [B, 1, T, H, W] -> [B, 256, 4, 36, 20] (matches the PyTorch module)."""
    bsz = x.shape[0]
    xc = jnp.transpose(x, (0, 2, 3, 4, 1)).astype(jnp.bfloat16)   # [B,T,H,W,1]

    # stem: Conv3d(1->64, k=(3,5,5), s=(1,2,2)) + BN + GELU  (K=75 padded to 128)
    p0, (t1, h1, w1) = _extract_patches(xc, (3, 5, 5), (1, 2, 2), (0, 0, 0))
    sc0, sh0 = _fold_bn(params["stem"])
    a0 = _conv_gemm(p0, params["stem"]["w"].reshape(-1, 64), sc0, sh0,
                    apply_gelu=True)
    a0 = a0.reshape(bsz, t1, h1, w1, 64)

    a1 = _residual_block(a0, params["res1"], 64, 128)
    a2 = _maxpool_1x2x2(a1)
    a3 = _residual_block(a2, params["res2"], 128, 256)
    a4 = _adaptive_avg_pool(a3, (4, 36, 20))            # [B,4,36,20,256] f32
    return jnp.transpose(a4, (0, 4, 1, 2, 3))           # NCDHW


def init_params(key):
    """PyTorch-default Conv3d init; BN affine + running stats randomized so the
    inference-BN path is exercised.  Weights stored as [kT,kH,kW,Cin,Cout]."""
    it = iter(jax.random.split(key, 40))

    def conv(cin, cout, ksize, with_bn=True):
        kt, kh, kw = ksize
        bound = 1.0 / np.sqrt(cin * kt * kh * kw)
        prm = {
            "w": jax.random.uniform(next(it), (kt, kh, kw, cin, cout),
                                    jnp.float32, -bound, bound),
            "b": jax.random.uniform(next(it), (cout,), jnp.float32, -bound, bound),
        }
        if with_bn:
            prm["gamma"] = jax.random.uniform(next(it), (cout,), jnp.float32, 0.5, 1.5)
            prm["beta"] = 0.1 * jax.random.normal(next(it), (cout,), jnp.float32)
            prm["mean"] = 0.1 * jax.random.normal(next(it), (cout,), jnp.float32)
            prm["var"] = jax.random.uniform(next(it), (cout,), jnp.float32, 0.5, 1.5)
        return prm

    return {
        "stem": conv(1, 64, (3, 5, 5)),
        "res1": {"conv1": conv(64, 128, (3, 3, 3)),
                 "conv2": conv(128, 128, (3, 3, 3)),
                 "shortcut": conv(64, 128, (1, 1, 1), with_bn=False)},
        "res2": {"conv1": conv(128, 256, (3, 3, 3)),
                 "conv2": conv(256, 256, (3, 3, 3)),
                 "shortcut": conv(128, 256, (1, 1, 1), with_bn=False)},
    }


def reference(x, params):
    """Pure-JAX (XLA, f32, HIGHEST precision) forward for verification."""
    def conv_bn(v, prm, stride, pad, act):
        y = lax.conv_general_dilated(
            v, prm["w"], window_strides=stride, padding=[(p, p) for p in pad],
            dimension_numbers=("NDHWC", "DHWIO", "NDHWC"),
            precision=lax.Precision.HIGHEST)
        y = y + prm["b"]
        if "gamma" in prm:
            scale = prm["gamma"] / jnp.sqrt(prm["var"] + _BN_EPS)
            y = (y - prm["mean"]) * scale + prm["beta"]
        return _gelu(y) if act else y

    def resblock(v, prm):
        y = conv_bn(v, prm["conv1"], (1, 1, 1), (1, 1, 1), act=True)
        y = conv_bn(y, prm["conv2"], (1, 1, 1), (1, 1, 1), act=False)
        s = conv_bn(v, prm["shortcut"], (1, 1, 1), (0, 0, 0), act=False)
        return _gelu(y + s)

    xc = jnp.transpose(x, (0, 2, 3, 4, 1)).astype(jnp.float32)
    a = conv_bn(xc, params["stem"], (1, 2, 2), (0, 0, 0), act=True)
    a = resblock(a, params["res1"])
    a = lax.reduce_window(a, -jnp.inf, lax.max,
                          (1, 1, 2, 2, 1), (1, 1, 2, 2, 1), "VALID")
    a = resblock(a, params["res2"])
    pt = jnp.asarray(_adaptive_pool_matrix(4, a.shape[1]))
    ph = jnp.asarray(_adaptive_pool_matrix(36, a.shape[2]))
    pw = jnp.asarray(_adaptive_pool_matrix(20, a.shape[3]))
    a = jnp.einsum("at,ph,qw,bthwc->bapqc", pt, ph, pw, a,
                   precision=lax.Precision.HIGHEST)
    return jnp.transpose(a, (0, 4, 1, 2, 3))


if __name__ == "__main__":
    B, T, H, W = 2, 6, 16, 16        # small test shapes (real model uses large H, W)
    key = jax.random.PRNGKey(0)
    k_x, k_p = jax.random.split(key)
    x = jax.random.normal(k_x, (B, 1, T, H, W), jnp.float32)
    params = init_params(k_p)

    out = jax.jit(spatiotemporal_encoder)(x, params)
    out = jax.block_until_ready(out)

    ref = reference(x, params)
    assert out.shape == (B, 256, 4, 36, 20), out.shape
    # bf16 MXU operands vs f32 reference: tolerance set deliberately (f32 accum,
    # ~0.4% per-layer bf16 rounding through 5 conv layers).
    err = float(jnp.max(jnp.abs(out.astype(jnp.float32) - ref)))
    scale = float(jnp.max(jnp.abs(ref)))
    assert err <= 0.04 * scale + 0.02, (err, scale)

    print("KERNEL_OK")
</pallas_src>

<mosaic_0001>
module attributes {stable_mosaic.version = 11 : i64} {
  func.func @kernel(%arg0: i32, %arg1: i32, %arg2: i32, %arg3: memref<1x144x128xbf16, #tpu.memory_space<vmem>>, %arg4: memref<128x64xbf16, #tpu.memory_space<vmem>>, %arg5: memref<1x64xf32, #tpu.memory_space<vmem>>, %arg6: memref<1x64xf32, #tpu.memory_space<vmem>>, %arg7: memref<1x144x64xbf16, #tpu.memory_space<vmem>>, %arg8: memref<144x64xf32, #tpu.memory_space<vmem>>) attributes {dimension_semantics = [#tpu.dimension_semantics<parallel>, #tpu.dimension_semantics<parallel>, #tpu.dimension_semantics<arbitrary>], iteration_bounds = array<i64: 2, 1, 1>, scalar_prefetch = 0 : i64, scratch_operands = 1 : i64, tpu.core_type = #tpu.core_type<tc>, window_params = [{transform_indices = @transform_0, window_bounds = array<i64: 1, 144, 128>}, {transform_indices = @transform_1, window_bounds = array<i64: 128, 64>}, {pipeline_mode = #tpu.pipeline_mode<synchronous>, transform_indices = @transform_2, window_bounds = array<i64: 1, 64>}, {pipeline_mode = #tpu.pipeline_mode<synchronous>, transform_indices = @transform_3, window_bounds = array<i64: 1, 64>}, {transform_indices = @transform_4, window_bounds = array<i64: 1, 144, 64>}]} {
    %c0_i32 = arith.constant 0 : i32
    %0 = arith.cmpi eq, %arg2, %c0_i32 : i32
    %1 = arith.extui %0 : i1 to i32
    %c0_i32_0 = arith.constant 0 : i32
    %2 = arith.cmpi ne, %1, %c0_i32_0 : i32
    scf.if %2 {
      %cst_11 = arith.constant 0.000000e+00 : f32
      %13 = vector.broadcast %cst_11 : f32 to vector<144x64xf32>
      %c0_12 = arith.constant 0 : index
      %c0_13 = arith.constant 0 : index
      %14 = vector.load %arg8[%c0_12, %c0_13] : memref<144x64xf32, #tpu.memory_space<vmem>>, vector<144x64xf32>
      tpu.vector_store %arg8[%c0_12, %c0_13], %13 {strides = array<i32>} : memref<144x64xf32, #tpu.memory_space<vmem>>, vector<144x64xf32>,
    } else {
    }
    %c0 = arith.constant 0 : index
    %c0_1 = arith.constant 0 : index
    %3 = vector.load %arg8[%c0, %c0_1] : memref<144x64xf32, #tpu.memory_space<vmem>>, vector<144x64xf32>
    %c0_2 = arith.constant 0 : index
    %c0_3 = arith.constant 0 : index
    %c0_4 = arith.constant 0 : index
    %4 = vector.load %arg3[%c0_2, %c0_3, %c0_4] : memref<1x144x128xbf16, #tpu.memory_space<vmem>>, vector<1x144x128xbf16>
    %5 = vector.shape_cast %4 : vector<1x144x128xbf16> to vector<144x128xbf16>
    %c0_5 = arith.constant 0 : index
    %c0_6 = arith.constant 0 : index
    %6 = vector.load %arg4[%c0_5, %c0_6] : memref<128x64xbf16, #tpu.memory_space<vmem>>, vector<128x64xbf16>
    %cst = arith.constant dense<0.000000e+00> : vector<144x64xf32>
    %7 = tpu.matmul %5, %6, %cst {dimension_numbers = #tpu.dot_dimension_numbers<[1], [0], [0], [1], [0, 0, 1, 1], [], []>} : vector<144x128xbf16>, vector<128x64xbf16>, vector<144x64xf32> -> vector<144x64xf32>
    %8 = arith.addf %3, %7 : vector<144x64xf32>
    %c0_7 = arith.constant 0 : index
    %c0_8 = arith.constant 0 : index
    %9 = vector.load %arg8[%c0_7, %c0_8] : memref<144x64xf32, #tpu.memory_space<vmem>>, vector<144x64xf32>
    tpu.vector_store %arg8[%c0_7, %c0_8], %8 {strides = array<i32>} : memref<144x64xf32, #tpu.memory_space<vmem>>, vector<144x64xf32>,
    %c0_i32_9 = arith.constant 0 : i32
    %10 = arith.cmpi eq, %arg2, %c0_i32_9 : i32
    %11 = arith.extui %10 : i1 to i32
    %c0_i32_10 = arith.constant 0 : i32
    %12 = arith.cmpi ne, %11, %c0_i32_10 : i32
    scf.if %12 {
      %c0_11 = arith.constant 0 : index
      %c0_12 = arith.constant 0 : index
      %13 = vector.load %arg8[%c0_11, %c0_12] : memref<144x64xf32, #tpu.memory_space<vmem>>, vector<144x64xf32>
      %c0_13 = arith.constant 0 : index
      %c0_14 = arith.constant 0 : index
      %14 = vector.load %arg5[%c0_13, %c0_14] : memref<1x64xf32, #tpu.memory_space<vmem>>, vector<1x64xf32>
      %15 = vector.broadcast %14 : vector<1x64xf32> to vector<144x64xf32>
      %16 = arith.mulf %13, %15 : vector<144x64xf32>
      %c0_15 = arith.constant 0 : index
      %c0_16 = arith.constant 0 : index
      %17 = vector.load %arg6[%c0_15, %c0_16] : memref<1x64xf32, #tpu.memory_space<vmem>>, vector<1x64xf32>
      %18 = vector.broadcast %17 : vector<1x64xf32> to vector<144x64xf32>
      %19 = arith.addf %16, %18 : vector<144x64xf32>
      %cst_17 = arith.constant 5.000000e-01 : f32
      %20 = vector.broadcast %cst_17 : f32 to vector<144x64xf32>
      %21 = arith.mulf %20, %19 : vector<144x64xf32>
      %cst_18 = arith.constant 4.471500e-02 : f32
      %22 = vector.broadcast %cst_18 : f32 to vector<144x64xf32>
      %23 = arith.mulf %22, %19 : vector<144x64xf32>
      %24 = arith.mulf %23, %19 : vector<144x64xf32>
      %25 = arith.mulf %24, %19 : vector<144x64xf32>
      %26 = arith.addf %19, %25 : vector<144x64xf32>
      %cst_19 = arith.constant 0.797884583 : f32
      %27 = vector.broadcast %cst_19 : f32 to vector<144x64xf32>
      %28 = arith.mulf %27, %26 : vector<144x64xf32>
      %29 = math.tanh %28 : vector<144x64xf32>
      %cst_20 = arith.constant 1.000000e+00 : f32
      %30 = vector.broadcast %cst_20 : f32 to vector<144x64xf32>
      %31 = arith.addf %30, %29 : vector<144x64xf32>
      %32 = arith.mulf %21, %31 : vector<144x64xf32>
      %33 = arith.truncf %32 : vector<144x64xf32> to vector<144x64xbf16>
      %c0_21 = arith.constant 0 : index
      %c0_22 = arith.constant 0 : index
      %c0_23 = arith.constant 0 : index
      %34 = vector.load %arg7[%c0_21, %c0_22, %c0_23] : memref<1x144x64xbf16, #tpu.memory_space<vmem>>, vector<1x144x64xbf16>
      %35 = vector.shape_cast %34 : vector<1x144x64xbf16> to vector<144x64xbf16>
      %36 = vector.shape_cast %33 : vector<144x64xbf16> to vector<1x144x64xbf16>
      tpu.vector_store %arg7[%c0_21, %c0_22, %c0_23], %36 {strides = array<i32>} : memref<1x144x64xbf16, #tpu.memory_space<vmem>>, vector<1x144x64xbf16>,
    } else {
    }
    return
  }
  func.func @transform_0(%arg0: i32, %arg1: i32, %arg2: i32) -> (i32, i32, i32) {
    %c0_i32 = arith.constant 0 : i32
    return %arg0, %arg1, %arg2 : i32, i32, i32
  }
  func.func @transform_1(%arg0: i32, %arg1: i32, %arg2: i32) -> (i32, i32) {
    %c0_i32 = arith.constant 0 : i32
    %c0_i32_0 = arith.constant 0 : i32
    return %arg2, %c0_i32 : i32, i32
  }
  func.func @transform_2(%arg0: i32, %arg1: i32, %arg2: i32) -> (i32, i32) {
    %c0_i32 = arith.constant 0 : i32
    %c0_i32_0 = arith.constant 0 : i32
    %c0_i32_1 = arith.constant 0 : i32
    return %c0_i32, %c0_i32_0 : i32, i32
  }
  func.func @transform_3(%arg0: i32, %arg1: i32, %arg2: i32) -> (i32, i32) {
    %c0_i32 = arith.constant 0 : i32
    %c0_i32_0 = arith.constant 0 : i32
    %c0_i32_1 = arith.constant 0 : i32
    return %c0_i32, %c0_i32_0 : i32, i32
  }
  func.func @transform_4(%arg0: i32, %arg1: i32, %arg2: i32) -> (i32, i32, i32) {
    %c0_i32 = arith.constant 0 : i32
    %c0_i32_0 = arith.constant 0 : i32
    return %arg0, %arg1, %c0_i32 : i32, i32, i32
  }
}

module attributes {stable_mosaic.version = 11 : i64} {
  func.func @kernel(%arg0: i32, %arg1: i32, %arg2: i32, %arg3: memref<1x144x1792xbf16, #tpu.memory_space<vmem>>, %arg4: memref<1792x128xbf16, #tpu.memory_space<vmem>>, %arg5: memref<1x128xf32, #tpu.memory_space<vmem>>, %arg6: memref<1x128xf32, #tpu.memory_space<vmem>>, %arg7: memref<1x144x128xbf16, #tpu.memory_space<vmem>>, %arg8: memref<144x128xf32, #tpu.memory_space<vmem>>) attributes {dimension_semantics = [#tpu.dimension_semantics<parallel>, #tpu.dimension_semantics<parallel>, #tpu.dimension_semantics<arbitrary>], iteration_bounds = array<i64: 2, 1, 1>, scalar_prefetch = 0 : i64, scratch_operands = 1 : i64, tpu.core_type = #tpu.core_type<tc>, window_params = [{transform_indices = @transform_0, window_bounds = array<i64: 1, 144, 1792>}, {transform_indices = @transform_1, window_bounds = array<i64: 1792, 128>}, {pipeline_mode = #tpu.pipeline_mode<synchronous>, transform_indices = @transform_2, window_bounds = array<i64: 1, 128>}, {pipeline_mode = #tpu.pipeline_mode<synchronous>, transform_indices = @transform_3, window_bounds = array<i64: 1, 128>}, {transform_indices = @transform_4, window_bounds = array<i64: 1, 144, 128>}]} {
    %c0_i32 = arith.constant 0 : i32
    %0 = arith.cmpi eq, %arg2, %c0_i32 : i32
    %1 = arith.extui %0 : i1 to i32
    %c0_i32_0 = arith.constant 0 : i32
    %2 = arith.cmpi ne, %1, %c0_i32_0 : i32
    scf.if %2 {
      %cst_11 = arith.constant 0.000000e+00 : f32
      %13 = vector.broadcast %cst_11 : f32 to vector<144x128xf32>
      %c0_12 = arith.constant 0 : index
      %c0_13 = arith.constant 0 : index
      %14 = vector.load %arg8[%c0_12, %c0_13] : memref<144x128xf32, #tpu.memory_space<vmem>>, vector<144x128xf32>
      tpu.vector_store %arg8[%c0_12, %c0_13], %13 {strides = array<i32>} : memref<144x128xf32, #tpu.memory_space<vmem>>, vector<144x128xf32>,
    } else {
    }
    %c0 = arith.constant 0 : index
    %c0_1 = arith.constant 0 : index
    %3 = vector.load %arg8[%c0, %c0_1] : memref<144x128xf32, #tpu.memory_space<vmem>>, vector<144x128xf32>
    %c0_2 = arith.constant 0 : index
    %c0_3 = arith.constant 0 : index
    %c0_4 = arith.constant 0 : index
    %4 = vector.load %arg3[%c0_2, %c0_3, %c0_4] : memref<1x144x1792xbf16, #tpu.memory_space<vmem>>, vector<1x144x1792xbf16>
    %5 = vector.shape_cast %4 : vector<1x144x1792xbf16> to vector<144x1792xbf16>
    %c0_5 = arith.constant 0 : index
    %c0_6 = arith.constant 0 : index
    %6 = vector.load %arg4[%c0_5, %c0_6] : memref<1792x128xbf16, #tpu.memory_space<vmem>>, vector<1792x128xbf16>
    %cst = arith.constant dense<0.000000e+00> : vector<144x128xf32>
    %7 = tpu.matmul %5, %6, %cst {dimension_numbers = #tpu.dot_dimension_numbers<[1], [0], [0], [1], [0, 0, 1, 1], [], []>} : vector<144x1792xbf16>, vector<1792x128xbf16>, vector<144x128xf32> -> vector<144x128xf32>
    %8 = arith.addf %3, %7 : vector<144x128xf32>
    %c0_7 = arith.constant 0 : index
    %c0_8 = arith.constant 0 : index
    %9 = vector.load %arg8[%c0_7, %c0_8] : memref<144x128xf32, #tpu.memory_space<vmem>>, vector<144x128xf32>
    tpu.vector_store %arg8[%c0_7, %c0_8], %8 {strides = array<i32>} : memref<144x128xf32, #tpu.memory_space<vmem>>, vector<144x128xf32>,
    %c0_i32_9 = arith.constant 0 : i32
    %10 = arith.cmpi eq, %arg2, %c0_i32_9 : i32
    %11 = arith.extui %10 : i1 to i32
    %c0_i32_10 = arith.constant 0 : i32
    %12 = arith.cmpi ne, %11, %c0_i32_10 : i32
    scf.if %12 {
      %c0_11 = arith.constant 0 : index
      %c0_12 = arith.constant 0 : index
      %13 = vector.load %arg8[%c0_11, %c0_12] : memref<144x128xf32, #tpu.memory_space<vmem>>, vector<144x128xf32>
      %c0_13 = arith.constant 0 : index
      %c0_14 = arith.constant 0 : index
      %14 = vector.load %arg5[%c0_13, %c0_14] : memref<1x128xf32, #tpu.memory_space<vmem>>, vector<1x128xf32>
      %15 = vector.broadcast %14 : vector<1x128xf32> to vector<144x128xf32>
      %16 = arith.mulf %13, %15 : vector<144x128xf32>
      %c0_15 = arith.constant 0 : index
      %c0_16 = arith.constant 0 : index
      %17 = vector.load %arg6[%c0_15, %c0_16] : memref<1x128xf32, #tpu.memory_space<vmem>>, vector<1x128xf32>
      %18 = vector.broadcast %17 : vector<1x128xf32> to vector<144x128xf32>
      %19 = arith.addf %16, %18 : vector<144x128xf32>
      %cst_17 = arith.constant 5.000000e-01 : f32
      %20 = vector.broadcast %cst_17 : f32 to vector<144x128xf32>
      %21 = arith.mulf %20, %19 : vector<144x128xf32>
      %cst_18 = arith.constant 4.471500e-02 : f32
      %22 = vector.broadcast %cst_18 : f32 to vector<144x128xf32>
      %23 = arith.mulf %22, %19 : vector<144x128xf32>
      %24 = arith.mulf %23, %19 : vector<144x128xf32>
      %25 = arith.mulf %24, %19 : vector<144x128xf32>
      %26 = arith.addf %19, %25 : vector<144x128xf32>
      %cst_19 = arith.constant 0.797884583 : f32
      %27 = vector.broadcast %cst_19 : f32 to vector<144x128xf32>
      %28 = arith.mulf %27, %26 : vector<144x128xf32>
      %29 = math.tanh %28 : vector<144x128xf32>
      %cst_20 = arith.constant 1.000000e+00 : f32
      %30 = vector.broadcast %cst_20 : f32 to vector<144x128xf32>
      %31 = arith.addf %30, %29 : vector<144x128xf32>
      %32 = arith.mulf %21, %31 : vector<144x128xf32>
      %33 = arith.truncf %32 : vector<144x128xf32> to vector<144x128xbf16>
      %c0_21 = arith.constant 0 : index
      %c0_22 = arith.constant 0 : index
      %c0_23 = arith.constant 0 : index
      %34 = vector.load %arg7[%c0_21, %c0_22, %c0_23] : memref<1x144x128xbf16, #tpu.memory_space<vmem>>, vector<1x144x128xbf16>
      %35 = vector.shape_cast %34 : vector<1x144x128xbf16> to vector<144x128xbf16>
      %36 = vector.shape_cast %33 : vector<144x128xbf16> to vector<1x144x128xbf16>
      tpu.vector_store %arg7[%c0_21, %c0_22, %c0_23], %36 {strides = array<i32>} : memref<1x144x128xbf16, #tpu.memory_space<vmem>>, vector<1x144x128xbf16>,
    } else {
    }
    return
  }
  func.func @transform_0(%arg0: i32, %arg1: i32, %arg2: i32) -> (i32, i32, i32) {
    %c0_i32 = arith.constant 0 : i32
    return %arg0, %arg1, %arg2 : i32, i32, i32
  }
  func.func @transform_1(%arg0: i32, %arg1: i32, %arg2: i32) -> (i32, i32) {
    %c0_i32 = arith.constant 0 : i32
    %c0_i32_0 = arith.constant 0 : i32
    return %arg2, %c0_i32 : i32, i32
  }
  func.func @transform_2(%arg0: i32, %arg1: i32, %arg2: i32) -> (i32, i32) {
    %c0_i32 = arith.constant 0 : i32
    %c0_i32_0 = arith.constant 0 : i32
    %c0_i32_1 = arith.constant 0 : i32
    return %c0_i32, %c0_i32_0 : i32, i32
  }
  func.func @transform_3(%arg0: i32, %arg1: i32, %arg2: i32) -> (i32, i32) {
    %c0_i32 = arith.constant 0 : i32
    %c0_i32_0 = arith.constant 0 : i32
    %c0_i32_1 = arith.constant 0 : i32
    return %c0_i32, %c0_i32_0 : i32, i32
  }
  func.func @transform_4(%arg0: i32, %arg1: i32, %arg2: i32) -> (i32, i32, i32) {
    %c0_i32 = arith.constant 0 : i32
    %c0_i32_0 = arith.constant 0 : i32
    return %arg0, %arg1, %c0_i32 : i32, i32, i32
  }
}

module attributes {stable_mosaic.version = 11 : i64} {
  func.func @kernel(%arg0: i32, %arg1: i32, %arg2: i32, %arg3: memref<1x144x1152xbf16, #tpu.memory_space<vmem>>, %arg4: memref<1152x128xbf16, #tpu.memory_space<vmem>>, %arg5: memref<1x128xf32, #tpu.memory_space<vmem>>, %arg6: memref<1x128xf32, #tpu.memory_space<vmem>>, %arg7: memref<1x144x64xbf16, #tpu.memory_space<vmem>>, %arg8: memref<64x128xbf16, #tpu.memory_space<vmem>>, %arg9: memref<1x144x128xbf16, #tpu.memory_space<vmem>>, %arg10: memref<144x128xf32, #tpu.memory_space<vmem>>) attributes {dimension_semantics = [#tpu.dimension_semantics<parallel>, #tpu.dimension_semantics<parallel>, #tpu.dimension_semantics<arbitrary>], iteration_bounds = array<i64: 2, 1, 3>, scalar_prefetch = 0 : i64, scratch_operands = 1 : i64, tpu.core_type = #tpu.core_type<tc>, window_params = [{transform_indices = @transform_0, window_bounds = array<i64: 1, 144, 1152>}, {transform_indices = @transform_1, window_bounds = array<i64: 1152, 128>}, {pipeline_mode = #tpu.pipeline_mode<synchronous>, transform_indices = @transform_2, window_bounds = array<i64: 1, 128>}, {pipeline_mode = #tpu.pipeline_mode<synchronous>, transform_indices = @transform_3, window_bounds = array<i64: 1, 128>}, {transform_indices = @transform_4, window_bounds = array<i64: 1, 144, 64>}, {pipeline_mode = #tpu.pipeline_mode<synchronous>, transform_indices = @transform_5, window_bounds = array<i64: 64, 128>}, {transform_indices = @transform_6, window_bounds = array<i64: 1, 144, 128>}]} {
    %c0_i32 = arith.constant 0 : i32
    %0 = arith.cmpi eq, %arg2, %c0_i32 : i32
    %1 = arith.extui %0 : i1 to i32
    %c0_i32_0 = arith.constant 0 : i32
    %2 = arith.cmpi ne, %1, %c0_i32_0 : i32
    scf.if %2 {
      %cst_10 = arith.constant 0.000000e+00 : f32
      %13 = vector.broadcast %cst_10 : f32 to vector<144x128xf32>
      %c0_11 = arith.constant 0 : index
      %c0_12 = arith.constant 0 : index
      %14 = vector.load %arg10[%c0_11, %c0_12] : memref<144x128xf32, #tpu.memory_space<vmem>>, vector<144x128xf32>
      tpu.vector_store %arg10[%c0_11, %c0_12], %13 {strides = array<i32>} : memref<144x128xf32, #tpu.memory_space<vmem>>, vector<144x128xf32>,
    } else {
    }
    %c0 = arith.constant 0 : index
    %c0_1 = arith.constant 0 : index
    %3 = vector.load %arg10[%c0, %c0_1] : memref<144x128xf32, #tpu.memory_space<vmem>>, vector<144x128xf32>
    %c0_2 = arith.constant 0 : index
    %c0_3 = arith.constant 0 : index
    %c0_4 = arith.constant 0 : index
    %4 = vector.load %arg3[%c0_2, %c0_3, %c0_4] : memref<1x144x1152xbf16, #tpu.memory_space<vmem>>, vector<1x144x1152xbf16>
    %5 = vector.shape_cast %4 : vector<1x144x1152xbf16> to vector<144x1152xbf16>
    %c0_5 = arith.constant 0 : index
    %c0_6 = arith.constant 0 : index
    %6 = vector.load %arg4[%c0_5, %c0_6] : memref<1152x128xbf16, #tpu.memory_space<vmem>>, vector<1152x128xbf16>
    %cst = arith.constant dense<0.000000e+00> : vector<144x128xf32>
    %7 = tpu.matmul %5, %6, %cst {dimension_numbers = #tpu.dot_dimension_numbers<[1], [0], [0], [1], [0, 0, 1, 1], [], []>} : vector<144x1152xbf16>, vector<1152x128xbf16>, vector<144x128xf32> -> vector<144x128xf32>
    %8 = arith.addf %3, %7 : vector<144x128xf32>
    %c0_7 = arith.constant 0 : index
    %c0_8 = arith.constant 0 : index
    %9 = vector.load %arg10[%c0_7, %c0_8] : memref<144x128xf32, #tpu.memory_space<vmem>>, vector<144x128xf32>
    tpu.vector_store %arg10[%c0_7, %c0_8], %8 {strides = array<i32>} : memref<144x128xf32, #tpu.memory_space<vmem>>, vector<144x128xf32>,
    %c2_i32 = arith.constant 2 : i32
    %10 = arith.cmpi eq, %arg2, %c2_i32 : i32
    %11 = arith.extui %10 : i1 to i32
    %c0_i32_9 = arith.constant 0 : i32
    %12 = arith.cmpi ne, %11, %c0_i32_9 : i32
    scf.if %12 {
      %c0_10 = arith.constant 0 : index
      %c0_11 = arith.constant 0 : index
      %13 = vector.load %arg10[%c0_10, %c0_11] : memref<144x128xf32, #tpu.memory_space<vmem>>, vector<144x128xf32>
      %c0_12 = arith.constant 0 : index
      %c0_13 = arith.constant 0 : index
      %14 = vector.load %arg5[%c0_12, %c0_13] : memref<1x128xf32, #tpu.memory_space<vmem>>, vector<1x128xf32>
      %15 = vector.broadcast %14 : vector<1x128xf32> to vector<144x128xf32>
      %16 = arith.mulf %13, %15 : vector<144x128xf32>
      %c0_14 = arith.constant 0 : index
      %c0_15 = arith.constant 0 : index
      %17 = vector.load %arg6[%c0_14, %c0_15] : memref<1x128xf32, #tpu.memory_space<vmem>>, vector<1x128xf32>
      %18 = vector.broadcast %17 : vector<1x128xf32> to vector<144x128xf32>
      %19 = arith.addf %16, %18 : vector<144x128xf32>
      %c0_16 = arith.constant 0 : index
      %c0_17 = arith.constant 0 : index
      %c0_18 = arith.constant 0 : index
      %20 = vector.load %arg7[%c0_16, %c0_17, %c0_18] : memref<1x144x64xbf16, #tpu.memory_space<vmem>>, vector<1x144x64xbf16>
      %21 = vector.shape_cast %20 : vector<1x144x64xbf16> to vector<144x64xbf16>
      %c0_19 = arith.constant 0 : index
      %c0_20 = arith.constant 0 : index
      %22 = vector.load %arg8[%c0_19, %c0_20] : memref<64x128xbf16, #tpu.memory_space<vmem>>, vector<64x128xbf16>
      %cst_21 = arith.constant dense<0.000000e+00> : vector<144x128xf32>
      %23 = tpu.matmul %21, %22, %cst_21 {dimension_numbers = #tpu.dot_dimension_numbers<[1], [0], [0], [1], [0, 0, 1, 1], [], []>} : vector<144x64xbf16>, vector<64x128xbf16>, vector<144x128xf32> -> vector<144x128xf32>
      %24 = arith.addf %19, %23 : vector<144x128xf32>
      %cst_22 = arith.constant 5.000000e-01 : f32
      %25 = vector.broadcast %cst_22 : f32 to vector<144x128xf32>
      %26 = arith.mulf %25, %24 : vector<144x128xf32>
      %cst_23 = arith.constant 4.471500e-02 : f32
      %27 = vector.broadcast %cst_23 : f32 to vector<144x128xf32>
      %28 = arith.mulf %27, %24 : vector<144x128xf32>
      %29 = arith.mulf %28, %24 : vector<144x128xf32>
      %30 = arith.mulf %29, %24 : vector<144x128xf32>
      %31 = arith.addf %24, %30 : vector<144x128xf32>
      %cst_24 = arith.constant 0.797884583 : f32
      %32 = vector.broadcast %cst_24 : f32 to vector<144x128xf32>
      %33 = arith.mulf %32, %31 : vector<144x128xf32>
      %34 = math.tanh %33 : vector<144x128xf32>
      %cst_25 = arith.constant 1.000000e+00 : f32
      %35 = vector.broadcast %cst_25 : f32 to vector<144x128xf32>
      %36 = arith.addf %35, %34 : vector<144x128xf32>
      %37 = arith.mulf %26, %36 : vector<144x128xf32>
      %38 = arith.truncf %37 : vector<144x128xf32> to vector<144x128xbf16>
      %c0_26 = arith.constant 0 : index
      %c0_27 = arith.constant 0 : index
      %c0_28 = arith.constant 0 : index
      %39 = vector.load %arg9[%c0_26, %c0_27, %c0_28] : memref<1x144x128xbf16, #tpu.memory_space<vmem>>, vector<1x144x128xbf16>
      %40 = vector.shape_cast %39 : vector<1x144x128xbf16> to vector<144x128xbf16>
      %41 = vector.shape_cast %38 : vector<144x128xbf16> to vector<1x144x128xbf16>
      tpu.vector_store %arg9[%c0_26, %c0_27, %c0_28], %41 {strides = array<i32>} : memref<1x144x128xbf16, #tpu.memory_space<vmem>>, vector<1x144x128xbf16>,
    } else {
    }
    return
  }
  func.func @transform_0(%arg0: i32, %arg1: i32, %arg2: i32) -> (i32, i32, i32) {
    %c0_i32 = arith.constant 0 : i32
    return %arg0, %arg1, %arg2 : i32, i32, i32
  }
  func.func @transform_1(%arg0: i32, %arg1: i32, %arg2: i32) -> (i32, i32) {
    %c0_i32 = arith.constant 0 : i32
    %c0_i32_0 = arith.constant 0 : i32
    return %arg2, %c0_i32 : i32, i32
  }
  func.func @transform_2(%arg0: i32, %arg1: i32, %arg2: i32) -> (i32, i32) {
    %c0_i32 = arith.constant 0 : i32
    %c0_i32_0 = arith.constant 0 : i32
    %c0_i32_1 = arith.constant 0 : i32
    return %c0_i32, %c0_i32_0 : i32, i32
  }
  func.func @transform_3(%arg0: i32, %arg1: i32, %arg2: i32) -> (i32, i32) {
    %c0_i32 = arith.constant 0 : i32
    %c0_i32_0 = arith.constant 0 : i32
    %c0_i32_1 = arith.constant 0 : i32
    return %c0_i32, %c0_i32_0 : i32, i32
  }
  func.func @transform_4(%arg0: i32, %arg1: i32, %arg2: i32) -> (i32, i32, i32) {
    %c0_i32 = arith.constant 0 : i32
    %c0_i32_0 = arith.constant 0 : i32
    return %arg0, %arg1, %c0_i32 : i32, i32, i32
  }
  func.func @transform_5(%arg0: i32, %arg1: i32, %arg2: i32) -> (i32, i32) {
    %c0_i32 = arith.constant 0 : i32
    %c0_i32_0 = arith.constant 0 : i32
    %c0_i32_1 = arith.constant 0 : i32
    return %c0_i32, %c0_i32_0 : i32, i32
  }
  func.func @transform_6(%arg0: i32, %arg1: i32, %arg2: i32) -> (i32, i32, i32) {
    %c0_i32 = arith.constant 0 : i32
    %c0_i32_0 = arith.constant 0 : i32
    return %arg0, %arg1, %c0_i32 : i32, i32, i32
  }
}

module attributes {stable_mosaic.version = 11 : i64} {
  func.func @kernel(%arg0: i32, %arg1: i32, %arg2: memref<1x40x128xbf16, #tpu.memory_space<vmem>>, %arg3: memref<1x40x128xbf16, #tpu.memory_space<vmem>>, %arg4: memref<1x40x128xbf16, #tpu.memory_space<vmem>>, %arg5: memref<1x40x128xbf16, #tpu.memory_space<vmem>>, %arg6: memref<1x40x128xbf16, #tpu.memory_space<vmem>>) attributes {dimension_semantics = [#tpu.dimension_semantics<parallel>, #tpu.dimension_semantics<parallel>], iteration_bounds = array<i64: 2, 1>, scalar_prefetch = 0 : i64, scratch_operands = 0 : i64, tpu.core_type = #tpu.core_type<tc>, window_params = [{transform_indices = @transform_0, window_bounds = array<i64: 1, 40, 128>}, {transform_indices = @transform_1, window_bounds = array<i64: 1, 40, 128>}, {transform_indices = @transform_2, window_bounds = array<i64: 1, 40, 128>}, {transform_indices = @transform_3, window_bounds = array<i64: 1, 40, 128>}, {transform_indices = @transform_4, window_bounds = array<i64: 1, 40, 128>}]} {
    %c0 = arith.constant 0 : index
    %c0_0 = arith.constant 0 : index
    %c0_1 = arith.constant 0 : index
    %0 = vector.load %arg2[%c0, %c0_0, %c0_1] : memref<1x40x128xbf16, #tpu.memory_space<vmem>>, vector<1x40x128xbf16>
    %1 = vector.shape_cast %0 : vector<1x40x128xbf16> to vector<40x128xbf16>
    %c0_2 = arith.constant 0 : index
    %c0_3 = arith.constant 0 : index
    %c0_4 = arith.constant 0 : index
    %2 = vector.load %arg3[%c0_2, %c0_3, %c0_4] : memref<1x40x128xbf16, #tpu.memory_space<vmem>>, vector<1x40x128xbf16>
    %3 = vector.shape_cast %2 : vector<1x40x128xbf16> to vector<40x128xbf16>
    %4 = arith.maximumf %1, %3 : vector<40x128xbf16>
    %c0_5 = arith.constant 0 : index
    %c0_6 = arith.constant 0 : index
    %c0_7 = arith.constant 0 : index
    %5 = vector.load %arg4[%c0_5, %c0_6, %c0_7] : memref<1x40x128xbf16, #tpu.memory_space<vmem>>, vector<1x40x128xbf16>
    %6 = vector.shape_cast %5 : vector<1x40x128xbf16> to vector<40x128xbf16>
    %c0_8 = arith.constant 0 : index
    %c0_9 = arith.constant 0 : index
    %c0_10 = arith.constant 0 : index
    %7 = vector.load %arg5[%c0_8, %c0_9, %c0_10] : memref<1x40x128xbf16, #tpu.memory_space<vmem>>, vector<1x40x128xbf16>
    %8 = vector.shape_cast %7 : vector<1x40x128xbf16> to vector<40x128xbf16>
    %9 = arith.maximumf %6, %8 : vector<40x128xbf16>
    %10 = arith.maximumf %4, %9 : vector<40x128xbf16>
    %c0_11 = arith.constant 0 : index
    %c0_12 = arith.constant 0 : index
    %c0_13 = arith.constant 0 : index
    %11 = vector.load %arg6[%c0_11, %c0_12, %c0_13] : memref<1x40x128xbf16, #tpu.memory_space<vmem>>, vector<1x40x128xbf16>
    %12 = vector.shape_cast %11 : vector<1x40x128xbf16> to vector<40x128xbf16>
    %13 = vector.shape_cast %10 : vector<40x128xbf16> to vector<1x40x128xbf16>
    tpu.vector_store %arg6[%c0_11, %c0_12, %c0_13], %13 {strides = array<i32>} : memref<1x40x128xbf16, #tpu.memory_space<vmem>>, vector<1x40x128xbf16>,
    return
  }
  func.func @transform_0(%arg0: i32, %arg1: i32) -> (i32, i32, i32) {
    %c0_i32 = arith.constant 0 : i32
    %c0_i32_0 = arith.constant 0 : i32
    return %arg0, %arg1, %c0_i32 : i32, i32, i32
  }
  func.func @transform_1(%arg0: i32, %arg1: i32) -> (i32, i32, i32) {
    %c0_i32 = arith.constant 0 : i32
    %c0_i32_0 = arith.constant 0 : i32
    return %arg0, %arg1, %c0_i32 : i32, i32, i32
  }
  func.func @transform_2(%arg0: i32, %arg1: i32) -> (i32, i32, i32) {
    %c0_i32 = arith.constant 0 : i32
    %c0_i32_0 = arith.constant 0 : i32
    return %arg0, %arg1, %c0_i32 : i32, i32, i32
  }
  func.func @transform_3(%arg0: i32, %arg1: i32) -> (i32, i32, i32) {
    %c0_i32 = arith.constant 0 : i32
    %c0_i32_0 = arith.constant 0 : i32
    return %arg0, %arg1, %c0_i32 : i32, i32, i32
  }
  func.func @transform_4(%arg0: i32, %arg1: i32) -> (i32, i32, i32) {
    %c0_i32 = arith.constant 0 : i32
    %c0_i32_0 = arith.constant 0 : i32
    return %arg0, %arg1, %c0_i32 : i32, i32, i32
  }
}

module attributes {stable_mosaic.version = 11 : i64} {
  func.func @kernel(%arg0: i32, %arg1: i32, %arg2: i32, %arg3: memref<1x40x1152xbf16, #tpu.memory_space<vmem>>, %arg4: memref<1152x256xbf16, #tpu.memory_space<vmem>>, %arg5: memref<1x256xf32, #tpu.memory_space<vmem>>, %arg6: memref<1x256xf32, #tpu.memory_space<vmem>>, %arg7: memref<1x40x256xbf16, #tpu.memory_space<vmem>>, %arg8: memref<40x256xf32, #tpu.memory_space<vmem>>) attributes {dimension_semantics = [#tpu.dimension_semantics<parallel>, #tpu.dimension_semantics<parallel>, #tpu.dimension_semantics<arbitrary>], iteration_bounds = array<i64: 2, 1, 3>, scalar_prefetch = 0 : i64, scratch_operands = 1 : i64, tpu.core_type = #tpu.core_type<tc>, window_params = [{transform_indices = @transform_0, window_bounds = array<i64: 1, 40, 1152>}, {transform_indices = @transform_1, window_bounds = array<i64: 1152, 256>}, {pipeline_mode = #tpu.pipeline_mode<synchronous>, transform_indices = @transform_2, window_bounds = array<i64: 1, 256>}, {pipeline_mode = #tpu.pipeline_mode<synchronous>, transform_indices = @transform_3, window_bounds = array<i64: 1, 256>}, {transform_indices = @transform_4, window_bounds = array<i64: 1, 40, 256>}]} {
    %c0_i32 = arith.constant 0 : i32
    %0 = arith.cmpi eq, %arg2, %c0_i32 : i32
    %1 = arith.extui %0 : i1 to i32
    %c0_i32_0 = arith.constant 0 : i32
    %2 = arith.cmpi ne, %1, %c0_i32_0 : i32
    scf.if %2 {
      %cst_10 = arith.constant 0.000000e+00 : f32
      %13 = vector.broadcast %cst_10 : f32 to vector<40x256xf32>
      %c0_11 = arith.constant 0 : index
      %c0_12 = arith.constant 0 : index
      %14 = vector.load %arg8[%c0_11, %c0_12] : memref<40x256xf32, #tpu.memory_space<vmem>>, vector<40x256xf32>
      tpu.vector_store %arg8[%c0_11, %c0_12], %13 {strides = array<i32>} : memref<40x256xf32, #tpu.memory_space<vmem>>, vector<40x256xf32>,
    } else {
    }
    %c0 = arith.constant 0 : index
    %c0_1 = arith.constant 0 : index
    %3 = vector.load %arg8[%c0, %c0_1] : memref<40x256xf32, #tpu.memory_space<vmem>>, vector<40x256xf32>
    %c0_2 = arith.constant 0 : index
    %c0_3 = arith.constant 0 : index
    %c0_4 = arith.constant 0 : index
    %4 = vector.load %arg3[%c0_2, %c0_3, %c0_4] : memref<1x40x1152xbf16, #tpu.memory_space<vmem>>, vector<1x40x1152xbf16>
    %5 = vector.shape_cast %4 : vector<1x40x1152xbf16> to vector<40x1152xbf16>
    %c0_5 = arith.constant 0 : index
    %c0_6 = arith.constant 0 : index
    %6 = vector.load %arg4[%c0_5, %c0_6] : memref<1152x256xbf16, #tpu.memory_space<vmem>>, vector<1152x256xbf16>
    %cst = arith.constant dense<0.000000e+00> : vector<40x256xf32>
    %7 = tpu.matmul %5, %6, %cst {dimension_numbers = #tpu.dot_dimension_numbers<[1], [0], [0], [1], [0, 0, 1, 1], [], []>} : vector<40x1152xbf16>, vector<1152x256xbf16>, vector<40x256xf32> -> vector<40x256xf32>
    %8 = arith.addf %3, %7 : vector<40x256xf32>
    %c0_7 = arith.constant 0 : index
    %c0_8 = arith.constant 0 : index
    %9 = vector.load %arg8[%c0_7, %c0_8] : memref<40x256xf32, #tpu.memory_space<vmem>>, vector<40x256xf32>
    tpu.vector_store %arg8[%c0_7, %c0_8], %8 {strides = array<i32>} : memref<40x256xf32, #tpu.memory_space<vmem>>, vector<40x256xf32>,
    %c2_i32 = arith.constant 2 : i32
    %10 = arith.cmpi eq, %arg2, %c2_i32 : i32
    %11 = arith.extui %10 : i1 to i32
    %c0_i32_9 = arith.constant 0 : i32
    %12 = arith.cmpi ne, %11, %c0_i32_9 : i32
    scf.if %12 {
      %c0_10 = arith.constant 0 : index
      %c0_11 = arith.constant 0 : index
      %13 = vector.load %arg8[%c0_10, %c0_11] : memref<40x256xf32, #tpu.memory_space<vmem>>, vector<40x256xf32>
      %c0_12 = arith.constant 0 : index
      %c0_13 = arith.constant 0 : index
      %14 = vector.load %arg5[%c0_12, %c0_13] : memref<1x256xf32, #tpu.memory_space<vmem>>, vector<1x256xf32>
      %15 = vector.broadcast %14 : vector<1x256xf32> to vector<40x256xf32>
      %16 = arith.mulf %13, %15 : vector<40x256xf32>
      %c0_14 = arith.constant 0 : index
      %c0_15 = arith.constant 0 : index
      %17 = vector.load %arg6[%c0_14, %c0_15] : memref<1x256xf32, #tpu.memory_space<vmem>>, vector<1x256xf32>
      %18 = vector.broadcast %17 : vector<1x256xf32> to vector<40x256xf32>
      %19 = arith.addf %16, %18 : vector<40x256xf32>
      %cst_16 = arith.constant 5.000000e-01 : f32
      %20 = vector.broadcast %cst_16 : f32 to vector<40x256xf32>
      %21 = arith.mulf %20, %19 : vector<40x256xf32>
      %cst_17 = arith.constant 4.471500e-02 : f32
      %22 = vector.broadcast %cst_17 : f32 to vector<40x256xf32>
      %23 = arith.mulf %22, %19 : vector<40x256xf32>
      %24 = arith.mulf %23, %19 : vector<40x256xf32>
      %25 = arith.mulf %24, %19 : vector<40x256xf32>
      %26 = arith.addf %19, %25 : vector<40x256xf32>
      %cst_18 = arith.constant 0.797884583 : f32
      %27 = vector.broadcast %cst_18 : f32 to vector<40x256xf32>
      %28 = arith.mulf %27, %26 : vector<40x256xf32>
      %29 = math.tanh %28 : vector<40x256xf32>
      %cst_19 = arith.constant 1.000000e+00 : f32
      %30 = vector.broadcast %cst_19 : f32 to vector<40x256xf32>
      %31 = arith.addf %30, %29 : vector<40x256xf32>
      %32 = arith.mulf %21, %31 : vector<40x256xf32>
      %33 = arith.truncf %32 : vector<40x256xf32> to vector<40x256xbf16>
      %c0_20 = arith.constant 0 : index
      %c0_21 = arith.constant 0 : index
      %c0_22 = arith.constant 0 : index
      %34 = vector.load %arg7[%c0_20, %c0_21, %c0_22] : memref<1x40x256xbf16, #tpu.memory_space<vmem>>, vector<1x40x256xbf16>
      %35 = vector.shape_cast %34 : vector<1x40x256xbf16> to vector<40x256xbf16>
      %36 = vector.shape_cast %33 : vector<40x256xbf16> to vector<1x40x256xbf16>
      tpu.vector_store %arg7[%c0_20, %c0_21, %c0_22], %36 {strides = array<i32>} : memref<1x40x256xbf16, #tpu.memory_space<vmem>>, vector<1x40x256xbf16>,
    } else {
    }
    return
  }
  func.func @transform_0(%arg0: i32, %arg1: i32, %arg2: i32) -> (i32, i32, i32) {
    %c0_i32 = arith.constant 0 : i32
    return %arg0, %arg1, %arg2 : i32, i32, i32
  }
  func.func @transform_1(%arg0: i32, %arg1: i32, %arg2: i32) -> (i32, i32) {
    %c0_i32 = arith.constant 0 : i32
    %c0_i32_0 = arith.constant 0 : i32
    return %arg2, %c0_i32 : i32, i32
  }
  func.func @transform_2(%arg0: i32, %arg1: i32, %arg2: i32) -> (i32, i32) {
    %c0_i32 = arith.constant 0 : i32
    %c0_i32_0 = arith.constant 0 : i32
    %c0_i32_1 = arith.constant 0 : i32
    return %c0_i32, %c0_i32_0 : i32, i32
  }
  func.func @transform_3(%arg0: i32, %arg1: i32, %arg2: i32) -> (i32, i32) {
    %c0_i32 = arith.constant 0 : i32
    %c0_i32_0 = arith.constant 0 : i32
    %c0_i32_1 = arith.constant 0 : i32
    return %c0_i32, %c0_i32_0 : i32, i32
  }
  func.func @transform_4(%arg0: i32, %arg1: i32, %arg2: i32) -> (i32, i32, i32) {
    %c0_i32 = arith.constant 0 : i32
    %c0_i32_0 = arith.constant 0 : i32
    return %arg0, %arg1, %c0_i32 : i32, i32, i32
  }
}

module attributes {stable_mosaic.version = 11 : i64} {
  func.func @kernel(%arg0: i32, %arg1: i32, %arg2: i32, %arg3: memref<1x40x1152xbf16, #tpu.memory_space<vmem>>, %arg4: memref<1152x256xbf16, #tpu.memory_space<vmem>>, %arg5: memref<1x256xf32, #tpu.memory_space<vmem>>, %arg6: memref<1x256xf32, #tpu.memory_space<vmem>>, %arg7: memref<1x40x128xbf16, #tpu.memory_space<vmem>>, %arg8: memref<128x256xbf16, #tpu.memory_space<vmem>>, %arg9: memref<1x40x256xbf16, #tpu.memory_space<vmem>>, %arg10: memref<40x256xf32, #tpu.memory_space<vmem>>) attributes {dimension_semantics = [#tpu.dimension_semantics<parallel>, #tpu.dimension_semantics<parallel>, #tpu.dimension_semantics<arbitrary>], iteration_bounds = array<i64: 2, 1, 6>, scalar_prefetch = 0 : i64, scratch_operands = 1 : i64, tpu.core_type = #tpu.core_type<tc>, window_params = [{transform_indices = @transform_0, window_bounds = array<i64: 1, 40, 1152>}, {transform_indices = @transform_1, window_bounds = array<i64: 1152, 256>}, {pipeline_mode = #tpu.pipeline_mode<synchronous>, transform_indices = @transform_2, window_bounds = array<i64: 1, 256>}, {pipeline_mode = #tpu.pipeline_mode<synchronous>, transform_indices = @transform_3, window_bounds = array<i64: 1, 256>}, {transform_indices = @transform_4, window_bounds = array<i64: 1, 40, 128>}, {pipeline_mode = #tpu.pipeline_mode<synchronous>, transform_indices = @transform_5, window_bounds = array<i64: 128, 256>}, {transform_indices = @transform_6, window_bounds = array<i64: 1, 40, 256>}]} {
    %c0_i32 = arith.constant 0 : i32
    %0 = arith.cmpi eq, %arg2, %c0_i32 : i32
    %1 = arith.extui %0 : i1 to i32
    %c0_i32_0 = arith.constant 0 : i32
    %2 = arith.cmpi ne, %1, %c0_i32_0 : i32
    scf.if %2 {
      %cst_10 = arith.constant 0.000000e+00 : f32
      %13 = vector.broadcast %cst_10 : f32 to vector<40x256xf32>
      %c0_11 = arith.constant 0 : index
      %c0_12 = arith.constant 0 : index
      %14 = vector.load %arg10[%c0_11, %c0_12] : memref<40x256xf32, #tpu.memory_space<vmem>>, vector<40x256xf32>
      tpu.vector_store %arg10[%c0_11, %c0_12], %13 {strides = array<i32>} : memref<40x256xf32, #tpu.memory_space<vmem>>, vector<40x256xf32>,
    } else {
    }
    %c0 = arith.constant 0 : index
    %c0_1 = arith.constant 0 : index
    %3 = vector.load %arg10[%c0, %c0_1] : memref<40x256xf32, #tpu.memory_space<vmem>>, vector<40x256xf32>
    %c0_2 = arith.constant 0 : index
    %c0_3 = arith.constant 0 : index
    %c0_4 = arith.constant 0 : index
    %4 = vector.load %arg3[%c0_2, %c0_3, %c0_4] : memref<1x40x1152xbf16, #tpu.memory_space<vmem>>, vector<1x40x1152xbf16>
    %5 = vector.shape_cast %4 : vector<1x40x1152xbf16> to vector<40x1152xbf16>
    %c0_5 = arith.constant 0 : index
    %c0_6 = arith.constant 0 : index
    %6 = vector.load %arg4[%c0_5, %c0_6] : memref<1152x256xbf16, #tpu.memory_space<vmem>>, vector<1152x256xbf16>
    %cst = arith.constant dense<0.000000e+00> : vector<40x256xf32>
    %7 = tpu.matmul %5, %6, %cst {dimension_numbers = #tpu.dot_dimension_numbers<[1], [0], [0], [1], [0, 0, 1, 1], [], []>} : vector<40x1152xbf16>, vector<1152x256xbf16>, vector<40x256xf32> -> vector<40x256xf32>
    %8 = arith.addf %3, %7 : vector<40x256xf32>
    %c0_7 = arith.constant 0 : index
    %c0_8 = arith.constant 0 : index
    %9 = vector.load %arg10[%c0_7, %c0_8] : memref<40x256xf32, #tpu.memory_space<vmem>>, vector<40x256xf32>
    tpu.vector_store %arg10[%c0_7, %c0_8], %8 {strides = array<i32>} : memref<40x256xf32, #tpu.memory_space<vmem>>, vector<40x256xf32>,
    %c5_i32 = arith.constant 5 : i32
    %10 = arith.cmpi eq, %arg2, %c5_i32 : i32
    %11 = arith.extui %10 : i1 to i32
    %c0_i32_9 = arith.constant 0 : i32
    %12 = arith.cmpi ne, %11, %c0_i32_9 : i32
    scf.if %12 {
      %c0_10 = arith.constant 0 : index
      %c0_11 = arith.constant 0 : index
      %13 = vector.load %arg10[%c0_10, %c0_11] : memref<40x256xf32, #tpu.memory_space<vmem>>, vector<40x256xf32>
      %c0_12 = arith.constant 0 : index
      %c0_13 = arith.constant 0 : index
      %14 = vector.load %arg5[%c0_12, %c0_13] : memref<1x256xf32, #tpu.memory_space<vmem>>, vector<1x256xf32>
      %15 = vector.broadcast %14 : vector<1x256xf32> to vector<40x256xf32>
      %16 = arith.mulf %13, %15 : vector<40x256xf32>
      %c0_14 = arith.constant 0 : index
      %c0_15 = arith.constant 0 : index
      %17 = vector.load %arg6[%c0_14, %c0_15] : memref<1x256xf32, #tpu.memory_space<vmem>>, vector<1x256xf32>
      %18 = vector.broadcast %17 : vector<1x256xf32> to vector<40x256xf32>
      %19 = arith.addf %16, %18 : vector<40x256xf32>
      %c0_16 = arith.constant 0 : index
      %c0_17 = arith.constant 0 : index
      %c0_18 = arith.constant 0 : index
      %20 = vector.load %arg7[%c0_16, %c0_17, %c0_18] : memref<1x40x128xbf16, #tpu.memory_space<vmem>>, vector<1x40x128xbf16>
      %21 = vector.shape_cast %20 : vector<1x40x128xbf16> to vector<40x128xbf16>
      %c0_19 = arith.constant 0 : index
      %c0_20 = arith.constant 0 : index
      %22 = vector.load %arg8[%c0_19, %c0_20] : memref<128x256xbf16, #tpu.memory_space<vmem>>, vector<128x256xbf16>
      %cst_21 = arith.constant dense<0.000000e+00> : vector<40x256xf32>
      %23 = tpu.matmul %21, %22, %cst_21 {dimension_numbers = #tpu.dot_dimension_numbers<[1], [0], [0], [1], [0, 0, 1, 1], [], []>} : vector<40x128xbf16>, vector<128x256xbf16>, vector<40x256xf32> -> vector<40x256xf32>
      %24 = arith.addf %19, %23 : vector<40x256xf32>
      %cst_22 = arith.constant 5.000000e-01 : f32
      %25 = vector.broadcast %cst_22 : f32 to vector<40x256xf32>
      %26 = arith.mulf %25, %24 : vector<40x256xf32>
      %cst_23 = arith.constant 4.471500e-02 : f32
      %27 = vector.broadcast %cst_23 : f32 to vector<40x256xf32>
      %28 = arith.mulf %27, %24 : vector<40x256xf32>
      %29 = arith.mulf %28, %24 : vector<40x256xf32>
      %30 = arith.mulf %29, %24 : vector<40x256xf32>
      %31 = arith.addf %24, %30 : vector<40x256xf32>
      %cst_24 = arith.constant 0.797884583 : f32
      %32 = vector.broadcast %cst_24 : f32 to vector<40x256xf32>
      %33 = arith.mulf %32, %31 : vector<40x256xf32>
      %34 = math.tanh %33 : vector<40x256xf32>
      %cst_25 = arith.constant 1.000000e+00 : f32
      %35 = vector.broadcast %cst_25 : f32 to vector<40x256xf32>
      %36 = arith.addf %35, %34 : vector<40x256xf32>
      %37 = arith.mulf %26, %36 : vector<40x256xf32>
      %38 = arith.truncf %37 : vector<40x256xf32> to vector<40x256xbf16>
      %c0_26 = arith.constant 0 : index
      %c0_27 = arith.constant 0 : index
      %c0_28 = arith.constant 0 : index
      %39 = vector.load %arg9[%c0_26, %c0_27, %c0_28] : memref<1x40x256xbf16, #tpu.memory_space<vmem>>, vector<1x40x256xbf16>
      %40 = vector.shape_cast %39 : vector<1x40x256xbf16> to vector<40x256xbf16>
      %41 = vector.shape_cast %38 : vector<40x256xbf16> to vector<1x40x256xbf16>
      tpu.vector_store %arg9[%c0_26, %c0_27, %c0_28], %41 {strides = array<i32>} : memref<1x40x256xbf16, #tpu.memory_space<vmem>>, vector<1x40x256xbf16>,
    } else {
    }
    return
  }
  func.func @transform_0(%arg0: i32, %arg1: i32, %arg2: i32) -> (i32, i32, i32) {
    %c0_i32 = arith.constant 0 : i32
    return %arg0, %arg1, %arg2 : i32, i32, i32
  }
  func.func @transform_1(%arg0: i32, %arg1: i32, %arg2: i32) -> (i32, i32) {
    %c0_i32 = arith.constant 0 : i32
    %c0_i32_0 = arith.constant 0 : i32
    return %arg2, %c0_i32 : i32, i32
  }
  func.func @transform_2(%arg0: i32, %arg1: i32, %arg2: i32) -> (i32, i32) {
    %c0_i32 = arith.constant 0 : i32
    %c0_i32_0 = arith.constant 0 : i32
    %c0_i32_1 = arith.constant 0 : i32
    return %c0_i32, %c0_i32_0 : i32, i32
  }
  func.func @transform_3(%arg0: i32, %arg1: i32, %arg2: i32) -> (i32, i32) {
    %c0_i32 = arith.constant 0 : i32
    %c0_i32_0 = arith.constant 0 : i32
    %c0_i32_1 = arith.constant 0 : i32
    return %c0_i32, %c0_i32_0 : i32, i32
  }
  func.func @transform_4(%arg0: i32, %arg1: i32, %arg2: i32) -> (i32, i32, i32) {
    %c0_i32 = arith.constant 0 : i32
    %c0_i32_0 = arith.constant 0 : i32
    return %arg0, %arg1, %c0_i32 : i32, i32, i32
  }
  func.func @transform_5(%arg0: i32, %arg1: i32, %arg2: i32) -> (i32, i32) {
    %c0_i32 = arith.constant 0 : i32
    %c0_i32_0 = arith.constant 0 : i32
    %c0_i32_1 = arith.constant 0 : i32
    return %c0_i32, %c0_i32_0 : i32, i32
  }
  func.func @transform_6(%arg0: i32, %arg1: i32, %arg2: i32) -> (i32, i32, i32) {
    %c0_i32 = arith.constant 0 : i32
    %c0_i32_0 = arith.constant 0 : i32
    return %arg0, %arg1, %c0_i32 : i32, i32, i32
  }
}

module attributes {stable_mosaic.version = 11 : i64} {
  func.func @kern_a(%arg0: i32, %arg1: i32, %arg2: memref<144x12xbf16, #tpu.memory_space<vmem>>, %arg3: memref<1x12x768xbf16, #tpu.memory_space<vmem>>, %arg4: memref<1x144x768xf32, #tpu.memory_space<vmem>>) attributes {dimension_semantics = [#tpu.dimension_semantics<parallel>, #tpu.dimension_semantics<parallel>], iteration_bounds = array<i64: 2, 1>, scalar_prefetch = 0 : i64, scratch_operands = 0 : i64, tpu.core_type = #tpu.core_type<tc>, window_params = [{pipeline_mode = #tpu.pipeline_mode<synchronous>, transform_indices = @transform_0, window_bounds = array<i64: 144, 12>}, {transform_indices = @transform_1, window_bounds = array<i64: 1, 12, 768>}, {transform_indices = @transform_2, window_bounds = array<i64: 1, 144, 768>}]} {
    %c0 = arith.constant 0 : index
    %c0_0 = arith.constant 0 : index
    %0 = vector.load %arg2[%c0, %c0_0] : memref<144x12xbf16, #tpu.memory_space<vmem>>, vector<144x12xbf16>
    %c0_1 = arith.constant 0 : index
    %c0_2 = arith.constant 0 : index
    %c0_3 = arith.constant 0 : index
    %1 = vector.load %arg3[%c0_1, %c0_2, %c0_3] : memref<1x12x768xbf16, #tpu.memory_space<vmem>>, vector<1x12x768xbf16>
    %2 = vector.shape_cast %1 : vector<1x12x768xbf16> to vector<12x768xbf16>
    %cst = arith.constant dense<0.000000e+00> : vector<144x768xf32>
    %3 = tpu.matmul %0, %2, %cst {dimension_numbers = #tpu.dot_dimension_numbers<[1], [0], [0], [1], [0, 0, 1, 1], [], []>} : vector<144x12xbf16>, vector<12x768xbf16>, vector<144x768xf32> -> vector<144x768xf32>
    %c0_4 = arith.constant 0 : index
    %c0_5 = arith.constant 0 : index
    %c0_6 = arith.constant 0 : index
    %4 = vector.load %arg4[%c0_4, %c0_5, %c0_6] : memref<1x144x768xf32, #tpu.memory_space<vmem>>, vector<1x144x768xf32>
    %5 = vector.shape_cast %4 : vector<1x144x768xf32> to vector<144x768xf32>
    %6 = vector.shape_cast %3 : vector<144x768xf32> to vector<1x144x768xf32>
    tpu.vector_store %arg4[%c0_4, %c0_5, %c0_6], %6 {strides = array<i32>} : memref<1x144x768xf32, #tpu.memory_space<vmem>>, vector<1x144x768xf32>,
    return
  }
  func.func @transform_0(%arg0: i32, %arg1: i32) -> (i32, i32) {
    %c0_i32 = arith.constant 0 : i32
    %c0_i32_0 = arith.constant 0 : i32
    %c0_i32_1 = arith.constant 0 : i32
    return %c0_i32, %c0_i32_0 : i32, i32
  }
  func.func @transform_1(%arg0: i32, %arg1: i32) -> (i32, i32, i32) {
    %c0_i32 = arith.constant 0 : i32
    %c0_i32_0 = arith.constant 0 : i32
    return %arg0, %c0_i32, %arg1 : i32, i32, i32
  }
  func.func @transform_2(%arg0: i32, %arg1: i32) -> (i32, i32, i32) {
    %c0_i32 = arith.constant 0 : i32
    %c0_i32_0 = arith.constant 0 : i32
    return %arg0, %c0_i32, %arg1 : i32, i32, i32
  }
}

module attributes {stable_mosaic.version = 11 : i64} {
  func.func @kern_b(%arg0: i32, %arg1: i32, %arg2: memref<20x3xf32, #tpu.memory_space<vmem>>, %arg3: memref<1x16x3x256xf32, #tpu.memory_space<vmem>>, %arg4: memref<1x16x20x256xf32, #tpu.memory_space<vmem>>) attributes {dimension_semantics = [#tpu.dimension_semantics<parallel>, #tpu.dimension_semantics<parallel>], iteration_bounds = array<i64: 2, 9>, scalar_prefetch = 0 : i64, scratch_operands = 0 : i64, tpu.core_type = #tpu.core_type<tc>, window_params = [{pipeline_mode = #tpu.pipeline_mode<synchronous>, transform_indices = @transform_0, window_bounds = array<i64: 20, 3>}, {transform_indices = @transform_1, window_bounds = array<i64: 1, 16, 3, 256>}, {transform_indices = @transform_2, window_bounds = array<i64: 1, 16, 20, 256>}]} {
    %c0 = arith.constant 0 : index
    %c0_0 = arith.constant 0 : index
    %0 = vector.load %arg2[%c0, %c0_0] : memref<20x3xf32, #tpu.memory_space<vmem>>, vector<20x3xf32>
    %c0_1 = arith.constant 0 : index
    %c0_2 = arith.constant 0 : index
    %c0_3 = arith.constant 0 : index
    %c0_4 = arith.constant 0 : index
    %1 = vector.load %arg3[%c0_1, %c0_2, %c0_3, %c0_4] : memref<1x16x3x256xf32, #tpu.memory_space<vmem>>, vector<1x1x3x256xf32>
    %2 = vector.shape_cast %1 : vector<1x1x3x256xf32> to vector<3x256xf32>
    %cst = arith.constant dense<0.000000e+00> : vector<20x256xf32>
    %3 = tpu.matmul %0, %2, %cst {dimension_numbers = #tpu.dot_dimension_numbers<[1], [0], [0], [1], [0, 0, 1, 1], [], []>} : vector<20x3xf32>, vector<3x256xf32>, vector<20x256xf32> -> vector<20x256xf32>
    %c0_5 = arith.constant 0 : index
    %c0_6 = arith.constant 0 : index
    %c0_7 = arith.constant 0 : index
    %c0_8 = arith.constant 0 : index
    %4 = vector.load %arg4[%c0_5, %c0_6, %c0_7, %c0_8] : memref<1x16x20x256xf32, #tpu.memory_space<vmem>>, vector<1x1x20x256xf32>
    %5 = vector.shape_cast %4 : vector<1x1x20x256xf32> to vector<20x256xf32>
    %6 = vector.shape_cast %3 : vector<20x256xf32> to vector<1x1x20x256xf32>
    tpu.vector_store %arg4[%c0_5, %c0_6, %c0_7, %c0_8], %6 {strides = array<i32>} : memref<1x16x20x256xf32, #tpu.memory_space<vmem>>, vector<1x1x20x256xf32>,
    %c0_9 = arith.constant 0 : index
    %c0_10 = arith.constant 0 : index
    %7 = vector.load %arg2[%c0_9, %c0_10] : memref<20x3xf32, #tpu.memory_space<vmem>>, vector<20x3xf32>
    %c0_11 = arith.constant 0 : index
    %c1 = arith.constant 1 : index
    %c0_12 = arith.constant 0 : index
    %c0_13 = arith.constant 0 : index
    %8 = vector.load %arg3[%c0_11, %c1, %c0_12, %c0_13] : memref<1x16x3x256xf32, #tpu.memory_space<vmem>>, vector<1x1x3x256xf32>
    %9 = vector.shape_cast %8 : vector<1x1x3x256xf32> to vector<3x256xf32>
    %cst_14 = arith.constant dense<0.000000e+00> : vector<20x256xf32>
    %10 = tpu.matmul %7, %9, %cst_14 {dimension_numbers = #tpu.dot_dimension_numbers<[1], [0], [0], [1], [0, 0, 1, 1], [], []>} : vector<20x3xf32>, vector<3x256xf32>, vector<20x256xf32> -> vector<20x256xf32>
    %c0_15 = arith.constant 0 : index
    %c1_16 = arith.constant 1 : index
    %c0_17 = arith.constant 0 : index
    %c0_18 = arith.constant 0 : index
    %11 = vector.load %arg4[%c0_15, %c1_16, %c0_17, %c0_18] : memref<1x16x20x256xf32, #tpu.memory_space<vmem>>, vector<1x1x20x256xf32>
    %12 = vector.shape_cast %11 : vector<1x1x20x256xf32> to vector<20x256xf32>
    %13 = vector.shape_cast %10 : vector<20x256xf32> to vector<1x1x20x256xf32>
    tpu.vector_store %arg4[%c0_15, %c1_16, %c0_17, %c0_18], %13 {strides = array<i32>} : memref<1x16x20x256xf32, #tpu.memory_space<vmem>>, vector<1x1x20x256xf32>,
    %c0_19 = arith.constant 0 : index
    %c0_20 = arith.constant 0 : index
    %14 = vector.load %arg2[%c0_19, %c0_20] : memref<20x3xf32, #tpu.memory_space<vmem>>, vector<20x3xf32>
    %c0_21 = arith.constant 0 : index
    %c2 = arith.constant 2 : index
    %c0_22 = arith.constant 0 : index
    %c0_23 = arith.constant 0 : index
    %15 = vector.load %arg3[%c0_21, %c2, %c0_22, %c0_23] : memref<1x16x3x256xf32, #tpu.memory_space<vmem>>, vector<1x1x3x256xf32>
    %16 = vector.shape_cast %15 : vector<1x1x3x256xf32> to vector<3x256xf32>
    %cst_24 = arith.constant dense<0.000000e+00> : vector<20x256xf32>
    %17 = tpu.matmul %14, %16, %cst_24 {dimension_numbers = #tpu.dot_dimension_numbers<[1], [0], [0], [1], [0, 0, 1, 1], [], []>} : vector<20x3xf32>, vector<3x256xf32>, vector<20x256xf32> -> vector<20x256xf32>
    %c0_25 = arith.constant 0 : index
    %c2_26 = arith.constant 2 : index
    %c0_27 = arith.constant 0 : index
    %c0_28 = arith.constant 0 : index
    %18 = vector.load %arg4[%c0_25, %c2_26, %c0_27, %c0_28] : memref<1x16x20x256xf32, #tpu.memory_space<vmem>>, vector<1x1x20x256xf32>
    %19 = vector.shape_cast %18 : vector<1x1x20x256xf32> to vector<20x256xf32>
    %20 = vector.shape_cast %17 : vector<20x256xf32> to vector<1x1x20x256xf32>
    tpu.vector_store %arg4[%c0_25, %c2_26, %c0_27, %c0_28], %20 {strides = array<i32>} : memref<1x16x20x256xf32, #tpu.memory_space<vmem>>, vector<1x1x20x256xf32>,
    %c0_29 = arith.constant 0 : index
    %c0_30 = arith.constant 0 : index
    %21 = vector.load %arg2[%c0_29, %c0_30] : memref<20x3xf32, #tpu.memory_space<vmem>>, vector<20x3xf32>
    %c0_31 = arith.constant 0 : index
    %c3 = arith.constant 3 : index
    %c0_32 = arith.constant 0 : index
    %c0_33 = arith.constant 0 : index
    %22 = vector.load %arg3[%c0_31, %c3, %c0_32, %c0_33] : memref<1x16x3x256xf32, #tpu.memory_space<vmem>>, vector<1x1x3x256xf32>
    %23 = vector.shape_cast %22 : vector<1x1x3x256xf32> to vector<3x256xf32>
    %cst_34 = arith.constant dense<0.000000e+00> : vector<20x256xf32>
    %24 = tpu.matmul %21, %23, %cst_34 {dimension_numbers = #tpu.dot_dimension_numbers<[1], [0], [0], [1], [0, 0, 1, 1], [], []>} : vector<20x3xf32>, vector<3x256xf32>, vector<20x256xf32> -> vector<20x256xf32>
    %c0_35 = arith.constant 0 : index
    %c3_36 = arith.constant 3 : index
    %c0_37 = arith.constant 0 : index
    %c0_38 = arith.constant 0 : index
    %25 = vector.load %arg4[%c0_35, %c3_36, %c0_37, %c0_38] : memref<1x16x20x256xf32, #tpu.memory_space<vmem>>, vector<1x1x20x256xf32>
    %26 = vector.shape_cast %25 : vector<1x1x20x256xf32> to vector<20x256xf32>
    %27 = vector.shape_cast %24 : vector<20x256xf32> to vector<1x1x20x256xf32>
    tpu.vector_store %arg4[%c0_35, %c3_36, %c0_37, %c0_38], %27 {strides = array<i32>} : memref<1x16x20x256xf32, #tpu.memory_space<vmem>>, vector<1x1x20x256xf32>,
    %c0_39 = arith.constant 0 : index
    %c0_40 = arith.constant 0 : index
    %28 = vector.load %arg2[%c0_39, %c0_40] : memref<20x3xf32, #tpu.memory_space<vmem>>, vector<20x3xf32>
    %c0_41 = arith.constant 0 : index
    %c4 = arith.constant 4 : index
    %c0_42 = arith.constant 0 : index
    %c0_43 = arith.constant 0 : index
    %29 = vector.load %arg3[%c0_41, %c4, %c0_42, %c0_43] : memref<1x16x3x256xf32, #tpu.memory_space<vmem>>, vector<1x1x3x256xf32>
    %30 = vector.shape_cast %29 : vector<1x1x3x256xf32> to vector<3x256xf32>
    %cst_44 = arith.constant dense<0.000000e+00> : vector<20x256xf32>
    %31 = tpu.matmul %28, %30, %cst_44 {dimension_numbers = #tpu.dot_dimension_numbers<[1], [0], [0], [1], [0, 0, 1, 1], [], []>} : vector<20x3xf32>, vector<3x256xf32>, vector<20x256xf32> -> vector<20x256xf32>
    %c0_45 = arith.constant 0 : index
    %c4_46 = arith.constant 4 : index
    %c0_47 = arith.constant 0 : index
    %c0_48 = arith.constant 0 : index
    %32 = vector.load %arg4[%c0_45, %c4_46, %c0_47, %c0_48] : memref<1x16x20x256xf32, #tpu.memory_space<vmem>>, vector<1x1x20x256xf32>
    %33 = vector.shape_cast %32 : vector<1x1x20x256xf32> to vector<20x256xf32>
    %34 = vector.shape_cast %31 : vector<20x256xf32> to vector<1x1x20x256xf32>
    tpu.vector_store %arg4[%c0_45, %c4_46, %c0_47, %c0_48], %34 {strides = array<i32>} : memref<1x16x20x256xf32, #tpu.memory_space<vmem>>, vector<1x1x20x256xf32>,
    %c0_49 = arith.constant 0 : index
    %c0_50 = arith.constant 0 : index
    %35 = vector.load %arg2[%c0_49, %c0_50] : memref<20x3xf32, #tpu.memory_space<vmem>>, vector<20x3xf32>
    %c0_51 = arith.constant 0 : index
    %c5 = arith.constant 5 : index
    %c0_52 = arith.constant 0 : index
    %c0_53 = arith.constant 0 : index
    %36 = vector.load %arg3[%c0_51, %c5, %c0_52, %c0_53] : memref<1x16x3x256xf32, #tpu.memory_space<vmem>>, vector<1x1x3x256xf32>
    %37 = vector.shape_cast %36 : vector<1x1x3x256xf32> to vector<3x256xf32>
    %cst_54 = arith.constant dense<0.000000e+00> : vector<20x256xf32>
    %38 = tpu.matmul %35, %37, %cst_54 {dimension_numbers = #tpu.dot_dimension_numbers<[1], [0], [0], [1], [0, 0, 1, 1], [], []>} : vector<20x3xf32>, vector<3x256xf32>, vector<20x256xf32> -> vector<20x256xf32>
    %c0_55 = arith.constant 0 : index
    %c5_56 = arith.constant 5 : index
    %c0_57 = arith.constant 0 : index
    %c0_58 = arith.constant 0 : index
    %39 = vector.load %arg4[%c0_55, %c5_56, %c0_57, %c0_58] : memref<1x16x20x256xf32, #tpu.memory_space<vmem>>, vector<1x1x20x256xf32>
    %40 = vector.shape_cast %39 : vector<1x1x20x256xf32> to vector<20x256xf32>
    %41 = vector.shape_cast %38 : vector<20x256xf32> to vector<1x1x20x256xf32>
    tpu.vector_store %arg4[%c0_55, %c5_56, %c0_57, %c0_58], %41 {strides = array<i32>} : memref<1x16x20x256xf32, #tpu.memory_space<vmem>>, vector<1x1x20x256xf32>,
    %c0_59 = arith.constant 0 : index
    %c0_60 = arith.constant 0 : index
    %42 = vector.load %arg2[%c0_59, %c0_60] : memref<20x3xf32, #tpu.memory_space<vmem>>, vector<20x3xf32>
    %c0_61 = arith.constant 0 : index
    %c6 = arith.constant 6 : index
    %c0_62 = arith.constant 0 : index
    %c0_63 = arith.constant 0 : index
    %43 = vector.load %arg3[%c0_61, %c6, %c0_62, %c0_63] : memref<1x16x3x256xf32, #tpu.memory_space<vmem>>, vector<1x1x3x256xf32>
    %44 = vector.shape_cast %43 : vector<1x1x3x256xf32> to vector<3x256xf32>
    %cst_64 = arith.constant dense<0.000000e+00> : vector<20x256xf32>
    %45 = tpu.matmul %42, %44, %cst_64 {dimension_numbers = #tpu.dot_dimension_numbers<[1], [0], [0], [1], [0, 0, 1, 1], [], []>} : vector<20x3xf32>, vector<3x256xf32>, vector<20x256xf32> -> vector<20x256xf32>
    %c0_65 = arith.constant 0 : index
    %c6_66 = arith.constant 6 : index
    %c0_67 = arith.constant 0 : index
    %c0_68 = arith.constant 0 : index
    %46 = vector.load %arg4[%c0_65, %c6_66, %c0_67, %c0_68] : memref<1x16x20x256xf32, #tpu.memory_space<vmem>>, vector<1x1x20x256xf32>
    %47 = vector.shape_cast %46 : vector<1x1x20x256xf32> to vector<20x256xf32>
    %48 = vector.shape_cast %45 : vector<20x256xf32> to vector<1x1x20x256xf32>
    tpu.vector_store %arg4[%c0_65, %c6_66, %c0_67, %c0_68], %48 {strides = array<i32>} : memref<1x16x20x256xf32, #tpu.memory_space<vmem>>, vector<1x1x20x256xf32>,
    %c0_69 = arith.constant 0 : index
    %c0_70 = arith.constant 0 : index
    %49 = vector.load %arg2[%c0_69, %c0_70] : memref<20x3xf32, #tpu.memory_space<vmem>>, vector<20x3xf32>
    %c0_71 = arith.constant 0 : index
    %c7 = arith.constant 7 : index
    %c0_72 = arith.constant 0 : index
    %c0_73 = arith.constant 0 : index
    %50 = vector.load %arg3[%c0_71, %c7, %c0_72, %c0_73] : memref<1x16x3x256xf32, #tpu.memory_space<vmem>>, vector<1x1x3x256xf32>
    %51 = vector.shape_cast %50 : vector<1x1x3x256xf32> to vector<3x256xf32>
    %cst_74 = arith.constant dense<0.000000e+00> : vector<20x256xf32>
    %52 = tpu.matmul %49, %51, %cst_74 {dimension_numbers = #tpu.dot_dimension_numbers<[1], [0], [0], [1], [0, 0, 1, 1], [], []>} : vector<20x3xf32>, vector<3x256xf32>, vector<20x256xf32> -> vector<20x256xf32>
    %c0_75 = arith.constant 0 : index
    %c7_76 = arith.constant 7 : index
    %c0_77 = arith.constant 0 : index
    %c0_78 = arith.constant 0 : index
    %53 = vector.load %arg4[%c0_75, %c7_76, %c0_77, %c0_78] : memref<1x16x20x256xf32, #tpu.memory_space<vmem>>, vector<1x1x20x256xf32>
    %54 = vector.shape_cast %53 : vector<1x1x20x256xf32> to vector<20x256xf32>
    %55 = vector.shape_cast %52 : vector<20x256xf32> to vector<1x1x20x256xf32>
    tpu.vector_store %arg4[%c0_75, %c7_76, %c0_77, %c0_78], %55 {strides = array<i32>} : memref<1x16x20x256xf32, #tpu.memory_space<vmem>>, vector<1x1x20x256xf32>,
    %c0_79 = arith.constant 0 : index
    %c0_80 = arith.constant 0 : index
    %56 = vector.load %arg2[%c0_79, %c0_80] : memref<20x3xf32, #tpu.memory_space<vmem>>, vector<20x3xf32>
    %c0_81 = arith.constant 0 : index
    %c8 = arith.constant 8 : index
    %c0_82 = arith.constant 0 : index
    %c0_83 = arith.constant 0 : index
    %57 = vector.load %arg3[%c0_81, %c8, %c0_82, %c0_83] : memref<1x16x3x256xf32, #tpu.memory_space<vmem>>, vector<1x1x3x256xf32>
    %58 = vector.shape_cast %57 : vector<1x1x3x256xf32> to vector<3x256xf32>
    %cst_84 = arith.constant dense<0.000000e+00> : vector<20x256xf32>
    %59 = tpu.matmul %56, %58, %cst_84 {dimension_numbers = #tpu.dot_dimension_numbers<[1], [0], [0], [1], [0, 0, 1, 1], [], []>} : vector<20x3xf32>, vector<3x256xf32>, vector<20x256xf32> -> vector<20x256xf32>
    %c0_85 = arith.constant 0 : index
    %c8_86 = arith.constant 8 : index
    %c0_87 = arith.constant 0 : index
    %c0_88 = arith.constant 0 : index
    %60 = vector.load %arg4[%c0_85, %c8_86, %c0_87, %c0_88] : memref<1x16x20x256xf32, #tpu.memory_space<vmem>>, vector<1x1x20x256xf32>
    %61 = vector.shape_cast %60 : vector<1x1x20x256xf32> to vector<20x256xf32>
    %62 = vector.shape_cast %59 : vector<20x256xf32> to vector<1x1x20x256xf32>
    tpu.vector_store %arg4[%c0_85, %c8_86, %c0_87, %c0_88], %62 {strides = array<i32>} : memref<1x16x20x256xf32, #tpu.memory_space<vmem>>, vector<1x1x20x256xf32>,
    %c0_89 = arith.constant 0 : index
    %c0_90 = arith.constant 0 : index
    %63 = vector.load %arg2[%c0_89, %c0_90] : memref<20x3xf32, #tpu.memory_space<vmem>>, vector<20x3xf32>
    %c0_91 = arith.constant 0 : index
    %c9 = arith.constant 9 : index
    %c0_92 = arith.constant 0 : index
    %c0_93 = arith.constant 0 : index
    %64 = vector.load %arg3[%c0_91, %c9, %c0_92, %c0_93] : memref<1x16x3x256xf32, #tpu.memory_space<vmem>>, vector<1x1x3x256xf32>
    %65 = vector.shape_cast %64 : vector<1x1x3x256xf32> to vector<3x256xf32>
    %cst_94 = arith.constant dense<0.000000e+00> : vector<20x256xf32>
    %66 = tpu.matmul %63, %65, %cst_94 {dimension_numbers = #tpu.dot_dimension_numbers<[1], [0], [0], [1], [0, 0, 1, 1], [], []>} : vector<20x3xf32>, vector<3x256xf32>, vector<20x256xf32> -> vector<20x256xf32>
    %c0_95 = arith.constant 0 : index
    %c9_96 = arith.constant 9 : index
    %c0_97 = arith.constant 0 : index
    %c0_98 = arith.constant 0 : index
    %67 = vector.load %arg4[%c0_95, %c9_96, %c0_97, %c0_98] : memref<1x16x20x256xf32, #tpu.memory_space<vmem>>, vector<1x1x20x256xf32>
    %68 = vector.shape_cast %67 : vector<1x1x20x256xf32> to vector<20x256xf32>
    %69 = vector.shape_cast %66 : vector<20x256xf32> to vector<1x1x20x256xf32>
    tpu.vector_store %arg4[%c0_95, %c9_96, %c0_97, %c0_98], %69 {strides = array<i32>} : memref<1x16x20x256xf32, #tpu.memory_space<vmem>>, vector<1x1x20x256xf32>,
    %c0_99 = arith.constant 0 : index
    %c0_100 = arith.constant 0 : index
    %70 = vector.load %arg2[%c0_99, %c0_100] : memref<20x3xf32, #tpu.memory_space<vmem>>, vector<20x3xf32>
    %c0_101 = arith.constant 0 : index
    %c10 = arith.constant 10 : index
    %c0_102 = arith.constant 0 : index
    %c0_103 = arith.constant 0 : index
    %71 = vector.load %arg3[%c0_101, %c10, %c0_102, %c0_103] : memref<1x16x3x256xf32, #tpu.memory_space<vmem>>, vector<1x1x3x256xf32>
    %72 = vector.shape_cast %71 : vector<1x1x3x256xf32> to vector<3x256xf32>
    %cst_104 = arith.constant dense<0.000000e+00> : vector<20x256xf32>
    %73 = tpu.matmul %70, %72, %cst_104 {dimension_numbers = #tpu.dot_dimension_numbers<[1], [0], [0], [1], [0, 0, 1, 1], [], []>} : vector<20x3xf32>, vector<3x256xf32>, vector<20x256xf32> -> vector<20x256xf32>
    %c0_105 = arith.constant 0 : index
    %c10_106 = arith.constant 10 : index
    %c0_107 = arith.constant 0 : index
    %c0_108 = arith.constant 0 : index
    %74 = vector.load %arg4[%c0_105, %c10_106, %c0_107, %c0_108] : memref<1x16x20x256xf32, #tpu.memory_space<vmem>>, vector<1x1x20x256xf32>
    %75 = vector.shape_cast %74 : vector<1x1x20x256xf32> to vector<20x256xf32>
    %76 = vector.shape_cast %73 : vector<20x256xf32> to vector<1x1x20x256xf32>
    tpu.vector_store %arg4[%c0_105, %c10_106, %c0_107, %c0_108], %76 {strides = array<i32>} : memref<1x16x20x256xf32, #tpu.memory_space<vmem>>, vector<1x1x20x256xf32>,
    %c0_109 = arith.constant 0 : index
    %c0_110 = arith.constant 0 : index
    %77 = vector.load %arg2[%c0_109, %c0_110] : memref<20x3xf32, #tpu.memory_space<vmem>>, vector<20x3xf32>
    %c0_111 = arith.constant 0 : index
    %c11 = arith.constant 11 : index
    %c0_112 = arith.constant 0 : index
    %c0_113 = arith.constant 0 : index
    %78 = vector.load %arg3[%c0_111, %c11, %c0_112, %c0_113] : memref<1x16x3x256xf32, #tpu.memory_space<vmem>>, vector<1x1x3x256xf32>
    %79 = vector.shape_cast %78 : vector<1x1x3x256xf32> to vector<3x256xf32>
    %cst_114 = arith.constant dense<0.000000e+00> : vector<20x256xf32>
    %80 = tpu.matmul %77, %79, %cst_114 {dimension_numbers = #tpu.dot_dimension_numbers<[1], [0], [0], [1], [0, 0, 1, 1], [], []>} : vector<20x3xf32>, vector<3x256xf32>, vector<20x256xf32> -> vector<20x256xf32>
    %c0_115 = arith.constant 0 : index
    %c11_116 = arith.constant 11 : index
    %c0_117 = arith.constant 0 : index
    %c0_118 = arith.constant 0 : index
    %81 = vector.load %arg4[%c0_115, %c11_116, %c0_117, %c0_118] : memref<1x16x20x256xf32, #tpu.memory_space<vmem>>, vector<1x1x20x256xf32>
    %82 = vector.shape_cast %81 : vector<1x1x20x256xf32> to vector<20x256xf32>
    %83 = vector.shape_cast %80 : vector<20x256xf32> to vector<1x1x20x256xf32>
    tpu.vector_store %arg4[%c0_115, %c11_116, %c0_117, %c0_118], %83 {strides = array<i32>} : memref<1x16x20x256xf32, #tpu.memory_space<vmem>>, vector<1x1x20x256xf32>,
    %c0_119 = arith.constant 0 : index
    %c0_120 = arith.constant 0 : index
    %84 = vector.load %arg2[%c0_119, %c0_120] : memref<20x3xf32, #tpu.memory_space<vmem>>, vector<20x3xf32>
    %c0_121 = arith.constant 0 : index
    %c12 = arith.constant 12 : index
    %c0_122 = arith.constant 0 : index
    %c0_123 = arith.constant 0 : index
    %85 = vector.load %arg3[%c0_121, %c12, %c0_122, %c0_123] : memref<1x16x3x256xf32, #tpu.memory_space<vmem>>, vector<1x1x3x256xf32>
    %86 = vector.shape_cast %85 : vector<1x1x3x256xf32> to vector<3x256xf32>
    %cst_124 = arith.constant dense<0.000000e+00> : vector<20x256xf32>
    %87 = tpu.matmul %84, %86, %cst_124 {dimension_numbers = #tpu.dot_dimension_numbers<[1], [0], [0], [1], [0, 0, 1, 1], [], []>} : vector<20x3xf32>, vector<3x256xf32>, vector<20x256xf32> -> vector<20x256xf32>
    %c0_125 = arith.constant 0 : index
    %c12_126 = arith.constant 12 : index
    %c0_127 = arith.constant 0 : index
    %c0_128 = arith.constant 0 : index
    %88 = vector.load %arg4[%c0_125, %c12_126, %c0_127, %c0_128] : memref<1x16x20x256xf32, #tpu.memory_space<vmem>>, vector<1x1x20x256xf32>
    %89 = vector.shape_cast %88 : vector<1x1x20x256xf32> to vector<20x256xf32>
    %90 = vector.shape_cast %87 : vector<20x256xf32> to vector<1x1x20x256xf32>
    tpu.vector_store %arg4[%c0_125, %c12_126, %c0_127, %c0_128], %90 {strides = array<i32>} : memref<1x16x20x256xf32, #tpu.memory_space<vmem>>, vector<1x1x20x256xf32>,
    %c0_129 = arith.constant 0 : index
    %c0_130 = arith.constant 0 : index
    %91 = vector.load %arg2[%c0_129, %c0_130] : memref<20x3xf32, #tpu.memory_space<vmem>>, vector<20x3xf32>
    %c0_131 = arith.constant 0 : index
    %c13 = arith.constant 13 : index
    %c0_132 = arith.constant 0 : index
    %c0_133 = arith.constant 0 : index
    %92 = vector.load %arg3[%c0_131, %c13, %c0_132, %c0_133] : memref<1x16x3x256xf32, #tpu.memory_space<vmem>>, vector<1x1x3x256xf32>
    %93 = vector.shape_cast %92 : vector<1x1x3x256xf32> to vector<3x256xf32>
    %cst_134 = arith.constant dense<0.000000e+00> : vector<20x256xf32>
    %94 = tpu.matmul %91, %93, %cst_134 {dimension_numbers = #tpu.dot_dimension_numbers<[1], [0], [0], [1], [0, 0, 1, 1], [], []>} : vector<20x3xf32>, vector<3x256xf32>, vector<20x256xf32> -> vector<20x256xf32>
    %c0_135 = arith.constant 0 : index
    %c13_136 = arith.constant 13 : index
    %c0_137 = arith.constant 0 : index
    %c0_138 = arith.constant 0 : index
    %95 = vector.load %arg4[%c0_135, %c13_136, %c0_137, %c0_138] : memref<1x16x20x256xf32, #tpu.memory_space<vmem>>, vector<1x1x20x256xf32>
    %96 = vector.shape_cast %95 : vector<1x1x20x256xf32> to vector<20x256xf32>
    %97 = vector.shape_cast %94 : vector<20x256xf32> to vector<1x1x20x256xf32>
    tpu.vector_store %arg4[%c0_135, %c13_136, %c0_137, %c0_138], %97 {strides = array<i32>} : memref<1x16x20x256xf32, #tpu.memory_space<vmem>>, vector<1x1x20x256xf32>,
    %c0_139 = arith.constant 0 : index
    %c0_140 = arith.constant 0 : index
    %98 = vector.load %arg2[%c0_139, %c0_140] : memref<20x3xf32, #tpu.memory_space<vmem>>, vector<20x3xf32>
    %c0_141 = arith.constant 0 : index
    %c14 = arith.constant 14 : index
    %c0_142 = arith.constant 0 : index
    %c0_143 = arith.constant 0 : index
    %99 = vector.load %arg3[%c0_141, %c14, %c0_142, %c0_143] : memref<1x16x3x256xf32, #tpu.memory_space<vmem>>, vector<1x1x3x256xf32>
    %100 = vector.shape_cast %99 : vector<1x1x3x256xf32> to vector<3x256xf32>
    %cst_144 = arith.constant dense<0.000000e+00> : vector<20x256xf32>
    %101 = tpu.matmul %98, %100, %cst_144 {dimension_numbers = #tpu.dot_dimension_numbers<[1], [0], [0], [1], [0, 0, 1, 1], [], []>} : vector<20x3xf32>, vector<3x256xf32>, vector<20x256xf32> -> vector<20x256xf32>
    %c0_145 = arith.constant 0 : index
    %c14_146 = arith.constant 14 : index
    %c0_147 = arith.constant 0 : index
    %c0_148 = arith.constant 0 : index
    %102 = vector.load %arg4[%c0_145, %c14_146, %c0_147, %c0_148] : memref<1x16x20x256xf32, #tpu.memory_space<vmem>>, vector<1x1x20x256xf32>
    %103 = vector.shape_cast %102 : vector<1x1x20x256xf32> to vector<20x256xf32>
    %104 = vector.shape_cast %101 : vector<20x256xf32> to vector<1x1x20x256xf32>
    tpu.vector_store %arg4[%c0_145, %c14_146, %c0_147, %c0_148], %104 {strides = array<i32>} : memref<1x16x20x256xf32, #tpu.memory_space<vmem>>, vector<1x1x20x256xf32>,
    %c0_149 = arith.constant 0 : index
    %c0_150 = arith.constant 0 : index
    %105 = vector.load %arg2[%c0_149, %c0_150] : memref<20x3xf32, #tpu.memory_space<vmem>>, vector<20x3xf32>
    %c0_151 = arith.constant 0 : index
    %c15 = arith.constant 15 : index
    %c0_152 = arith.constant 0 : index
    %c0_153 = arith.constant 0 : index
    %106 = vector.load %arg3[%c0_151, %c15, %c0_152, %c0_153] : memref<1x16x3x256xf32, #tpu.memory_space<vmem>>, vector<1x1x3x256xf32>
    %107 = vector.shape_cast %106 : vector<1x1x3x256xf32> to vector<3x256xf32>
    %cst_154 = arith.constant dense<0.000000e+00> : vector<20x256xf32>
    %108 = tpu.matmul %105, %107, %cst_154 {dimension_numbers = #tpu.dot_dimension_numbers<[1], [0], [0], [1], [0, 0, 1, 1], [], []>} : vector<20x3xf32>, vector<3x256xf32>, vector<20x256xf32> -> vector<20x256xf32>
    %c0_155 = arith.constant 0 : index
    %c15_156 = arith.constant 15 : index
    %c0_157 = arith.constant 0 : index
    %c0_158 = arith.constant 0 : index
    %109 = vector.load %arg4[%c0_155, %c15_156, %c0_157, %c0_158] : memref<1x16x20x256xf32, #tpu.memory_space<vmem>>, vector<1x1x20x256xf32>
    %110 = vector.shape_cast %109 : vector<1x1x20x256xf32> to vector<20x256xf32>
    %111 = vector.shape_cast %108 : vector<20x256xf32> to vector<1x1x20x256xf32>
    tpu.vector_store %arg4[%c0_155, %c15_156, %c0_157, %c0_158], %111 {strides = array<i32>} : memref<1x16x20x256xf32, #tpu.memory_space<vmem>>, vector<1x1x20x256xf32>,
    return
  }
  func.func @transform_0(%arg0: i32, %arg1: i32) -> (i32, i32) {
    %c0_i32 = arith.constant 0 : i32
    %c0_i32_0 = arith.constant 0 : i32
    %c0_i32_1 = arith.constant 0 : i32
    return %c0_i32, %c0_i32_0 : i32, i32
  }
  func.func @transform_1(%arg0: i32, %arg1: i32) -> (i32, i32, i32, i32) {
    %c0_i32 = arith.constant 0 : i32
    %c0_i32_0 = arith.constant 0 : i32
    %c0_i32_1 = arith.constant 0 : i32
    return %arg0, %arg1, %c0_i32, %c0_i32_0 : i32, i32, i32, i32
  }
  func.func @transform_2(%arg0: i32, %arg1: i32) -> (i32, i32, i32, i32) {
    %c0_i32 = arith.constant 0 : i32
    %c0_i32_0 = arith.constant 0 : i32
    %c0_i32_1 = arith.constant 0 : i32
    return %arg0, %arg1, %c0_i32, %c0_i32_0 : i32, i32, i32, i32
  }
}

</mosaic_0001>

<bundles_post_ra>
// kernel: spatiotemporal_encoder.8
= control target key start
LH: loop header
LB: loop body
LE: loop exit
PB: predicated region body
PF: predicated region fallthrough
CT: control target
= control target key end

     0   :  { %s1310_s15 = smov 0   ;;  %s1312_s16 = smov 0   ;;  %s1672_s0 = inlined_call_operand.vmem [shape: bf16[2,144,128], index: 0, kind: input, shape index: {}]   ;;  %s1673_s1 = inlined_call_operand.vmem [shape: bf16[128,64], index: 1, kind: input, shape index: {}]   ;;  %s1674_s2 = inlined_call_operand.vmem [shape: f32[1,64], index: 2, kind: input, shape index: {}]   ;;  %s1675_s3 = inlined_call_operand.vmem [shape: f32[1,64], index: 3, kind: input, shape index: {}]   ;;  %s1676_s4 = inlined_call_operand.vmem [shape: bf16[2,144,64], index: 4, kind: output, shape index: {}]  }
   0x1   :  { %s1314_s17 = smov 0  }
   0x2 LB: > { %s33_s18 = sadd.s32 1, %s1277_s16  ;;  %p1034_p0 = scmp.ge.s32.totalorder %s1281_s17, 1  ;;  %s1281_s17 = sphi %s1314_s17, %s14_s17   ;;  %s1277_s16 = sphi %s1312_s16, %s1678_s16   ;;  %s1273_s15 = sphi %s1310_s15, %s1677_s15  }
   0x3   : > { %p35_p1 = scmp.ge.s32.totalorder %s33_s18, 2  ;;  %p206_p2 = scmp.lt.s32.totalorder %s1281_s17, 3 }
   0x5   : > { %s1680_s18 = smov (%p35_p1, %s33_s18), 0  ;;  %p207_p3 = pnand %p1034_p0, %p206_p2 }
   0x6   : > { %v1206_v0 = vld [vmem:[%s1673_s1] sm:$0xff] (!%p207_p3)   ;;  %v1283_v1 = vmov (!%p207_p3), 0.0   ;;  %v1207_v2 = vld [vmem:[%s1673_s1 + $0x8] sm:$0xff] (!%p207_p3)   ;;  %p249_p4 = scmp.lt.s32.totalorder (!%p207_p3), %s1273_s15, 1  ;;  %vm282_vm0 = vcmask (!%p207_p3), 523264   ;;  %vm1284_vm1 = vmmov (!%p207_p3), 0  }
   0x7   : > { %210 = sbr.rel (%p207_p3) target bundleno = 337 (0x151), region = 36  ;;  %1111 = vmatprep.subr.bf16.mxu0 (!%p207_p3), %v1283_v1  ;;  %1163 = vmatprep.subr.bf16.mxu1 (!%p207_p3), %v1283_v1  ;;  %283 = vst.msk [vmem:[#allocation2] sm:$0xff] (!%p207_p3), %vm282_vm0, %v1283_v1  ;;  %284 = vst.msk [vmem:[#allocation2 + $0x8] sm:$0xff] (!%p207_p3), %vm282_vm0, %v1283_v1  ;;  %v1208_v3 = vld [vmem:[%s1673_s1 + $0x10] sm:$0xff] (!%p207_p3)   ;;  %v1209_v4 = vld [vmem:[%s1673_s1 + $0x18] sm:$0xff] (!%p207_p3)   ;;  %vm902_vm2 = vcmask (!%p207_p3), 519168  }
   0x8   : > { %1112 = vmatpush3.bf16.msra.mxu0 (!%p207_p3), %v1206_v0  ;;  %1171 = vmatpush3.bf16.msra.mxu1 (!%p207_p3), %v1206_v0  ;;  %285 = vst.msk [vmem:[#allocation2 + $0x10] sm:$0xff] (!%p207_p3), %vm282_vm0, %v1283_v1  ;;  %286 = vst.msk [vmem:[#allocation2 + $0x18] sm:$0xff] (!%p207_p3), %vm282_vm0, %v1283_v1  ;;  %v1210_v5 = vld [vmem:[%s1673_s1 + $0x20] sm:$0xff] (!%p207_p3)   ;;  %v1211_v6 = vld [vmem:[%s1673_s1 + $0x28] sm:$0xff] (!%p207_p3)  }
   0x9   : > { %1113 = vmatprep.subr.bf16.mxu0 (!%p207_p3), %v1283_v1  ;;  %1164 = vmatprep.subr.bf16.mxu1 (!%p207_p3), %v1283_v1  ;;  %287 = vst.msk [vmem:[#allocation2 + $0x20] sm:$0xff] (!%p207_p3), %vm282_vm0, %v1283_v1  ;;  %288 = vst.msk [vmem:[#allocation2 + $0x28] sm:$0xff] (!%p207_p3), %vm282_vm0, %v1283_v1  ;;  %v1212_v7 = vld [vmem:[%s1673_s1 + $0x30] sm:$0xff] (!%p207_p3)   ;;  %v1213_v8 = vld [vmem:[%s1673_s1 + $0x38] sm:$0xff] (!%p207_p3)  }
   0xa   : > { %1127 = vmatprep.mubr.msk.bf16.mxu0 (!%p207_p3), %vm1284_vm1, %v1283_v1  ;;  %1147 = vmatprep.mubr.msk.bf16.mxu1 (!%p207_p3), %vm1284_vm1, %v1283_v1  ;;  %289 = vst.msk [vmem:[#allocation2 + $0x30] sm:$0xff] (!%p207_p3), %vm282_vm0, %v1283_v1  ;;  %290 = vst.msk [vmem:[#allocation2 + $0x38] sm:$0xff] (!%p207_p3), %vm282_vm0, %v1283_v1  ;;  %v1448_v36 = vld [vmem:[%s1674_s2] ss:$0 sm:$0xff] (!%p207_p3) }
   0xb   : > { %291 = vst.msk [vmem:[#allocation2 + $0x40] sm:$0xff] (!%p207_p3), %vm282_vm0, %v1283_v1  ;;  %292 = vst.msk [vmem:[#allocation2 + $0x48] sm:$0xff] (!%p207_p3), %vm282_vm0, %v1283_v1  ;;  %v1453_v46 = vld [vmem:[%s1675_s3] ss:$0 sm:$0xff] (!%p207_p3) }
   0xc   : > { %293 = vst.msk [vmem:[#allocation2 + $0x50] sm:$0xff] (!%p207_p3), %vm282_vm0, %v1283_v1  ;;  %294 = vst.msk [vmem:[#allocation2 + $0x58] sm:$0xff] (!%p207_p3), %vm282_vm0, %v1283_v1  ;;  %1114 = vmatpush3.bf16.msra.mxu0 (!%p207_p3), %v1207_v2  ;;  %1172 = vmatpush3.bf16.msra.mxu1 (!%p207_p3), %v1207_v2 }
   0xd   : > { %295 = vst.msk [vmem:[#allocation2 + $0x60] sm:$0xff] (!%p207_p3), %vm282_vm0, %v1283_v1  ;;  %296 = vst.msk [vmem:[#allocation2 + $0x68] sm:$0xff] (!%p207_p3), %vm282_vm0, %v1283_v1  ;;  %1115 = vmatprep.subr.bf16.mxu0 (!%p207_p3), %v1283_v1  ;;  %1165 = vmatprep.subr.bf16.mxu1 (!%p207_p3), %v1283_v1 }
   0xe   : > { %s1682_s15 = smov (!%p249_p4, %s1273_s15), 1  ;;  %297 = vst.msk [vmem:[#allocation2 + $0x70] sm:$0xff] %vm282_vm0, %v1283_v1  ;;  %298 = vst.msk [vmem:[#allocation2 + $0x78] sm:$0xff] %vm282_vm0, %v1283_v1  ;;  %v301_v18 = vld [vmem:[#allocation2] sm:$0xff]  ;;  %v302_v22 = vld [vmem:[#allocation2 + $0x8] sm:$0xff] }
   0xf   : > { %299 = vst.msk [vmem:[#allocation2 + $0x80] sm:$0xff] %vm282_vm0, %v1283_v1  ;;  %300 = vst.msk [vmem:[#allocation2 + $0x88] sm:$0xff] %vm282_vm0, %v1283_v1  ;;  %s1179_s25 = smul.u32 72, %s1682_s15  ;;  %v303_v34 = vld [vmem:[#allocation2 + $0x10] sm:$0xff]  ;;  %v304_v39 = vld [vmem:[#allocation2 + $0x18] sm:$0xff] }
  0x10   : > { %1116 = vmatpush3.bf16.msra.mxu0 %v1208_v3  ;;  %1173 = vmatpush3.bf16.msra.mxu1 %v1208_v3  ;;  %v305_v62 = vld [vmem:[#allocation2 + $0x20] sm:$0xff] }
  0x11   : > { %s1391_s28 = scalar_lea.vmem %s1672_s0, %s1179_s25  ;;  %1117 = vmatprep.subr.bf16.mxu0 %v1283_v1  ;;  %1166 = vmatprep.subr.bf16.mxu1 %v1283_v1  ;;  %s1557_s23 = scalar_lea.vmem %s1676_s4, %s1179_s25 }
  0x12   : > { %v1214_v9 = vld [vmem:[%s1391_s28] sm:$0xff]   ;;  %v1215_v10 = vld [vmem:[%s1391_s28 + $0x28] sm:$0xff]   ;;  %v1217_v12 = vld [vmem:[%s1391_s28 + $0x30] sm:$0xff]  }
  0x13   : > { %v1216_v11 = vld [vmem:[%s1391_s28 + $0x8] sm:$0xff]   ;;  %v1218_v13 = vld [vmem:[%s1391_s28 + $0x10] sm:$0xff]   ;;  %v1219_v14 = vld [vmem:[%s1391_s28 + $0x38] sm:$0xff]  }
  0x14   : > { %1118 = vmatpush3.bf16.msra.mxu0 %v1209_v4  ;;  %1174 = vmatpush3.bf16.msra.mxu1 %v1209_v4  ;;  %v1220_v15 = vld [vmem:[%s1391_s28 + $0x18] sm:$0xff]   ;;  %v1221_v16 = vld [vmem:[%s1391_s28 + $0x40] sm:$0xff]   ;;  %v311_v19 = vld [vmem:[#allocation2 + $0x50] sm:$0xff] }
  0x15   : > { %1119 = vmatprep.subr.bf16.mxu0 %v1283_v1  ;;  %1167 = vmatprep.subr.bf16.mxu1 %v1283_v1  ;;  %v1222_v17 = vld [vmem:[%s1391_s28 + $0x20] sm:$0xff]   ;;  %v312_v23 = vld [vmem:[#allocation2 + $0x58] sm:$0xff]  ;;  %v314_v40 = vld [vmem:[#allocation2 + $0x68] sm:$0xff] }
  0x16   : > { %v313_v35 = vld [vmem:[#allocation2 + $0x60] sm:$0xff]  ;;  %v315_v63 = vld [vmem:[#allocation2 + $0x70] sm:$0xff] }
  0x18   : > { %1120 = vmatpush3.bf16.msra.mxu0 %v1210_v5  ;;  %1175 = vmatpush3.bf16.msra.mxu1 %v1210_v5 }
  0x19   : > { %1121 = vmatprep.subr.bf16.mxu0 %v1283_v1  ;;  %1168 = vmatprep.subr.bf16.mxu1 %v1283_v1 }
  0x1c   : > { %1122 = vmatpush3.bf16.msra.mxu0 %v1211_v6  ;;  %1176 = vmatpush3.bf16.msra.mxu1 %v1211_v6 }
  0x1d   : > { %1123 = vmatprep.subr.bf16.mxu0 %v1283_v1  ;;  %1169 = vmatprep.subr.bf16.mxu1 %v1283_v1 }
  0x20   : > { %1124 = vmatpush3.bf16.msra.mxu0 %v1212_v7  ;;  %1177 = vmatpush3.bf16.msra.mxu1 %v1212_v7 }
  0x21   : > { %1125 = vmatprep.subr.bf16.mxu0 %v1283_v1  ;;  %1170 = vmatprep.subr.bf16.mxu1 %v1283_v1 }
  0x24   : > { %1126 = vmatpush3.bf16.msra.mxu0 %v1213_v8  ;;  %1178 = vmatpush3.bf16.msra.mxu1 %v1213_v8 }
  0x27   : > { %1128 = vmatmul.mubr.bf16.vlgmr.msra.gmra.mrb[0].mxu0 %v1214_v9  ;;  %1148 = vmatmul.mubr.bf16.vlgmr.msra.gmra.mrb[0].mxu1 %v1215_v10 }
  0x28   : > { %1131 = vmatprep.mubr.msk.bf16.mxu0 %vm1284_vm1, %v1283_v1  ;;  %1151 = vmatprep.mubr.msk.bf16.mxu1 %vm1284_vm1, %v1283_v1 }
  0x2f   : > { %1132 = vmatmul.mubr.bf16.gmra.mrb[4].mxu0 %v1216_v11  ;;  %1152 = vmatmul.mubr.bf16.gmra.mrb[4].mxu1 %v1217_v12 }
  0x30   : > { %1135 = vmatprep.mubr.msk.bf16.mxu0 %vm1284_vm1, %v1283_v1  ;;  %1155 = vmatprep.mubr.msk.bf16.mxu1 %vm1284_vm1, %v1283_v1 }
  0x37   : > { %1136 = vmatmul.mubr.bf16.gmra.mrb[8].mxu0 %v1218_v13  ;;  %1156 = vmatmul.mubr.bf16.gmra.mrb[8].mxu1 %v1219_v14 }
  0x38   : > { %1139 = vmatprep.mubr.msk.bf16.mxu0 %vm1284_vm1, %v1283_v1  ;;  %1159 = vmatprep.mubr.msk.bf16.mxu1 %vm1284_vm1, %v1283_v1 }
  0x3f   : > { %1140 = vmatmul.mubr.bf16.gmra.mrb[12].mxu0 %v1220_v15  ;;  %1160 = vmatmul.mubr.bf16.gmra.mrb[12].mxu1 %v1221_v16 }
  0x40   : > { %1143 = vmatprep.mubr.msk.bf16.mxu0 %vm1284_vm1, %v1283_v1 }
  0x47   : > { %1144 = vmatmul.mubr.bf16.gmra.mrb[16].mxu0 %v1222_v17 }
  0xfa   : > { %v489_v20 = vpop.f32.mrb[0].mxu0  ;;  %v529_v21 = vpop.f32.mrb[0].mxu1 }
  0xfb   : > { %v560_v24 = vadd.f32 %v489_v20, %v301_v18  ;;  %v570_v25 = vadd.f32 %v529_v21, %v311_v19  ;;  %v1129_v26 = vpop.f32.mrb[1].mxu0  ;;  %v1149_v27 = vpop.f32.mrb[1].mxu1 }
  0xfc   : > { %v492_v28 = vpop.f32.mrb[2].mxu0  ;;  %v532_v29 = vpop.f32.mrb[2].mxu1 }
  0xfd   : > { %579 = vst.msk [vmem:[#allocation2] sm:$0xff] %vm282_vm0, %v560_v24  ;;  %589 = vst.msk [vmem:[#allocation2 + $0x50] sm:$0xff] %vm282_vm0, %v570_v25  ;;  %v561_v30 = vadd.f32 %v492_v28, %v302_v22  ;;  %v571_v31 = vadd.f32 %v532_v29, %v312_v23  ;;  %v1130_v32 = vpop.f32.mrb[3].mxu0  ;;  %v1150_v33 = vpop.f32.mrb[3].mxu1 }
  0xff   : > { %580 = vst.msk [vmem:[#allocation2 + $0x8] sm:$0xff] %vm282_vm0, %v561_v30  ;;  %590 = vst.msk [vmem:[#allocation2 + $0x58] sm:$0xff] %vm282_vm0, %v571_v31 }
 0x102   : > { %v497_v37 = vpop.f32.mrb[4].mxu0  ;;  %v537_v38 = vpop.f32.mrb[4].mxu1 }
 0x103   : > { %v562_v41 = vadd.f32 %v497_v37, %v303_v34  ;;  %v572_v42 = vadd.f32 %v537_v38, %v313_v35  ;;  %v1133_v43 = vpop.f32.mrb[5].mxu0  ;;  %v1153_v44 = vpop.f32.mrb[5].mxu1 }
 0x104   : > { %v600_v45 = vld [vmem:[#allocation2] sm:$0xff]  ;;  %v610_v47 = vld [vmem:[#allocation2 + $0x50] sm:$0xff]  ;;  %v500_v48 = vpop.f32.mrb[6].mxu0  ;;  %v540_v49 = vpop.f32.mrb[6].mxu1 }
 0x105   : > { %v625_v50 = vmul.f32 %v1448_v36, %v600_v45  ;;  %v635_v51 = vmul.f32 %v1448_v36, %v610_v47  ;;  %581 = vst.msk [vmem:[#allocation2 + $0x10] sm:$0xff] %vm282_vm0, %v562_v41  ;;  %591 = vst.msk [vmem:[#allocation2 + $0x60] sm:$0xff] %vm282_vm0, %v572_v42  ;;  %v563_v52 = vadd.f32 %v500_v48, %v304_v39  ;;  %v1134_v54 = vpop.f32.mrb[7].mxu0  ;;  %v1154_v55 = vpop.f32.mrb[7].mxu1  ;;  %v306_v48 = vld [vmem:[#allocation2 + $0x28] sm:$0xff] }
 0x106   : > { %v573_v53 = vadd.f32 %v540_v49, %v314_v40  ;;  %v601_v56 = vld [vmem:[#allocation2 + $0x8] sm:$0xff]  ;;  %v611_v57 = vld [vmem:[#allocation2 + $0x58] sm:$0xff] }
 0x107   : > { %v1460_v58 = vadd.f32 %v1453_v46, %v625_v50  ;;  %v1463_v59 = vadd.f32 %v1453_v46, %v635_v51  ;;  %v626_v60 = vmul.f32 %v1448_v36, %v601_v56  ;;  %v636_v61 = vmul.f32 %v1448_v36, %v611_v57  ;;  %582 = vst.msk [vmem:[#allocation2 + $0x18] sm:$0xff] %vm282_vm0, %v563_v52 }
 0x108   : > { %592 = vst.msk [vmem:[#allocation2 + $0x68] sm:$0xff] %vm282_vm0, %v573_v53 }
 0x109   : > { %v686_v0 = vmul.f32 0.044715, %v1460_v58  ;;  %v696_v1 = vmul.f32 0.044715, %v1463_v59  ;;  %v1472_v2 = vadd.f32 %v1453_v46, %v626_v60  ;;  %v1475_v3 = vadd.f32 %v1453_v46, %v636_v61 }
 0x10a   : > { %v505_v4 = vpop.f32.mrb[8].mxu0  ;;  %v545_v5 = vpop.f32.mrb[8].mxu1  ;;  %v1513_v56 = vmul.f32 0.5, %v1460_v58 }
 0x10b   : > { %v704_v6 = vmul.f32 %v686_v0, %v1460_v58  ;;  %v714_v7 = vmul.f32 %v696_v1, %v1463_v59  ;;  %v564_v8 = vadd.f32 %v505_v4, %v305_v62  ;;  %v574_v9 = vadd.f32 %v545_v5, %v315_v63  ;;  %v1137_v10 = vpop.f32.mrb[9].mxu0  ;;  %v1157_v11 = vpop.f32.mrb[9].mxu1  ;;  %v316_v4 = vld [vmem:[#allocation2 + $0x78] sm:$0xff] }
 0x10c   : > { %v687_v12 = vmul.f32 0.044715, %v1472_v2  ;;  %v697_v13 = vmul.f32 0.044715, %v1475_v3  ;;  %v602_v16 = vld [vmem:[#allocation2 + $0x10] sm:$0xff]  ;;  %v612_v17 = vld [vmem:[#allocation2 + $0x60] sm:$0xff] }
 0x10d   : > { %v722_v14 = vmul.f32 %v704_v6, %v1460_v58  ;;  %v732_v15 = vmul.f32 %v714_v7, %v1463_v59  ;;  %583 = vst.msk [vmem:[#allocation2 + $0x20] sm:$0xff] %vm282_vm0, %v564_v8  ;;  %593 = vst.msk [vmem:[#allocation2 + $0x70] sm:$0xff] %vm282_vm0, %v574_v9  ;;  %v508_v18 = vpop.f32.mrb[10].mxu0  ;;  %v548_v19 = vpop.f32.mrb[10].mxu1  ;;  %v627_v22 = vmul.f32 %v1448_v36, %v602_v16 }
 0x10e   : > { %v705_v20 = vmul.f32 %v687_v12, %v1472_v2  ;;  %v715_v21 = vmul.f32 %v697_v13, %v1475_v3  ;;  %v637_v23 = vmul.f32 %v1448_v36, %v612_v17  ;;  %v603_v24 = vld [vmem:[#allocation2 + $0x18] sm:$0xff]  ;;  %v1138_v26 = vpop.f32.mrb[11].mxu0  ;;  %v1158_v27 = vpop.f32.mrb[11].mxu1  ;;  %v565_v13 = vadd.f32 %v508_v18, %v306_v48 }
 0x10f   : > { %v613_v25 = vld [vmem:[#allocation2 + $0x68] sm:$0xff]  ;;  %v740_v28 = vadd.f32 %v722_v14, %v1460_v58  ;;  %v750_v29 = vadd.f32 %v732_v15, %v1463_v59  ;;  %v628_v30 = vmul.f32 %v1448_v36, %v603_v24  ;;  %v1496_v34 = vadd.f32 %v1453_v46, %v627_v22  ;;  %v308_v22 = vld [vmem:[#allocation2 + $0x38] sm:$0xff] }
 0x110   : > { %v638_v31 = vmul.f32 %v1448_v36, %v613_v25  ;;  %v723_v32 = vmul.f32 %v705_v20, %v1472_v2  ;;  %v733_v33 = vmul.f32 %v715_v21, %v1475_v3  ;;  %v1499_v35 = vadd.f32 %v1453_v46, %v637_v23  ;;  %v307_v20 = vld [vmem:[#allocation2 + $0x30] sm:$0xff]  ;;  %v317_v21 = vld [vmem:[#allocation2 + $0x80] sm:$0xff]  ;;  %584 = vst.msk [vmem:[#allocation2 + $0x28] sm:$0xff] %vm282_vm0, %v565_v13 }
 0x111   : > { %v758_v37 = vmul.f32 0.7978846, %v740_v28  ;;  %v768_v38 = vmul.f32 0.7978846, %v750_v29  ;;  %v1502_v39 = vadd.f32 %v1453_v46, %v628_v30  ;;  %v688_v43 = vmul.f32 0.044715, %v1496_v34 }
 0x112   : > { %v1505_v40 = vadd.f32 %v1453_v46, %v638_v31  ;;  %v741_v41 = vadd.f32 %v723_v32, %v1472_v2  ;;  %v751_v42 = vadd.f32 %v733_v33, %v1475_v3  ;;  %v513_v44 = vpop.f32.mrb[12].mxu0  ;;  %v553_v45 = vpop.f32.mrb[12].mxu1  ;;  %v698_v47 = vmul.f32 0.044715, %v1499_v35  ;;  %v309_v32 = vld [vmem:[#allocation2 + $0x40] sm:$0xff] }
 0x113   : > { %1223 = vtanh.f32 %v758_v37  ;;  %v1141_v49 = vpop.f32.mrb[13].mxu0  ;;  %v1161_v50 = vpop.f32.mrb[13].mxu1  ;;  %v706_v53 = vmul.f32 %v688_v43, %v1496_v34  ;;  %v689_v60 = vmul.f32 0.044715, %v1502_v39  ;;  %v575_v17 = vadd.f32 %v548_v19, %v316_v4  ;;  %v318_v19 = vld [vmem:[#allocation2 + $0x88] sm:$0xff] }
 0x114   : > { %1225 = vtanh.f32 %v768_v38  ;;  %v759_v51 = vmul.f32 0.7978846, %v741_v41  ;;  %v769_v52 = vmul.f32 0.7978846, %v751_v42  ;;  %v604_v54 = vld [vmem:[#allocation2 + $0x20] sm:$0xff]  ;;  %v614_v55 = vld [vmem:[#allocation2 + $0x70] sm:$0xff]  ;;  %v716_v57 = vmul.f32 %v698_v47, %v1499_v35 }
 0x115   : > { %v699_v61 = vmul.f32 0.044715, %v1505_v40  ;;  %v516_v62 = vpop.f32.mrb[14].mxu0  ;;  %v724_v63 = vmul.f32 %v706_v53, %v1496_v34  ;;  %v629_v0 = vmul.f32 %v1448_v36, %v604_v54  ;;  %v639_v1 = vmul.f32 %v1448_v36, %v614_v55  ;;  %v556_v5 = vpop.f32.mrb[14].mxu1  ;;  %594 = vst.msk [vmem:[#allocation2 + $0x78] sm:$0xff] %vm282_vm0, %v575_v17  ;;  %v310_v43 = vld [vmem:[#allocation2 + $0x48] sm:$0xff] }
 0x116   : > { %1227 = vtanh.f32 %v759_v51  ;;  %v1142_v6 = vpop.f32.mrb[15].mxu0  ;;  %v734_v58 = vmul.f32 %v716_v57, %v1499_v35  ;;  %v707_v7 = vmul.f32 %v689_v60, %v1502_v39  ;;  %v1162_v9 = vpop.f32.mrb[15].mxu1  ;;  %v678_v23 = vmul.f32 0.5, %v1463_v59 }
 0x117   : > { %1229 = vtanh.f32 %v769_v52  ;;  %v717_v8 = vmul.f32 %v699_v61, %v1505_v40  ;;  %v742_v10 = vadd.f32 %v724_v63, %v1496_v34  ;;  %v1526_v11 = vadd.f32 %v1453_v46, %v629_v0  ;;  %v605_v4 = vld [vmem:[#allocation2 + $0x28] sm:$0xff] }
 0x118   : > { %v1529_v12 = vadd.f32 %v1453_v46, %v639_v1  ;;  %v752_v14 = vadd.f32 %v734_v58, %v1499_v35  ;;  %v725_v15 = vmul.f32 %v707_v7, %v1502_v39  ;;  %v669_v24 = vmul.f32 0.5, %v1472_v2 }
 0x119   : > { %v735_v16 = vmul.f32 %v717_v8, %v1505_v40  ;;  %v760_v25 = vmul.f32 0.7978846, %v742_v10  ;;  %v690_v26 = vmul.f32 0.044715, %v1526_v11  ;;  %v566_v2 = vadd.f32 %v513_v44, %v307_v20 }
 0x11a   : > { %v770_v18 = vmul.f32 0.7978846, %v752_v14  ;;  %v743_v27 = vadd.f32 %v725_v15, %v1502_v39  ;;  %v700_v29 = vmul.f32 0.044715, %v1529_v12  ;;  %v521_v30 = vpop.f32.mrb[16].mxu0  ;;  %v576_v31 = vadd.f32 %v553_v45, %v317_v21 }
 0x11b   : > { %v753_v28 = vadd.f32 %v735_v16, %v1505_v40  ;;  %1231 = vtanh.f32 %v760_v25  ;;  %v708_v59 = vmul.f32 %v690_v26, %v1526_v11  ;;  %v1145_v33 = vpop.f32.mrb[17].mxu0  ;;  %585 = vst.msk [vmem:[#allocation2 + $0x30] sm:$0xff] %vm282_vm0, %v566_v2  ;;  %v567_v44 = vadd.f32 %v516_v62, %v308_v22 }
 0x11c   : > { %1233 = vtanh.f32 %v770_v18  ;;  %v761_v38 = vmul.f32 0.7978846, %v743_v27  ;;  %v718_v42 = vmul.f32 %v700_v29, %v1529_v12  ;;  %v524_v47 = vpop.f32.mrb[18].mxu0  ;;  %595 = vst.msk [vmem:[#allocation2 + $0x80] sm:$0xff] %vm282_vm0, %v576_v31  ;;  %v577_v45 = vadd.f32 %v556_v5, %v318_v19  ;;  %v615_v8 = vld [vmem:[#allocation2 + $0x78] sm:$0xff] }
 0x11d   : > { %v1224_v37 = vpop.eup %1223  ;;  %v771_v41 = vmul.f32 0.7978846, %v753_v28  ;;  %v726_v50 = vmul.f32 %v708_v59, %v1526_v11  ;;  %v1146_v51 = vpop.f32.mrb[19].mxu0  ;;  %v568_v54 = vadd.f32 %v521_v30, %v309_v32  ;;  %586 = vst.msk [vmem:[#allocation2 + $0x38] sm:$0xff] %vm282_vm0, %v567_v44  ;;  %v569_v61 = vadd.f32 %v524_v47, %v310_v43 }
 0x11e   : > { %v1226_v48 = vpop.eup %1225  ;;  %v794_v49 = vadd.f32 1.0, %v1224_v37  ;;  %1235 = vtanh.f32 %v761_v38  ;;  %v736_v53 = vmul.f32 %v718_v42, %v1529_v12  ;;  %596 = vst.msk [vmem:[#allocation2 + $0x88] sm:$0xff] %vm282_vm0, %v577_v45  ;;  %v630_v7 = vmul.f32 %v1448_v36, %v605_v4 }
 0x11f   : > { %v804_v52 = vadd.f32 1.0, %v1226_v48  ;;  %1237 = vtanh.f32 %v771_v41  ;;  %v744_v60 = vadd.f32 %v726_v50, %v1526_v11  ;;  %587 = vst.msk [vmem:[#allocation2 + $0x40] sm:$0xff] %vm282_vm0, %v568_v54  ;;  %588 = vst.msk [vmem:[#allocation2 + $0x48] sm:$0xff] %vm282_vm0, %v569_v61  ;;  %v640_v14 = vmul.f32 %v1448_v36, %v615_v8 }
 0x120   : > { %v1228_v55 = vpop.eup %1227  ;;  %v812_v57 = vmul.f32 %v794_v49, %v1513_v56  ;;  %v679_v56 = vmul.f32 0.5, %v1475_v3  ;;  %v754_v1 = vadd.f32 %v736_v53, %v1529_v12  ;;  %v1568_v15 = vadd.f32 %v1453_v46, %v630_v7 }
 0x121   : > { %v1230_v63 = vpop.eup %1229  ;;  %v822_v62 = vmul.f32 %v804_v52, %v678_v23  ;;  %v795_v0 = vadd.f32 1.0, %v1228_v55  ;;  %v762_v58 = vmul.f32 0.7978846, %v744_v60  ;;  %v670_v17 = vmul.f32 0.5, %v1496_v34 }
 0x122   : > { %v1076_v5 = vpack.c.bf16 %v812_v57, %v812_v57  ;;  %v805_v6 = vadd.f32 1.0, %v1230_v63  ;;  %v772_v13 = vmul.f32 0.7978846, %v754_v1  ;;  %v1574_v20 = vadd.f32 %v1453_v46, %v640_v14  ;;  %v606_v21 = vld [vmem:[#allocation2 + $0x30] sm:$0xff] }
 0x123   : > { %v1086_v9 = vpack.c.bf16 %v822_v62, %v822_v62  ;;  %v813_v10 = vmul.f32 %v795_v0, %v669_v24  ;;  %1239 = vtanh.f32 %v762_v58  ;;  %v616_v22 = vld [vmem:[#allocation2 + $0x80] sm:$0xff]  ;;  %v680_v25 = vmul.f32 0.5, %v1499_v35 }
 0x124   : > { %903 = vst.msk [vmem:[%s1557_s23] sm:$0xf] %vm902_vm2, %v1076_v5  ;;  %v823_v3 = vmul.f32 %v805_v6, %v679_v56  ;;  %1241 = vtanh.f32 %v772_v13  ;;  %v691_v26 = vmul.f32 0.044715, %v1568_v15  ;;  %v631_v18 = vmul.f32 %v1448_v36, %v606_v21  ;;  %v607_v30 = vld [vmem:[#allocation2 + $0x38] sm:$0xff] }
 0x125   : > { %913 = vst.msk [vmem:[%s1557_s23 + $0x28] sm:$0xf] %vm902_vm2, %v1086_v9  ;;  %v1077_v16 = vpack.c.bf16 %v813_v10, %v813_v10  ;;  %v1232_v23 = vpop.eup %1231  ;;  %v671_v34 = vmul.f32 0.5, %v1502_v39  ;;  %v701_v29 = vmul.f32 0.044715, %v1574_v20  ;;  %v641_v19 = vmul.f32 %v1448_v36, %v616_v22  ;;  %v617_v59 = vld [vmem:[#allocation2 + $0x88] sm:$0xff] }
 0x126   : > { %v1087_v24 = vpack.c.bf16 %v823_v3, %v823_v3  ;;  %v1234_v27 = vpop.eup %1233  ;;  %v796_v28 = vadd.f32 1.0, %v1232_v23  ;;  %v681_v35 = vmul.f32 0.5, %v1505_v40  ;;  %v709_v31 = vmul.f32 %v691_v26, %v1568_v15  ;;  %v608_v10 = vld [vmem:[#allocation2 + $0x40] sm:$0xff] }
 0x127   : > { %904 = vst.msk [vmem:[%s1557_s23 + $0x4] sm:$0xf] %vm902_vm2, %v1077_v16  ;;  %v806_v2 = vadd.f32 1.0, %v1234_v27  ;;  %v1589_v32 = vadd.f32 %v1453_v46, %v631_v18  ;;  %v719_v39 = vmul.f32 %v701_v29, %v1574_v20  ;;  %v1593_v38 = vadd.f32 %v1453_v46, %v641_v19  ;;  %v609_v16 = vld [vmem:[#allocation2 + $0x48] sm:$0xff] }
 0x128   : > { %914 = vst.msk [vmem:[%s1557_s23 + $0x2c] sm:$0xf] %vm902_vm2, %v1087_v24  ;;  %v1236_v33 = vpop.eup %1235  ;;  %v814_v37 = vmul.f32 %v796_v28, %v670_v17  ;;  %v632_v41 = vmul.f32 %v1448_v36, %v607_v30  ;;  %v727_v40 = vmul.f32 %v709_v31, %v1568_v15  ;;  %v642_v48 = vmul.f32 %v1448_v36, %v617_v59 }
 0x129   : > { %v1238_v42 = vpop.eup %1237  ;;  %v824_v43 = vmul.f32 %v806_v2, %v680_v25  ;;  %v797_v47 = vadd.f32 1.0, %v1236_v33  ;;  %v737_v44 = vmul.f32 %v719_v39, %v1574_v20  ;;  %v692_v45 = vmul.f32 0.044715, %v1589_v32 }
 0x12a   : > { %v1078_v49 = vpack.c.bf16 %v814_v37, %v814_v37  ;;  %v807_v50 = vadd.f32 1.0, %v1238_v42  ;;  %v672_v53 = vmul.f32 0.5, %v1526_v11  ;;  %v745_v54 = vadd.f32 %v727_v40, %v1568_v15 }
 0x12b   : > { %v1088_v51 = vpack.c.bf16 %v824_v43, %v824_v43  ;;  %v815_v52 = vmul.f32 %v797_v47, %v671_v34  ;;  %v755_v57 = vadd.f32 %v737_v44, %v1574_v20  ;;  %v710_v60 = vmul.f32 %v692_v45, %v1589_v32 }
 0x12c   : > { %905 = vst.msk [vmem:[%s1557_s23 + $0x8] sm:$0xf] %vm902_vm2, %v1078_v49  ;;  %v825_v55 = vmul.f32 %v807_v50, %v681_v35  ;;  %v702_v61 = vmul.f32 0.044715, %v1593_v38  ;;  %v763_v0 = vmul.f32 0.7978846, %v745_v54  ;;  %v1610_v11 = vadd.f32 %v1453_v46, %v632_v41 }
 0x12d   : > { %v1240_v63 = vpop.eup %1239  ;;  %915 = vst.msk [vmem:[%s1557_s23 + $0x30] sm:$0xf] %vm902_vm2, %v1088_v51  ;;  %v1079_v62 = vpack.c.bf16 %v815_v52, %v815_v52  ;;  %v1613_v56 = vadd.f32 %v1453_v46, %v642_v48  ;;  %v773_v6 = vmul.f32 0.7978846, %v755_v57  ;;  %v728_v58 = vmul.f32 %v710_v60, %v1589_v32 }
 0x12e   : > { %v1242_v1 = vpop.eup %1241  ;;  %v1089_v4 = vpack.c.bf16 %v825_v55, %v825_v55  ;;  %v798_v5 = vadd.f32 1.0, %v1240_v63  ;;  %v682_v7 = vmul.f32 0.5, %v1529_v12  ;;  %1243 = vtanh.f32 %v763_v0 }
 0x12f   : > { %906 = vst.msk [vmem:[%s1557_s23 + $0xc] sm:$0xf] %vm902_vm2, %v1079_v62  ;;  %v808_v8 = vadd.f32 1.0, %v1242_v1  ;;  %v720_v9 = vmul.f32 %v702_v61, %v1593_v38  ;;  %1245 = vtanh.f32 %v773_v6  ;;  %v746_v14 = vadd.f32 %v728_v58, %v1589_v32 }
 0x130   : > { %916 = vst.msk [vmem:[%s1557_s23 + $0x34] sm:$0xf] %vm902_vm2, %v1089_v4  ;;  %v816_v13 = vmul.f32 %v798_v5, %v672_v53  ;;  %v693_v3 = vmul.f32 0.044715, %v1610_v11  ;;  %v703_v12 = vmul.f32 0.044715, %v1613_v56  ;;  %v633_v25 = vmul.f32 %v1448_v36, %v608_v10 }
 0x131   : > { %v826_v17 = vmul.f32 %v808_v8, %v682_v7  ;;  %v738_v21 = vmul.f32 %v720_v9, %v1593_v38  ;;  %v764_v23 = vmul.f32 0.7978846, %v746_v14  ;;  %v634_v28 = vmul.f32 %v1448_v36, %v609_v16 }
 0x132   : > { %v1080_v22 = vpack.c.bf16 %v816_v13, %v816_v13  ;;  %v711_v24 = vmul.f32 %v693_v3, %v1610_v11  ;;  %v721_v27 = vmul.f32 %v703_v12, %v1613_v56  ;;  %v658_v29 = vadd.f32 %v1453_v46, %v633_v25 }
 0x133   : > { %v1090_v26 = vpack.c.bf16 %v826_v17, %v826_v17  ;;  %v756_v18 = vadd.f32 %v738_v21, %v1593_v38  ;;  %1247 = vtanh.f32 %v764_v23  ;;  %v659_v59 = vadd.f32 %v1453_v46, %v634_v28 }
 0x134   : > { %907 = vst.msk [vmem:[%s1557_s23 + $0x10] sm:$0xf] %vm902_vm2, %v1080_v22  ;;  %v729_v34 = vmul.f32 %v711_v24, %v1610_v11  ;;  %v739_v30 = vmul.f32 %v721_v27, %v1613_v56  ;;  %v694_v35 = vmul.f32 0.044715, %v658_v29  ;;  %v673_v47 = vmul.f32 0.5, %v1568_v15 }
 0x135   : > { %917 = vst.msk [vmem:[%s1557_s23 + $0x38] sm:$0xf] %vm902_vm2, %v1090_v26  ;;  %v774_v19 = vmul.f32 0.7978846, %v756_v18  ;;  %v695_v31 = vmul.f32 0.044715, %v659_v59 }
 0x136   : > { %v747_v2 = vadd.f32 %v729_v34, %v1610_v11  ;;  %v757_v36 = vadd.f32 %v739_v30, %v1613_v56  ;;  %v712_v37 = vmul.f32 %v694_v35, %v658_v29  ;;  %v683_v46 = vmul.f32 0.5, %v1574_v20 }
 0x137   : > { %1249 = vtanh.f32 %v774_v19  ;;  %v713_v42 = vmul.f32 %v695_v31, %v659_v59  ;;  %v674_v15 = vmul.f32 0.5, %v1589_v32  ;;  %v684_v62 = vmul.f32 0.5, %v1593_v38 }
 0x138   : > { %v765_v33 = vmul.f32 0.7978846, %v747_v2  ;;  %v1244_v39 = vpop.eup %1243  ;;  %v775_v41 = vmul.f32 0.7978846, %v757_v36  ;;  %v730_v48 = vmul.f32 %v712_v37, %v658_v29  ;;  %v675_v32 = vmul.f32 0.5, %v1610_v11 }
 0x139   : > { %v1246_v43 = vpop.eup %1245  ;;  %v799_v40 = vadd.f32 1.0, %v1244_v39  ;;  %v731_v50 = vmul.f32 %v713_v42, %v659_v59  ;;  %v685_v8 = vmul.f32 0.5, %v1613_v56  ;;  %v676_v17 = vmul.f32 0.5, %v658_v29 }
 0x13a   : > { %1251 = vtanh.f32 %v765_v33  ;;  %v809_v49 = vadd.f32 1.0, %v1246_v43  ;;  %v748_v45 = vadd.f32 %v730_v48, %v658_v29  ;;  %v677_v11 = vmul.f32 0.5, %v659_v59 }
 0x13b   : > { %1253 = vtanh.f32 %v775_v41  ;;  %v817_v44 = vmul.f32 %v799_v40, %v673_v47  ;;  %v749_v52 = vadd.f32 %v731_v50, %v659_v59 }
 0x13c   : > { %v827_v51 = vmul.f32 %v809_v49, %v683_v46  ;;  %v766_v55 = vmul.f32 0.7978846, %v748_v45 }
 0x13d   : > { %v1248_v53 = vpop.eup %1247  ;;  %v1081_v54 = vpack.c.bf16 %v817_v44, %v817_v44  ;;  %v767_v61 = vmul.f32 0.7978846, %v749_v52 }
 0x13e   : > { %v1091_v57 = vpack.c.bf16 %v827_v51, %v827_v51  ;;  %v800_v60 = vadd.f32 1.0, %v1248_v53  ;;  %1255 = vtanh.f32 %v766_v55 }
 0x13f   : > { %908 = vst.msk [vmem:[%s1557_s23 + $0x14] sm:$0xf] %vm902_vm2, %v1081_v54  ;;  %1257 = vtanh.f32 %v767_v61 }
 0x140   : > { %918 = vst.msk [vmem:[%s1557_s23 + $0x3c] sm:$0xf] %vm902_vm2, %v1091_v57  ;;  %v818_v63 = vmul.f32 %v800_v60, %v674_v15 }
 0x141   : > { %v1250_v20 = vpop.eup %1249 }
 0x142   : > { %v810_v0 = vadd.f32 1.0, %v1250_v20  ;;  %v1082_v1 = vpack.c.bf16 %v818_v63, %v818_v63 }
 0x144   : > { %v1252_v4 = vpop.eup %1251  ;;  %v828_v5 = vmul.f32 %v810_v0, %v684_v62  ;;  %909 = vst.msk [vmem:[%s1557_s23 + $0x18] sm:$0xf] %vm902_vm2, %v1082_v1 }
 0x145   : > { %v1254_v6 = vpop.eup %1253  ;;  %v801_v58 = vadd.f32 1.0, %v1252_v4 }
 0x146   : > { %v1092_v7 = vpack.c.bf16 %v828_v5, %v828_v5  ;;  %v811_v9 = vadd.f32 1.0, %v1254_v6 }
 0x147   : > { %v819_v10 = vmul.f32 %v801_v58, %v675_v32 }
 0x148   : > { %919 = vst.msk [vmem:[%s1557_s23 + $0x40] sm:$0xf] %vm902_vm2, %v1092_v7  ;;  %v829_v38 = vmul.f32 %v811_v9, %v685_v8  ;;  %v1256_v14 = vpop.eup %1255 }
 0x149   : > { %v1083_v13 = vpack.c.bf16 %v819_v10, %v819_v10  ;;  %v1258_v16 = vpop.eup %1257  ;;  %v802_v21 = vadd.f32 1.0, %v1256_v14 }
 0x14a   : > { %v1093_v3 = vpack.c.bf16 %v829_v38, %v829_v38  ;;  %v803_v12 = vadd.f32 1.0, %v1258_v16 }
 0x14b   : > { %910 = vst.msk [vmem:[%s1557_s23 + $0x1c] sm:$0xf] %vm902_vm2, %v1083_v13  ;;  %v820_v56 = vmul.f32 %v802_v21, %v676_v17 }
 0x14c   : > { %920 = vst.msk [vmem:[%s1557_s23 + $0x44] sm:$0xf] %vm902_vm2, %v1093_v3  ;;  %v821_v22 = vmul.f32 %v803_v12, %v677_v11 }
 0x14d   : > { %v1084_v23 = vpack.c.bf16 %v820_v56, %v820_v56 }
 0x14e   : > { %v1085_v24 = vpack.c.bf16 %v821_v22, %v821_v22 }
 0x14f   : > { %911 = vst.msk [vmem:[%s1557_s23 + $0x20] sm:$0xf] %vm902_vm2, %v1084_v23 }
 0x150   : > { %912 = vst.msk [vmem:[%s1557_s23 + $0x24] sm:$0xf] %vm902_vm2, %v1085_v24 }
 0x151 PF: > { %s14_s17 = sadd.s32 1, %s1281_s17   ;;  %s1677_s15 = smov %s1277_s16 }
 0x152   : > { %p11_p5 = scmp.ge.s32.totalorder %s14_s17, 4   ;;  %s1678_s16 = smov %s1680_s18 }
 0x154   :  { %13 = sbr.rel (!%p11_p5) target bundleno = 2 (0x2), region = 77 }

// kernel: spatiotemporal_encoder.9
= control target key start
LH: loop header
LB: loop body
LE: loop exit
PB: predicated region body
PF: predicated region fallthrough
CT: control target
= control target key end

     0   :  { %s4440_s15 = smov 0   ;;  %s4442_s16 = smov 0   ;;  %s5272_s0 = inlined_call_operand.vmem [shape: bf16[2,144,1792], index: 0, kind: input, shape index: {}]   ;;  %s5273_s1 = inlined_call_operand.vmem [shape: bf16[1792,128], index: 1, kind: input, shape index: {}]   ;;  %s5274_s2 = inlined_call_operand.vmem [shape: f32[1,128], index: 2, kind: input, shape index: {}]   ;;  %s5275_s3 = inlined_call_operand.vmem [shape: f32[1,128], index: 3, kind: input, shape index: {}]   ;;  %s5276_s4 = inlined_call_operand.vmem [shape: bf16[2,144,128], index: 4, kind: output, shape index: {}]  }
   0x1   :  { %s4444_s17 = smov 0  }
   0x2 LB: > { %s33_s18 = sadd.s32 1, %s4409_s16  ;;  %p3188_p0 = scmp.ge.s32.totalorder %s4413_s17, 1  ;;  %s4413_s17 = sphi %s4444_s17, %s14_s17   ;;  %s4409_s16 = sphi %s4442_s16, %s5278_s16   ;;  %s4405_s15 = sphi %s4440_s15, %s5277_s15  }
   0x3   : > { %p35_p1 = scmp.ge.s32.totalorder %s33_s18, 2  ;;  %p209_p2 = scmp.lt.s32.totalorder %s4413_s17, 3 }
   0x5   : > { %s5280_s18 = smov (%p35_p1, %s33_s18), 0  ;;  %p210_p3 = pnand %p3188_p0, %p209_p2 }
   0x6   : > { %v4054_v0 = vld [vmem:[%s5273_s1 + $0x40] sm:$0xff] (!%p210_p3)   ;;  %v4056_v2 = vld [vmem:[%s5273_s1 + $0x48] sm:$0xff] (!%p210_p3)   ;;  %p255_p4 = scmp.lt.s32.totalorder (!%p210_p3), %s4405_s15, 1  ;;  %v4058_v4 = vld [vmem:[%s5273_s1 + $0x50] sm:$0xff] (!%p210_p3)  }
   0x7   : > { %213 = sbr.rel (%p210_p3) target bundleno = 541 (0x21d), region = 36  ;;  %v4055_v1 = vld [vmem:[%s5273_s1] sm:$0xff] (!%p210_p3)   ;;  %4012 = vmatprep.subr.bf16.mxu1 (!%p210_p3), %v4054_v0  ;;  %3522 = vmatprep.subr.bf16.mxu0 (!%p210_p3), %v4054_v0  ;;  %v4057_v3 = vld [vmem:[%s5273_s1 + $0x8] sm:$0xff] (!%p210_p3)   ;;  %v4059_v5 = vld [vmem:[%s5273_s1 + $0x10] sm:$0xff] (!%p210_p3)  }
   0x8   : > { %4020 = vmatpush3.bf16.msra.mxu1 (!%p210_p3), %v4055_v1  ;;  %3523 = vmatpush3.bf16.msra.mxu0 (!%p210_p3), %v4055_v1  ;;  %v4060_v6 = vld [vmem:[%s5273_s1 + $0x58] sm:$0xff] (!%p210_p3)   ;;  %v4062_v8 = vld [vmem:[%s5273_s1 + $0x60] sm:$0xff] (!%p210_p3)   ;;  %v4064_v10 = vld [vmem:[%s5273_s1 + $0x68] sm:$0xff] (!%p210_p3)  }
   0x9   : > { %4013 = vmatprep.subr.bf16.mxu1 (!%p210_p3), %v4056_v2  ;;  %3524 = vmatprep.subr.bf16.mxu0 (!%p210_p3), %v4056_v2  ;;  %v4061_v7 = vld [vmem:[%s5273_s1 + $0x18] sm:$0xff] (!%p210_p3)   ;;  %v4063_v9 = vld [vmem:[%s5273_s1 + $0x20] sm:$0xff] (!%p210_p3)   ;;  %v4065_v12 = vld [vmem:[%s5273_s1 + $0x28] sm:$0xff] (!%p210_p3)  }
   0xa   : > { %v4066_v13 = vld [vmem:[%s5273_s1 + $0x70] sm:$0xff] (!%p210_p3)   ;;  %v4068_v16 = vld [vmem:[%s5273_s1 + $0x78] sm:$0xff] (!%p210_p3)   ;;  %v4073_v18 = vld [vmem:[%s5273_s1 + $0xc0] sm:$0xff] (!%p210_p3)  }
   0xb   : > { %v4067_v15 = vld [vmem:[%s5273_s1 + $0x30] sm:$0xff] (!%p210_p3)   ;;  %v4069_v17 = vld [vmem:[%s5273_s1 + $0x38] sm:$0xff] (!%p210_p3)   ;;  %v4083_v20 = vld [vmem:[%s5273_s1 + $0x140] sm:$0xff] (!%p210_p3)  }
   0xc   : > { %4021 = vmatpush3.bf16.msra.mxu1 (!%p210_p3), %v4057_v3  ;;  %3525 = vmatpush3.bf16.msra.mxu0 (!%p210_p3), %v4057_v3  ;;  %v4074_v21 = vld [vmem:[%s5273_s1 + $0x80] sm:$0xff] (!%p210_p3)   ;;  %v4075_v22 = vld [vmem:[%s5273_s1 + $0xc8] sm:$0xff] (!%p210_p3)   ;;  %v4085_v29 = vld [vmem:[%s5273_s1 + $0xd0] sm:$0xff] (!%p210_p3)  }
   0xd   : > { %4014 = vmatprep.subr.bf16.mxu1 (!%p210_p3), %v4058_v4  ;;  %3526 = vmatprep.subr.bf16.mxu0 (!%p210_p3), %v4058_v4  ;;  %v4084_v25 = vld [vmem:[%s5273_s1 + $0x100] sm:$0xff] (!%p210_p3)   ;;  %v4087_v26 = vld [vmem:[%s5273_s1 + $0x148] sm:$0xff] (!%p210_p3)   ;;  %v4086_v32 = vld [vmem:[%s5273_s1 + $0x90] sm:$0xff] (!%p210_p3)  }
   0xe   : > { %s5282_s15 = smov (!%p255_p4, %s4405_s15), 1  ;;  %v4076_v28 = vld [vmem:[%s5273_s1 + $0x88] sm:$0xff]   ;;  %v4097_v34 = vld [vmem:[%s5273_s1 + $0x150] sm:$0xff]   ;;  %v4093_v35 = vld [vmem:[%s5273_s1 + $0xd8] sm:$0xff]  }
   0xf   : > { %s4028_s7 = smul.u32 1008, %s5282_s15  ;;  %v4088_v31 = vld [vmem:[%s5273_s1 + $0x108] sm:$0xff]   ;;  %v4098_v37 = vld [vmem:[%s5273_s1 + $0x110] sm:$0xff]   ;;  %v4100_v38 = vld [vmem:[%s5273_s1 + $0x158] sm:$0xff]  }
  0x10   : > { %4022 = vmatpush3.bf16.msra.mxu1 %v4059_v5  ;;  %3527 = vmatpush3.bf16.msra.mxu0 %v4059_v5  ;;  %v4096_v40 = vld [vmem:[%s5273_s1 + $0x98] sm:$0xff]   ;;  %v4099_v41 = vld [vmem:[%s5273_s1 + $0xe0] sm:$0xff]   ;;  %v4110_v48 = vld [vmem:[%s5273_s1 + $0xe8] sm:$0xff]   ;;  %s4029_s13 = smul.u32 72, %s5282_s15 }
  0x11   : > { %4015 = vmatprep.subr.bf16.mxu1 %v4060_v6  ;;  %3528 = vmatprep.subr.bf16.mxu0 %v4060_v6  ;;  %s4491_s14 = scalar_lea.vmem %s5272_s0, %s4028_s7  ;;  %v4102_v43 = vld [vmem:[%s5273_s1 + $0x118] sm:$0xff]   ;;  %v4101_v44 = vld [vmem:[%s5273_s1 + $0xa0] sm:$0xff]   ;;  %v4112_v50 = vld [vmem:[%s5273_s1 + $0xa8] sm:$0xff]  }
  0x12   : > { %v4072_v11 = vld [vmem:[%s4491_s14 + $0x1c4] ss:$56 sps:$4 sm:$0xff]   ;;  %v4070_v19 = vld [vmem:[%s4491_s14 + $0x1c0] ss:$56 sps:$4 sm:$0xff]   ;;  %v4080_v24 = vld [vmem:[%s4491_s14 + $0x234] ss:$56 sps:$4 sm:$0xff]   ;;  %s5154_s20 = scalar_lea.vmem %s5276_s4, %s4029_s13 }
  0x13   : > { %2042 = vmatprep.mubr.bf16.mxu1 %v4072_v11  ;;  %v4079_v14 = vld [vmem:[%s4491_s14 + $0x4] ss:$56 sps:$4 sm:$0xff]   ;;  %v4077_v23 = vld [vmem:[%s4491_s14] ss:$56 sps:$4 sm:$0xff]   ;;  %v4089_v27 = vld [vmem:[%s4491_s14 + $0x74] ss:$56 sps:$4 sm:$0xff]  }
  0x14   : > { %4023 = vmatpush3.bf16.msra.mxu1 %v4061_v7  ;;  %3529 = vmatpush3.bf16.msra.mxu0 %v4061_v7  ;;  %v4082_v30 = vld [vmem:[%s4491_s14 + $0x230] ss:$56 sps:$4 sm:$0xff]   ;;  %v4091_v33 = vld [vmem:[%s4491_s14 + $0x2a4] ss:$56 sps:$4 sm:$0xff]   ;;  %v4095_v42 = vld [vmem:[%s4491_s14 + $0x2a0] ss:$56 sps:$4 sm:$0xff]  }
  0x15   : > { %4016 = vmatprep.subr.bf16.mxu1 %v4062_v8  ;;  %3530 = vmatprep.subr.bf16.mxu0 %v4062_v8  ;;  %v4094_v36 = vld [vmem:[%s4491_s14 + $0x70] ss:$56 sps:$4 sm:$0xff]   ;;  %v4103_v39 = vld [vmem:[%s4491_s14 + $0xe4] ss:$56 sps:$4 sm:$0xff]   ;;  %v4105_v45 = vld [vmem:[%s4491_s14 + $0x314] ss:$56 sps:$4 sm:$0xff]  }
  0x16   : > { %2010 = vmatprep.mubr.bf16.mxu0 %v4079_v14  ;;  %v4109_v46 = vld [vmem:[%s5273_s1 + $0x160] sm:$0xff]   ;;  %v4113_v51 = vld [vmem:[%s5273_s1 + $0x168] sm:$0xff]   ;;  %v4115_v55 = vld [vmem:[%s5273_s1 + $0xf0] sm:$0xff]  }
  0x17   : > { %v4107_v47 = vld [vmem:[%s4491_s14 + $0xe0] ss:$56 sps:$4 sm:$0xff]   ;;  %v4114_v52 = vld [vmem:[%s5273_s1 + $0x128] sm:$0xff]   ;;  %v4118_v56 = vld [vmem:[%s4491_s14 + $0x384] ss:$56 sps:$4 sm:$0xff]  }
  0x18   : > { %4024 = vmatpush3.bf16.msra.mxu1 %v4063_v9  ;;  %3531 = vmatpush3.bf16.msra.mxu0 %v4063_v9  ;;  %v4111_v49 = vld [vmem:[%s5273_s1 + $0x120] sm:$0xff]   ;;  %v4116_v53 = vld [vmem:[%s4491_s14 + $0x154] ss:$56 sps:$4 sm:$0xff]   ;;  %v4108_v54 = vld [vmem:[%s4491_s14 + $0x310] ss:$56 sps:$4 sm:$0xff]  }
  0x19   : > { %4017 = vmatprep.subr.bf16.mxu1 %v4064_v10  ;;  %3532 = vmatprep.subr.bf16.mxu0 %v4064_v10  ;;  %v4120_v57 = vld [vmem:[%s5273_s1 + $0xb0] sm:$0xff]   ;;  %v4125_v61 = vld [vmem:[%s5273_s1 + $0xf8] sm:$0xff]   ;;  %v4131_v2 = vld [vmem:[%s4491_s14 + $0xc] ss:$56 sps:$4 sm:$0xff]  }
  0x1a   : > { %v4121_v58 = vld [vmem:[%s4491_s14 + $0x150] ss:$56 sps:$4 sm:$0xff]   ;;  %v4127_v62 = vld [vmem:[%s5273_s1 + $0x178] sm:$0xff]   ;;  %v4134_v4 = vld [vmem:[%s4491_s14 + $0x14] ss:$56 sps:$4 sm:$0xff]  }
  0x1b   : > { %v4123_v59 = vld [vmem:[%s5273_s1 + $0x170] sm:$0xff]   ;;  %v4126_v63 = vld [vmem:[%s5273_s1 + $0xb8] sm:$0xff]   ;;  %v4135_v5 = vld [vmem:[%s5273_s1 + $0x1c0] sm:$0xff]  }
  0x1c   : > { %4025 = vmatpush3.bf16.msra.mxu1 %v4065_v12  ;;  %3533 = vmatpush3.bf16.msra.mxu0 %v4065_v12  ;;  %v4124_v60 = vld [vmem:[%s5273_s1 + $0x130] sm:$0xff]   ;;  %v4122_v0 = vld [vmem:[%s4491_s14 + $0x380] ss:$56 sps:$4 sm:$0xff]   ;;  %v4141_v9 = vld [vmem:[%s4491_s14 + $0x84] ss:$56 sps:$4 sm:$0xff]  }
  0x1d   : > { %4018 = vmatprep.subr.bf16.mxu1 %v4066_v13  ;;  %3534 = vmatprep.subr.bf16.mxu0 %v4066_v13  ;;  %v4128_v1 = vld [vmem:[%s5273_s1 + $0x138] sm:$0xff]   ;;  %v4132_v3 = vld [vmem:[%s4491_s14 + $0x10] ss:$56 sps:$4 sm:$0xff]   ;;  %v4137_v6 = vld [vmem:[%s5273_s1 + $0x240] sm:$0xff]  }
  0x1e   : > { %v4138_v7 = vld [vmem:[%s5273_s1 + $0x200] sm:$0xff]   ;;  %v4139_v11 = vld [vmem:[%s4491_s14 + $0x7c] ss:$56 sps:$4 sm:$0xff]   ;;  %v4145_v13 = vld [vmem:[%s5273_s1 + $0x1c8] sm:$0xff]  }
  0x1f   : > { %v4129_v8 = vld [vmem:[%s4491_s14 + $0x8] ss:$56 sps:$4 sm:$0xff]  }
  0x20   : > { %4026 = vmatpush3.bf16.msra.mxu1 %v4067_v15  ;;  %3535 = vmatpush3.bf16.msra.mxu0 %v4067_v15  ;;  %v4136_v10 = vld [vmem:[%s5273_s1 + $0x180] sm:$0xff]   ;;  %v4147_v14 = vld [vmem:[%s5273_s1 + $0x248] sm:$0xff]  }
  0x21   : > { %4019 = vmatprep.subr.bf16.mxu1 %v4068_v16  ;;  %3536 = vmatprep.subr.bf16.mxu0 %v4068_v16  ;;  %v4144_v12 = vld [vmem:[%s4491_s14 + $0x80] ss:$56 sps:$4 sm:$0xff]   ;;  %v4148_v15 = vld [vmem:[%s5273_s1 + $0x208] sm:$0xff]  }
  0x22   : > { %v4146_v16 = vld [vmem:[%s5273_s1 + $0x188] sm:$0xff]  }
  0x24   : > { %4027 = vmatpush3.bf16.msra.mxu1 %v4069_v17  ;;  %3537 = vmatpush3.bf16.msra.mxu0 %v4069_v17  ;;  %v4151_v17 = vld [vmem:[%s4491_s14 + $0xf4] ss:$56 sps:$4 sm:$0xff]  }
  0x25   : > { %3592 = vmatprep.subr.bf16.mxu1 %v4073_v18  ;;  %3662 = vmatprep.subr.bf16.mxu0 %v4083_v20  ;;  %v4143_v18 = vld [vmem:[%s4491_s14 + $0x78] ss:$56 sps:$4 sm:$0xff]   ;;  %v4149_v20 = vld [vmem:[%s4491_s14 + $0xec] ss:$56 sps:$4 sm:$0xff]  }
  0x27   : > { %2043 = vmatmul.mubr.bf16.vlgmr.msra.gmra.mrb[0].mxu1 %v4070_v19  ;;  %2011 = vmatmul.mubr.bf16.vlgmr.msra.gmra.mrb[0].mxu0 %v4077_v23  ;;  %v4155_v19 = vld [vmem:[%s5273_s1 + $0x1d0] sm:$0xff]  }
  0x28   : > { %3593 = vmatpush3.bf16.msra.mxu1 %v4074_v21  ;;  %2050 = vmatprep.mubr.bf16.mxu1 %v4080_v24  ;;  %v4156_v21 = vld [vmem:[%s5273_s1 + $0x190] sm:$0xff]  }
  0x29   : > { %3594 = vmatprep.subr.bf16.mxu1 %v4075_v22  ;;  %3663 = vmatpush3.bf16.msra.mxu0 %v4084_v25  ;;  %v4157_v22 = vld [vmem:[%s5273_s1 + $0x250] sm:$0xff]   ;;  %v4161_v25 = vld [vmem:[%s4491_s14 + $0x164] ss:$56 sps:$4 sm:$0xff]  }
  0x2a   : > { %3664 = vmatprep.subr.bf16.mxu0 %v4087_v26  ;;  %2018 = vmatprep.mubr.bf16.mxu0 %v4089_v27  ;;  %v4158_v23 = vld [vmem:[%s5273_s1 + $0x210] sm:$0xff]   ;;  %v4165_v26 = vld [vmem:[%s5273_s1 + $0x1d8] sm:$0xff]   ;;  %v4153_v27 = vld [vmem:[%s4491_s14 + $0xe8] ss:$56 sps:$4 sm:$0xff]  }
  0x2b   : > { %v4154_v24 = vld [vmem:[%s4491_s14 + $0xf0] ss:$56 sps:$4 sm:$0xff]  }
  0x2c   : > { %3595 = vmatpush3.bf16.msra.mxu1 %v4076_v28  ;;  %v4166_v28 = vld [vmem:[%s5273_s1 + $0x198] sm:$0xff]  }
  0x2d   : > { %3596 = vmatprep.subr.bf16.mxu1 %v4085_v29  ;;  %3665 = vmatpush3.bf16.msra.mxu0 %v4088_v31  ;;  %v4167_v29 = vld [vmem:[%s5273_s1 + $0x258] sm:$0xff]  }
  0x2e   : > { %3666 = vmatprep.subr.bf16.mxu0 %v4097_v34  ;;  %v4159_v31 = vld [vmem:[%s4491_s14 + $0x15c] ss:$56 sps:$4 sm:$0xff]   ;;  %v4175_v34 = vld [vmem:[%s5273_s1 + $0x1e0] sm:$0xff]  }
  0x2f   : > { %2051 = vmatmul.mubr.bf16.gmra.mrb[4].mxu1 %v4082_v30  ;;  %2019 = vmatmul.mubr.bf16.gmra.mrb[4].mxu0 %v4094_v36  ;;  %v4168_v30 = vld [vmem:[%s5273_s1 + $0x218] sm:$0xff]   ;;  %v4177_v36 = vld [vmem:[%s5273_s1 + $0x260] sm:$0xff]  }
  0x30   : > { %3597 = vmatpush3.bf16.msra.mxu1 %v4086_v32  ;;  %2058 = vmatprep.mubr.bf16.mxu1 %v4091_v33  ;;  %v4164_v32 = vld [vmem:[%s4491_s14 + $0x160] ss:$56 sps:$4 sm:$0xff]   ;;  %v4171_v33 = vld [vmem:[%s4491_s14 + $0x1d4] ss:$56 sps:$4 sm:$0xff]  }
  0x31   : > { %3598 = vmatprep.subr.bf16.mxu1 %v4093_v35  ;;  %3667 = vmatpush3.bf16.msra.mxu0 %v4098_v37  ;;  %v4176_v35 = vld [vmem:[%s5273_s1 + $0x1a0] sm:$0xff]   ;;  %v4163_v37 = vld [vmem:[%s4491_s14 + $0x158] ss:$56 sps:$4 sm:$0xff]  }
  0x32   : > { %3668 = vmatprep.subr.bf16.mxu0 %v4100_v38  ;;  %2026 = vmatprep.mubr.bf16.mxu0 %v4103_v39  ;;  %v4169_v38 = vld [vmem:[%s4491_s14 + $0x1cc] ss:$56 sps:$4 sm:$0xff]   ;;  %v4174_v39 = vld [vmem:[%s4491_s14 + $0x1d0] ss:$56 sps:$4 sm:$0xff]  }
  0x34   : > { %3599 = vmatpush3.bf16.msra.mxu1 %v4096_v40  ;;  %v4180_v40 = vld [vmem:[%s4491_s14 + $0x244] ss:$56 sps:$4 sm:$0xff]  }
  0x35   : > { %3600 = vmatprep.subr.bf16.mxu1 %v4099_v41  ;;  %3669 = vmatpush3.bf16.msra.mxu0 %v4102_v43  ;;  %v4182_v41 = vld [vmem:[%s5273_s1 + $0x220] sm:$0xff]   ;;  %v4186_v43 = vld [vmem:[%s5273_s1 + $0x1a8] sm:$0xff]  }
  0x36   : > { %3670 = vmatprep.subr.bf16.mxu0 %v4109_v46  ;;  %v4178_v46 = vld [vmem:[%s4491_s14 + $0x23c] ss:$56 sps:$4 sm:$0xff]  }
  0x37   : > { %2059 = vmatmul.mubr.bf16.gmra.mrb[8].mxu1 %v4095_v42  ;;  %2027 = vmatmul.mubr.bf16.gmra.mrb[8].mxu0 %v4107_v47  ;;  %v4185_v42 = vld [vmem:[%s5273_s1 + $0x1e8] sm:$0xff]  }
  0x38   : > { %3601 = vmatpush3.bf16.msra.mxu1 %v4101_v44  ;;  %2066 = vmatprep.mubr.bf16.mxu1 %v4105_v45  ;;  %v4191_v44 = vld [vmem:[%s5273_s1 + $0x268] sm:$0xff]  }
  0x39   : > { %3602 = vmatprep.subr.bf16.mxu1 %v4110_v48  ;;  %3671 = vmatpush3.bf16.msra.mxu0 %v4111_v49  ;;  %v4173_v45 = vld [vmem:[%s4491_s14 + $0x1c8] ss:$56 sps:$4 sm:$0xff]   ;;  %v4195_v48 = vld [vmem:[%s5273_s1 + $0x1f0] sm:$0xff]  }
  0x3a   : > { %3672 = vmatprep.subr.bf16.mxu0 %v4113_v51  ;;  %2034 = vmatprep.mubr.bf16.mxu0 %v4116_v53  ;;  %v4194_v47 = vld [vmem:[%s5273_s1 + $0x228] sm:$0xff]   ;;  %v4184_v49 = vld [vmem:[%s4491_s14 + $0x240] ss:$56 sps:$4 sm:$0xff]   ;;  %v4200_v51 = vld [vmem:[%s5273_s1 + $0x1b0] sm:$0xff]  }
  0x3b   : > { %v4204_v53 = vld [vmem:[%s5273_s1 + $0x230] sm:$0xff]  }
  0x3c   : > { %3603 = vmatpush3.bf16.msra.mxu1 %v4112_v50  ;;  %v4189_v50 = vld [vmem:[%s4491_s14 + $0x2b4] ss:$56 sps:$4 sm:$0xff]  }
  0x3d   : > { %3673 = vmatpush3.bf16.msra.mxu0 %v4114_v52  ;;  %3604 = vmatprep.subr.bf16.mxu1 %v4115_v55  ;;  %v4203_v52 = vld [vmem:[%s5273_s1 + $0x270] sm:$0xff]   ;;  %v4187_v55 = vld [vmem:[%s4491_s14 + $0x2ac] ss:$56 sps:$4 sm:$0xff]  }
  0x3e   : > { %3674 = vmatprep.subr.bf16.mxu0 %v4123_v59  ;;  %v4212_v59 = vld [vmem:[%s5273_s1 + $0x1b8] sm:$0xff]  }
  0x3f   : > { %2067 = vmatmul.mubr.bf16.gmra.mrb[12].mxu1 %v4108_v54  ;;  %2035 = vmatmul.mubr.bf16.gmra.mrb[12].mxu0 %v4121_v58  ;;  %v4183_v54 = vld [vmem:[%s4491_s14 + $0x238] ss:$56 sps:$4 sm:$0xff]  }
  0x40   : > { %2074 = vmatprep.mubr.bf16.mxu1 %v4118_v56  ;;  %3605 = vmatpush3.bf16.msra.mxu1 %v4120_v57  ;;  %v4193_v56 = vld [vmem:[%s4491_s14 + $0x2b0] ss:$56 sps:$4 sm:$0xff]   ;;  %v4198_v57 = vld [vmem:[%s4491_s14 + $0x324] ss:$56 sps:$4 sm:$0xff]  }
  0x41   : > { %3675 = vmatpush3.bf16.msra.mxu0 %v4124_v60  ;;  %3606 = vmatprep.subr.bf16.mxu1 %v4125_v61  ;;  %v4209_v58 = vld [vmem:[%s5273_s1 + $0x1f8] sm:$0xff]  }
  0x42   : > { %3676 = vmatprep.subr.bf16.mxu0 %v4127_v62  ;;  %2220 = vmatprep.mubr.bf16.mxu0 %v4134_v4  ;;  %v4213_v60 = vld [vmem:[%s5273_s1 + $0x278] sm:$0xff]   ;;  %v4192_v62 = vld [vmem:[%s4491_s14 + $0x2a8] ss:$56 sps:$4 sm:$0xff]  }
  0x43   : > { %v4214_v61 = vld [vmem:[%s5273_s1 + $0x238] sm:$0xff]  }
  0x44   : > { %3607 = vmatpush3.bf16.msra.mxu1 %v4126_v63  ;;  %v4196_v63 = vld [vmem:[%s4491_s14 + $0x31c] ss:$56 sps:$4 sm:$0xff]   ;;  %v4201_v4 = vld [vmem:[%s4491_s14 + $0x318] ss:$56 sps:$4 sm:$0xff]  }
  0x45   : > { %3677 = vmatpush3.bf16.msra.mxu0 %v4128_v1  ;;  %3732 = vmatprep.subr.bf16.mxu1 %v4135_v5  ;;  %v4221_v1 = vld [vmem:[%s5273_s1 + $0x2c0] sm:$0xff]  }
  0x46   : > { %3802 = vmatprep.subr.bf16.mxu0 %v4137_v6  ;;  %v4205_v5 = vld [vmem:[%s4491_s14 + $0x38c] ss:$56 sps:$4 sm:$0xff]   ;;  %v4211_v6 = vld [vmem:[%s4491_s14 + $0x390] ss:$56 sps:$4 sm:$0xff]  }
  0x47   : > { %2075 = vmatmul.mubr.bf16.gmra.mrb[16].mxu1 %v4122_v0  ;;  %v4202_v0 = vld [vmem:[%s4491_s14 + $0x320] ss:$56 sps:$4 sm:$0xff]  }
  0x48   : > { %2115 = vmatprep.mubr.bf16.mxu1 %v4131_v2  ;;  %2221 = vmatmul.mubr.bf16.vlgmr.msra.gmra.mrb[16].mxu0 %v4132_v3  ;;  %v4207_v2 = vld [vmem:[%s4491_s14 + $0x394] ss:$56 sps:$4 sm:$0xff]   ;;  %v4223_v3 = vld [vmem:[%s5273_s1 + $0x340] sm:$0xff]  }
  0x49   : > { %3803 = vmatpush3.bf16.msra.mxu0 %v4138_v7  ;;  %2228 = vmatprep.mubr.bf16.mxu0 %v4141_v9  ;;  %v4220_v7 = vld [vmem:[%s4491_s14 + $0x24] ss:$56 sps:$4 sm:$0xff]  }
  0x4a   : > { %3804 = vmatprep.subr.bf16.mxu0 %v4147_v14  ;;  %v4217_v9 = vld [vmem:[%s4491_s14 + $0x1c] ss:$56 sps:$4 sm:$0xff]   ;;  %v4215_v14 = vld [vmem:[%s4491_s14 + $0x18] ss:$56 sps:$4 sm:$0xff]  }
  0x4d   : > { %3805 = vmatpush3.bf16.msra.mxu0 %v4148_v15  ;;  %v4222_v15 = vld [vmem:[%s5273_s1 + $0x280] sm:$0xff]  }
  0x4e   : > { %3806 = vmatprep.subr.bf16.mxu0 %v4157_v22  ;;  %v4244_v22 = vld [vmem:[%s5273_s1 + $0x310] sm:$0xff]  }
  0x4f   : > { %2116 = vmatmul.mubr.bf16.vlgmr.msra.gmra.mrb[20].mxu1 %v4129_v8  ;;  %v4210_v8 = vld [vmem:[%s4491_s14 + $0x388] ss:$56 sps:$4 sm:$0xff]  }
  0x50   : > { %3733 = vmatpush3.bf16.msra.mxu1 %v4136_v10  ;;  %2123 = vmatprep.mubr.bf16.mxu1 %v4139_v11  ;;  %v4218_v10 = vld [vmem:[%s4491_s14 + $0x20] ss:$56 sps:$4 sm:$0xff]  }
  0x51   : > { %2229 = vmatmul.mubr.bf16.gmra.mrb[20].mxu0 %v4144_v12  ;;  %3734 = vmatprep.subr.bf16.mxu1 %v4145_v13  ;;  %v4224_v11 = vld [vmem:[%s5273_s1 + $0x300] sm:$0xff]   ;;  %v4227_v12 = vld [vmem:[%s4491_s14 + $0x94] ss:$56 sps:$4 sm:$0xff]  }
  0x52   : > { %2236 = vmatprep.mubr.bf16.mxu0 %v4151_v17  ;;  %3807 = vmatpush3.bf16.msra.mxu0 %v4158_v23  ;;  %v4233_v13 = vld [vmem:[%s5273_s1 + $0x348] sm:$0xff]   ;;  %v4253_v23 = vld [vmem:[%s5273_s1 + $0x358] sm:$0xff]  }
  0x53   : > { %3808 = vmatprep.subr.bf16.mxu0 %v4167_v29  ;;  %v4234_v17 = vld [vmem:[%s5273_s1 + $0x308] sm:$0xff]   ;;  %v4263_v29 = vld [vmem:[%s5273_s1 + $0x360] sm:$0xff]  }
  0x54   : > { %3735 = vmatpush3.bf16.msra.mxu1 %v4146_v16  ;;  %v4225_v16 = vld [vmem:[%s4491_s14 + $0x8c] ss:$56 sps:$4 sm:$0xff]  }
  0x55   : > { %3736 = vmatprep.subr.bf16.mxu1 %v4155_v19  ;;  %v4230_v19 = vld [vmem:[%s4491_s14 + $0x90] ss:$56 sps:$4 sm:$0xff]  }
  0x56   : > { %3809 = vmatpush3.bf16.msra.mxu0 %v4168_v30  ;;  %v4240_v30 = vld [vmem:[%s4491_s14 + $0x100] ss:$56 sps:$4 sm:$0xff]  }
  0x57   : > { %2124 = vmatmul.mubr.bf16.gmra.mrb[24].mxu1 %v4143_v18  ;;  %3810 = vmatprep.subr.bf16.mxu0 %v4177_v36  ;;  %v4243_v18 = vld [vmem:[%s5273_s1 + $0x350] sm:$0xff]   ;;  %v4261_v36 = vld [vmem:[%s5273_s1 + $0x2e0] sm:$0xff]  }
  0x58   : > { %2131 = vmatprep.mubr.bf16.mxu1 %v4149_v20  ;;  %3737 = vmatpush3.bf16.msra.mxu1 %v4156_v21  ;;  %v4231_v20 = vld [vmem:[%s5273_s1 + $0x2c8] sm:$0xff]   ;;  %v4237_v21 = vld [vmem:[%s4491_s14 + $0x104] ss:$56 sps:$4 sm:$0xff]  }
  0x59   : > { %2237 = vmatmul.mubr.bf16.gmra.mrb[24].mxu0 %v4154_v24  ;;  %3738 = vmatprep.subr.bf16.mxu1 %v4165_v26  ;;  %v4232_v24 = vld [vmem:[%s5273_s1 + $0x288] sm:$0xff]   ;;  %v4241_v26 = vld [vmem:[%s5273_s1 + $0x2d0] sm:$0xff]  }
  0x5a   : > { %2244 = vmatprep.mubr.bf16.mxu0 %v4161_v25  ;;  %3811 = vmatpush3.bf16.msra.mxu0 %v4182_v41  ;;  %v4229_v25 = vld [vmem:[%s4491_s14 + $0x88] ss:$56 sps:$4 sm:$0xff]  }
  0x5b   : > { %3812 = vmatprep.subr.bf16.mxu0 %v4191_v44  ;;  %v4280_v41 = vld [vmem:[%s5273_s1 + $0x328] sm:$0xff]   ;;  %v4257_v44 = vld [vmem:[%s4491_s14 + $0x1e4] ss:$56 sps:$4 sm:$0xff]  }
  0x5c   : > { %3739 = vmatpush3.bf16.msra.mxu1 %v4166_v28  ;;  %v4254_v28 = vld [vmem:[%s5273_s1 + $0x318] sm:$0xff]  }
  0x5d   : > { %3740 = vmatprep.subr.bf16.mxu1 %v4175_v34  ;;  %v4268_v34 = vld [vmem:[%s5273_s1 + $0x320] sm:$0xff]  }
  0x5e   : > { %3813 = vmatpush3.bf16.msra.mxu0 %v4194_v47  ;;  %v4249_v47 = vld [vmem:[%s4491_s14 + $0x168] ss:$56 sps:$4 sm:$0xff]  }
  0x5f   : > { %2132 = vmatmul.mubr.bf16.gmra.mrb[28].mxu1 %v4153_v27  ;;  %3814 = vmatprep.subr.bf16.mxu0 %v4203_v52  ;;  %v4235_v27 = vld [vmem:[%s4491_s14 + $0xfc] ss:$56 sps:$4 sm:$0xff]   ;;  %v4260_v52 = vld [vmem:[%s4491_s14 + $0x1e0] ss:$56 sps:$4 sm:$0xff]  }
  0x60   : > { %2139 = vmatprep.mubr.bf16.mxu1 %v4159_v31  ;;  %3741 = vmatpush3.bf16.msra.mxu1 %v4176_v35  ;;  %v4242_v31 = vld [vmem:[%s5273_s1 + $0x290] sm:$0xff]   ;;  %v4252_v35 = vld [vmem:[%s5273_s1 + $0x298] sm:$0xff]  }
  0x61   : > { %2245 = vmatmul.mubr.bf16.gmra.mrb[28].mxu0 %v4164_v32  ;;  %3742 = vmatprep.subr.bf16.mxu1 %v4185_v42  ;;  %v4247_v32 = vld [vmem:[%s4491_s14 + $0x174] ss:$56 sps:$4 sm:$0xff]   ;;  %v4262_v42 = vld [vmem:[%s5273_s1 + $0x2a0] sm:$0xff]  }
  0x62   : > { %2252 = vmatprep.mubr.bf16.mxu0 %v4171_v33  ;;  %3815 = vmatpush3.bf16.msra.mxu0 %v4204_v53  ;;  %v4251_v33 = vld [vmem:[%s5273_s1 + $0x2d8] sm:$0xff]   ;;  %v4266_v53 = vld [vmem:[%s4491_s14 + $0x254] ss:$56 sps:$4 sm:$0xff]  }
  0x63   : > { %3816 = vmatprep.subr.bf16.mxu0 %v4213_v60  ;;  %v4270_v60 = vld [vmem:[%s4491_s14 + $0x250] ss:$56 sps:$4 sm:$0xff]  }
  0x64   : > { %3743 = vmatpush3.bf16.msra.mxu1 %v4186_v43  ;;  %v4271_v43 = vld [vmem:[%s5273_s1 + $0x2e8] sm:$0xff]  }
  0x65   : > { %3744 = vmatprep.subr.bf16.mxu1 %v4195_v48  ;;  %v4289_v48 = vld [vmem:[%s5273_s1 + $0x370] sm:$0xff]  }
  0x66   : > { %3817 = vmatpush3.bf16.msra.mxu0 %v4214_v61  ;;  %v4275_v61 = vld [vmem:[%s4491_s14 + $0x2c4] ss:$56 sps:$4 sm:$0xff]  }
  0x67   : > { %2140 = vmatmul.mubr.bf16.gmra.mrb[32].mxu1 %v4163_v37  ;;  %3942 = vmatprep.subr.bf16.mxu0 %v4223_v3  ;;  %v4277_v37 = vld [vmem:[%s5273_s1 + $0x368] sm:$0xff]  }
  0x68   : > { %2147 = vmatprep.mubr.bf16.mxu1 %v4169_v38  ;;  %3745 = vmatpush3.bf16.msra.mxu1 %v4200_v51  ;;  %v4239_v38 = vld [vmem:[%s4491_s14 + $0xf8] ss:$56 sps:$4 sm:$0xff]   ;;  %v4282_v3 = vld [vmem:[%s4491_s14 + $0x32c] ss:$56 sps:$4 sm:$0xff]  }
  0x69   : > { %2253 = vmatmul.mubr.bf16.gmra.mrb[32].mxu0 %v4174_v39  ;;  %3746 = vmatprep.subr.bf16.mxu1 %v4209_v58  ;;  %v4245_v39 = vld [vmem:[%s4491_s14 + $0x16c] ss:$56 sps:$4 sm:$0xff]   ;;  %v4286_v51 = vld [vmem:[%s5273_s1 + $0x2b0] sm:$0xff]  }
  0x6a   : > { %2260 = vmatprep.mubr.bf16.mxu0 %v4180_v40  ;;  %v4250_v40 = vld [vmem:[%s4491_s14 + $0x170] ss:$56 sps:$4 sm:$0xff]  }
  0x6b   : > { %v4259_v58 = vld [vmem:[%s4491_s14 + $0x1d8] ss:$56 sps:$4 sm:$0xff]  }
  0x6c   : > { %3747 = vmatpush3.bf16.msra.mxu1 %v4212_v59  ;;  %v4264_v59 = vld [vmem:[%s4491_s14 + $0x24c] ss:$56 sps:$4 sm:$0xff]  }
  0x6d   : > { %3872 = vmatprep.subr.bf16.mxu1 %v4221_v1  ;;  %v4284_v1 = vld [vmem:[%s4491_s14 + $0x334] ss:$56 sps:$4 sm:$0xff]  }
  0x6f   : > { %2148 = vmatmul.mubr.bf16.gmra.mrb[36].mxu1 %v4173_v45  ;;  %v4272_v45 = vld [vmem:[%s5273_s1 + $0x2a8] sm:$0xff]  }
  0x70   : > { %2155 = vmatprep.mubr.bf16.mxu1 %v4178_v46  ;;  %v4281_v46 = vld [vmem:[%s5273_s1 + $0x2f0] sm:$0xff]  }
  0x71   : > { %2261 = vmatmul.mubr.bf16.gmra.mrb[36].mxu0 %v4184_v49  ;;  %v4290_v49 = vld [vmem:[%s5273_s1 + $0x330] sm:$0xff]  }
  0x72   : > { %2268 = vmatprep.mubr.bf16.mxu0 %v4189_v50  ;;  %v4255_v50 = vld [vmem:[%s4491_s14 + $0x1dc] ss:$56 sps:$4 sm:$0xff]  }
  0x77   : > { %2156 = vmatmul.mubr.bf16.gmra.mrb[40].mxu1 %v4183_v54  ;;  %v4295_v54 = vld [vmem:[%s5273_s1 + $0x2f8] sm:$0xff]  }
  0x78   : > { %2163 = vmatprep.mubr.bf16.mxu1 %v4187_v55  ;;  %v4298_v55 = vld [vmem:[%s5273_s1 + $0x2b8] sm:$0xff]  }
  0x79   : > { %2269 = vmatmul.mubr.bf16.gmra.mrb[40].mxu0 %v4193_v56  ;;  %v4299_v56 = vld [vmem:[%s5273_s1 + $0x378] sm:$0xff]  }
  0x7a   : > { %2276 = vmatprep.mubr.bf16.mxu0 %v4198_v57  ;;  %v4300_v57 = vld [vmem:[%s5273_s1 + $0x338] sm:$0xff]  }
  0x7f   : > { %2164 = vmatmul.mubr.bf16.gmra.mrb[44].mxu1 %v4192_v62  ;;  %v4269_v62 = vld [vmem:[%s4491_s14 + $0x248] ss:$56 sps:$4 sm:$0xff]  }
  0x80   : > { %2171 = vmatprep.mubr.bf16.mxu1 %v4196_v63  ;;  %v4273_v63 = vld [vmem:[%s4491_s14 + $0x2bc] ss:$56 sps:$4 sm:$0xff]  }
  0x81   : > { %2277 = vmatmul.mubr.bf16.gmra.mrb[44].mxu0 %v4202_v0  ;;  %v4279_v0 = vld [vmem:[%s4491_s14 + $0x2c0] ss:$56 sps:$4 sm:$0xff]  }
  0x82   : > { %2284 = vmatprep.mubr.bf16.mxu0 %v4207_v2  ;;  %v4278_v2 = vld [vmem:[%s4491_s14 + $0x2b8] ss:$56 sps:$4 sm:$0xff]  }
  0x87   : > { %2172 = vmatmul.mubr.bf16.gmra.mrb[48].mxu1 %v4201_v4  ;;  %v4288_v4 = vld [vmem:[%s4491_s14 + $0x330] ss:$56 sps:$4 sm:$0xff]  }
  0x88   : > { %2179 = vmatprep.mubr.bf16.mxu1 %v4205_v5  ;;  %v4293_v5 = vld [vmem:[%s4491_s14 + $0x3a4] ss:$56 sps:$4 sm:$0xff]  }
  0x89   : > { %2285 = vmatmul.mubr.bf16.gmra.mrb[48].mxu0 %v4211_v6  ;;  %v4287_v6 = vld [vmem:[%s4491_s14 + $0x328] ss:$56 sps:$4 sm:$0xff]  }
  0x8a   : > { %2430 = vmatprep.mubr.bf16.mxu0 %v4220_v7  ;;  %v4291_v7 = vld [vmem:[%s4491_s14 + $0x39c] ss:$56 sps:$4 sm:$0xff]  }
  0x8f   : > { %2180 = vmatmul.mubr.bf16.gmra.mrb[52].mxu1 %v4210_v8  ;;  %v4297_v8 = vld [vmem:[%s4491_s14 + $0x3a0] ss:$56 sps:$4 sm:$0xff]  }
  0x90   : > { %2325 = vmatprep.mubr.bf16.mxu1 %v4217_v9  ;;  %v4306_v9 = vld [vmem:[%s4491_s14 + $0x34] ss:$56 sps:$4 sm:$0xff]  }
  0x91   : > { %2431 = vmatmul.mubr.bf16.vlgmr.msra.gmra.mrb[52].mxu0 %v4218_v10  ;;  %v4296_v10 = vld [vmem:[%s4491_s14 + $0x398] ss:$56 sps:$4 sm:$0xff]  }
  0x92   : > { %3943 = vmatpush3.bf16.msra.mxu0 %v4224_v11  ;;  %2438 = vmatprep.mubr.bf16.mxu0 %v4227_v12  ;;  %v4303_v11 = vld [vmem:[%s4491_s14 + $0x2c] ss:$56 sps:$4 sm:$0xff]   ;;  %v4304_v12 = vld [vmem:[%s4491_s14 + $0x30] ss:$56 sps:$4 sm:$0xff]  }
  0x93   : > { %3944 = vmatprep.subr.bf16.mxu0 %v4233_v13  ;;  %v4309_v13 = vld [vmem:[%s4491_s14 + $0xa4] ss:$56 sps:$4 sm:$0xff]  }
  0x96   : > { %3945 = vmatpush3.bf16.msra.mxu0 %v4234_v17  ;;  %v4315_v17 = vld [vmem:[%s4491_s14 + $0x114] ss:$56 sps:$4 sm:$0xff]  }
  0x97   : > { %2326 = vmatmul.mubr.bf16.vlgmr.msra.gmra.mrb[56].mxu1 %v4215_v14  ;;  %3946 = vmatprep.subr.bf16.mxu0 %v4243_v18  ;;  %v4301_v14 = vld [vmem:[%s4491_s14 + $0x28] ss:$56 sps:$4 sm:$0xff]   ;;  %v4311_v18 = vld [vmem:[%s4491_s14 + $0x98] ss:$56 sps:$4 sm:$0xff]  }
  0x98   : > { %3873 = vmatpush3.bf16.msra.mxu1 %v4222_v15  ;;  %2333 = vmatprep.mubr.bf16.mxu1 %v4225_v16  ;;  %v4307_v15 = vld [vmem:[%s4491_s14 + $0x9c] ss:$56 sps:$4 sm:$0xff]   ;;  %v4312_v16 = vld [vmem:[%s4491_s14 + $0xa0] ss:$56 sps:$4 sm:$0xff]  }
  0x99   : > { %2439 = vmatmul.mubr.bf16.gmra.mrb[56].mxu0 %v4230_v19  ;;  %3874 = vmatprep.subr.bf16.mxu1 %v4231_v20  ;;  %v4313_v19 = vld [vmem:[%s4491_s14 + $0x10c] ss:$56 sps:$4 sm:$0xff]   ;;  %v4318_v20 = vld [vmem:[%s4491_s14 + $0x110] ss:$56 sps:$4 sm:$0xff]  }
  0x9a   : > { %2446 = vmatprep.mubr.bf16.mxu0 %v4237_v21  ;;  %3947 = vmatpush3.bf16.msra.mxu0 %v4244_v22  ;;  %v4321_v21 = vld [vmem:[%s4491_s14 + $0x184] ss:$56 sps:$4 sm:$0xff]   ;;  %v4317_v22 = vld [vmem:[%s4491_s14 + $0x108] ss:$56 sps:$4 sm:$0xff]  }
  0x9b   : > { %3948 = vmatprep.subr.bf16.mxu0 %v4253_v23  ;;  %v4319_v23 = vld [vmem:[%s4491_s14 + $0x17c] ss:$56 sps:$4 sm:$0xff]  }
  0x9c   : > { %3875 = vmatpush3.bf16.msra.mxu1 %v4232_v24  ;;  %v4324_v24 = vld [vmem:[%s4491_s14 + $0x180] ss:$56 sps:$4 sm:$0xff]  }
  0x9d   : > { %3876 = vmatprep.subr.bf16.mxu1 %v4241_v26  ;;  %v4323_v26 = vld [vmem:[%s4491_s14 + $0x178] ss:$56 sps:$4 sm:$0xff]  }
  0x9e   : > { %3949 = vmatpush3.bf16.msra.mxu0 %v4254_v28  ;;  %v4330_v28 = vld [vmem:[%s4491_s14 + $0x1f0] ss:$56 sps:$4 sm:$0xff]  }
  0x9f   : > { %2334 = vmatmul.mubr.bf16.gmra.mrb[60].mxu1 %v4229_v25  ;;  %3950 = vmatprep.subr.bf16.mxu0 %v4263_v29  ;;  %v4327_v25 = vld [vmem:[%s4491_s14 + $0x1f4] ss:$56 sps:$4 sm:$0xff]   ;;  %v4333_v29 = vld [vmem:[%s4491_s14 + $0x264] ss:$56 sps:$4 sm:$0xff]  }
  0xa0   : > { %2341 = vmatprep.mubr.bf16.mxu1 %v4235_v27  ;;  %3877 = vmatpush3.bf16.msra.mxu1 %v4242_v31  ;;  %v4325_v27 = vld [vmem:[%s4491_s14 + $0x1ec] ss:$56 sps:$4 sm:$0xff]  }
  0xa1   : > { %2447 = vmatmul.mubr.bf16.gmra.mrb[60].mxu0 %v4240_v30  ;;  %3878 = vmatprep.subr.bf16.mxu1 %v4251_v33  ;;  %v4329_v33 = vld [vmem:[%s4491_s14 + $0x1e8] ss:$56 sps:$4 sm:$0xff]  }
  0xa2   : > { %2454 = vmatprep.mubr.bf16.mxu0 %v4247_v32  ;;  %3951 = vmatpush3.bf16.msra.mxu0 %v4268_v34 }
  0xa3   : > { %3952 = vmatprep.subr.bf16.mxu0 %v4277_v37 }
  0xa4   : > { %3879 = vmatpush3.bf16.msra.mxu1 %v4252_v35 }
  0xa5   : > { %3880 = vmatprep.subr.bf16.mxu1 %v4261_v36 }
  0xa6   : > { %3953 = vmatpush3.bf16.msra.mxu0 %v4280_v41 }
  0xa7   : > { %2342 = vmatmul.mubr.bf16.gmra.mrb[64].mxu1 %v4239_v38  ;;  %3954 = vmatprep.subr.bf16.mxu0 %v4289_v48 }
  0xa8   : > { %2349 = vmatprep.mubr.bf16.mxu1 %v4245_v39  ;;  %3881 = vmatpush3.bf16.msra.mxu1 %v4262_v42  ;;  %v4331_v39 = vld [vmem:[%s4491_s14 + $0x25c] ss:$56 sps:$4 sm:$0xff]   ;;  %v4336_v42 = vld [vmem:[%s4491_s14 + $0x260] ss:$56 sps:$4 sm:$0xff]  }
  0xa9   : > { %2455 = vmatmul.mubr.bf16.gmra.mrb[64].mxu0 %v4250_v40  ;;  %3882 = vmatprep.subr.bf16.mxu1 %v4271_v43 }
  0xaa   : > { %2462 = vmatprep.mubr.bf16.mxu0 %v4257_v44  ;;  %3955 = vmatpush3.bf16.msra.mxu0 %v4290_v49  ;;  %v4335_v49 = vld [vmem:[%s4491_s14 + $0x258] ss:$56 sps:$4 sm:$0xff]  }
  0xab   : > { %3956 = vmatprep.subr.bf16.mxu0 %v4299_v56 }
  0xac   : > { %3883 = vmatpush3.bf16.msra.mxu1 %v4272_v45  ;;  %v4339_v45 = vld [vmem:[%s4491_s14 + $0x2d4] ss:$56 sps:$4 sm:$0xff]  }
  0xad   : > { %3884 = vmatprep.subr.bf16.mxu1 %v4281_v46 }
  0xae   : > { %3957 = vmatpush3.bf16.msra.mxu0 %v4300_v57 }
  0xaf   : > { %2350 = vmatmul.mubr.bf16.gmra.mrb[68].mxu1 %v4249_v47 }
  0xb0   : > { %2357 = vmatprep.mubr.bf16.mxu1 %v4255_v50  ;;  %3885 = vmatpush3.bf16.msra.mxu1 %v4286_v51 }
  0xb1   : > { %2463 = vmatmul.mubr.bf16.gmra.mrb[68].mxu0 %v4260_v52  ;;  %3886 = vmatprep.subr.bf16.mxu1 %v4295_v54 }
  0xb2   : > { %2470 = vmatprep.mubr.bf16.mxu0 %v4266_v53 }
  0xb4   : > { %3887 = vmatpush3.bf16.msra.mxu1 %v4298_v55  ;;  %v4337_v55 = vld [vmem:[%s4491_s14 + $0x2cc] ss:$56 sps:$4 sm:$0xff]  }
  0xb7   : > { %2358 = vmatmul.mubr.bf16.gmra.mrb[72].mxu1 %v4259_v58  ;;  %v4342_v58 = vld [vmem:[%s4491_s14 + $0x2d0] ss:$56 sps:$4 sm:$0xff]  }
  0xb8   : > { %2365 = vmatprep.mubr.bf16.mxu1 %v4264_v59 }
  0xb9   : > { %2471 = vmatmul.mubr.bf16.gmra.mrb[72].mxu0 %v4270_v60 }
  0xba   : > { %2478 = vmatprep.mubr.bf16.mxu0 %v4275_v61  ;;  %v4345_v61 = vld [vmem:[%s4491_s14 + $0x344] ss:$56 sps:$4 sm:$0xff]  }
  0xbf   : > { %2366 = vmatmul.mubr.bf16.gmra.mrb[76].mxu1 %v4269_v62 }
  0xc0   : > { %2373 = vmatprep.mubr.bf16.mxu1 %v4273_v63 }
  0xc1   : > { %2479 = vmatmul.mubr.bf16.gmra.mrb[76].mxu0 %v4279_v0 }
  0xc2   : > { %2486 = vmatprep.mubr.bf16.mxu0 %v4284_v1  ;;  %v4341_v1 = vld [vmem:[%s4491_s14 + $0x2c8] ss:$56 sps:$4 sm:$0xff]  }
  0xc7   : > { %2374 = vmatmul.mubr.bf16.gmra.mrb[80].mxu1 %v4278_v2 }
  0xc8   : > { %2381 = vmatprep.mubr.bf16.mxu1 %v4282_v3 }
  0xc9   : > { %2487 = vmatmul.mubr.bf16.gmra.mrb[80].mxu0 %v4288_v4 }
  0xca   : > { %2494 = vmatprep.mubr.bf16.mxu0 %v4293_v5 }
  0xcf   : > { %2382 = vmatmul.mubr.bf16.gmra.mrb[84].mxu1 %v4287_v6 }
  0xd0   : > { %2389 = vmatprep.mubr.bf16.mxu1 %v4291_v7  ;;  %v4343_v7 = vld [vmem:[%s4491_s14 + $0x33c] ss:$56 sps:$4 sm:$0xff]  }
  0xd1   : > { %2495 = vmatmul.mubr.bf16.gmra.mrb[84].mxu0 %v4297_v8 }
  0xd2   : > { %2640 = vmatprep.mubr.bf16.mxu0 %v4306_v9 }
  0xd7   : > { %2390 = vmatmul.mubr.bf16.gmra.mrb[88].mxu1 %v4296_v10  ;;  %v4348_v10 = vld [vmem:[%s4491_s14 + $0x340] ss:$56 sps:$4 sm:$0xff]  }
  0xd8   : > { %2535 = vmatprep.mubr.bf16.mxu1 %v4303_v11 }
  0xd9   : > { %2641 = vmatmul.mubr.bf16.vlgmr.msra.gmra.mrb[88].mxu0 %v4304_v12 }
  0xda   : > { %2648 = vmatprep.mubr.bf16.mxu0 %v4309_v13  ;;  %v4351_v13 = vld [vmem:[%s4491_s14 + $0x3b4] ss:$56 sps:$4 sm:$0xff]  }
  0xdf   : > { %2536 = vmatmul.mubr.bf16.vlgmr.msra.gmra.mrb[92].mxu1 %v4301_v14 }
  0xe0   : > { %2543 = vmatprep.mubr.bf16.mxu1 %v4307_v15 }
  0xe1   : > { %2649 = vmatmul.mubr.bf16.gmra.mrb[92].mxu0 %v4312_v16 }
  0xe2   : > { %2656 = vmatprep.mubr.bf16.mxu0 %v4315_v17  ;;  %v4347_v17 = vld [vmem:[%s4491_s14 + $0x338] ss:$56 sps:$4 sm:$0xff]  }
  0xe7   : > { %2544 = vmatmul.mubr.bf16.gmra.mrb[96].mxu1 %v4311_v18 }
  0xe8   : > { %2551 = vmatprep.mubr.bf16.mxu1 %v4313_v19 }
  0xe9   : > { %2657 = vmatmul.mubr.bf16.gmra.mrb[96].mxu0 %v4318_v20 }
  0xea   : > { %2664 = vmatprep.mubr.bf16.mxu0 %v4321_v21 }
  0xef   : > { %2552 = vmatmul.mubr.bf16.gmra.mrb[100].mxu1 %v4317_v22 }
  0xf0   : > { %2559 = vmatprep.mubr.bf16.mxu1 %v4319_v23  ;;  %v4349_v23 = vld [vmem:[%s4491_s14 + $0x3ac] ss:$56 sps:$4 sm:$0xff]  }
  0xf1   : > { %2665 = vmatmul.mubr.bf16.gmra.mrb[100].mxu0 %v4324_v24 }
  0xf2   : > { %2672 = vmatprep.mubr.bf16.mxu0 %v4327_v25 }
  0xf7   : > { %2560 = vmatmul.mubr.bf16.gmra.mrb[104].mxu1 %v4323_v26  ;;  %v4354_v26 = vld [vmem:[%s4491_s14 + $0x3b0] ss:$56 sps:$4 sm:$0xff]  }
  0xf8   : > { %2567 = vmatprep.mubr.bf16.mxu1 %v4325_v27 }
  0xf9   : > { %2673 = vmatmul.mubr.bf16.gmra.mrb[104].mxu0 %v4330_v28 }
  0xfa   : > { %v3562_v30 = vpop.f32.mrb[0].mxu1  ;;  %v3538_v31 = vpop.f32.mrb[0].mxu0  ;;  %2680 = vmatprep.mubr.bf16.mxu0 %v4333_v29 }
  0xfb   : > { %v3563_v32 = vpop.f32.mrb[1].mxu1  ;;  %v3539_v34 = vpop.f32.mrb[1].mxu0 }
  0xfc   : > { %v4913_v35 = vadd.f32 %v3563_v32, %v3562_v30  ;;  %v3565_v36 = vpop.f32.mrb[2].mxu1  ;;  %v4915_v37 = vadd.f32 %v3539_v34, %v3538_v31  ;;  %v3541_v38 = vpop.f32.mrb[2].mxu0  ;;  %v4353_v31 = vld [vmem:[%s4491_s14 + $0x3a8] ss:$56 sps:$4 sm:$0xff]  }
  0xfd   : > { %v3566_v40 = vpop.f32.mrb[3].mxu1  ;;  %v3542_v41 = vpop.f32.mrb[3].mxu0 }
  0xfe   : > { %v4919_v43 = vadd.f32 %v3566_v40, %v3565_v36  ;;  %v4921_v44 = vadd.f32 %v3542_v41, %v3541_v38 }
  0xff   : > { %2568 = vmatmul.mubr.bf16.gmra.mrb[108].mxu1 %v4329_v33 }
 0x100   : > { %2575 = vmatprep.mubr.bf16.mxu1 %v4331_v39 }
 0x101   : > { %2681 = vmatmul.mubr.bf16.gmra.mrb[108].mxu0 %v4336_v42 }
 0x102   : > { %v3568_v46 = vpop.f32.mrb[4].mxu1  ;;  %v3544_v47 = vpop.f32.mrb[4].mxu0  ;;  %2688 = vmatprep.mubr.bf16.mxu0 %v4339_v45 }
 0x103   : > { %v3569_v48 = vpop.f32.mrb[5].mxu1  ;;  %v3545_v50 = vpop.f32.mrb[5].mxu0 }
 0x104   : > { %v4925_v51 = vadd.f32 %v3569_v48, %v3568_v46  ;;  %v3571_v52 = vpop.f32.mrb[6].mxu1  ;;  %v4927_v53 = vadd.f32 %v3545_v50, %v3544_v47  ;;  %v3547_v54 = vpop.f32.mrb[6].mxu0 }
 0x105   : > { %v3572_v56 = vpop.f32.mrb[7].mxu1  ;;  %v3548_v57 = vpop.f32.mrb[7].mxu0 }
 0x106   : > { %v4931_v59 = vadd.f32 %v3572_v56, %v3571_v52  ;;  %v4933_v60 = vadd.f32 %v3548_v57, %v3547_v54 }
 0x107   : > { %2576 = vmatmul.mubr.bf16.gmra.mrb[112].mxu1 %v4335_v49 }
 0x108   : > { %2583 = vmatprep.mubr.bf16.mxu1 %v4337_v55 }
 0x109   : > { %2689 = vmatmul.mubr.bf16.gmra.mrb[112].mxu0 %v4342_v58 }
 0x10a   : > { %v3574_v62 = vpop.f32.mrb[8].mxu1  ;;  %v3550_v63 = vpop.f32.mrb[8].mxu0  ;;  %2696 = vmatprep.mubr.bf16.mxu0 %v4345_v61 }
 0x10b   : > { %v3575_v0 = vpop.f32.mrb[9].mxu1  ;;  %v3551_v2 = vpop.f32.mrb[9].mxu0 }
 0x10c   : > { %v4937_v3 = vadd.f32 %v3575_v0, %v3574_v62  ;;  %v3577_v4 = vpop.f32.mrb[10].mxu1  ;;  %v4939_v5 = vadd.f32 %v3551_v2, %v3550_v63  ;;  %v3553_v6 = vpop.f32.mrb[10].mxu0 }
 0x10d   : > { %v3578_v8 = vpop.f32.mrb[11].mxu1  ;;  %v3554_v9 = vpop.f32.mrb[11].mxu0 }
 0x10e   : > { %v4943_v11 = vadd.f32 %v3578_v8, %v3577_v4  ;;  %v4945_v12 = vadd.f32 %v3554_v9, %v3553_v6 }
 0x10f   : > { %2584 = vmatmul.mubr.bf16.gmra.mrb[116].mxu1 %v4341_v1 }
 0x110   : > { %2591 = vmatprep.mubr.bf16.mxu1 %v4343_v7 }
 0x111   : > { %2697 = vmatmul.mubr.bf16.gmra.mrb[116].mxu0 %v4348_v10 }
 0x112   : > { %v3580_v14 = vpop.f32.mrb[12].mxu1  ;;  %v3556_v15 = vpop.f32.mrb[12].mxu0  ;;  %2704 = vmatprep.mubr.bf16.mxu0 %v4351_v13 }
 0x113   : > { %v3581_v16 = vpop.f32.mrb[13].mxu1  ;;  %v3557_v18 = vpop.f32.mrb[13].mxu0 }
 0x114   : > { %v4949_v19 = vadd.f32 %v3581_v16, %v3580_v14  ;;  %v3583_v20 = vpop.f32.mrb[14].mxu1  ;;  %v4951_v21 = vadd.f32 %v3557_v18, %v3556_v15  ;;  %v3559_v22 = vpop.f32.mrb[14].mxu0 }
 0x115   : > { %v3584_v24 = vpop.f32.mrb[15].mxu1  ;;  %v3560_v25 = vpop.f32.mrb[15].mxu0 }
 0x116   : > { %v4955_v27 = vadd.f32 %v3584_v24, %v3583_v20  ;;  %v4957_v28 = vadd.f32 %v3560_v25, %v3559_v22 }
 0x117   : > { %2592 = vmatmul.mubr.bf16.gmra.mrb[120].mxu1 %v4347_v17 }
 0x118   : > { %2599 = vmatprep.mubr.bf16.mxu1 %v4349_v23 }
 0x119   : > { %2705 = vmatmul.mubr.bf16.gmra.mrb[120].mxu0 %v4354_v26 }
 0x11a   : > { %v3586_v29 = vpop.f32.mrb[16].mxu1 }
 0x11b   : > { %v3587_v30 = vpop.f32.mrb[17].mxu1  ;;  %v3678_v32 = vpop.f32.mrb[16].mxu0 }
 0x11c   : > { %v4960_v33 = vadd.f32 %v3587_v30, %v3586_v29  ;;  %v3589_v34 = vpop.f32.mrb[18].mxu1  ;;  %v3679_v36 = vpop.f32.mrb[17].mxu0 }
 0x11d   : > { %v3590_v38 = vpop.f32.mrb[19].mxu1  ;;  %v3680_v39 = vadd.f32 %v3679_v36, %v3678_v32  ;;  %v3681_v40 = vpop.f32.mrb[18].mxu0 }
 0x11e   : > { %v4962_v41 = vadd.f32 %v3590_v38, %v3589_v34  ;;  %v3682_v42 = vpop.f32.mrb[19].mxu0 }
 0x11f   : > { %2600 = vmatmul.mubr.bf16.gmra.mrb[124].mxu1 %v4353_v31  ;;  %v3683_v45 = vadd.f32 %v3682_v42, %v3681_v40 }
 0x122   : > { %v3608_v46 = vpop.f32.mrb[20].mxu1 }
 0x123   : > { %v3609_v47 = vpop.f32.mrb[21].mxu1 }
 0x124   : > { %v3610_v48 = vadd.f32 %v3609_v47, %v3608_v46  ;;  %v3611_v49 = vpop.f32.mrb[22].mxu1  ;;  %v3684_v50 = vpop.f32.mrb[20].mxu0 }
 0x125   : > { %v3612_v52 = vpop.f32.mrb[23].mxu1  ;;  %v3685_v54 = vpop.f32.mrb[21].mxu0 }
 0x126   : > { %v2118_v55 = vadd.f32 %v3610_v48, %v4915_v37  ;;  %v3613_v56 = vadd.f32 %v3612_v52, %v3611_v49  ;;  %v3686_v57 = vadd.f32 %v3685_v54, %v3684_v50  ;;  %v3687_v58 = vpop.f32.mrb[22].mxu0 }
 0x127   : > { %v3688_v61 = vpop.f32.mrb[23].mxu0 }
 0x128   : > { %v4965_v62 = vadd.f32 %v3680_v39, %v2118_v55  ;;  %v2121_v63 = vadd.f32 %v3613_v56, %v4921_v44  ;;  %v3689_v0 = vadd.f32 %v3688_v61, %v3687_v58 }
 0x12a   : > { %v4968_v1 = vadd.f32 %v3683_v45, %v2121_v63  ;;  %v3614_v2 = vpop.f32.mrb[24].mxu1 }
 0x12b   : > { %v3615_v4 = vpop.f32.mrb[25].mxu1 }
 0x12c   : > { %v3616_v6 = vadd.f32 %v3615_v4, %v3614_v2  ;;  %v3617_v7 = vpop.f32.mrb[26].mxu1  ;;  %v3690_v8 = vpop.f32.mrb[24].mxu0 }
 0x12d   : > { %v3618_v9 = vpop.f32.mrb[27].mxu1  ;;  %v3691_v10 = vpop.f32.mrb[25].mxu0 }
 0x12e   : > { %v2126_v37 = vadd.f32 %v3616_v6, %v4927_v53  ;;  %v3619_v13 = vadd.f32 %v3618_v9, %v3617_v7  ;;  %v3692_v14 = vadd.f32 %v3691_v10, %v3690_v8  ;;  %v3693_v15 = vpop.f32.mrb[26].mxu0 }
 0x12f   : > { %v3694_v16 = vpop.f32.mrb[27].mxu0 }
 0x130   : > { %v4971_v17 = vadd.f32 %v3686_v57, %v2126_v37  ;;  %v2129_v44 = vadd.f32 %v3619_v13, %v4933_v60  ;;  %v3695_v18 = vadd.f32 %v3694_v16, %v3693_v15 }
 0x132   : > { %v4974_v20 = vadd.f32 %v3689_v0, %v2129_v44  ;;  %v3620_v22 = vpop.f32.mrb[28].mxu1 }
 0x133   : > { %v3621_v23 = vpop.f32.mrb[29].mxu1 }
 0x134   : > { %v3622_v24 = vadd.f32 %v3621_v23, %v3620_v22  ;;  %v3623_v25 = vpop.f32.mrb[30].mxu1  ;;  %v3696_v26 = vpop.f32.mrb[28].mxu0 }
 0x135   : > { %v3624_v29 = vpop.f32.mrb[31].mxu1  ;;  %v3697_v30 = vpop.f32.mrb[29].mxu0 }
 0x136   : > { %v2134_v53 = vadd.f32 %v3622_v24, %v4939_v5  ;;  %v3625_v31 = vadd.f32 %v3624_v29, %v3623_v25  ;;  %v3698_v32 = vadd.f32 %v3697_v30, %v3696_v26  ;;  %v3699_v34 = vpop.f32.mrb[30].mxu0 }
 0x137   : > { %v3700_v36 = vpop.f32.mrb[31].mxu0 }
 0x138   : > { %v4977_v38 = vadd.f32 %v3692_v14, %v2134_v53  ;;  %v2137_v60 = vadd.f32 %v3625_v31, %v4945_v12  ;;  %v3701_v39 = vadd.f32 %v3700_v36, %v3699_v34 }
 0x13a   : > { %v4980_v40 = vadd.f32 %v3695_v18, %v2137_v60  ;;  %v3626_v42 = vpop.f32.mrb[32].mxu1 }
 0x13b   : > { %v3627_v45 = vpop.f32.mrb[33].mxu1 }
 0x13c   : > { %v3628_v46 = vadd.f32 %v3627_v45, %v3626_v42  ;;  %v3629_v47 = vpop.f32.mrb[34].mxu1  ;;  %v3702_v48 = vpop.f32.mrb[32].mxu0 }
 0x13d   : > { %v3630_v49 = vpop.f32.mrb[35].mxu1  ;;  %v3703_v50 = vpop.f32.mrb[33].mxu0 }
 0x13e   : > { %v2142_v5 = vadd.f32 %v3628_v46, %v4951_v21  ;;  %v3631_v52 = vadd.f32 %v3630_v49, %v3629_v47  ;;  %v3704_v54 = vadd.f32 %v3703_v50, %v3702_v48  ;;  %v3705_v55 = vpop.f32.mrb[34].mxu0 }
 0x13f   : > { %v3706_v56 = vpop.f32.mrb[35].mxu0 }
 0x140   : > { %v4983_v57 = vadd.f32 %v3698_v32, %v2142_v5  ;;  %v2145_v12 = vadd.f32 %v3631_v52, %v4957_v28  ;;  %v3707_v58 = vadd.f32 %v3706_v56, %v3705_v55 }
 0x142   : > { %v4986_v61 = vadd.f32 %v3701_v39, %v2145_v12  ;;  %v3632_v63 = vpop.f32.mrb[36].mxu1 }
 0x143   : > { %v3633_v0 = vpop.f32.mrb[37].mxu1 }
 0x144   : > { %v3634_v2 = vadd.f32 %v3633_v0, %v3632_v63  ;;  %v3635_v4 = vpop.f32.mrb[38].mxu1  ;;  %v3708_v6 = vpop.f32.mrb[36].mxu0 }
 0x145   : > { %v3636_v7 = vpop.f32.mrb[39].mxu1  ;;  %v3709_v8 = vpop.f32.mrb[37].mxu0 }
 0x146   : > { %v2150_v21 = vadd.f32 %v3634_v2, %v4913_v35  ;;  %v3637_v9 = vadd.f32 %v3636_v7, %v3635_v4  ;;  %v3710_v10 = vadd.f32 %v3709_v8, %v3708_v6  ;;  %v3711_v37 = vpop.f32.mrb[38].mxu0 }
 0x147   : > { %v3712_v13 = vpop.f32.mrb[39].mxu0 }
 0x148   : > { %v4989_v14 = vadd.f32 %v3704_v54, %v2150_v21  ;;  %v2153_v28 = vadd.f32 %v3637_v9, %v4919_v43  ;;  %v3713_v15 = vadd.f32 %v3712_v13, %v3711_v37 }
 0x14a   : > { %v4992_v16 = vadd.f32 %v3707_v58, %v2153_v28  ;;  %v3638_v44 = vpop.f32.mrb[40].mxu1 }
 0x14b   : > { %v3639_v18 = vpop.f32.mrb[41].mxu1 }
 0x14c   : > { %v3640_v22 = vadd.f32 %v3639_v18, %v3638_v44  ;;  %v3641_v23 = vpop.f32.mrb[42].mxu1  ;;  %v3714_v24 = vpop.f32.mrb[40].mxu0 }
 0x14d   : > { %v3642_v25 = vpop.f32.mrb[43].mxu1  ;;  %v3715_v26 = vpop.f32.mrb[41].mxu0 }
 0x14e   : > { %v2158_v35 = vadd.f32 %v3640_v22, %v4925_v51  ;;  %v3643_v29 = vadd.f32 %v3642_v25, %v3641_v23  ;;  %v3716_v30 = vadd.f32 %v3715_v26, %v3714_v24  ;;  %v3717_v53 = vpop.f32.mrb[42].mxu0 }
 0x14f   : > { %v3718_v31 = vpop.f32.mrb[43].mxu0 }
 0x150   : > { %v4995_v32 = vadd.f32 %v3710_v10, %v2158_v35  ;;  %v2161_v43 = vadd.f32 %v3643_v29, %v4931_v59  ;;  %v3719_v34 = vadd.f32 %v3718_v31, %v3717_v53 }
 0x152   : > { %v4998_v36 = vadd.f32 %v3713_v15, %v2161_v43  ;;  %v3644_v60 = vpop.f32.mrb[44].mxu1 }
 0x153   : > { %v3645_v39 = vpop.f32.mrb[45].mxu1 }
 0x154   : > { %v3646_v42 = vadd.f32 %v3645_v39, %v3644_v60  ;;  %v3647_v45 = vpop.f32.mrb[46].mxu1  ;;  %v3720_v46 = vpop.f32.mrb[44].mxu0 }
 0x155   : > { %v3648_v47 = vpop.f32.mrb[47].mxu1  ;;  %v3721_v48 = vpop.f32.mrb[45].mxu0 }
 0x156   : > { %v2166_v51 = vadd.f32 %v3646_v42, %v4937_v3  ;;  %v3649_v49 = vadd.f32 %v3648_v47, %v3647_v45  ;;  %v3722_v50 = vadd.f32 %v3721_v48, %v3720_v46  ;;  %v3723_v5 = vpop.f32.mrb[46].mxu0 }
 0x157   : > { %v3724_v52 = vpop.f32.mrb[47].mxu0 }
 0x158   : > { %v5001_v54 = vadd.f32 %v3716_v30, %v2166_v51  ;;  %v2169_v59 = vadd.f32 %v3649_v49, %v4943_v11  ;;  %v3725_v55 = vadd.f32 %v3724_v52, %v3723_v5 }
 0x15a   : > { %v5004_v56 = vadd.f32 %v3719_v34, %v2169_v59  ;;  %v3650_v12 = vpop.f32.mrb[48].mxu1 }
 0x15b   : > { %v3651_v58 = vpop.f32.mrb[49].mxu1 }
 0x15c   : > { %v3652_v63 = vadd.f32 %v3651_v58, %v3650_v12  ;;  %v3653_v0 = vpop.f32.mrb[50].mxu1  ;;  %v3726_v2 = vpop.f32.mrb[48].mxu0 }
 0x15d   : > { %v3654_v4 = vpop.f32.mrb[51].mxu1  ;;  %v3727_v6 = vpop.f32.mrb[49].mxu0 }
 0x15e   : > { %v2174_v3 = vadd.f32 %v3652_v63, %v4949_v19  ;;  %v3655_v7 = vadd.f32 %v3654_v4, %v3653_v0  ;;  %v3728_v8 = vadd.f32 %v3727_v6, %v3726_v2  ;;  %v3729_v21 = vpop.f32.mrb[50].mxu0 }
 0x15f   : > { %v3730_v9 = vpop.f32.mrb[51].mxu0 }
 0x160   : > { %v5007_v10 = vadd.f32 %v3722_v50, %v2174_v3  ;;  %v2177_v11 = vadd.f32 %v3655_v7, %v4955_v27  ;;  %v3731_v37 = vadd.f32 %v3730_v9, %v3729_v21 }
 0x162   : > { %v5010_v13 = vadd.f32 %v3725_v55, %v2177_v11  ;;  %v3656_v28 = vpop.f32.mrb[52].mxu1 }
 0x163   : > { %v3657_v15 = vpop.f32.mrb[53].mxu1 }
 0x164   : > { %v3658_v44 = vadd.f32 %v3657_v15, %v3656_v28  ;;  %v3659_v18 = vpop.f32.mrb[54].mxu1  ;;  %v3818_v22 = vpop.f32.mrb[52].mxu0 }
 0x165   : > { %v3660_v23 = vpop.f32.mrb[55].mxu1  ;;  %v3819_v24 = vpop.f32.mrb[53].mxu0 }
 0x166   : > { %v2182_v19 = vadd.f32 %v3658_v44, %v4960_v33  ;;  %v3661_v25 = vadd.f32 %v3660_v23, %v3659_v18  ;;  %v3820_v26 = vadd.f32 %v3819_v24, %v3818_v22  ;;  %v3821_v35 = vpop.f32.mrb[54].mxu0 }
 0x167   : > { %v3822_v29 = vpop.f32.mrb[55].mxu0 }
 0x168   : > { %v5013_v30 = vadd.f32 %v3728_v8, %v2182_v19  ;;  %v2185_v27 = vadd.f32 %v3661_v25, %v4962_v41  ;;  %v3823_v53 = vadd.f32 %v3822_v29, %v3821_v35 }
 0x16a   : > { %v5016_v31 = vadd.f32 %v3731_v37, %v2185_v27  ;;  %v3748_v43 = vpop.f32.mrb[56].mxu1 }
 0x16b   : > { %v3749_v34 = vpop.f32.mrb[57].mxu1 }
 0x16c   : > { %v3750_v60 = vadd.f32 %v3749_v34, %v3748_v43  ;;  %v3751_v39 = vpop.f32.mrb[58].mxu1  ;;  %v3824_v42 = vpop.f32.mrb[56].mxu0 }
 0x16d   : > { %v3752_v45 = vpop.f32.mrb[59].mxu1  ;;  %v3825_v46 = vpop.f32.mrb[57].mxu0 }
 0x16e   : > { %v2328_v33 = vadd.f32 %v3750_v60, %v4965_v62  ;;  %v3753_v47 = vadd.f32 %v3752_v45, %v3751_v39  ;;  %v3826_v48 = vadd.f32 %v3825_v46, %v3824_v42  ;;  %v3827_v51 = vpop.f32.mrb[58].mxu0 }
 0x16f   : > { %v3828_v49 = vpop.f32.mrb[59].mxu0 }
 0x170   : > { %v5019_v50 = vadd.f32 %v3820_v26, %v2328_v33  ;;  %v2331_v41 = vadd.f32 %v3753_v47, %v4968_v1  ;;  %v3829_v5 = vadd.f32 %v3828_v49, %v3827_v51 }
 0x172   : > { %v5022_v52 = vadd.f32 %v3823_v53, %v2331_v41  ;;  %v3754_v59 = vpop.f32.mrb[60].mxu1 }
 0x173   : > { %v3755_v55 = vpop.f32.mrb[61].mxu1 }
 0x174   : > { %v3756_v12 = vadd.f32 %v3755_v55, %v3754_v59  ;;  %v3757_v58 = vpop.f32.mrb[62].mxu1  ;;  %v3830_v63 = vpop.f32.mrb[60].mxu0 }
 0x175   : > { %v3758_v0 = vpop.f32.mrb[63].mxu1  ;;  %v3831_v2 = vpop.f32.mrb[61].mxu0 }
 0x176   : > { %v2336_v62 = vadd.f32 %v3756_v12, %v4971_v17  ;;  %v3759_v4 = vadd.f32 %v3758_v0, %v3757_v58  ;;  %v3832_v6 = vadd.f32 %v3831_v2, %v3830_v63  ;;  %v3833_v3 = vpop.f32.mrb[62].mxu0 }
 0x177   : > { %v3834_v7 = vpop.f32.mrb[63].mxu0 }
 0x178   : > { %v5025_v8 = vadd.f32 %v3826_v48, %v2336_v62  ;;  %v2339_v1 = vadd.f32 %v3759_v4, %v4974_v20  ;;  %v3835_v21 = vadd.f32 %v3834_v7, %v3833_v3 }
 0x17a   : > { %v5028_v9 = vadd.f32 %v3829_v5, %v2339_v1  ;;  %v3760_v11 = vpop.f32.mrb[64].mxu1 }
 0x17b   : > { %v3761_v37 = vpop.f32.mrb[65].mxu1 }
 0x17c   : > { %v3762_v28 = vadd.f32 %v3761_v37, %v3760_v11  ;;  %v3763_v15 = vpop.f32.mrb[66].mxu1  ;;  %v3836_v44 = vpop.f32.mrb[64].mxu0 }
 0x17d   : > { %v3764_v18 = vpop.f32.mrb[67].mxu1  ;;  %v3837_v22 = vpop.f32.mrb[65].mxu0 }
 0x17e   : > { %v2344_v17 = vadd.f32 %v3762_v28, %v4977_v38  ;;  %v3765_v23 = vadd.f32 %v3764_v18, %v3763_v15  ;;  %v3838_v24 = vadd.f32 %v3837_v22, %v3836_v44  ;;  %v3839_v19 = vpop.f32.mrb[66].mxu0 }
 0x17f   : > { %v3840_v25 = vpop.f32.mrb[67].mxu0 }
 0x180   : > { %v5031_v26 = vadd.f32 %v3832_v6, %v2344_v17  ;;  %v2347_v20 = vadd.f32 %v3765_v23, %v4980_v40  ;;  %v3841_v35 = vadd.f32 %v3840_v25, %v3839_v19 }
 0x182   : > { %v5034_v29 = vadd.f32 %v3835_v21, %v2347_v20  ;;  %v3766_v27 = vpop.f32.mrb[68].mxu1 }
 0x183   : > { %v3767_v53 = vpop.f32.mrb[69].mxu1 }
 0x184   : > { %v3768_v43 = vadd.f32 %v3767_v53, %v3766_v27  ;;  %v3769_v34 = vpop.f32.mrb[70].mxu1  ;;  %v3842_v60 = vpop.f32.mrb[68].mxu0 }
 0x185   : > { %v3770_v39 = vpop.f32.mrb[71].mxu1  ;;  %v3843_v42 = vpop.f32.mrb[69].mxu0 }
 0x186   : > { %v2352_v38 = vadd.f32 %v3768_v43, %v4983_v57  ;;  %v3771_v45 = vadd.f32 %v3770_v39, %v3769_v34  ;;  %v3844_v46 = vadd.f32 %v3843_v42, %v3842_v60  ;;  %v3845_v33 = vpop.f32.mrb[70].mxu0 }
 0x187   : > { %v3846_v47 = vpop.f32.mrb[71].mxu0 }
 0x188   : > { %v5037_v48 = vadd.f32 %v3838_v24, %v2352_v38  ;;  %v2355_v40 = vadd.f32 %v3771_v45, %v4986_v61  ;;  %v3847_v51 = vadd.f32 %v3846_v47, %v3845_v33 }
 0x18a   : > { %v5040_v49 = vadd.f32 %v3841_v35, %v2355_v40  ;;  %v3772_v41 = vpop.f32.mrb[72].mxu1 }
 0x18b   : > { %v3773_v5 = vpop.f32.mrb[73].mxu1 }
 0x18c   : > { %v3774_v59 = vadd.f32 %v3773_v5, %v3772_v41  ;;  %v3775_v55 = vpop.f32.mrb[74].mxu1  ;;  %v3848_v12 = vpop.f32.mrb[72].mxu0 }
 0x18d   : > { %v3776_v58 = vpop.f32.mrb[75].mxu1  ;;  %v3849_v63 = vpop.f32.mrb[73].mxu0 }
 0x18e   : > { %v2360_v57 = vadd.f32 %v3774_v59, %v4989_v14  ;;  %v3777_v0 = vadd.f32 %v3776_v58, %v3775_v55  ;;  %v3850_v2 = vadd.f32 %v3849_v63, %v3848_v12  ;;  %v3851_v62 = vpop.f32.mrb[74].mxu0 }
 0x18f   : > { %v3852_v4 = vpop.f32.mrb[75].mxu0 }
 0x190   : > { %v5043_v6 = vadd.f32 %v3844_v46, %v2360_v57  ;;  %v2363_v61 = vadd.f32 %v3777_v0, %v4992_v16  ;;  %v3853_v3 = vadd.f32 %v3852_v4, %v3851_v62 }
 0x192   : > { %v5046_v7 = vadd.f32 %v3847_v51, %v2363_v61  ;;  %v3778_v1 = vpop.f32.mrb[76].mxu1 }
 0x193   : > { %v3779_v21 = vpop.f32.mrb[77].mxu1 }
 0x194   : > { %v3780_v11 = vadd.f32 %v3779_v21, %v3778_v1  ;;  %v3781_v37 = vpop.f32.mrb[78].mxu1  ;;  %v3854_v28 = vpop.f32.mrb[76].mxu0 }
 0x195   : > { %v3782_v15 = vpop.f32.mrb[79].mxu1  ;;  %v3855_v44 = vpop.f32.mrb[77].mxu0 }
 0x196   : > { %v2368_v14 = vadd.f32 %v3780_v11, %v4995_v32  ;;  %v3783_v18 = vadd.f32 %v3782_v15, %v3781_v37  ;;  %v3856_v22 = vadd.f32 %v3855_v44, %v3854_v28  ;;  %v3857_v17 = vpop.f32.mrb[78].mxu0 }
 0x197   : > { %v3858_v23 = vpop.f32.mrb[79].mxu0 }
 0x198   : > { %v5049_v24 = vadd.f32 %v3850_v2, %v2368_v14  ;;  %v2371_v16 = vadd.f32 %v3783_v18, %v4998_v36  ;;  %v3859_v19 = vadd.f32 %v3858_v23, %v3857_v17 }
 0x19a   : > { %v5052_v25 = vadd.f32 %v3853_v3, %v2371_v16  ;;  %v3784_v20 = vpop.f32.mrb[80].mxu1 }
 0x19b   : > { %v3785_v35 = vpop.f32.mrb[81].mxu1 }
 0x19c   : > { %v3786_v27 = vadd.f32 %v3785_v35, %v3784_v20  ;;  %v3787_v53 = vpop.f32.mrb[82].mxu1  ;;  %v3860_v43 = vpop.f32.mrb[80].mxu0 }
 0x19d   : > { %v3788_v34 = vpop.f32.mrb[83].mxu1  ;;  %v3861_v60 = vpop.f32.mrb[81].mxu0 }
 0x19e   : > { %v2376_v32 = vadd.f32 %v3786_v27, %v5001_v54  ;;  %v3789_v39 = vadd.f32 %v3788_v34, %v3787_v53  ;;  %v3862_v42 = vadd.f32 %v3861_v60, %v3860_v43  ;;  %v3863_v38 = vpop.f32.mrb[82].mxu0 }
 0x19f   : > { %v3864_v45 = vpop.f32.mrb[83].mxu0 }
 0x1a0   : > { %v5055_v46 = vadd.f32 %v3856_v22, %v2376_v32  ;;  %v2379_v36 = vadd.f32 %v3789_v39, %v5004_v56  ;;  %v3865_v33 = vadd.f32 %v3864_v45, %v3863_v38  ;;  %v5076_v39 = vld [vmem:[%s5274_s2] ss:$0 sm:$0xff] }
 0x1a2   : > { %v5058_v47 = vadd.f32 %v3859_v19, %v2379_v36  ;;  %v3790_v40 = vpop.f32.mrb[84].mxu1  ;;  %v5082_v36 = vld [vmem:[%s5275_s3] ss:$0 sm:$0xff] }
 0x1a3   : > { %v3791_v51 = vpop.f32.mrb[85].mxu1 }
 0x1a4   : > { %v3792_v41 = vadd.f32 %v3791_v51, %v3790_v40  ;;  %v3793_v5 = vpop.f32.mrb[86].mxu1  ;;  %v3866_v59 = vpop.f32.mrb[84].mxu0 }
 0x1a5   : > { %v3794_v55 = vpop.f32.mrb[87].mxu1  ;;  %v3867_v12 = vpop.f32.mrb[85].mxu0 }
 0x1a6   : > { %v2384_v54 = vadd.f32 %v3792_v41, %v5007_v10  ;;  %v3795_v58 = vadd.f32 %v3794_v55, %v3793_v5  ;;  %v3868_v63 = vadd.f32 %v3867_v12, %v3866_v59  ;;  %v3869_v57 = vpop.f32.mrb[86].mxu0 }
 0x1a7   : > { %v3870_v0 = vpop.f32.mrb[87].mxu0 }
 0x1a8   : > { %v5061_v2 = vadd.f32 %v3862_v42, %v2384_v54  ;;  %v2387_v56 = vadd.f32 %v3795_v58, %v5010_v13  ;;  %v3871_v62 = vadd.f32 %v3870_v0, %v3869_v57 }
 0x1aa   : > { %v5064_v4 = vadd.f32 %v3865_v33, %v2387_v56  ;;  %v3796_v61 = vpop.f32.mrb[88].mxu1 }
 0x1ab   : > { %v3797_v3 = vpop.f32.mrb[89].mxu1 }
 0x1ac   : > { %v3798_v1 = vadd.f32 %v3797_v3, %v3796_v61  ;;  %v3799_v21 = vpop.f32.mrb[90].mxu1  ;;  %v3958_v11 = vpop.f32.mrb[88].mxu0 }
 0x1ad   : > { %v3800_v37 = vpop.f32.mrb[91].mxu1  ;;  %v3959_v28 = vpop.f32.mrb[89].mxu0 }
 0x1ae   : > { %v2392_v10 = vadd.f32 %v3798_v1, %v5013_v30  ;;  %v3801_v15 = vadd.f32 %v3800_v37, %v3799_v21  ;;  %v3960_v44 = vadd.f32 %v3959_v28, %v3958_v11  ;;  %v3961_v14 = vpop.f32.mrb[90].mxu0 }
 0x1af   : > { %v3962_v18 = vpop.f32.mrb[91].mxu0 }
 0x1b0   : > { %v5067_v22 = vadd.f32 %v3868_v63, %v2392_v10  ;;  %v2395_v13 = vadd.f32 %v3801_v15, %v5016_v31  ;;  %v3963_v17 = vadd.f32 %v3962_v18, %v3961_v14 }
 0x1b2   : > { %v5070_v23 = vadd.f32 %v3871_v62, %v2395_v13  ;;  %v3888_v16 = vpop.f32.mrb[92].mxu1 }
 0x1b3   : > { %v3889_v19 = vpop.f32.mrb[93].mxu1 }
 0x1b4   : > { %v3890_v20 = vadd.f32 %v3889_v19, %v3888_v16  ;;  %v3891_v35 = vpop.f32.mrb[94].mxu1  ;;  %v3964_v27 = vpop.f32.mrb[92].mxu0 }
 0x1b5   : > { %v3892_v53 = vpop.f32.mrb[95].mxu1  ;;  %v3965_v43 = vpop.f32.mrb[93].mxu0 }
 0x1b6   : > { %v2538_v30 = vadd.f32 %v3890_v20, %v5019_v50  ;;  %v3893_v34 = vadd.f32 %v3892_v53, %v3891_v35  ;;  %v3966_v60 = vadd.f32 %v3965_v43, %v3964_v27  ;;  %v3967_v32 = vpop.f32.mrb[94].mxu0 }
 0x1b7   : > { %v3968_v31 = vpop.f32.mrb[95].mxu0 }
 0x1b8   : > { %v2643_v42 = vadd.f32 %v3960_v44, %v2538_v30  ;;  %v2541_v38 = vadd.f32 %v3893_v34, %v5022_v52  ;;  %v3969_v45 = vadd.f32 %v3968_v31, %v3967_v32 }
 0x1ba   : > { %v2777_v50 = vmul.f32 %v5076_v39, %v2643_v42  ;;  %v2646_v33 = vadd.f32 %v3963_v17, %v2541_v38  ;;  %v3894_v40 = vpop.f32.mrb[96].mxu1 }
 0x1bb   : > { %v3895_v51 = vpop.f32.mrb[97].mxu1 }
 0x1bc   : > { %v5086_v41 = vadd.f32 %v5082_v36, %v2777_v50  ;;  %v2778_v5 = vmul.f32 %v5076_v39, %v2646_v33  ;;  %v3896_v59 = vadd.f32 %v3895_v51, %v3894_v40  ;;  %v3897_v55 = vpop.f32.mrb[98].mxu1  ;;  %v3970_v12 = vpop.f32.mrb[96].mxu0 }
 0x1bd   : > { %v3898_v52 = vpop.f32.mrb[99].mxu1  ;;  %v3971_v54 = vpop.f32.mrb[97].mxu0 }
 0x1be   : > { %v2838_v58 = vmul.f32 0.044715, %v5086_v41  ;;  %v5091_v63 = vadd.f32 %v5082_v36, %v2778_v5  ;;  %v2546_v57 = vadd.f32 %v3896_v59, %v5025_v8  ;;  %v3973_v0 = vpop.f32.mrb[98].mxu0  ;;  %v3899_v56 = vadd.f32 %v3898_v52, %v3897_v55 }
 0x1bf   : > { %v3972_v62 = vadd.f32 %v3971_v54, %v3970_v12  ;;  %v3974_v61 = vpop.f32.mrb[99].mxu0 }
 0x1c0   : > { %v2856_v3 = vmul.f32 %v2838_v58, %v5086_v41  ;;  %v2839_v1 = vmul.f32 0.044715, %v5091_v63  ;;  %v2651_v21 = vadd.f32 %v3966_v60, %v2546_v57  ;;  %v2549_v11 = vadd.f32 %v3899_v56, %v5028_v9 }
 0x1c1   : > { %v3975_v37 = vadd.f32 %v3974_v61, %v3973_v0 }
 0x1c2   : > { %v2874_v28 = vmul.f32 %v2856_v3, %v5086_v41  ;;  %v2857_v10 = vmul.f32 %v2839_v1, %v5091_v63  ;;  %v2779_v15 = vmul.f32 %v5076_v39, %v2651_v21  ;;  %v3900_v44 = vpop.f32.mrb[100].mxu1  ;;  %v2654_v8 = vadd.f32 %v3969_v45, %v2549_v11 }
 0x1c3   : > { %v3901_v14 = vpop.f32.mrb[101].mxu1 }
 0x1c4   : > { %v2892_v18 = vadd.f32 %v2874_v28, %v5086_v41  ;;  %v2875_v13 = vmul.f32 %v2857_v10, %v5091_v63  ;;  %v5103_v17 = vadd.f32 %v5082_v36, %v2779_v15  ;;  %v3902_v16 = vadd.f32 %v3901_v14, %v3900_v44  ;;  %v3903_v19 = vpop.f32.mrb[102].mxu1  ;;  %v3976_v9 = vpop.f32.mrb[100].mxu0 }
 0x1c5   : > { %v2780_v20 = vmul.f32 %v5076_v39, %v2654_v8  ;;  %v3904_v35 = vpop.f32.mrb[103].mxu1  ;;  %v3977_v27 = vpop.f32.mrb[101].mxu0 }
 0x1c6   : > { %v2910_v53 = vmul.f32 0.7978846, %v2892_v18  ;;  %v2893_v43 = vadd.f32 %v2875_v13, %v5091_v63  ;;  %v2840_v30 = vmul.f32 0.044715, %v5103_v17  ;;  %v3979_v34 = vpop.f32.mrb[102].mxu0  ;;  %v2554_v32 = vadd.f32 %v3902_v16, %v5031_v26 }
 0x1c7   : > { %v5109_v60 = vadd.f32 %v5082_v36, %v2780_v20  ;;  %v3905_v31 = vadd.f32 %v3904_v35, %v3903_v19  ;;  %v3978_v42 = vadd.f32 %v3977_v27, %v3976_v9  ;;  %v3980_v38 = vpop.f32.mrb[103].mxu0 }
 0x1c8   : > { %4355 = vtanh.f32 %v2910_v53  ;;  %v2911_v45 = vmul.f32 0.7978846, %v2893_v43  ;;  %v2858_v50 = vmul.f32 %v2840_v30, %v5103_v17  ;;  %v3981_v33 = vadd.f32 %v3980_v38, %v3979_v34 }
 0x1c9   : > { %v2841_v40 = vmul.f32 0.044715, %v5109_v60  ;;  %v2659_v51 = vadd.f32 %v3972_v62, %v2554_v32  ;;  %v2557_v5 = vadd.f32 %v3905_v31, %v5034_v29  ;;  %v2820_v31 = vmul.f32 0.5, %v5086_v41 }
 0x1ca   : > { %4357 = vtanh.f32 %v2911_v45  ;;  %v2876_v59 = vmul.f32 %v2858_v50, %v5103_v17  ;;  %v3906_v55 = vpop.f32.mrb[104].mxu1 }
 0x1cb   : > { %v2859_v12 = vmul.f32 %v2841_v40, %v5109_v60  ;;  %v2781_v26 = vmul.f32 %v5076_v39, %v2659_v51  ;;  %v2662_v52 = vadd.f32 %v3975_v37, %v2557_v5  ;;  %v3907_v54 = vpop.f32.mrb[105].mxu1  ;;  %v2821_v40 = vmul.f32 0.5, %v5091_v63 }
 0x1cc   : > { %v2894_v58 = vadd.f32 %v2876_v59, %v5103_v17  ;;  %v3908_v57 = vadd.f32 %v3907_v54, %v3906_v55  ;;  %v3909_v0 = vpop.f32.mrb[106].mxu1  ;;  %v3982_v56 = vpop.f32.mrb[104].mxu0 }
 0x1cd   : > { %v2877_v61 = vmul.f32 %v2859_v12, %v5109_v60  ;;  %v5121_v62 = vadd.f32 %v5082_v36, %v2781_v26  ;;  %v2782_v29 = vmul.f32 %v5076_v39, %v2662_v52  ;;  %v3910_v3 = vpop.f32.mrb[107].mxu1  ;;  %v3983_v1 = vpop.f32.mrb[105].mxu0 }
 0x1ce   : > { %v2912_v21 = vmul.f32 0.7978846, %v2894_v58  ;;  %v2562_v11 = vadd.f32 %v3908_v57, %v5037_v48  ;;  %v3911_v28 = vadd.f32 %v3910_v3, %v3909_v0  ;;  %v3984_v37 = vadd.f32 %v3983_v1, %v3982_v56  ;;  %v3985_v10 = vpop.f32.mrb[106].mxu0 }
 0x1cf   : > { %v2895_v15 = vadd.f32 %v2877_v61, %v5109_v60  ;;  %v2842_v44 = vmul.f32 0.044715, %v5121_v62  ;;  %v5128_v8 = vadd.f32 %v5082_v36, %v2782_v29  ;;  %v3986_v14 = vpop.f32.mrb[107].mxu0  ;;  %v2822_v29 = vmul.f32 0.5, %v5103_v17 }
 0x1d0   : > { %4359 = vtanh.f32 %v2912_v21  ;;  %v2667_v18 = vadd.f32 %v3978_v42, %v2562_v11  ;;  %v2565_v13 = vadd.f32 %v3911_v28, %v5040_v49  ;;  %v3987_v16 = vadd.f32 %v3986_v14, %v3985_v10 }
 0x1d1   : > { %v2913_v19 = vmul.f32 0.7978846, %v2895_v15  ;;  %v2860_v48 = vmul.f32 %v2842_v44, %v5121_v62  ;;  %v2843_v9 = vmul.f32 0.044715, %v5128_v8 }
 0x1d2   : > { %v4356_v20 = vpop.eup %4355  ;;  %v2783_v35 = vmul.f32 %v5076_v39, %v2667_v18  ;;  %v2670_v27 = vadd.f32 %v3981_v33, %v2565_v13  ;;  %v3912_v53 = vpop.f32.mrb[108].mxu1 }
 0x1d3   : > { %v2946_v43 = vadd.f32 1.0, %v4356_v20  ;;  %4361 = vtanh.f32 %v2913_v19  ;;  %v2878_v30 = vmul.f32 %v2860_v48, %v5121_v62  ;;  %v2861_v34 = vmul.f32 %v2843_v9, %v5128_v8  ;;  %v3913_v32 = vpop.f32.mrb[109].mxu1 }
 0x1d4   : > { %v4358_v49 = vpop.eup %4357  ;;  %v5139_v42 = vadd.f32 %v5082_v36, %v2783_v35  ;;  %v2784_v38 = vmul.f32 %v5076_v39, %v2670_v27  ;;  %v3914_v45 = vadd.f32 %v3913_v32, %v3912_v53  ;;  %v3915_v50 = vpop.f32.mrb[110].mxu1 }
 0x1d5   : > { %v3988_v33 = vpop.f32.mrb[108].mxu0  ;;  %v2947_v51 = vadd.f32 1.0, %v4358_v49  ;;  %v2896_v5 = vadd.f32 %v2878_v30, %v5121_v62  ;;  %v2879_v59 = vmul.f32 %v2861_v34, %v5128_v8  ;;  %v3916_v55 = vpop.f32.mrb[111].mxu1  ;;  %v2964_v26 = vmul.f32 %v2946_v43, %v2820_v31 }
 0x1d6   : > { %v3989_v12 = vpop.f32.mrb[109].mxu0  ;;  %v2844_v41 = vmul.f32 0.044715, %v5139_v42  ;;  %v5147_v52 = vadd.f32 %v5082_v36, %v2784_v38  ;;  %v2570_v54 = vadd.f32 %v3914_v45, %v5043_v6  ;;  %v3917_v56 = vadd.f32 %v3916_v55, %v3915_v50 }
 0x1d7   : > { %v3991_v58 = vpop.f32.mrb[110].mxu0  ;;  %v2965_v57 = vmul.f32 %v2947_v51, %v2821_v40  ;;  %v2914_v0 = vmul.f32 0.7978846, %v2896_v5  ;;  %v2897_v63 = vadd.f32 %v2879_v59, %v5128_v8  ;;  %v3990_v13 = vadd.f32 %v3989_v12, %v3988_v33 }
 0x1d8   : > { %v3992_v61 = vpop.f32.mrb[111].mxu0  ;;  %v2862_v3 = vmul.f32 %v2844_v41, %v5139_v42  ;;  %v2845_v1 = vmul.f32 0.044715, %v5147_v52  ;;  %v2675_v6 = vadd.f32 %v3984_v37, %v2570_v54  ;;  %v2573_v28 = vadd.f32 %v3917_v56, %v5046_v7 }
 0x1d9   : > { %v3472_v21 = vpack.c.bf16 %v2965_v57, %v2964_v26  ;;  %4363 = vtanh.f32 %v2914_v0  ;;  %v2915_v11 = vmul.f32 0.7978846, %v2897_v63  ;;  %v3993_v37 = vadd.f32 %v3992_v61, %v3991_v58 }
 0x1da   : > { %v4360_v10 = vpop.eup %4359  ;;  %v2880_v15 = vmul.f32 %v2862_v3, %v5139_v42  ;;  %v2863_v44 = vmul.f32 %v2845_v1, %v5147_v52  ;;  %v2785_v14 = vmul.f32 %v5076_v39, %v2675_v6  ;;  %v3918_v18 = vpop.f32.mrb[112].mxu1  ;;  %v2678_v19 = vadd.f32 %v3987_v16, %v2573_v28 }
 0x1db   : > { %3473 = vst [vmem:[%s5154_s20] sm:$0xff] %v3472_v21   ;;  %v2948_v17 = vadd.f32 1.0, %v4360_v10  ;;  %4365 = vtanh.f32 %v2915_v11  ;;  %v3919_v48 = vpop.f32.mrb[113].mxu1  ;;  %v2823_v30 = vmul.f32 0.5, %v5109_v60 }
 0x1dc   : > { %v2898_v9 = vadd.f32 %v2880_v15, %v5139_v42  ;;  %v2881_v20 = vmul.f32 %v2863_v44, %v5147_v52  ;;  %v5167_v7 = vadd.f32 %v5082_v36, %v2785_v14  ;;  %v3920_v35 = vadd.f32 %v3919_v48, %v3918_v18  ;;  %v3921_v27 = vpop.f32.mrb[114].mxu1  ;;  %v3994_v53 = vpop.f32.mrb[112].mxu0 }
 0x1dd   : > { %v4362_v43 = vpop.eup %4361  ;;  %v2786_v34 = vmul.f32 %v5076_v39, %v2678_v19  ;;  %v3922_v32 = vpop.f32.mrb[115].mxu1  ;;  %v2966_v16 = vmul.f32 %v2948_v17, %v2822_v29  ;;  %v2824_v15 = vmul.f32 0.5, %v5121_v62  ;;  %v2825_v17 = vmul.f32 0.5, %v5128_v8 }
 0x1de   : > { %v3995_v49 = vpop.f32.mrb[113].mxu0  ;;  %v2949_v31 = vadd.f32 1.0, %v4362_v43  ;;  %v2916_v38 = vmul.f32 0.7978846, %v2898_v9  ;;  %v2899_v45 = vadd.f32 %v2881_v20, %v5147_v52  ;;  %v2846_v33 = vmul.f32 0.044715, %v5167_v7 }
 0x1df   : > { %v3997_v50 = vpop.f32.mrb[114].mxu0  ;;  %v5174_v40 = vadd.f32 %v5082_v36, %v2786_v34  ;;  %v2578_v51 = vadd.f32 %v3920_v35, %v5049_v24  ;;  %v3923_v5 = vadd.f32 %v3922_v32, %v3921_v27  ;;  %v3996_v12 = vadd.f32 %v3995_v49, %v3994_v53 }
 0x1e0   : > { %v3998_v59 = vpop.f32.mrb[115].mxu0  ;;  %v2967_v60 = vmul.f32 %v2949_v31, %v2823_v30  ;;  %4367 = vtanh.f32 %v2916_v38  ;;  %v2917_v55 = vmul.f32 0.7978846, %v2899_v45  ;;  %v2864_v26 = vmul.f32 %v2846_v33, %v5167_v7 }
 0x1e1   : > { %v2847_v41 = vmul.f32 0.044715, %v5174_v40  ;;  %v2683_v54 = vadd.f32 %v3990_v13, %v2578_v51  ;;  %v2581_v57 = vadd.f32 %v3923_v5, %v5052_v25  ;;  %v3999_v63 = vadd.f32 %v3998_v59, %v3997_v50 }
 0x1e2   : > { %v3477_v58 = vpack.c.bf16 %v2967_v60, %v2966_v16  ;;  %4369 = vtanh.f32 %v2917_v55  ;;  %v3924_v0 = vpop.f32.mrb[116].mxu1  ;;  %v2882_v24 = vmul.f32 %v2864_v26, %v5167_v7  ;;  %v2826_v38 = vmul.f32 0.5, %v5139_v42 }
 0x1e3   : > { %v4364_v56 = vpop.eup %4363  ;;  %v2865_v61 = vmul.f32 %v2847_v41, %v5174_v40  ;;  %v2787_v29 = vmul.f32 %v5076_v39, %v2683_v54  ;;  %v3925_v3 = vpop.f32.mrb[117].mxu1  ;;  %v2686_v6 = vadd.f32 %v3993_v37, %v2581_v57  ;;  %v2827_v57 = vmul.f32 0.5, %v5147_v52 }
 0x1e4   : > { %3514 = vst [vmem:[%s5154_s20 + $0x8] sm:$0xff] %v3477_v58   ;;  %v2950_v1 = vadd.f32 1.0, %v4364_v56  ;;  %v3926_v21 = vadd.f32 %v3925_v3, %v3924_v0  ;;  %v3927_v11 = vpop.f32.mrb[118].mxu1  ;;  %v4000_v28 = vpop.f32.mrb[116].mxu0  ;;  %v2900_v25 = vadd.f32 %v2882_v24, %v5167_v7 }
 0x1e5   : > { %v4366_v10 = vpop.eup %4365  ;;  %v2883_v44 = vmul.f32 %v2865_v61, %v5174_v40  ;;  %v5188_v14 = vadd.f32 %v5082_v36, %v2787_v29  ;;  %v3928_v18 = vpop.f32.mrb[119].mxu1  ;;  %v2788_v48 = vmul.f32 %v5076_v39, %v2686_v6 }
 0x1e6   : > { %v4001_v13 = vpop.f32.mrb[117].mxu0  ;;  %v2951_v19 = vadd.f32 1.0, %v4366_v10  ;;  %v2586_v37 = vadd.f32 %v3926_v21, %v5055_v46  ;;  %v2968_v20 = vmul.f32 %v2950_v1, %v2824_v15  ;;  %v2918_v35 = vmul.f32 0.7978846, %v2900_v25 }
 0x1e7   : > { %v4003_v9 = vpop.f32.mrb[118].mxu0  ;;  %v2901_v62 = vadd.f32 %v2883_v44, %v5174_v40  ;;  %v2848_v27 = vmul.f32 0.044715, %v5188_v14  ;;  %v5196_v30 = vadd.f32 %v5082_v36, %v2788_v48  ;;  %v3929_v32 = vadd.f32 %v3928_v18, %v3927_v11 }
 0x1e8   : > { %v4004_v53 = vpop.f32.mrb[119].mxu0  ;;  %v2969_v43 = vmul.f32 %v2951_v19, %v2825_v17  ;;  %v2691_v34 = vadd.f32 %v3996_v12, %v2586_v37  ;;  %4371 = vtanh.f32 %v2918_v35  ;;  %v4002_v46 = vadd.f32 %v4001_v13, %v4000_v28 }
 0x1e9   : > { %v2919_v8 = vmul.f32 0.7978846, %v2901_v62  ;;  %v2866_v49 = vmul.f32 %v2848_v27, %v5188_v14  ;;  %v2849_v45 = vmul.f32 0.044715, %v5196_v30  ;;  %v2589_v59 = vadd.f32 %v3929_v32, %v5058_v47 }
 0x1ea   : > { %v4368_v16 = vpop.eup %4367  ;;  %v3482_v31 = vpack.c.bf16 %v2969_v43, %v2968_v20  ;;  %v2789_v50 = vmul.f32 %v5076_v39, %v2691_v34  ;;  %v3930_v33 = vpop.f32.mrb[120].mxu1  ;;  %v4005_v54 = vadd.f32 %v4004_v53, %v4003_v9 }
 0x1eb   : > { %v2952_v51 = vadd.f32 1.0, %v4368_v16  ;;  %4373 = vtanh.f32 %v2919_v8  ;;  %v2884_v5 = vmul.f32 %v2866_v49, %v5188_v14  ;;  %v3931_v60 = vpop.f32.mrb[121].mxu1  ;;  %v2867_v12 = vmul.f32 %v2849_v45, %v5196_v30 }
 0x1ec   : > { %v4370_v55 = vpop.eup %4369  ;;  %3515 = vst [vmem:[%s5154_s20 + $0x10] sm:$0xff] %v3482_v31   ;;  %v5207_v26 = vadd.f32 %v5082_v36, %v2789_v50  ;;  %v3932_v42 = vadd.f32 %v3931_v60, %v3930_v33  ;;  %v3933_v41 = vpop.f32.mrb[122].mxu1  ;;  %v2694_v24 = vadd.f32 %v3999_v63, %v2589_v59  ;;  %v2829_v45 = vmul.f32 0.5, %v5174_v40 }
 0x1ed   : > { %v4006_v58 = vpop.f32.mrb[120].mxu0  ;;  %v2953_v0 = vadd.f32 1.0, %v4370_v55  ;;  %v2902_v56 = vadd.f32 %v2884_v5, %v5188_v14  ;;  %v3934_v61 = vpop.f32.mrb[123].mxu1  ;;  %v2970_v29 = vmul.f32 %v2952_v51, %v2826_v38  ;;  %v2885_v3 = vmul.f32 %v2867_v12, %v5196_v30 }
 0x1ee   : > { %v4007_v47 = vpop.f32.mrb[121].mxu0  ;;  %v2850_v1 = vmul.f32 0.044715, %v5207_v26  ;;  %v2594_v6 = vadd.f32 %v3932_v42, %v5061_v2  ;;  %v2790_v10 = vmul.f32 %v5076_v39, %v2694_v24  ;;  %v3935_v15 = vadd.f32 %v3934_v61, %v3933_v41 }
 0x1ef   : > { %v4009_v21 = vpop.f32.mrb[122].mxu0  ;;  %v2971_v11 = vmul.f32 %v2953_v0, %v2827_v57  ;;  %v2920_v28 = vmul.f32 0.7978846, %v2902_v56  ;;  %v2903_v25 = vadd.f32 %v2885_v3, %v5196_v30  ;;  %v4008_v18 = vadd.f32 %v4007_v47, %v4006_v58 }
 0x1f0   : > { %v4010_v52 = vpop.f32.mrb[123].mxu0  ;;  %v2868_v63 = vmul.f32 %v2850_v1, %v5207_v26  ;;  %v2699_v44 = vadd.f32 %v4002_v46, %v2594_v6  ;;  %v5218_v17 = vadd.f32 %v5082_v36, %v2790_v10  ;;  %v2597_v2 = vadd.f32 %v3935_v15, %v5064_v4 }
 0x1f1   : > { %v3487_v13 = vpack.c.bf16 %v2971_v11, %v2970_v29  ;;  %4375 = vtanh.f32 %v2920_v28  ;;  %v2921_v19 = vmul.f32 0.7978846, %v2903_v25  ;;  %v4011_v20 = vadd.f32 %v4010_v52, %v4009_v21 }
 0x1f2   : > { %v2886_v48 = vmul.f32 %v2868_v63, %v5207_v26  ;;  %v2791_v37 = vmul.f32 %v5076_v39, %v2699_v44  ;;  %v3936_v9 = vpop.f32.mrb[124].mxu1  ;;  %v4372_v35 = vpop.eup %4371  ;;  %v2851_v62 = vmul.f32 0.044715, %v5218_v17  ;;  %v2702_v27 = vadd.f32 %v4005_v54, %v2597_v2 }
 0x1f3   : > { %3516 = vst [vmem:[%s5154_s20 + $0x18] sm:$0xff] %v3487_v13   ;;  %v3937_v53 = vpop.f32.mrb[125].mxu1  ;;  %v2954_v43 = vadd.f32 1.0, %v4372_v35  ;;  %4377 = vtanh.f32 %v2921_v19  ;;  %v2828_v38 = vmul.f32 0.5, %v5167_v7  ;;  %v2830_v21 = vmul.f32 0.5, %v5188_v14 }
 0x1f4   : > { %v2904_v34 = vadd.f32 %v2886_v48, %v5207_v26  ;;  %v5227_v32 = vadd.f32 %v5082_v36, %v2791_v37  ;;  %v3939_v4 = vpop.f32.mrb[126].mxu1  ;;  %v2869_v49 = vmul.f32 %v2851_v62, %v5218_v17  ;;  %v2792_v46 = vmul.f32 %v5076_v39, %v2702_v27 }
 0x1f5   : > { %v4374_v8 = vpop.eup %4373  ;;  %v3938_v16 = vadd.f32 %v3937_v53, %v3936_v9  ;;  %v3940_v31 = vpop.f32.mrb[127].mxu1  ;;  %v2972_v55 = vmul.f32 %v2954_v43, %v2828_v38  ;;  %v2831_v28 = vmul.f32 0.5, %v5196_v30  ;;  %v2832_v62 = vmul.f32 0.5, %v5207_v26 }
 0x1f6   : > { %v2955_v50 = vadd.f32 1.0, %v4374_v8  ;;  %v2922_v33 = vmul.f32 0.7978846, %v2904_v34  ;;  %v2887_v51 = vmul.f32 %v2869_v49, %v5218_v17  ;;  %v2852_v5 = vmul.f32 0.044715, %v5227_v32 }
 0x1f7   : > { %v5236_v59 = vadd.f32 %v5082_v36, %v2792_v46  ;;  %v2602_v60 = vadd.f32 %v3938_v16, %v5067_v22  ;;  %v3941_v42 = vadd.f32 %v3940_v31, %v3939_v4  ;;  %v2834_v38 = vmul.f32 0.5, %v5227_v32 }
 0x1f8   : > { %v2973_v12 = vmul.f32 %v2955_v50, %v2829_v45  ;;  %4379 = vtanh.f32 %v2922_v33  ;;  %v2905_v7 = vadd.f32 %v2887_v51, %v5218_v17  ;;  %v2870_v40 = vmul.f32 %v2852_v5, %v5227_v32 }
 0x1f9   : > { %v2853_v41 = vmul.f32 0.044715, %v5236_v59  ;;  %v2707_v58 = vadd.f32 %v4008_v18, %v2602_v60  ;;  %v2605_v57 = vadd.f32 %v3941_v42, %v5070_v23  ;;  %v2835_v26 = vmul.f32 0.5, %v5236_v59 }
 0x1fa   : > { %v3492_v54 = vpack.c.bf16 %v2973_v12, %v2972_v55  ;;  %v2923_v56 = vmul.f32 0.7978846, %v2905_v7  ;;  %v2888_v24 = vmul.f32 %v2870_v40, %v5227_v32 }
 0x1fb   : > { %v4376_v0 = vpop.eup %4375  ;;  %v2871_v22 = vmul.f32 %v2853_v41, %v5236_v59  ;;  %v2793_v61 = vmul.f32 %v5076_v39, %v2707_v58  ;;  %v2710_v47 = vadd.f32 %v4011_v20, %v2605_v57 }
 0x1fc   : > { %3517 = vst [vmem:[%s5154_s20 + $0x20] sm:$0xff] %v3492_v54   ;;  %v2956_v29 = vadd.f32 1.0, %v4376_v0  ;;  %4381 = vtanh.f32 %v2923_v56  ;;  %v2906_v3 = vadd.f32 %v2888_v24, %v5227_v32 }
 0x1fd   : > { %v2889_v1 = vmul.f32 %v2871_v22, %v5236_v59  ;;  %v4378_v6 = vpop.eup %4377  ;;  %v2818_v23 = vadd.f32 %v5082_v36, %v2793_v61  ;;  %v2794_v11 = vmul.f32 %v5076_v39, %v2710_v47 }
 0x1fe   : > { %v2957_v10 = vadd.f32 1.0, %v4378_v6  ;;  %v2924_v15 = vmul.f32 0.7978846, %v2906_v3  ;;  %v2974_v44 = vmul.f32 %v2956_v29, %v2830_v21 }
 0x1ff   : > { %v2907_v52 = vadd.f32 %v2889_v1, %v5236_v59  ;;  %v2854_v25 = vmul.f32 0.044715, %v2818_v23  ;;  %v2819_v63 = vadd.f32 %v5082_v36, %v2794_v11  ;;  %v2833_v36 = vmul.f32 0.5, %v5218_v17 }
 0x200   : > { %v2975_v18 = vmul.f32 %v2957_v10, %v2831_v28  ;;  %4383 = vtanh.f32 %v2924_v15  ;;  %v2836_v55 = vmul.f32 0.5, %v2818_v23 }
 0x201   : > { %v2925_v13 = vmul.f32 0.7978846, %v2907_v52  ;;  %v2872_v2 = vmul.f32 %v2854_v25, %v2818_v23  ;;  %v2855_v14 = vmul.f32 0.044715, %v2819_v63  ;;  %v2837_v12 = vmul.f32 0.5, %v2819_v63 }
 0x202   : > { %v4380_v19 = vpop.eup %4379  ;;  %v3497_v48 = vpack.c.bf16 %v2975_v18, %v2974_v44 }
 0x203   : > { %4385 = vtanh.f32 %v2925_v13  ;;  %v2890_v39 = vmul.f32 %v2872_v2, %v2818_v23  ;;  %v2873_v37 = vmul.f32 %v2855_v14, %v2819_v63  ;;  %v2958_v30 = vadd.f32 1.0, %v4380_v19 }
 0x204   : > { %3518 = vst [vmem:[%s5154_s20 + $0x28] sm:$0xff] %v3497_v48  }
 0x205   : > { %v2908_v9 = vadd.f32 %v2890_v39, %v2818_v23  ;;  %v2891_v20 = vmul.f32 %v2873_v37, %v2819_v63  ;;  %v2976_v34 = vmul.f32 %v2958_v30, %v2832_v62 }
 0x206   : > { %v4382_v35 = vpop.eup %4381 }
 0x207   : > { %v2959_v27 = vadd.f32 1.0, %v4382_v35  ;;  %v2926_v53 = vmul.f32 0.7978846, %v2908_v9  ;;  %v2909_v43 = vadd.f32 %v2891_v20, %v2819_v63 }
 0x209   : > { %v2977_v4 = vmul.f32 %v2959_v27, %v2833_v36  ;;  %4387 = vtanh.f32 %v2926_v53  ;;  %v2927_v8 = vmul.f32 0.7978846, %v2909_v43 }
 0x20a   : > { %v4384_v49 = vpop.eup %4383 }
 0x20b   : > { %v3502_v46 = vpack.c.bf16 %v2977_v4, %v2976_v34  ;;  %v2960_v16 = vadd.f32 1.0, %v4384_v49  ;;  %4389 = vtanh.f32 %v2927_v8 }
 0x20d   : > { %v4386_v31 = vpop.eup %4385  ;;  %3519 = vst [vmem:[%s5154_s20 + $0x30] sm:$0xff] %v3502_v46   ;;  %v2978_v45 = vmul.f32 %v2960_v16, %v2834_v38 }
 0x20e   : > { %v2961_v17 = vadd.f32 1.0, %v4386_v31 }
 0x210   : > { %v2979_v50 = vmul.f32 %v2961_v17, %v2835_v26 }
 0x212   : > { %v3507_v33 = vpack.c.bf16 %v2979_v50, %v2978_v45 }
 0x213   : > { %v4388_v51 = vpop.eup %4387 }
 0x214   : > { %3520 = vst [vmem:[%s5154_s20 + $0x38] sm:$0xff] %v3507_v33   ;;  %v2962_v5 = vadd.f32 1.0, %v4388_v51 }
 0x215   : > { %v4390_v60 = vpop.eup %4389 }
 0x216   : > { %v2963_v42 = vadd.f32 1.0, %v4390_v60  ;;  %v2980_v7 = vmul.f32 %v2962_v5, %v2836_v55 }
 0x218   : > { %v2981_v40 = vmul.f32 %v2963_v42, %v2837_v12 }
 0x21a   : > { %v3512_v41 = vpack.c.bf16 %v2981_v40, %v2980_v7 }
 0x21c   : > { %3521 = vst [vmem:[%s5154_s20 + $0x40] sm:$0xff] %v3512_v41  }
 0x21d PF: > { %s14_s17 = sadd.s32 1, %s4413_s17   ;;  %s5277_s15 = smov %s4409_s16 }
 0x21e   : > { %p11_p5 = scmp.ge.s32.totalorder %s14_s17, 4   ;;  %s5278_s16 = smov %s5280_s18 }
 0x220   :  { %13 = sbr.rel (!%p11_p5) target bundleno = 2 (0x2), region = 77 }

// kernel: spatiotemporal_encoder.11
= control target key start
LH: loop header
LB: loop body
LE: loop exit
PB: predicated region body
PF: predicated region fallthrough
CT: control target
= control target key end

     0   :  { %s625_s15 = smov 0   ;;  %s627_s16 = smov 0   ;;  %s688_s0 = inlined_call_operand.vmem [shape: bf16[2,40,128], index: 0, kind: input, shape index: {}]   ;;  %s689_s1 = inlined_call_operand.vmem [shape: bf16[2,40,128], index: 1, kind: input, shape index: {}]   ;;  %s690_s2 = inlined_call_operand.vmem [shape: bf16[2,40,128], index: 2, kind: input, shape index: {}]   ;;  %s691_s3 = inlined_call_operand.vmem [shape: bf16[2,40,128], index: 3, kind: input, shape index: {}]   ;;  %s692_s4 = inlined_call_operand.vmem [shape: bf16[2,40,128], index: 4, kind: output, shape index: {}]  }
   0x1   :  { %s629_s17 = smov 0  }
   0x2 LB: > { %s26_s18 = sadd.s32 1, %s594_s16  ;;  %p530_p0 = scmp.ge.s32.totalorder %s598_s17, 1  ;;  %s598_s17 = sphi %s629_s17, %s14_s17   ;;  %s594_s16 = sphi %s627_s16, %s694_s16   ;;  %s590_s15 = sphi %s625_s15, %s693_s15  }
   0x3   : > { %p28_p1 = scmp.ge.s32.totalorder %s26_s18, 2  ;;  %p234_p2 = scmp.lt.s32.totalorder %s598_s17, 3 }
   0x5   : > { %s696_s18 = smov (%p28_p1, %s26_s18), 0  ;;  %p235_p3 = pnand %p530_p0, %p234_p2 }
   0x6   : > { %p296_p4 = scmp.lt.s32.totalorder (!%p235_p3), %s590_s15, 1 }
   0x7   : > { %238 = sbr.rel (%p235_p3) target bundleno = 31 (0x1f), region = 36 }
   0xe   : > { %s698_s15 = smov (!%p296_p4, %s590_s15), 1 }
   0xf   : > { %s643_s19 = smul.u32 20, %s698_s15 }
  0x11   : > { %s303_s22 = scalar_lea.vmem %s688_s0, %s643_s19  ;;  %s313_s25 = scalar_lea.vmem %s689_s1, %s643_s19 }
  0x12   : > { %s657_s28 = scalar_lea.vmem %s690_s2, %s643_s19  ;;  %s663_s5 = scalar_lea.vmem %s691_s3, %s643_s19  ;;  %v345_v0 = vld [vmem:[%s303_s22] sm:$0xf]  ;;  %v346_v1 = vld [vmem:[%s303_s22 + $0x4] sm:$0xf]  ;;  %v347_v10 = vld [vmem:[%s303_s22 + $0x8] sm:$0xf] }
  0x13   : > { %v350_v2 = vld [vmem:[%s313_s25] sm:$0xf]  ;;  %v351_v3 = vld [vmem:[%s313_s25 + $0x4] sm:$0xf]  ;;  %v348_v13 = vld [vmem:[%s303_s22 + $0xc] sm:$0xf]  ;;  %s343_s8 = scalar_lea.vmem %s692_s4, %s643_s19 }
  0x14   : > { %v355_v4 = vmax.bf16 %v350_v2, %v345_v0  ;;  %v360_v5 = vld [vmem:[%s657_s28] sm:$0xf]  ;;  %v361_v6 = vld [vmem:[%s657_s28 + $0x4] sm:$0xf]  ;;  %v356_v7 = vmax.bf16 %v351_v3, %v346_v1  ;;  %v352_v14 = vld [vmem:[%s313_s25 + $0x8] sm:$0xf] }
  0x15   : > { %v365_v8 = vld [vmem:[%s663_s5] sm:$0xf]  ;;  %v366_v9 = vld [vmem:[%s663_s5 + $0x4] sm:$0xf]  ;;  %v353_v15 = vld [vmem:[%s313_s25 + $0xc] sm:$0xf]  ;;  %v357_v16 = vmax.bf16 %v352_v14, %v347_v10 }
  0x16   : > { %v370_v11 = vmax.bf16 %v365_v8, %v360_v5  ;;  %v371_v12 = vmax.bf16 %v366_v9, %v361_v6  ;;  %v358_v17 = vmax.bf16 %v353_v15, %v348_v13  ;;  %v362_v18 = vld [vmem:[%s657_s28 + $0x8] sm:$0xf]  ;;  %v363_v19 = vld [vmem:[%s657_s28 + $0xc] sm:$0xf]  ;;  %v349_v25 = vld [vmem:[%s303_s22 + $0x10] sm:$0xf] }
  0x17   : > { %v367_v20 = vld [vmem:[%s663_s5 + $0x8] sm:$0xf]  ;;  %v368_v23 = vld [vmem:[%s663_s5 + $0xc] sm:$0xf]  ;;  %v354_v26 = vld [vmem:[%s313_s25 + $0x10] sm:$0xf] }
  0x18   : > { %v375_v21 = vmax.bf16 %v370_v11, %v355_v4  ;;  %v376_v22 = vmax.bf16 %v371_v12, %v356_v7  ;;  %v372_v24 = vmax.bf16 %v367_v20, %v362_v18  ;;  %v373_v27 = vmax.bf16 %v368_v23, %v363_v19  ;;  %v364_v29 = vld [vmem:[%s657_s28 + $0x10] sm:$0xf] }
  0x19   : > { %v359_v28 = vmax.bf16 %v354_v26, %v349_v25  ;;  %v369_v30 = vld [vmem:[%s663_s5 + $0x10] sm:$0xf] }
  0x1a   : > { %v548_v31 = vcombine.low %v375_v21, %v376_v22  ;;  %v377_v32 = vmax.bf16 %v372_v24, %v357_v16  ;;  %v374_v33 = vmax.bf16 %v369_v30, %v364_v29  ;;  %v378_v34 = vmax.bf16 %v373_v27, %v358_v17 }
  0x1c   : > { %542 = vst [vmem:[%s343_s8] sm:$0xff] %v548_v31   ;;  %v379_v35 = vmax.bf16 %v374_v33, %v359_v28  ;;  %v549_v36 = vcombine.low %v377_v32, %v378_v34 }
  0x1e   : > { %384 = vst [vmem:[%s343_s8 + $0x10] sm:$0xf] %v379_v35  ;;  %550 = vst [vmem:[%s343_s8 + $0x8] sm:$0xff] %v549_v36  }
  0x1f PF: > { %s14_s17 = sadd.s32 1, %s598_s17   ;;  %s693_s15 = smov %s594_s16 }
  0x20   : > { %p11_p5 = scmp.ge.s32.totalorder %s14_s17, 4   ;;  %s694_s16 = smov %s696_s18 }
  0x22   :  { %13 = sbr.rel (!%p11_p5) target bundleno = 2 (0x2), region = 75 }

// kernel: spatiotemporal_encoder.10
= control target key start
LH: loop header
LB: loop body
LE: loop exit
PB: predicated region body
PF: predicated region fallthrough
CT: control target
= control target key end

     0   :  { %s4086_s21 = smov 0   ;;  %s4088_s22 = smov 0   ;;  %s4901_s0 = inlined_call_operand.vmem [shape: bf16[2,144,3456], index: 0, kind: input, shape index: {}]   ;;  %s4902_s1 = inlined_call_operand.vmem [shape: bf16[3456,128], index: 1, kind: input, shape index: {}]   ;;  %s4903_s2 = inlined_call_operand.vmem [shape: f32[1,128], index: 2, kind: input, shape index: {}]   ;;  %s4904_s3 = inlined_call_operand.vmem [shape: f32[1,128], index: 3, kind: input, shape index: {}]   ;;  %s4905_s4 = inlined_call_operand.vmem [shape: bf16[2,144,64], index: 4, kind: input, shape index: {}]   ;;  %s4906_s5 = inlined_call_operand.vmem [shape: bf16[64,128], index: 5, kind: input, shape index: {}]   ;;  %s4907_s6 = inlined_call_operand.vmem [shape: bf16[2,144,128], index: 6, kind: output, shape index: {}]  }
   0x1   :  { %s4090_s23 = smov 0   ;;  %s4092_s24 = smov 0  }
   0x2   :  { %s4094_s25 = smov 0   ;;  %s4096_s26 = smov 0  }
   0x3   :  { %s4098_s27 = smov 0  }
   0x4 LB: > { %s28_s28 = sadd.s32 1, %s4036_s25  ;;  %s35_s29 = sadd.s32 1, %s4040_s26  ;;  %s4044_s27 = sphi %s4098_s27, %s16_s27   ;;  %s4040_s26 = sphi %s4096_s26, %s4913_s26   ;;  %s4036_s25 = sphi %s4094_s25, %s4912_s25   ;;  %s4032_s24 = sphi %s4092_s24, %s4911_s24   ;;  %s4028_s23 = sphi %s4090_s23, %s4910_s23   ;;  %s4024_s22 = sphi %s4088_s22, %s4909_s22   ;;  %s4020_s21 = sphi %s4086_s21, %s4908_s21  }
   0x5   : > { %p29_p0 = scmp.ge.s32.totalorder %s28_s28, 3  ;;  %p53_p1 = scmp.ne.s32.totalorder %s4024_s22, %s4020_s21 }
   0x6   : > { %p54_p2 = scmp.eq.s32.totalorder %s4044_s27, 0  ;;  %s46_s9 = sadd.s32 1, %s4024_s22 }
   0x7   : > { %s4915_s28 = smov (%p29_p0, %s28_s28), 0  ;;  %s4917_s29 = smov (!%p29_p0, %s35_s29), %s4040_s26 }
   0x8   : > { %p55_p3 = por %p54_p2, %p53_p1  ;;  %p37_p4 = scmp.ge.s32.totalorder %s4917_s29, 2 }
   0x9   : > { %s42_s30 = ssub.s32 %s4036_s25, %s4915_s28  ;;  %p2945_p6 = scmp.ge.s32.totalorder %s4044_s27, 6 }
   0xa   : > { %s4919_s29 = smov (%p37_p4, %s4917_s29), 0 }
   0xb   : > { %s39_s7 = ssub.s32 %s4040_s26, %s4919_s29  ;;  %233 = sbr.rel (%p2945_p6) target bundleno = 75 (0x4b), region = 28 }
   0xc   : > { %s43_s8 = sor.u32 %s42_s30, %s39_s7 }
   0xd   : > { %p44_p5 = scmp.eq.s32.totalorder %s43_s8, 0 }
   0xf   : > { %s4137_s10 = scalar_select %p44_p5, %s4024_s22, %s46_s9  }
  0x12   : > { %236 = sbr.rel (!%p55_p3) target bundleno = 75 (0x4b), region = 32  ;;  %s238_s11 = sand.u32 (%p55_p3), 1, %s4024_s22  }
  0x13   : > { %s242_s12 = smul.u32 (%p55_p3), 9, %s4036_s25 }
  0x14   : > { %s3687_s13 = smul.u32 (%p55_p3), 648, %s238_s11 }
  0x15   : > { %s3688_s14 = smul.u32 (%p55_p3), 486, %s4040_s26 }
  0x16   : > { %s4151_s20 = scalar_lea.vmem (%p55_p3), [#allocation3], %s3687_s13 }
  0x17   : > { %s246_s15 = sadd.s32 (%p55_p3), %s3688_s14, %s242_s12 }
  0x18   : > { %s2946_s16 = sshll.u32 (%p55_p3), %s246_s15, 2 }
  0x19   : > { %s4146_s19 = scalar_lea.vmem %s4901_s0, %s2946_s16 }
  0x1a   : > { %v263_v0 = vld [vmem:[%s4146_s19] sm:$0xff]  ;;  %v265_v1 = vld [vmem:[%s4146_s19 + $0x8] sm:$0xff]  ;;  %v267_v2 = vld [vmem:[%s4146_s19 + $0x10] sm:$0xff] }
  0x1b   : > { %264 = vst [vmem:[%s4151_s20] sm:$0xff] %v263_v0  ;;  %266 = vst [vmem:[%s4151_s20 + $0x8] sm:$0xff] %v265_v1  ;;  %v269_v3 = vld [vmem:[%s4146_s19 + $0x18] sm:$0xff]  ;;  %v271_v4 = vld [vmem:[%s4146_s19 + $0x6c] sm:$0xff] }
  0x1c   : > { %268 = vst [vmem:[%s4151_s20 + $0x10] sm:$0xff] %v267_v2  ;;  %v273_v5 = vld [vmem:[%s4146_s19 + $0x74] sm:$0xff]  ;;  %270 = vst [vmem:[%s4151_s20 + $0x18] sm:$0xff] %v269_v3  ;;  %v275_v6 = vld [vmem:[%s4146_s19 + $0x7c] sm:$0xff] }
  0x1d   : > { %272 = vst [vmem:[%s4151_s20 + $0x24] sm:$0xff] %v271_v4  ;;  %274 = vst [vmem:[%s4151_s20 + $0x2c] sm:$0xff] %v273_v5  ;;  %v277_v7 = vld [vmem:[%s4146_s19 + $0x84] sm:$0xff]  ;;  %v279_v8 = vld [vmem:[%s4146_s19 + $0xd8] sm:$0xff] }
  0x1e   : > { %276 = vst [vmem:[%s4151_s20 + $0x34] sm:$0xff] %v275_v6  ;;  %278 = vst [vmem:[%s4151_s20 + $0x3c] sm:$0xff] %v277_v7  ;;  %v281_v9 = vld [vmem:[%s4146_s19 + $0xe0] sm:$0xff]  ;;  %v283_v10 = vld [vmem:[%s4146_s19 + $0xe8] sm:$0xff] }
  0x1f   : > { %280 = vst [vmem:[%s4151_s20 + $0x48] sm:$0xff] %v279_v8  ;;  %v285_v11 = vld [vmem:[%s4146_s19 + $0xf0] sm:$0xff]  ;;  %282 = vst [vmem:[%s4151_s20 + $0x50] sm:$0xff] %v281_v9  ;;  %v287_v12 = vld [vmem:[%s4146_s19 + $0x144] sm:$0xff] }
  0x20   : > { %284 = vst [vmem:[%s4151_s20 + $0x58] sm:$0xff] %v283_v10  ;;  %286 = vst [vmem:[%s4151_s20 + $0x60] sm:$0xff] %v285_v11  ;;  %v289_v13 = vld [vmem:[%s4146_s19 + $0x14c] sm:$0xff]  ;;  %v291_v14 = vld [vmem:[%s4146_s19 + $0x154] sm:$0xff] }
  0x21   : > { %288 = vst [vmem:[%s4151_s20 + $0x6c] sm:$0xff] %v287_v12  ;;  %290 = vst [vmem:[%s4151_s20 + $0x74] sm:$0xff] %v289_v13  ;;  %v293_v15 = vld [vmem:[%s4146_s19 + $0x15c] sm:$0xff]  ;;  %v295_v16 = vld [vmem:[%s4146_s19 + $0x1b0] sm:$0xff] }
  0x22   : > { %292 = vst [vmem:[%s4151_s20 + $0x7c] sm:$0xff] %v291_v14  ;;  %v297_v17 = vld [vmem:[%s4146_s19 + $0x1b8] sm:$0xff]  ;;  %294 = vst [vmem:[%s4151_s20 + $0x84] sm:$0xff] %v293_v15  ;;  %v299_v18 = vld [vmem:[%s4146_s19 + $0x1c0] sm:$0xff] }
  0x23   : > { %296 = vst [vmem:[%s4151_s20 + $0x90] sm:$0xff] %v295_v16  ;;  %298 = vst [vmem:[%s4151_s20 + $0x98] sm:$0xff] %v297_v17  ;;  %v301_v19 = vld [vmem:[%s4146_s19 + $0x1c8] sm:$0xff]  ;;  %v303_v20 = vld [vmem:[%s4146_s19 + $0x21c] sm:$0xff] }
  0x24   : > { %300 = vst [vmem:[%s4151_s20 + $0xa0] sm:$0xff] %v299_v18  ;;  %302 = vst [vmem:[%s4151_s20 + $0xa8] sm:$0xff] %v301_v19  ;;  %v305_v21 = vld [vmem:[%s4146_s19 + $0x224] sm:$0xff]  ;;  %v307_v22 = vld [vmem:[%s4146_s19 + $0x22c] sm:$0xff] }
  0x25   : > { %304 = vst [vmem:[%s4151_s20 + $0xb4] sm:$0xff] %v303_v20  ;;  %v309_v23 = vld [vmem:[%s4146_s19 + $0x234] sm:$0xff]  ;;  %306 = vst [vmem:[%s4151_s20 + $0xbc] sm:$0xff] %v305_v21  ;;  %v311_v24 = vld [vmem:[%s4146_s19 + $0x288] sm:$0xff] }
  0x26   : > { %308 = vst [vmem:[%s4151_s20 + $0xc4] sm:$0xff] %v307_v22  ;;  %310 = vst [vmem:[%s4151_s20 + $0xcc] sm:$0xff] %v309_v23  ;;  %v313_v25 = vld [vmem:[%s4146_s19 + $0x290] sm:$0xff]  ;;  %v315_v26 = vld [vmem:[%s4146_s19 + $0x298] sm:$0xff] }
  0x27   : > { %312 = vst [vmem:[%s4151_s20 + $0xd8] sm:$0xff] %v311_v24  ;;  %314 = vst [vmem:[%s4151_s20 + $0xe0] sm:$0xff] %v313_v25  ;;  %v317_v27 = vld [vmem:[%s4146_s19 + $0x2a0] sm:$0xff]  ;;  %v319_v28 = vld [vmem:[%s4146_s19 + $0x2f4] sm:$0xff] }
  0x28   : > { %316 = vst [vmem:[%s4151_s20 + $0xe8] sm:$0xff] %v315_v26  ;;  %v321_v29 = vld [vmem:[%s4146_s19 + $0x2fc] sm:$0xff]  ;;  %318 = vst [vmem:[%s4151_s20 + $0xf0] sm:$0xff] %v317_v27  ;;  %v323_v30 = vld [vmem:[%s4146_s19 + $0x304] sm:$0xff] }
  0x29   : > { %320 = vst [vmem:[%s4151_s20 + $0xfc] sm:$0xff] %v319_v28  ;;  %322 = vst [vmem:[%s4151_s20 + $0x104] sm:$0xff] %v321_v29  ;;  %v325_v31 = vld [vmem:[%s4146_s19 + $0x30c] sm:$0xff]  ;;  %v327_v32 = vld [vmem:[%s4146_s19 + $0x360] sm:$0xff] }
  0x2a   : > { %324 = vst [vmem:[%s4151_s20 + $0x10c] sm:$0xff] %v323_v30  ;;  %326 = vst [vmem:[%s4151_s20 + $0x114] sm:$0xff] %v325_v31  ;;  %v329_v33 = vld [vmem:[%s4146_s19 + $0x368] sm:$0xff]  ;;  %v331_v34 = vld [vmem:[%s4146_s19 + $0x370] sm:$0xff] }
  0x2b   : > { %328 = vst [vmem:[%s4151_s20 + $0x120] sm:$0xff] %v327_v32  ;;  %v333_v35 = vld [vmem:[%s4146_s19 + $0x378] sm:$0xff]  ;;  %330 = vst [vmem:[%s4151_s20 + $0x128] sm:$0xff] %v329_v33  ;;  %v335_v36 = vld [vmem:[%s4146_s19 + $0x3cc] sm:$0xff] }
  0x2c   : > { %332 = vst [vmem:[%s4151_s20 + $0x130] sm:$0xff] %v331_v34  ;;  %334 = vst [vmem:[%s4151_s20 + $0x138] sm:$0xff] %v333_v35  ;;  %v337_v37 = vld [vmem:[%s4146_s19 + $0x3d4] sm:$0xff]  ;;  %v339_v38 = vld [vmem:[%s4146_s19 + $0x3dc] sm:$0xff] }
  0x2d   : > { %336 = vst [vmem:[%s4151_s20 + $0x144] sm:$0xff] %v335_v36  ;;  %338 = vst [vmem:[%s4151_s20 + $0x14c] sm:$0xff] %v337_v37  ;;  %v341_v39 = vld [vmem:[%s4146_s19 + $0x3e4] sm:$0xff]  ;;  %v343_v40 = vld [vmem:[%s4146_s19 + $0x438] sm:$0xff] }
  0x2e   : > { %340 = vst [vmem:[%s4151_s20 + $0x154] sm:$0xff] %v339_v38  ;;  %v345_v41 = vld [vmem:[%s4146_s19 + $0x440] sm:$0xff]  ;;  %342 = vst [vmem:[%s4151_s20 + $0x15c] sm:$0xff] %v341_v39  ;;  %v347_v42 = vld [vmem:[%s4146_s19 + $0x448] sm:$0xff] }
  0x2f   : > { %344 = vst [vmem:[%s4151_s20 + $0x168] sm:$0xff] %v343_v40  ;;  %346 = vst [vmem:[%s4151_s20 + $0x170] sm:$0xff] %v345_v41  ;;  %v349_v43 = vld [vmem:[%s4146_s19 + $0x450] sm:$0xff]  ;;  %v351_v44 = vld [vmem:[%s4146_s19 + $0x4a4] sm:$0xff] }
  0x30   : > { %348 = vst [vmem:[%s4151_s20 + $0x178] sm:$0xff] %v347_v42  ;;  %350 = vst [vmem:[%s4151_s20 + $0x180] sm:$0xff] %v349_v43  ;;  %v353_v45 = vld [vmem:[%s4146_s19 + $0x4ac] sm:$0xff]  ;;  %v355_v46 = vld [vmem:[%s4146_s19 + $0x4b4] sm:$0xff] }
  0x31   : > { %352 = vst [vmem:[%s4151_s20 + $0x18c] sm:$0xff] %v351_v44  ;;  %v357_v47 = vld [vmem:[%s4146_s19 + $0x4bc] sm:$0xff]  ;;  %354 = vst [vmem:[%s4151_s20 + $0x194] sm:$0xff] %v353_v45  ;;  %v359_v48 = vld [vmem:[%s4146_s19 + $0x510] sm:$0xff] }
  0x32   : > { %356 = vst [vmem:[%s4151_s20 + $0x19c] sm:$0xff] %v355_v46  ;;  %358 = vst [vmem:[%s4151_s20 + $0x1a4] sm:$0xff] %v357_v47  ;;  %v361_v49 = vld [vmem:[%s4146_s19 + $0x518] sm:$0xff]  ;;  %v363_v50 = vld [vmem:[%s4146_s19 + $0x520] sm:$0xff] }
  0x33   : > { %360 = vst [vmem:[%s4151_s20 + $0x1b0] sm:$0xff] %v359_v48  ;;  %362 = vst [vmem:[%s4151_s20 + $0x1b8] sm:$0xff] %v361_v49  ;;  %v365_v51 = vld [vmem:[%s4146_s19 + $0x528] sm:$0xff]  ;;  %v367_v52 = vld [vmem:[%s4146_s19 + $0x57c] sm:$0xff] }
  0x34   : > { %364 = vst [vmem:[%s4151_s20 + $0x1c0] sm:$0xff] %v363_v50  ;;  %v369_v53 = vld [vmem:[%s4146_s19 + $0x584] sm:$0xff]  ;;  %366 = vst [vmem:[%s4151_s20 + $0x1c8] sm:$0xff] %v365_v51  ;;  %v371_v54 = vld [vmem:[%s4146_s19 + $0x58c] sm:$0xff] }
  0x35   : > { %368 = vst [vmem:[%s4151_s20 + $0x1d4] sm:$0xff] %v367_v52  ;;  %370 = vst [vmem:[%s4151_s20 + $0x1dc] sm:$0xff] %v369_v53  ;;  %v373_v55 = vld [vmem:[%s4146_s19 + $0x594] sm:$0xff]  ;;  %v375_v56 = vld [vmem:[%s4146_s19 + $0x5e8] sm:$0xff] }
  0x36   : > { %372 = vst [vmem:[%s4151_s20 + $0x1e4] sm:$0xff] %v371_v54  ;;  %374 = vst [vmem:[%s4151_s20 + $0x1ec] sm:$0xff] %v373_v55  ;;  %v377_v57 = vld [vmem:[%s4146_s19 + $0x5f0] sm:$0xff]  ;;  %v379_v58 = vld [vmem:[%s4146_s19 + $0x5f8] sm:$0xff] }
  0x37   : > { %376 = vst [vmem:[%s4151_s20 + $0x1f8] sm:$0xff] %v375_v56  ;;  %v381_v59 = vld [vmem:[%s4146_s19 + $0x600] sm:$0xff]  ;;  %378 = vst [vmem:[%s4151_s20 + $0x200] sm:$0xff] %v377_v57  ;;  %v383_v60 = vld [vmem:[%s4146_s19 + $0x654] sm:$0xff] }
  0x38   : > { %380 = vst [vmem:[%s4151_s20 + $0x208] sm:$0xff] %v379_v58  ;;  %382 = vst [vmem:[%s4151_s20 + $0x210] sm:$0xff] %v381_v59  ;;  %v385_v61 = vld [vmem:[%s4146_s19 + $0x65c] sm:$0xff]  ;;  %v387_v62 = vld [vmem:[%s4146_s19 + $0x664] sm:$0xff] }
  0x39   : > { %384 = vst [vmem:[%s4151_s20 + $0x21c] sm:$0xff] %v383_v60  ;;  %386 = vst [vmem:[%s4151_s20 + $0x224] sm:$0xff] %v385_v61  ;;  %v389_v63 = vld [vmem:[%s4146_s19 + $0x66c] sm:$0xff]  ;;  %v391_v0 = vld [vmem:[%s4146_s19 + $0x6c0] sm:$0xff] }
  0x3a   : > { %388 = vst [vmem:[%s4151_s20 + $0x22c] sm:$0xff] %v387_v62  ;;  %v393_v1 = vld [vmem:[%s4146_s19 + $0x6c8] sm:$0xff]  ;;  %390 = vst [vmem:[%s4151_s20 + $0x234] sm:$0xff] %v389_v63  ;;  %v395_v2 = vld [vmem:[%s4146_s19 + $0x6d0] sm:$0xff] }
  0x3b   : > { %392 = vst [vmem:[%s4151_s20 + $0x240] sm:$0xff] %v391_v0  ;;  %394 = vst [vmem:[%s4151_s20 + $0x248] sm:$0xff] %v393_v1  ;;  %v397_v3 = vld [vmem:[%s4146_s19 + $0x6d8] sm:$0xff]  ;;  %v399_v4 = vld [vmem:[%s4146_s19 + $0x72c] sm:$0xff] }
  0x3c   : > { %396 = vst [vmem:[%s4151_s20 + $0x250] sm:$0xff] %v395_v2  ;;  %398 = vst [vmem:[%s4151_s20 + $0x258] sm:$0xff] %v397_v3  ;;  %v401_v5 = vld [vmem:[%s4146_s19 + $0x734] sm:$0xff]  ;;  %v403_v6 = vld [vmem:[%s4146_s19 + $0x73c] sm:$0xff] }
  0x3d   : > { %400 = vst [vmem:[%s4151_s20 + $0x264] sm:$0xff] %v399_v4  ;;  %v405_v7 = vld [vmem:[%s4146_s19 + $0x744] sm:$0xff]  ;;  %402 = vst [vmem:[%s4151_s20 + $0x26c] sm:$0xff] %v401_v5  ;;  %v2947_v8 = vld [vmem:[%s4146_s19 + $0x20] sm:$0xf] }
  0x3e   : > { %404 = vst [vmem:[%s4151_s20 + $0x274] sm:$0xff] %v403_v6  ;;  %406 = vst [vmem:[%s4151_s20 + $0x27c] sm:$0xff] %v405_v7  ;;  %v2949_v9 = vld [vmem:[%s4146_s19 + $0x8c] sm:$0xf]  ;;  %v2951_v10 = vld [vmem:[%s4146_s19 + $0xf8] sm:$0xf] }
  0x3f   : > { %2948 = vst [vmem:[%s4151_s20 + $0x20] sm:$0xf] %v2947_v8  ;;  %2950 = vst [vmem:[%s4151_s20 + $0x44] sm:$0xf] %v2949_v9  ;;  %v2953_v11 = vld [vmem:[%s4146_s19 + $0x164] sm:$0xf] }
  0x40   : > { %2952 = vst [vmem:[%s4151_s20 + $0x68] sm:$0xf] %v2951_v10  ;;  %v2955_v12 = vld [vmem:[%s4146_s19 + $0x1d0] sm:$0xf]  ;;  %v2957_v13 = vld [vmem:[%s4146_s19 + $0x23c] sm:$0xf] }
  0x41   : > { %2954 = vst [vmem:[%s4151_s20 + $0x8c] sm:$0xf] %v2953_v11  ;;  %2956 = vst [vmem:[%s4151_s20 + $0xb0] sm:$0xf] %v2955_v12  ;;  %v2959_v14 = vld [vmem:[%s4146_s19 + $0x2a8] sm:$0xf] }
  0x42   : > { %2958 = vst [vmem:[%s4151_s20 + $0xd4] sm:$0xf] %v2957_v13  ;;  %v2961_v15 = vld [vmem:[%s4146_s19 + $0x314] sm:$0xf]  ;;  %v2963_v16 = vld [vmem:[%s4146_s19 + $0x380] sm:$0xf] }
  0x43   : > { %2960 = vst [vmem:[%s4151_s20 + $0xf8] sm:$0xf] %v2959_v14  ;;  %2962 = vst [vmem:[%s4151_s20 + $0x11c] sm:$0xf] %v2961_v15  ;;  %v2965_v17 = vld [vmem:[%s4146_s19 + $0x3ec] sm:$0xf] }
  0x44   : > { %2964 = vst [vmem:[%s4151_s20 + $0x140] sm:$0xf] %v2963_v16  ;;  %v2967_v18 = vld [vmem:[%s4146_s19 + $0x458] sm:$0xf]  ;;  %v2969_v19 = vld [vmem:[%s4146_s19 + $0x4c4] sm:$0xf] }
  0x45   : > { %2966 = vst [vmem:[%s4151_s20 + $0x164] sm:$0xf] %v2965_v17  ;;  %2968 = vst [vmem:[%s4151_s20 + $0x188] sm:$0xf] %v2967_v18  ;;  %v2971_v20 = vld [vmem:[%s4146_s19 + $0x530] sm:$0xf] }
  0x46   : > { %2970 = vst [vmem:[%s4151_s20 + $0x1ac] sm:$0xf] %v2969_v19  ;;  %v2973_v21 = vld [vmem:[%s4146_s19 + $0x59c] sm:$0xf]  ;;  %v2975_v22 = vld [vmem:[%s4146_s19 + $0x608] sm:$0xf] }
  0x47   : > { %2972 = vst [vmem:[%s4151_s20 + $0x1d0] sm:$0xf] %v2971_v20  ;;  %2974 = vst [vmem:[%s4151_s20 + $0x1f4] sm:$0xf] %v2973_v21  ;;  %v2977_v23 = vld [vmem:[%s4146_s19 + $0x674] sm:$0xf] }
  0x48   : > { %2976 = vst [vmem:[%s4151_s20 + $0x218] sm:$0xf] %v2975_v22  ;;  %v2979_v24 = vld [vmem:[%s4146_s19 + $0x6e0] sm:$0xf]  ;;  %v2981_v25 = vld [vmem:[%s4146_s19 + $0x74c] sm:$0xf] }
  0x49   : > { %2978 = vst [vmem:[%s4151_s20 + $0x23c] sm:$0xf] %v2977_v23  ;;  %2980 = vst [vmem:[%s4151_s20 + $0x260] sm:$0xf] %v2979_v24 }
  0x4a   : > { %2982 = vst [vmem:[%s4151_s20 + $0x284] sm:$0xf] %v2981_v25 }
  0x4b PF: > { %p2983_p7 = scmp.ge.s32.totalorder %s4044_s27, 1  ;;  %p476_p8 = scmp.lt.s32.totalorder %s4044_s27, 7 }
  0x4d   : > { %p477_p9 = pnand %p2983_p7, %p476_p8 }
  0x4e   : > { %s483_s30 = sand.u32 (!%p477_p9), 1, %s4020_s21   ;;  %s532_s7 = smul.u32 (!%p477_p9), 144, %s4028_s23 }
  0x4f   : > { %480 = sbr.rel (%p477_p9) target bundleno = 813 (0x32d), region = 66  ;;  %p539_p10 = scmp.lt.s32.totalorder (!%p477_p9), %s4032_s24, 1 }
  0x50   : > { %s3689_s8 = smul.u32 (!%p477_p9), 648, %s483_s30  ;;  %p533_p11 = scmp.lt.s32.totalorder (!%p477_p9), %s532_s7, 431 }
  0x51   : > { %p2987_p12 = scmp.ne.s32.totalorder (!%p477_p9), %s4028_s23, 0 }
  0x52   : > { %s4351_s20 = scalar_lea.vmem (!%p477_p9), [#allocation3], %s3689_s8 }
  0x56   : > { %s4921_s7 = smov (!%p533_p11, %s532_s7), 431  ;;  %s4923_s24 = smov (!%p539_p10, %s4032_s24), 1 }
  0x57   : > { %s2984_s9 = sshll.u32 %s4921_s7, 2  ;;  %s3690_s14 = smul.u32 72, %s4923_s24  ;;  %v4046_v26 = vmov (!%p2987_p12), 0.0  }
  0x58   : > { %s4339_s13 = scalar_lea.vmem %s4902_s1, %s2984_s9  ;;  %562 = sbr.rel (%p2987_p12) target bundleno = 97 (0x61), region = 74  ;;  %563 = vst [vmem:[#allocation2] sm:$0xff] (!%p2987_p12), %v4046_v26  ;;  %564 = vst [vmem:[#allocation2 + $0x8] sm:$0xff] (!%p2987_p12), %v4046_v26 }
  0x59   : > { %s4344_s17 = scalar_lea.vmem %s4905_s4, %s3690_s14  ;;  %s4349_s19 = scalar_lea.vmem %s4907_s6, %s3690_s14  ;;  %565 = vst [vmem:[#allocation2 + $0x10] sm:$0xff] (!%p2987_p12), %v4046_v26  ;;  %566 = vst [vmem:[#allocation2 + $0x18] sm:$0xff] (!%p2987_p12), %v4046_v26 }
  0x5a   : > { %567 = vst [vmem:[#allocation2 + $0x20] sm:$0xff] (!%p2987_p12), %v4046_v26  ;;  %568 = vst [vmem:[#allocation2 + $0x28] sm:$0xff] (!%p2987_p12), %v4046_v26 }
  0x5b   : > { %569 = vst [vmem:[#allocation2 + $0x30] sm:$0xff] (!%p2987_p12), %v4046_v26  ;;  %570 = vst [vmem:[#allocation2 + $0x38] sm:$0xff] (!%p2987_p12), %v4046_v26 }
  0x5c   : > { %571 = vst [vmem:[#allocation2 + $0x40] sm:$0xff] (!%p2987_p12), %v4046_v26  ;;  %572 = vst [vmem:[#allocation2 + $0x48] sm:$0xff] (!%p2987_p12), %v4046_v26 }
  0x5d   : > { %573 = vst [vmem:[#allocation2 + $0x50] sm:$0xff] (!%p2987_p12), %v4046_v26  ;;  %574 = vst [vmem:[#allocation2 + $0x58] sm:$0xff] (!%p2987_p12), %v4046_v26 }
  0x5e   : > { %575 = vst [vmem:[#allocation2 + $0x60] sm:$0xff] (!%p2987_p12), %v4046_v26  ;;  %576 = vst [vmem:[#allocation2 + $0x68] sm:$0xff] (!%p2987_p12), %v4046_v26 }
  0x5f   : > { %577 = vst [vmem:[#allocation2 + $0x70] sm:$0xff] %v4046_v26  ;;  %578 = vst [vmem:[#allocation2 + $0x78] sm:$0xff] %v4046_v26 }
  0x60   : > { %579 = vst [vmem:[#allocation2 + $0x80] sm:$0xff] %v4046_v26  ;;  %580 = vst [vmem:[#allocation2 + $0x88] sm:$0xff] %v4046_v26 }
  0x61 PF: > { %v3752_v27 = vld [vmem:[%s4339_s13 + $0x40] sm:$0xff]   ;;  %v3754_v29 = vld [vmem:[%s4339_s13 + $0x48] sm:$0xff]   ;;  %v3756_v31 = vld [vmem:[%s4339_s13 + $0x50] sm:$0xff]   ;;  %vm4048_vm0 = vmmov 0   ;;  %p3141_p13 = scmp.ne.s32.totalorder %s4028_s23, 2 }
  0x62   : > { %v3753_v28 = vld [vmem:[%s4339_s13] sm:$0xff]   ;;  %3663 = vmatprep.subr.bf16.mxu1 %v3752_v27  ;;  %3257 = vmatprep.subr.bf16.mxu0 %v3752_v27  ;;  %v3755_v30 = vld [vmem:[%s4339_s13 + $0x8] sm:$0xff]   ;;  %v3757_v32 = vld [vmem:[%s4339_s13 + $0x10] sm:$0xff]   ;;  %vm4050_vm1 = vmmov (!%p3141_p13), 0   ;;  %vm2407_vm2 = vcmask (!%p3141_p13), 523264  }
  0x63   : > { %3671 = vmatpush3.bf16.msra.mxu1 %v3753_v28  ;;  %3258 = vmatpush3.bf16.msra.mxu0 %v3753_v28  ;;  %v3758_v33 = vld [vmem:[%s4339_s13 + $0x58] sm:$0xff]   ;;  %v3760_v35 = vld [vmem:[%s4339_s13 + $0x60] sm:$0xff]   ;;  %v3762_v37 = vld [vmem:[%s4339_s13 + $0x68] sm:$0xff]  }
  0x64   : > { %3664 = vmatprep.subr.bf16.mxu1 %v3754_v29  ;;  %3259 = vmatprep.subr.bf16.mxu0 %v3754_v29  ;;  %v3759_v34 = vld [vmem:[%s4339_s13 + $0x18] sm:$0xff]   ;;  %v3761_v36 = vld [vmem:[%s4339_s13 + $0x20] sm:$0xff]   ;;  %v3763_v39 = vld [vmem:[%s4339_s13 + $0x28] sm:$0xff]  }
  0x65   : > { %v3770_v38 = vld [vmem:[%s4351_s20 + $0x124] ss:$36 sps:$4 sm:$0xff]   ;;  %v3773_v49 = vld [vmem:[%s4339_s13 + $0xc8] sm:$0xff]  }
  0x66   : > { %v3764_v40 = vld [vmem:[%s4339_s13 + $0x70] sm:$0xff]   ;;  %1743 = vmatprep.mubr.bf16.mxu1 %v3770_v38  ;;  %v3766_v43 = vld [vmem:[%s4339_s13 + $0x78] sm:$0xff]   ;;  %v3771_v45 = vld [vmem:[%s4339_s13 + $0xc0] sm:$0xff]  }
  0x67   : > { %3672 = vmatpush3.bf16.msra.mxu1 %v3755_v30  ;;  %3260 = vmatpush3.bf16.msra.mxu0 %v3755_v30  ;;  %v3765_v41 = vld [vmem:[%s4339_s13 + $0x30] sm:$0xff]   ;;  %v3767_v44 = vld [vmem:[%s4339_s13 + $0x38] sm:$0xff]   ;;  %v3782_v47 = vld [vmem:[%s4339_s13 + $0x140] sm:$0xff]  }
  0x68   : > { %3665 = vmatprep.subr.bf16.mxu1 %v3756_v31  ;;  %3261 = vmatprep.subr.bf16.mxu0 %v3756_v31  ;;  %v3780_v42 = vld [vmem:[%s4351_s20 + $0x4] ss:$36 sps:$4 sm:$0xff]   ;;  %v3775_v51 = vld [vmem:[%s4351_s20 + $0x16c] ss:$36 sps:$4 sm:$0xff]   ;;  %v3786_v60 = vld [vmem:[%s4351_s20 + $0x1b4] ss:$36 sps:$4 sm:$0xff]  }
  0x69   : > { %1711 = vmatprep.mubr.bf16.mxu0 %v3780_v42  ;;  %v3768_v46 = vld [vmem:[%s4351_s20 + $0x120] ss:$36 sps:$4 sm:$0xff]   ;;  %v3772_v48 = vld [vmem:[%s4339_s13 + $0x80] sm:$0xff]   ;;  %v3785_v53 = vld [vmem:[%s4339_s13 + $0x148] sm:$0xff]  }
  0x6a   : > { %v3778_v50 = vld [vmem:[%s4351_s20] ss:$36 sps:$4 sm:$0xff]   ;;  %v3784_v52 = vld [vmem:[%s4339_s13 + $0x100] sm:$0xff]   ;;  %v3774_v54 = vld [vmem:[%s4339_s13 + $0x88] sm:$0xff]  }
  0x6b   : > { %3673 = vmatpush3.bf16.msra.mxu1 %v3757_v32  ;;  %3262 = vmatpush3.bf16.msra.mxu0 %v3757_v32  ;;  %v3792_v55 = vld [vmem:[%s4351_s20 + $0x4c] ss:$36 sps:$4 sm:$0xff]   ;;  %v3781_v56 = vld [vmem:[%s4339_s13 + $0xd0] sm:$0xff]  }
  0x6c   : > { %3666 = vmatprep.subr.bf16.mxu1 %v3758_v33  ;;  %3263 = vmatprep.subr.bf16.mxu0 %v3758_v33  ;;  %v3777_v57 = vld [vmem:[%s4351_s20 + $0x168] ss:$36 sps:$4 sm:$0xff]   ;;  %v3789_v58 = vld [vmem:[%s4339_s13 + $0x108] sm:$0xff]   ;;  %v3783_v59 = vld [vmem:[%s4339_s13 + $0x90] sm:$0xff]   ;;  %v4047_v33 = vmov 0.0  }
  0x6d   : > { %v3795_v61 = vld [vmem:[%s4339_s13 + $0x150] sm:$0xff]   ;;  %v3794_v62 = vld [vmem:[%s4351_s20 + $0x48] ss:$36 sps:$4 sm:$0xff]   ;;  %v3790_v5 = vld [vmem:[%s4351_s20 + $0x1b0] ss:$36 sps:$4 sm:$0xff]  }
  0x6e   : > { %v3788_v63 = vld [vmem:[%s4339_s13 + $0xd8] sm:$0xff]   ;;  %v3796_v0 = vld [vmem:[%s4339_s13 + $0x110] sm:$0xff]   ;;  %v3797_v4 = vld [vmem:[%s4339_s13 + $0xe0] sm:$0xff]  }
  0x6f   : > { %3674 = vmatpush3.bf16.msra.mxu1 %v3759_v34  ;;  %3264 = vmatpush3.bf16.msra.mxu0 %v3759_v34  ;;  %v3791_v1 = vld [vmem:[%s4339_s13 + $0x98] sm:$0xff]   ;;  %v3804_v3 = vld [vmem:[%s4351_s20 + $0x94] ss:$36 sps:$4 sm:$0xff]  }
  0x70   : > { %3667 = vmatprep.subr.bf16.mxu1 %v3760_v35  ;;  %3265 = vmatprep.subr.bf16.mxu0 %v3760_v35  ;;  %v3799_v2 = vld [vmem:[%s4339_s13 + $0x158] sm:$0xff]   ;;  %v3798_v7 = vld [vmem:[%s4339_s13 + $0xa0] sm:$0xff]   ;;  %v3806_v11 = vld [vmem:[%s4339_s13 + $0xe8] sm:$0xff]  }
  0x71   : > { %v3802_v6 = vld [vmem:[%s4339_s13 + $0x118] sm:$0xff]   ;;  %v3807_v9 = vld [vmem:[%s4351_s20 + $0x90] ss:$36 sps:$4 sm:$0xff]   ;;  %v3803_v15 = vld [vmem:[%s4351_s20 + $0x1f8] ss:$36 sps:$4 sm:$0xff]  }
  0x72   : > { %v3800_v8 = vld [vmem:[%s4351_s20 + $0x1fc] ss:$36 sps:$4 sm:$0xff]   ;;  %v3809_v10 = vld [vmem:[%s4339_s13 + $0x160] sm:$0xff]  }
  0x73   : > { %3675 = vmatpush3.bf16.msra.mxu1 %v3761_v36  ;;  %3266 = vmatpush3.bf16.msra.mxu0 %v3761_v36  ;;  %v3810_v12 = vld [vmem:[%s4339_s13 + $0x120] sm:$0xff]   ;;  %v3812_v13 = vld [vmem:[%s4339_s13 + $0x168] sm:$0xff]   ;;  %v3811_v16 = vld [vmem:[%s4339_s13 + $0xf0] sm:$0xff]  }
  0x74   : > { %3668 = vmatprep.subr.bf16.mxu1 %v3762_v37  ;;  %3267 = vmatprep.subr.bf16.mxu0 %v3762_v37  ;;  %v3808_v14 = vld [vmem:[%s4339_s13 + $0xa8] sm:$0xff]   ;;  %v3813_v18 = vld [vmem:[%s4351_s20 + $0x244] ss:$36 sps:$4 sm:$0xff]  }
  0x75   : > { %v3816_v17 = vld [vmem:[%s4339_s13 + $0x128] sm:$0xff]   ;;  %v3815_v19 = vld [vmem:[%s4339_s13 + $0xb0] sm:$0xff]   ;;  %v3822_v23 = vld [vmem:[%s4339_s13 + $0xf8] sm:$0xff]  }
  0x76   : > { %v3818_v20 = vld [vmem:[%s4351_s20 + $0xdc] ss:$36 sps:$4 sm:$0xff]   ;;  %v3828_v28 = vld [vmem:[%s4351_s20 + $0xc] ss:$36 sps:$4 sm:$0xff]   ;;  %v3833_v32 = vld [vmem:[%s4351_s20 + $0x14] ss:$36 sps:$4 sm:$0xff]  }
  0x77   : > { %3676 = vmatpush3.bf16.msra.mxu1 %v3763_v39  ;;  %3268 = vmatpush3.bf16.msra.mxu0 %v3763_v39  ;;  %v3820_v21 = vld [vmem:[%s4351_s20 + $0xd8] ss:$36 sps:$4 sm:$0xff]   ;;  %v3825_v25 = vld [vmem:[%s4339_s13 + $0x178] sm:$0xff]   ;;  %v3830_v30 = vld [vmem:[%s4339_s13 + $0x1c0] sm:$0xff]  }
  0x78   : > { %3669 = vmatprep.subr.bf16.mxu1 %v3764_v40  ;;  %3269 = vmatprep.subr.bf16.mxu0 %v3764_v40  ;;  %v3821_v22 = vld [vmem:[%s4339_s13 + $0x170] sm:$0xff]   ;;  %v3824_v26 = vld [vmem:[%s4339_s13 + $0xb8] sm:$0xff]   ;;  %v3831_v31 = vld [vmem:[%s4351_s20 + $0x10] ss:$36 sps:$4 sm:$0xff]  }
  0x79   : > { %v3823_v24 = vld [vmem:[%s4339_s13 + $0x130] sm:$0xff]   ;;  %v3829_v29 = vld [vmem:[%s4339_s13 + $0x138] sm:$0xff]   ;;  %v3835_v34 = vld [vmem:[%s4339_s13 + $0x200] sm:$0xff]  }
  0x7a   : > { %v3817_v27 = vld [vmem:[%s4351_s20 + $0x240] ss:$36 sps:$4 sm:$0xff]   ;;  %v3826_v36 = vld [vmem:[%s4351_s20 + $0x8] ss:$36 sps:$4 sm:$0xff]   ;;  %v3836_v38 = vld [vmem:[%s4351_s20 + $0x54] ss:$36 sps:$4 sm:$0xff]  }
  0x7b   : > { %3677 = vmatpush3.bf16.msra.mxu1 %v3765_v41  ;;  %3270 = vmatpush3.bf16.msra.mxu0 %v3765_v41  ;;  %v3839_v35 = vld [vmem:[%s4351_s20 + $0x5c] ss:$36 sps:$4 sm:$0xff]   ;;  %v3834_v37 = vld [vmem:[%s4339_s13 + $0x180] sm:$0xff]  }
  0x7c   : > { %3670 = vmatprep.subr.bf16.mxu1 %v3766_v43  ;;  %3271 = vmatprep.subr.bf16.mxu0 %v3766_v43  ;;  %v3841_v39 = vld [vmem:[%s4339_s13 + $0x1c8] sm:$0xff]   ;;  %v3848_v42 = vld [vmem:[%s4351_s20 + $0xa4] ss:$36 sps:$4 sm:$0xff]  }
  0x7d   : > { %v3842_v40 = vld [vmem:[%s4351_s20 + $0x58] ss:$36 sps:$4 sm:$0xff]  }
  0x7e   : > { %v3846_v41 = vld [vmem:[%s4339_s13 + $0x208] sm:$0xff]  }
  0x7f   : > { %3678 = vmatpush3.bf16.msra.mxu1 %v3767_v44  ;;  %3272 = vmatpush3.bf16.msra.mxu0 %v3767_v44  ;;  %v3843_v43 = vld [vmem:[%s4339_s13 + $0x188] sm:$0xff]  }
  0x80   : > { %3327 = vmatprep.subr.bf16.mxu1 %v3771_v45  ;;  %3397 = vmatprep.subr.bf16.mxu0 %v3782_v47  ;;  %v3838_v44 = vld [vmem:[%s4351_s20 + $0x50] ss:$36 sps:$4 sm:$0xff]   ;;  %v3851_v45 = vld [vmem:[%s4339_s13 + $0x1d0] sm:$0xff]  }
  0x81   : > { %v3856_v47 = vld [vmem:[%s4339_s13 + $0x210] sm:$0xff]  }
  0x82   : > { %1744 = vmatmul.mubr.bf16.vlgmr.msra.gmra.mrb[0].mxu1 %v3768_v46  ;;  %1712 = vmatmul.mubr.bf16.vlgmr.msra.gmra.mrb[0].mxu0 %v3778_v50  ;;  %v3844_v46 = vld [vmem:[%s4351_s20 + $0x9c] ss:$36 sps:$4 sm:$0xff]  }
  0x83   : > { %3328 = vmatpush3.bf16.msra.mxu1 %v3772_v48  ;;  %1751 = vmatprep.mubr.bf16.mxu1 %v3775_v51  ;;  %v3850_v48 = vld [vmem:[%s4351_s20 + $0xa0] ss:$36 sps:$4 sm:$0xff]   ;;  %v3857_v51 = vld [vmem:[%s4351_s20 + $0xec] ss:$36 sps:$4 sm:$0xff]  }
  0x84   : > { %3329 = vmatprep.subr.bf16.mxu1 %v3773_v49  ;;  %3398 = vmatpush3.bf16.msra.mxu0 %v3784_v52  ;;  %v3852_v49 = vld [vmem:[%s4339_s13 + $0x190] sm:$0xff]   ;;  %v3860_v50 = vld [vmem:[%s4339_s13 + $0x1d8] sm:$0xff]  }
  0x85   : > { %3399 = vmatprep.subr.bf16.mxu0 %v3785_v53  ;;  %1719 = vmatprep.mubr.bf16.mxu0 %v3792_v55  ;;  %v3861_v52 = vld [vmem:[%s4339_s13 + $0x198] sm:$0xff]   ;;  %v3847_v53 = vld [vmem:[%s4351_s20 + $0x98] ss:$36 sps:$4 sm:$0xff]  }
  0x86   : > { %v3853_v55 = vld [vmem:[%s4351_s20 + $0xe4] ss:$36 sps:$4 sm:$0xff]  }
  0x87   : > { %3330 = vmatpush3.bf16.msra.mxu1 %v3774_v54  ;;  %v3867_v54 = vld [vmem:[%s4339_s13 + $0x218] sm:$0xff]  }
  0x88   : > { %3331 = vmatprep.subr.bf16.mxu1 %v3781_v56  ;;  %3400 = vmatpush3.bf16.msra.mxu0 %v3789_v58  ;;  %v3869_v56 = vld [vmem:[%s4339_s13 + $0x1e0] sm:$0xff]  }
  0x89   : > { %3401 = vmatprep.subr.bf16.mxu0 %v3795_v61  ;;  %v3859_v58 = vld [vmem:[%s4351_s20 + $0xe8] ss:$36 sps:$4 sm:$0xff]   ;;  %v3878_v61 = vld [vmem:[%s4339_s13 + $0x1e8] sm:$0xff]  }
  0x8a   : > { %1752 = vmatmul.mubr.bf16.gmra.mrb[4].mxu1 %v3777_v57  ;;  %1720 = vmatmul.mubr.bf16.gmra.mrb[4].mxu0 %v3794_v62  ;;  %v3870_v57 = vld [vmem:[%s4339_s13 + $0x1a0] sm:$0xff]   ;;  %v3879_v62 = vld [vmem:[%s4339_s13 + $0x1a8] sm:$0xff]  }
  0x8b   : > { %3332 = vmatpush3.bf16.msra.mxu1 %v3783_v59  ;;  %1759 = vmatprep.mubr.bf16.mxu1 %v3786_v60  ;;  %v3865_v59 = vld [vmem:[%s4351_s20 + $0x134] ss:$36 sps:$4 sm:$0xff]  }
  0x8c   : > { %3333 = vmatprep.subr.bf16.mxu1 %v3788_v63  ;;  %3402 = vmatpush3.bf16.msra.mxu0 %v3796_v0  ;;  %v3877_v60 = vld [vmem:[%s4339_s13 + $0x220] sm:$0xff]   ;;  %v3855_v63 = vld [vmem:[%s4351_s20 + $0xe0] ss:$36 sps:$4 sm:$0xff]  }
  0x8d   : > { %3403 = vmatprep.subr.bf16.mxu0 %v3799_v2  ;;  %1727 = vmatprep.mubr.bf16.mxu0 %v3804_v3  ;;  %v3862_v0 = vld [vmem:[%s4351_s20 + $0x12c] ss:$36 sps:$4 sm:$0xff]   ;;  %v3874_v2 = vld [vmem:[%s4351_s20 + $0x17c] ss:$36 sps:$4 sm:$0xff]  }
  0x8e   : > { %v3886_v3 = vld [vmem:[%s4339_s13 + $0x228] sm:$0xff]  }
  0x8f   : > { %3334 = vmatpush3.bf16.msra.mxu1 %v3791_v1  ;;  %v3868_v1 = vld [vmem:[%s4351_s20 + $0x130] ss:$36 sps:$4 sm:$0xff]  }
  0x90   : > { %3335 = vmatprep.subr.bf16.mxu1 %v3797_v4  ;;  %3404 = vmatpush3.bf16.msra.mxu0 %v3802_v6  ;;  %v3887_v4 = vld [vmem:[%s4339_s13 + $0x1f0] sm:$0xff]   ;;  %v3864_v6 = vld [vmem:[%s4351_s20 + $0x128] ss:$36 sps:$4 sm:$0xff]  }
  0x91   : > { %3405 = vmatprep.subr.bf16.mxu0 %v3809_v10  ;;  %v3883_v10 = vld [vmem:[%s4351_s20 + $0x1c4] ss:$36 sps:$4 sm:$0xff]  }
  0x92   : > { %1760 = vmatmul.mubr.bf16.gmra.mrb[8].mxu1 %v3790_v5  ;;  %1728 = vmatmul.mubr.bf16.gmra.mrb[8].mxu0 %v3807_v9  ;;  %v3890_v5 = vld [vmem:[%s4339_s13 + $0x1b0] sm:$0xff]  }
  0x93   : > { %3336 = vmatpush3.bf16.msra.mxu1 %v3798_v7  ;;  %1767 = vmatprep.mubr.bf16.mxu1 %v3800_v8  ;;  %v3871_v7 = vld [vmem:[%s4351_s20 + $0x174] ss:$36 sps:$4 sm:$0xff]  }
  0x94   : > { %3337 = vmatprep.subr.bf16.mxu1 %v3806_v11  ;;  %3406 = vmatpush3.bf16.msra.mxu0 %v3810_v12  ;;  %v3895_v8 = vld [vmem:[%s4339_s13 + $0x230] sm:$0xff]   ;;  %v3898_v11 = vld [vmem:[%s4339_s13 + $0x1f8] sm:$0xff]  }
  0x95   : > { %3407 = vmatprep.subr.bf16.mxu0 %v3812_v13  ;;  %1735 = vmatprep.mubr.bf16.mxu0 %v3818_v20  ;;  %v3876_v9 = vld [vmem:[%s4351_s20 + $0x178] ss:$36 sps:$4 sm:$0xff]   ;;  %v3900_v12 = vld [vmem:[%s4339_s13 + $0x1b8] sm:$0xff]  }
  0x96   : > { %v3904_v13 = vld [vmem:[%s4339_s13 + $0x238] sm:$0xff]  }
  0x97   : > { %3338 = vmatpush3.bf16.msra.mxu1 %v3808_v14  ;;  %v3873_v14 = vld [vmem:[%s4351_s20 + $0x170] ss:$36 sps:$4 sm:$0xff]   ;;  %v3894_v20 = vld [vmem:[%s4351_s20 + $0x208] ss:$36 sps:$4 sm:$0xff]  }
  0x98   : > { %3339 = vmatprep.subr.bf16.mxu1 %v3811_v16  ;;  %3408 = vmatpush3.bf16.msra.mxu0 %v3816_v17  ;;  %v3885_v16 = vld [vmem:[%s4351_s20 + $0x1c0] ss:$36 sps:$4 sm:$0xff]   ;;  %v3892_v17 = vld [vmem:[%s4351_s20 + $0x20c] ss:$36 sps:$4 sm:$0xff]  }
  0x99   : > { %3409 = vmatprep.subr.bf16.mxu0 %v3821_v22  ;;  %v3891_v22 = vld [vmem:[%s4351_s20 + $0x200] ss:$36 sps:$4 sm:$0xff]  }
  0x9a   : > { %1768 = vmatmul.mubr.bf16.gmra.mrb[12].mxu1 %v3803_v15  ;;  %1736 = vmatmul.mubr.bf16.gmra.mrb[12].mxu0 %v3820_v21  ;;  %v3880_v15 = vld [vmem:[%s4351_s20 + $0x1bc] ss:$36 sps:$4 sm:$0xff]   ;;  %v3901_v21 = vld [vmem:[%s4351_s20 + $0x254] ss:$36 sps:$4 sm:$0xff]  }
  0x9b   : > { %1775 = vmatprep.mubr.bf16.mxu1 %v3813_v18  ;;  %3340 = vmatpush3.bf16.msra.mxu1 %v3815_v19  ;;  %v3882_v18 = vld [vmem:[%s4351_s20 + $0x1b8] ss:$36 sps:$4 sm:$0xff]   ;;  %v3888_v19 = vld [vmem:[%s4351_s20 + $0x204] ss:$36 sps:$4 sm:$0xff]  }
  0x9c   : > { %3341 = vmatprep.subr.bf16.mxu1 %v3822_v23  ;;  %3410 = vmatpush3.bf16.msra.mxu0 %v3823_v24  ;;  %v3896_v23 = vld [vmem:[%s4351_s20 + $0x24c] ss:$36 sps:$4 sm:$0xff]  }
  0x9d   : > { %3411 = vmatprep.subr.bf16.mxu0 %v3825_v25  ;;  %1921 = vmatprep.mubr.bf16.mxu0 %v3833_v32  ;;  %v3903_v24 = vld [vmem:[%s4351_s20 + $0x250] ss:$36 sps:$4 sm:$0xff]   ;;  %v3899_v25 = vld [vmem:[%s4351_s20 + $0x248] ss:$36 sps:$4 sm:$0xff]  }
  0x9e   : > { %v3913_v32 = vld [vmem:[%s4351_s20 + $0xac] ss:$36 sps:$4 sm:$0xff]  }
  0x9f   : > { %3342 = vmatpush3.bf16.msra.mxu1 %v3824_v26  ;;  %v3907_v26 = vld [vmem:[%s4351_s20 + $0x1c] ss:$36 sps:$4 sm:$0xff]  }
  0xa0   : > { %3412 = vmatpush3.bf16.msra.mxu0 %v3829_v29  ;;  %3467 = vmatprep.subr.bf16.mxu1 %v3830_v30  ;;  %v3909_v29 = vld [vmem:[%s4351_s20 + $0x64] ss:$36 sps:$4 sm:$0xff]  }
  0xa1   : > { %3567 = vmatprep.subr.bf16.mxu0 %v4047_v33  ;;  %v3912_v30 = vld [vmem:[%s4351_s20 + $0x68] ss:$36 sps:$4 sm:$0xff]  }
  0xa2   : > { %1776 = vmatmul.mubr.bf16.gmra.mrb[16].mxu1 %v3817_v27  ;;  %v3908_v27 = vld [vmem:[%s4351_s20 + $0x20] ss:$36 sps:$4 sm:$0xff]  }
  0xa3   : > { %1816 = vmatprep.mubr.bf16.mxu1 %v3828_v28  ;;  %1922 = vmatmul.mubr.bf16.vlgmr.msra.gmra.mrb[16].mxu0 %v3831_v31  ;;  %v3905_v28 = vld [vmem:[%s4351_s20 + $0x18] ss:$36 sps:$4 sm:$0xff]   ;;  %v3911_v31 = vld [vmem:[%s4351_s20 + $0x60] ss:$36 sps:$4 sm:$0xff]  }
  0xa4   : > { %3568 = vmatpush3.bf16.msra.mxu0 %v3835_v34  ;;  %1929 = vmatprep.mubr.bf16.mxu0 %v3839_v35  ;;  %v3916_v34 = vld [vmem:[%s4351_s20 + $0xb0] ss:$36 sps:$4 sm:$0xff]   ;;  %v3915_v35 = vld [vmem:[%s4351_s20 + $0xa8] ss:$36 sps:$4 sm:$0xff]  }
  0xa5   : > { %3569 = vmatprep.subr.bf16.mxu0 %v4047_v33 }
  0xa8   : > { %3570 = vmatpush3.bf16.msra.mxu0 %v3846_v41  ;;  %v3923_v41 = vld [vmem:[%s4351_s20 + $0x138] ss:$36 sps:$4 sm:$0xff]  }
  0xa9   : > { %3571 = vmatprep.subr.bf16.mxu0 %v4047_v33 }
  0xaa   : > { %1817 = vmatmul.mubr.bf16.vlgmr.msra.gmra.mrb[20].mxu1 %v3826_v36  ;;  %v3917_v36 = vld [vmem:[%s4351_s20 + $0xf4] ss:$36 sps:$4 sm:$0xff]  }
  0xab   : > { %3468 = vmatpush3.bf16.msra.mxu1 %v3834_v37  ;;  %1824 = vmatprep.mubr.bf16.mxu1 %v3836_v38  ;;  %v3920_v37 = vld [vmem:[%s4351_s20 + $0xf8] ss:$36 sps:$4 sm:$0xff]   ;;  %v3919_v38 = vld [vmem:[%s4351_s20 + $0xf0] ss:$36 sps:$4 sm:$0xff]  }
  0xac   : > { %3469 = vmatprep.subr.bf16.mxu1 %v3841_v39  ;;  %1930 = vmatmul.mubr.bf16.gmra.mrb[20].mxu0 %v3842_v40  ;;  %v3921_v39 = vld [vmem:[%s4351_s20 + $0x13c] ss:$36 sps:$4 sm:$0xff]  }
  0xad   : > { %1937 = vmatprep.mubr.bf16.mxu0 %v3848_v42  ;;  %3572 = vmatpush3.bf16.msra.mxu0 %v3856_v47  ;;  %v3924_v40 = vld [vmem:[%s4351_s20 + $0x140] ss:$36 sps:$4 sm:$0xff]   ;;  %v3931_v47 = vld [vmem:[%s4351_s20 + $0x1c8] ss:$36 sps:$4 sm:$0xff]  }
  0xae   : > { %3573 = vmatprep.subr.bf16.mxu0 %v4047_v33  ;;  %v3925_v42 = vld [vmem:[%s4351_s20 + $0x184] ss:$36 sps:$4 sm:$0xff]  }
  0xaf   : > { %3470 = vmatpush3.bf16.msra.mxu1 %v3843_v43  ;;  %v3928_v43 = vld [vmem:[%s4351_s20 + $0x188] ss:$36 sps:$4 sm:$0xff]  }
  0xb0   : > { %3471 = vmatprep.subr.bf16.mxu1 %v3851_v45  ;;  %v3929_v45 = vld [vmem:[%s4351_s20 + $0x1cc] ss:$36 sps:$4 sm:$0xff]  }
  0xb1   : > { %3574 = vmatpush3.bf16.msra.mxu0 %v3867_v54 }
  0xb2   : > { %1825 = vmatmul.mubr.bf16.gmra.mrb[24].mxu1 %v3838_v44  ;;  %3575 = vmatprep.subr.bf16.mxu0 %v4047_v33  ;;  %v3927_v44 = vld [vmem:[%s4351_s20 + $0x180] ss:$36 sps:$4 sm:$0xff]  }
  0xb3   : > { %1832 = vmatprep.mubr.bf16.mxu1 %v3844_v46  ;;  %3472 = vmatpush3.bf16.msra.mxu1 %v3852_v49  ;;  %v3932_v46 = vld [vmem:[%s4351_s20 + $0x1d0] ss:$36 sps:$4 sm:$0xff]   ;;  %v3936_v49 = vld [vmem:[%s4351_s20 + $0x218] ss:$36 sps:$4 sm:$0xff]  }
  0xb4   : > { %1938 = vmatmul.mubr.bf16.gmra.mrb[24].mxu0 %v3850_v48  ;;  %3473 = vmatprep.subr.bf16.mxu1 %v3860_v50  ;;  %v3933_v48 = vld [vmem:[%s4351_s20 + $0x214] ss:$36 sps:$4 sm:$0xff]  }
  0xb5   : > { %1945 = vmatprep.mubr.bf16.mxu0 %v3857_v51  ;;  %3576 = vmatpush3.bf16.msra.mxu0 %v3877_v60  ;;  %v3935_v50 = vld [vmem:[%s4351_s20 + $0x210] ss:$36 sps:$4 sm:$0xff]   ;;  %v3937_v51 = vld [vmem:[%s4351_s20 + $0x25c] ss:$36 sps:$4 sm:$0xff]  }
  0xb6   : > { %3577 = vmatprep.subr.bf16.mxu0 %v4047_v33 }
  0xb7   : > { %3474 = vmatpush3.bf16.msra.mxu1 %v3861_v52  ;;  %v3940_v52 = vld [vmem:[%s4351_s20 + $0x260] ss:$36 sps:$4 sm:$0xff]  }
  0xb8   : > { %3475 = vmatprep.subr.bf16.mxu1 %v3869_v56 }
  0xb9   : > { %3578 = vmatpush3.bf16.msra.mxu0 %v3886_v3 }
  0xba   : > { %1833 = vmatmul.mubr.bf16.gmra.mrb[28].mxu1 %v3847_v53  ;;  %3579 = vmatprep.subr.bf16.mxu0 %v4047_v33  ;;  %v3939_v53 = vld [vmem:[%s4351_s20 + $0x258] ss:$36 sps:$4 sm:$0xff]  }
  0xbb   : > { %1840 = vmatprep.mubr.bf16.mxu1 %v3853_v55  ;;  %3476 = vmatpush3.bf16.msra.mxu1 %v3870_v57 }
  0xbc   : > { %1946 = vmatmul.mubr.bf16.gmra.mrb[28].mxu0 %v3859_v58  ;;  %3477 = vmatprep.subr.bf16.mxu1 %v3878_v61 }
  0xbd   : > { %1953 = vmatprep.mubr.bf16.mxu0 %v3865_v59  ;;  %3580 = vmatpush3.bf16.msra.mxu0 %v3895_v8 }
  0xbe   : > { %3581 = vmatprep.subr.bf16.mxu0 %v4047_v33 }
  0xbf   : > { %3478 = vmatpush3.bf16.msra.mxu1 %v3879_v62 }
  0xc0   : > { %3479 = vmatprep.subr.bf16.mxu1 %v3887_v4 }
  0xc1   : > { %3582 = vmatpush3.bf16.msra.mxu0 %v3904_v13 }
  0xc2   : > { %1841 = vmatmul.mubr.bf16.gmra.mrb[32].mxu1 %v3855_v63 }
  0xc3   : > { %1848 = vmatprep.mubr.bf16.mxu1 %v3862_v0  ;;  %3480 = vmatpush3.bf16.msra.mxu1 %v3890_v5 }
  0xc4   : > { %1954 = vmatmul.mubr.bf16.gmra.mrb[32].mxu0 %v3868_v1  ;;  %3481 = vmatprep.subr.bf16.mxu1 %v3898_v11 }
  0xc5   : > { %1961 = vmatprep.mubr.bf16.mxu0 %v3874_v2 }
  0xc7   : > { %3482 = vmatpush3.bf16.msra.mxu1 %v3900_v12 }
  0xca   : > { %1849 = vmatmul.mubr.bf16.gmra.mrb[36].mxu1 %v3864_v6 }
  0xcb   : > { %1856 = vmatprep.mubr.bf16.mxu1 %v3871_v7 }
  0xcc   : > { %1962 = vmatmul.mubr.bf16.gmra.mrb[36].mxu0 %v3876_v9 }
  0xcd   : > { %1969 = vmatprep.mubr.bf16.mxu0 %v3883_v10 }
  0xd2   : > { %1857 = vmatmul.mubr.bf16.gmra.mrb[40].mxu1 %v3873_v14 }
  0xd3   : > { %1864 = vmatprep.mubr.bf16.mxu1 %v3880_v15 }
  0xd4   : > { %1970 = vmatmul.mubr.bf16.gmra.mrb[40].mxu0 %v3885_v16 }
  0xd5   : > { %1977 = vmatprep.mubr.bf16.mxu0 %v3892_v17 }
  0xda   : > { %1865 = vmatmul.mubr.bf16.gmra.mrb[44].mxu1 %v3882_v18 }
  0xdb   : > { %1872 = vmatprep.mubr.bf16.mxu1 %v3888_v19 }
  0xdc   : > { %1978 = vmatmul.mubr.bf16.gmra.mrb[44].mxu0 %v3894_v20 }
  0xdd   : > { %1985 = vmatprep.mubr.bf16.mxu0 %v3901_v21 }
  0xe2   : > { %1873 = vmatmul.mubr.bf16.gmra.mrb[48].mxu1 %v3891_v22 }
  0xe3   : > { %1880 = vmatprep.mubr.bf16.mxu1 %v3896_v23 }
  0xe4   : > { %1986 = vmatmul.mubr.bf16.gmra.mrb[48].mxu0 %v3903_v24 }
  0xe5   : > { %3583 = vmatprep.mubr.msk.bf16.mxu0 %vm4048_vm0, %v4047_v33 }
  0xea   : > { %1881 = vmatmul.mubr.bf16.gmra.mrb[52].mxu1 %v3899_v25 }
  0xeb   : > { %2026 = vmatprep.mubr.bf16.mxu1 %v3907_v26 }
  0xec   : > { %3584 = vmatmul.mubr.bf16.vlgmr.msra.gmra.mrb[52].mxu0 %v3908_v27 }
  0xed   : > { %3587 = vmatprep.mubr.msk.bf16.mxu0 %vm4048_vm0, %v4047_v33 }
  0xf2   : > { %2027 = vmatmul.mubr.bf16.vlgmr.msra.gmra.mrb[56].mxu1 %v3905_v28 }
  0xf3   : > { %2034 = vmatprep.mubr.bf16.mxu1 %v3909_v29 }
  0xf4   : > { %3588 = vmatmul.mubr.bf16.gmra.mrb[56].mxu0 %v3912_v30 }
  0xf5   : > { %3591 = vmatprep.mubr.msk.bf16.mxu0 %vm4048_vm0, %v4047_v33 }
  0xfa   : > { %2035 = vmatmul.mubr.bf16.gmra.mrb[60].mxu1 %v3911_v31 }
  0xfb   : > { %2042 = vmatprep.mubr.bf16.mxu1 %v3913_v32 }
  0xfc   : > { %3592 = vmatmul.mubr.bf16.gmra.mrb[60].mxu0 %v3916_v34 }
  0xfd   : > { %3595 = vmatprep.mubr.msk.bf16.mxu0 %vm4048_vm0, %v4047_v33 }
 0x102   : > { %2043 = vmatmul.mubr.bf16.gmra.mrb[64].mxu1 %v3915_v35 }
 0x103   : > { %2050 = vmatprep.mubr.bf16.mxu1 %v3917_v36 }
 0x104   : > { %3596 = vmatmul.mubr.bf16.gmra.mrb[64].mxu0 %v3920_v37 }
 0x105   : > { %3599 = vmatprep.mubr.msk.bf16.mxu0 %vm4048_vm0, %v4047_v33 }
 0x10a   : > { %2051 = vmatmul.mubr.bf16.gmra.mrb[68].mxu1 %v3919_v38 }
 0x10b   : > { %2058 = vmatprep.mubr.bf16.mxu1 %v3921_v39 }
 0x10c   : > { %3600 = vmatmul.mubr.bf16.gmra.mrb[68].mxu0 %v3924_v40 }
 0x10d   : > { %3603 = vmatprep.mubr.msk.bf16.mxu0 %vm4048_vm0, %v4047_v33 }
 0x112   : > { %2059 = vmatmul.mubr.bf16.gmra.mrb[72].mxu1 %v3923_v41 }
 0x113   : > { %2066 = vmatprep.mubr.bf16.mxu1 %v3925_v42 }
 0x114   : > { %3604 = vmatmul.mubr.bf16.gmra.mrb[72].mxu0 %v3928_v43 }
 0x115   : > { %3607 = vmatprep.mubr.msk.bf16.mxu0 %vm4048_vm0, %v4047_v33 }
 0x11a   : > { %2067 = vmatmul.mubr.bf16.gmra.mrb[76].mxu1 %v3927_v44 }
 0x11b   : > { %2074 = vmatprep.mubr.bf16.mxu1 %v3929_v45 }
 0x11c   : > { %3608 = vmatmul.mubr.bf16.gmra.mrb[76].mxu0 %v3932_v46 }
 0x11d   : > { %3611 = vmatprep.mubr.msk.bf16.mxu0 %vm4048_vm0, %v4047_v33 }
 0x122   : > { %2075 = vmatmul.mubr.bf16.gmra.mrb[80].mxu1 %v3931_v47 }
 0x123   : > { %2082 = vmatprep.mubr.bf16.mxu1 %v3933_v48 }
 0x124   : > { %3612 = vmatmul.mubr.bf16.gmra.mrb[80].mxu0 %v3936_v49 }
 0x125   : > { %3615 = vmatprep.mubr.msk.bf16.mxu0 %vm4048_vm0, %v4047_v33 }
 0x12a   : > { %2083 = vmatmul.mubr.bf16.gmra.mrb[84].mxu1 %v3935_v50 }
 0x12b   : > { %2090 = vmatprep.mubr.bf16.mxu1 %v3937_v51 }
 0x12c   : > { %3616 = vmatmul.mubr.bf16.gmra.mrb[84].mxu0 %v3940_v52 }
 0x132   : > { %2091 = vmatmul.mubr.bf16.gmra.mrb[88].mxu1 %v3939_v53 }
 0x155   : > { %v3297_v54 = vpop.f32.mrb[0].mxu1  ;;  %v3273_v55 = vpop.f32.mrb[0].mxu0 }
 0x156   : > { %v3298_v56 = vpop.f32.mrb[1].mxu1  ;;  %v3274_v57 = vpop.f32.mrb[1].mxu0 }
 0x157   : > { %v4533_v58 = vadd.f32 %v3298_v56, %v3297_v54  ;;  %v3300_v59 = vpop.f32.mrb[2].mxu1  ;;  %v3275_v60 = vadd.f32 %v3274_v57, %v3273_v55  ;;  %v3276_v61 = vpop.f32.mrb[2].mxu0 }
 0x158   : > { %v3301_v62 = vpop.f32.mrb[3].mxu1  ;;  %v3277_v63 = vpop.f32.mrb[3].mxu0 }
 0x159   : > { %v4535_v33 = vadd.f32 %v3301_v62, %v3300_v59  ;;  %v3278_v0 = vadd.f32 %v3277_v63, %v3276_v61 }
 0x15d   : > { %v3303_v1 = vpop.f32.mrb[4].mxu1  ;;  %v3279_v2 = vpop.f32.mrb[4].mxu0 }
 0x15e   : > { %v3304_v3 = vpop.f32.mrb[5].mxu1  ;;  %v3280_v4 = vpop.f32.mrb[5].mxu0 }
 0x15f   : > { %v4537_v5 = vadd.f32 %v3304_v3, %v3303_v1  ;;  %v3306_v6 = vpop.f32.mrb[6].mxu1  ;;  %v4539_v7 = vadd.f32 %v3280_v4, %v3279_v2  ;;  %v3282_v8 = vpop.f32.mrb[6].mxu0 }
 0x160   : > { %v3307_v9 = vpop.f32.mrb[7].mxu1  ;;  %v3283_v10 = vpop.f32.mrb[7].mxu0 }
 0x161   : > { %v4541_v11 = vadd.f32 %v3307_v9, %v3306_v6  ;;  %v4543_v12 = vadd.f32 %v3283_v10, %v3282_v8 }
 0x165   : > { %v3309_v13 = vpop.f32.mrb[8].mxu1  ;;  %v3285_v14 = vpop.f32.mrb[8].mxu0 }
 0x166   : > { %v3310_v15 = vpop.f32.mrb[9].mxu1  ;;  %v3286_v16 = vpop.f32.mrb[9].mxu0 }
 0x167   : > { %v4545_v17 = vadd.f32 %v3310_v15, %v3309_v13  ;;  %v3312_v18 = vpop.f32.mrb[10].mxu1  ;;  %v4547_v19 = vadd.f32 %v3286_v16, %v3285_v14  ;;  %v3288_v20 = vpop.f32.mrb[10].mxu0 }
 0x168   : > { %v3313_v21 = vpop.f32.mrb[11].mxu1  ;;  %v3289_v22 = vpop.f32.mrb[11].mxu0 }
 0x169   : > { %v4549_v23 = vadd.f32 %v3313_v21, %v3312_v18  ;;  %v4551_v24 = vadd.f32 %v3289_v22, %v3288_v20 }
 0x16d   : > { %v3315_v25 = vpop.f32.mrb[12].mxu1  ;;  %v3291_v26 = vpop.f32.mrb[12].mxu0 }
 0x16e   : > { %v3316_v27 = vpop.f32.mrb[13].mxu1  ;;  %v3292_v28 = vpop.f32.mrb[13].mxu0 }
 0x16f   : > { %v4553_v29 = vadd.f32 %v3316_v27, %v3315_v25  ;;  %v3318_v30 = vpop.f32.mrb[14].mxu1  ;;  %v4555_v31 = vadd.f32 %v3292_v28, %v3291_v26  ;;  %v3294_v32 = vpop.f32.mrb[14].mxu0 }
 0x170   : > { %v3319_v34 = vpop.f32.mrb[15].mxu1  ;;  %v3295_v35 = vpop.f32.mrb[15].mxu0 }
 0x171   : > { %v4557_v36 = vadd.f32 %v3319_v34, %v3318_v30  ;;  %v4559_v37 = vadd.f32 %v3295_v35, %v3294_v32 }
 0x175   : > { %v3321_v38 = vpop.f32.mrb[16].mxu1 }
 0x176   : > { %v3322_v39 = vpop.f32.mrb[17].mxu1  ;;  %v3413_v40 = vpop.f32.mrb[16].mxu0 }
 0x177   : > { %v4561_v41 = vadd.f32 %v3322_v39, %v3321_v38  ;;  %v3324_v42 = vpop.f32.mrb[18].mxu1  ;;  %v3414_v43 = vpop.f32.mrb[17].mxu0 }
 0x178   : > { %v3325_v44 = vpop.f32.mrb[19].mxu1  ;;  %v3415_v45 = vadd.f32 %v3414_v43, %v3413_v40  ;;  %v3416_v46 = vpop.f32.mrb[18].mxu0 }
 0x179   : > { %v4563_v47 = vadd.f32 %v3325_v44, %v3324_v42  ;;  %v3417_v48 = vpop.f32.mrb[19].mxu0 }
 0x17a   : > { %v3418_v49 = vadd.f32 %v3417_v48, %v3416_v46 }
 0x17d   : > { %v3343_v50 = vpop.f32.mrb[20].mxu1 }
 0x17e   : > { %v3344_v51 = vpop.f32.mrb[21].mxu1 }
 0x17f   : > { %v3345_v52 = vadd.f32 %v3344_v51, %v3343_v50  ;;  %v3346_v53 = vpop.f32.mrb[22].mxu1  ;;  %v3419_v54 = vpop.f32.mrb[20].mxu0 }
 0x180   : > { %v3347_v55 = vpop.f32.mrb[23].mxu1  ;;  %v3420_v56 = vpop.f32.mrb[21].mxu0 }
 0x181   : > { %v1819_v57 = vadd.f32 %v3345_v52, %v3275_v60  ;;  %v3348_v59 = vadd.f32 %v3347_v55, %v3346_v53  ;;  %v3421_v61 = vadd.f32 %v3420_v56, %v3419_v54  ;;  %v3422_v62 = vpop.f32.mrb[22].mxu0 }
 0x182   : > { %v3423_v63 = vpop.f32.mrb[23].mxu0 }
 0x183   : > { %v1822_v1 = vadd.f32 %v3348_v59, %v3278_v0  ;;  %v4565_v2 = vadd.f32 %v3415_v45, %v1819_v57  ;;  %v3424_v3 = vadd.f32 %v3423_v63, %v3422_v62 }
 0x185   : > { %v4567_v4 = vadd.f32 %v3418_v49, %v1822_v1  ;;  %v3349_v6 = vpop.f32.mrb[24].mxu1 }
 0x186   : > { %v3350_v8 = vpop.f32.mrb[25].mxu1 }
 0x187   : > { %v3351_v9 = vadd.f32 %v3350_v8, %v3349_v6  ;;  %v3352_v10 = vpop.f32.mrb[26].mxu1  ;;  %v3425_v13 = vpop.f32.mrb[24].mxu0 }
 0x188   : > { %v3353_v14 = vpop.f32.mrb[27].mxu1  ;;  %v3426_v15 = vpop.f32.mrb[25].mxu0 }
 0x189   : > { %v1827_v16 = vadd.f32 %v3351_v9, %v4539_v7  ;;  %v3354_v60 = vadd.f32 %v3353_v14, %v3352_v10  ;;  %v3427_v18 = vadd.f32 %v3426_v15, %v3425_v13  ;;  %v3428_v20 = vpop.f32.mrb[26].mxu0 }
 0x18a   : > { %v3429_v21 = vpop.f32.mrb[27].mxu0 }
 0x18b   : > { %v1830_v0 = vadd.f32 %v3354_v60, %v4543_v12  ;;  %v4571_v22 = vadd.f32 %v3421_v61, %v1827_v16  ;;  %v3430_v25 = vadd.f32 %v3429_v21, %v3428_v20 }
 0x18d   : > { %v4573_v26 = vadd.f32 %v3424_v3, %v1830_v0  ;;  %v3355_v27 = vpop.f32.mrb[28].mxu1 }
 0x18e   : > { %v3356_v28 = vpop.f32.mrb[29].mxu1 }
 0x18f   : > { %v3357_v30 = vadd.f32 %v3356_v28, %v3355_v27  ;;  %v3358_v32 = vpop.f32.mrb[30].mxu1  ;;  %v3431_v34 = vpop.f32.mrb[28].mxu0 }
 0x190   : > { %v3359_v35 = vpop.f32.mrb[31].mxu1  ;;  %v3432_v38 = vpop.f32.mrb[29].mxu0 }
 0x191   : > { %v1835_v7 = vadd.f32 %v3357_v30, %v4547_v19  ;;  %v3360_v39 = vadd.f32 %v3359_v35, %v3358_v32  ;;  %v3433_v40 = vadd.f32 %v3432_v38, %v3431_v34  ;;  %v3434_v42 = vpop.f32.mrb[30].mxu0 }
 0x192   : > { %v3435_v43 = vpop.f32.mrb[31].mxu0 }
 0x193   : > { %v1838_v12 = vadd.f32 %v3360_v39, %v4551_v24  ;;  %v4577_v44 = vadd.f32 %v3427_v18, %v1835_v7  ;;  %v3436_v45 = vadd.f32 %v3435_v43, %v3434_v42 }
 0x195   : > { %v4579_v46 = vadd.f32 %v3430_v25, %v1838_v12  ;;  %v3361_v48 = vpop.f32.mrb[32].mxu1 }
 0x196   : > { %v3362_v49 = vpop.f32.mrb[33].mxu1 }
 0x197   : > { %v3363_v50 = vadd.f32 %v3362_v49, %v3361_v48  ;;  %v3364_v51 = vpop.f32.mrb[34].mxu1  ;;  %v3437_v52 = vpop.f32.mrb[32].mxu0 }
 0x198   : > { %v3365_v53 = vpop.f32.mrb[35].mxu1  ;;  %v3438_v54 = vpop.f32.mrb[33].mxu0 }
 0x199   : > { %v1843_v19 = vadd.f32 %v3363_v50, %v4555_v31  ;;  %v3366_v55 = vadd.f32 %v3365_v53, %v3364_v51  ;;  %v3439_v56 = vadd.f32 %v3438_v54, %v3437_v52  ;;  %v3440_v57 = vpop.f32.mrb[34].mxu0 }
 0x19a   : > { %v3441_v59 = vpop.f32.mrb[35].mxu0 }
 0x19b   : > { %v1846_v24 = vadd.f32 %v3366_v55, %v4559_v37  ;;  %v4583_v61 = vadd.f32 %v3433_v40, %v1843_v19  ;;  %v3442_v62 = vadd.f32 %v3441_v59, %v3440_v57 }
 0x19d   : > { %v4585_v63 = vadd.f32 %v3436_v45, %v1846_v24  ;;  %v3367_v1 = vpop.f32.mrb[36].mxu1 }
 0x19e   : > { %v3368_v3 = vpop.f32.mrb[37].mxu1 }
 0x19f   : > { %v3369_v6 = vadd.f32 %v3368_v3, %v3367_v1  ;;  %v3370_v8 = vpop.f32.mrb[38].mxu1  ;;  %v3443_v9 = vpop.f32.mrb[36].mxu0 }
 0x1a0   : > { %v3371_v10 = vpop.f32.mrb[39].mxu1  ;;  %v3444_v13 = vpop.f32.mrb[37].mxu0 }
 0x1a1   : > { %v1851_v31 = vadd.f32 %v3369_v6, %v4533_v58  ;;  %v3372_v14 = vadd.f32 %v3371_v10, %v3370_v8  ;;  %v3445_v15 = vadd.f32 %v3444_v13, %v3443_v9  ;;  %v3446_v16 = vpop.f32.mrb[38].mxu0 }
 0x1a2   : > { %v3447_v60 = vpop.f32.mrb[39].mxu0 }
 0x1a3   : > { %v1854_v37 = vadd.f32 %v3372_v14, %v4535_v33  ;;  %v4589_v18 = vadd.f32 %v3439_v56, %v1851_v31  ;;  %v3448_v20 = vadd.f32 %v3447_v60, %v3446_v16 }
 0x1a5   : > { %v4591_v21 = vadd.f32 %v3442_v62, %v1854_v37  ;;  %v3373_v0 = vpop.f32.mrb[40].mxu1 }
 0x1a6   : > { %v3374_v25 = vpop.f32.mrb[41].mxu1 }
 0x1a7   : > { %v3375_v27 = vadd.f32 %v3374_v25, %v3373_v0  ;;  %v3376_v28 = vpop.f32.mrb[42].mxu1  ;;  %v3449_v30 = vpop.f32.mrb[40].mxu0 }
 0x1a8   : > { %v3377_v32 = vpop.f32.mrb[43].mxu1  ;;  %v3450_v34 = vpop.f32.mrb[41].mxu0 }
 0x1a9   : > { %v1859_v58 = vadd.f32 %v3375_v27, %v4537_v5  ;;  %v3378_v35 = vadd.f32 %v3377_v32, %v3376_v28  ;;  %v3451_v38 = vadd.f32 %v3450_v34, %v3449_v30  ;;  %v3452_v7 = vpop.f32.mrb[42].mxu0 }
 0x1aa   : > { %v3453_v39 = vpop.f32.mrb[43].mxu0 }
 0x1ab   : > { %v1862_v33 = vadd.f32 %v3378_v35, %v4541_v11  ;;  %v4595_v40 = vadd.f32 %v3445_v15, %v1859_v58  ;;  %v3454_v42 = vadd.f32 %v3453_v39, %v3452_v7 }
 0x1ad   : > { %v4597_v43 = vadd.f32 %v3448_v20, %v1862_v33  ;;  %v3379_v12 = vpop.f32.mrb[44].mxu1 }
 0x1ae   : > { %v3380_v45 = vpop.f32.mrb[45].mxu1 }
 0x1af   : > { %v3381_v48 = vadd.f32 %v3380_v45, %v3379_v12  ;;  %v3382_v49 = vpop.f32.mrb[46].mxu1  ;;  %v3455_v50 = vpop.f32.mrb[44].mxu0 }
 0x1b0   : > { %v3383_v51 = vpop.f32.mrb[47].mxu1  ;;  %v3456_v52 = vpop.f32.mrb[45].mxu0 }
 0x1b1   : > { %v1867_v5 = vadd.f32 %v3381_v48, %v4545_v17  ;;  %v3384_v53 = vadd.f32 %v3383_v51, %v3382_v49  ;;  %v3457_v54 = vadd.f32 %v3456_v52, %v3455_v50  ;;  %v3458_v19 = vpop.f32.mrb[46].mxu0  ;;  %v581_v51 = vld [vmem:[#allocation2] sm:$0xff] }
 0x1b2   : > { %v3459_v55 = vpop.f32.mrb[47].mxu0 }
 0x1b3   : > { %v1870_v11 = vadd.f32 %v3384_v53, %v4549_v23  ;;  %v4601_v56 = vadd.f32 %v3451_v38, %v1867_v5  ;;  %v3460_v57 = vadd.f32 %v3459_v55, %v3458_v19  ;;  %v582_v53 = vld [vmem:[#allocation2 + $0x8] sm:$0xff] }
 0x1b5   : > { %v4603_v59 = vadd.f32 %v3454_v42, %v1870_v11  ;;  %v3385_v24 = vpop.f32.mrb[48].mxu1 }
 0x1b6   : > { %v3386_v62 = vpop.f32.mrb[49].mxu1 }
 0x1b7   : > { %v3387_v1 = vadd.f32 %v3386_v62, %v3385_v24  ;;  %v3388_v3 = vpop.f32.mrb[50].mxu1  ;;  %v3461_v6 = vpop.f32.mrb[48].mxu0 }
 0x1b8   : > { %v3389_v8 = vpop.f32.mrb[51].mxu1  ;;  %v3462_v9 = vpop.f32.mrb[49].mxu0 }
 0x1b9   : > { %v1875_v17 = vadd.f32 %v3387_v1, %v4553_v29  ;;  %v3390_v10 = vadd.f32 %v3389_v8, %v3388_v3  ;;  %v3463_v13 = vadd.f32 %v3462_v9, %v3461_v6  ;;  %v3464_v31 = vpop.f32.mrb[50].mxu0 }
 0x1ba   : > { %v3465_v14 = vpop.f32.mrb[51].mxu0 }
 0x1bb   : > { %v1878_v23 = vadd.f32 %v3390_v10, %v4557_v36  ;;  %v4607_v15 = vadd.f32 %v3457_v54, %v1875_v17  ;;  %v3466_v16 = vadd.f32 %v3465_v14, %v3464_v31  ;;  %v583_v17 = vld [vmem:[#allocation2 + $0x10] sm:$0xff]  ;;  %v584_v31 = vld [vmem:[#allocation2 + $0x18] sm:$0xff] }
 0x1bd   : > { %v4609_v60 = vadd.f32 %v3460_v57, %v1878_v23  ;;  %v3391_v37 = vpop.f32.mrb[52].mxu1 }
 0x1be   : > { %v3392_v20 = vpop.f32.mrb[53].mxu1 }
 0x1bf   : > { %v3393_v0 = vadd.f32 %v3392_v20, %v3391_v37  ;;  %v3394_v25 = vpop.f32.mrb[54].mxu1  ;;  %v2133_v27 = vpop.f32.mrb[52].mxu0 }
 0x1c0   : > { %v3395_v28 = vpop.f32.mrb[55].mxu1  ;;  %v3585_v30 = vpop.f32.mrb[53].mxu0 }
 0x1c1   : > { %v1883_v29 = vadd.f32 %v3393_v0, %v4561_v41  ;;  %v3396_v32 = vadd.f32 %v3395_v28, %v3394_v25  ;;  %v2136_v34 = vpop.f32.mrb[54].mxu0 }
 0x1c2   : > { %v3586_v58 = vpop.f32.mrb[55].mxu0 }
 0x1c3   : > { %v1886_v35 = vadd.f32 %v3396_v32, %v4563_v47  ;;  %v4613_v36 = vadd.f32 %v3463_v13, %v1883_v29 }
 0x1c5   : > { %v4615_v38 = vadd.f32 %v3466_v16, %v1886_v35  ;;  %v3483_v7 = vpop.f32.mrb[56].mxu1 }
 0x1c6   : > { %v3484_v39 = vpop.f32.mrb[57].mxu1 }
 0x1c7   : > { %v3485_v33 = vadd.f32 %v3484_v39, %v3483_v7  ;;  %v3486_v42 = vpop.f32.mrb[58].mxu1  ;;  %v2141_v12 = vpop.f32.mrb[56].mxu0  ;;  %v586_v7 = vld [vmem:[#allocation2 + $0x28] sm:$0xff] }
 0x1c8   : > { %v3487_v45 = vpop.f32.mrb[59].mxu1  ;;  %v3589_v48 = vpop.f32.mrb[57].mxu0 }
 0x1c9   : > { %v3488_v49 = vadd.f32 %v3487_v45, %v3486_v42  ;;  %v2029_v50 = vadd.f32 %v3485_v33, %v4565_v2  ;;  %v2144_v41 = vpop.f32.mrb[58].mxu0 }
 0x1ca   : > { %v3590_v52 = vpop.f32.mrb[59].mxu0 }
 0x1cb   : > { %v2134_v5 = vadd.f32 %v2133_v27, %v2029_v50  ;;  %v2032_v47 = vadd.f32 %v3488_v49, %v4567_v4 }
 0x1cd   : > { %v2204_v54 = vadd.f32 %v2134_v5, %v581_v51  ;;  %v2137_v19 = vadd.f32 %v2136_v34, %v2032_v47  ;;  %v3489_v55 = vpop.f32.mrb[60].mxu1  ;;  %v585_v34 = vld [vmem:[#allocation2 + $0x20] sm:$0xff]  ;;  %v587_v47 = vld [vmem:[#allocation2 + $0x30] sm:$0xff] }
 0x1ce   : > { %v3490_v11 = vpop.f32.mrb[61].mxu1 }
 0x1cf   : > { %2222 = vst [vmem:[#allocation2] sm:$0xff] %v2204_v54  ;;  %v2205_v57 = vadd.f32 %v2137_v19, %v582_v53  ;;  %v3491_v24 = vadd.f32 %v3490_v11, %v3489_v55  ;;  %v3492_v62 = vpop.f32.mrb[62].mxu1  ;;  %v2149_v1 = vpop.f32.mrb[60].mxu0  ;;  %v588_v19 = vld [vmem:[#allocation2 + $0x38] sm:$0xff] }
 0x1d0   : > { %v3493_v3 = vpop.f32.mrb[63].mxu1  ;;  %v3593_v6 = vpop.f32.mrb[61].mxu0 }
 0x1d1   : > { %2223 = vst [vmem:[#allocation2 + $0x8] sm:$0xff] %v2205_v57  ;;  %v3494_v2 = vadd.f32 %v3493_v3, %v3492_v62  ;;  %v2037_v8 = vadd.f32 %v3491_v24, %v4571_v22  ;;  %v2152_v9 = vpop.f32.mrb[62].mxu0 }
 0x1d2   : > { %v3594_v10 = vpop.f32.mrb[63].mxu0 }
 0x1d3   : > { %v2142_v4 = vadd.f32 %v2141_v12, %v2037_v8  ;;  %v2040_v13 = vadd.f32 %v3494_v2, %v4573_v26  ;;  %v589_v10 = vld [vmem:[#allocation2 + $0x40] sm:$0xff] }
 0x1d5   : > { %v2206_v14 = vadd.f32 %v2142_v4, %v583_v17  ;;  %v2145_v23 = vadd.f32 %v2144_v41, %v2040_v13  ;;  %v3495_v16 = vpop.f32.mrb[64].mxu1 }
 0x1d6   : > { %v3496_v37 = vpop.f32.mrb[65].mxu1 }
 0x1d7   : > { %2224 = vst [vmem:[#allocation2 + $0x10] sm:$0xff] %v2206_v14  ;;  %v2207_v20 = vadd.f32 %v2145_v23, %v584_v31  ;;  %v3497_v0 = vadd.f32 %v3496_v37, %v3495_v16  ;;  %v3498_v25 = vpop.f32.mrb[66].mxu1  ;;  %v2157_v27 = vpop.f32.mrb[64].mxu0  ;;  %v590_v31 = vld [vmem:[#allocation2 + $0x48] sm:$0xff] }
 0x1d8   : > { %v3499_v28 = vpop.f32.mrb[67].mxu1  ;;  %v3597_v30 = vpop.f32.mrb[65].mxu0 }
 0x1d9   : > { %2225 = vst [vmem:[#allocation2 + $0x18] sm:$0xff] %v2207_v20  ;;  %v3500_v22 = vadd.f32 %v3499_v28, %v3498_v25  ;;  %v2045_v29 = vadd.f32 %v3497_v0, %v4577_v44  ;;  %v2160_v32 = vpop.f32.mrb[66].mxu0 }
 0x1da   : > { %v3598_v58 = vpop.f32.mrb[67].mxu0 }
 0x1db   : > { %v2150_v26 = vadd.f32 %v2149_v1, %v2045_v29  ;;  %v2048_v35 = vadd.f32 %v3500_v22, %v4579_v46 }
 0x1dd   : > { %v2208_v39 = vadd.f32 %v2150_v26, %v585_v34  ;;  %v2153_v33 = vadd.f32 %v2152_v9, %v2048_v35  ;;  %v3501_v42 = vpop.f32.mrb[68].mxu1  ;;  %v592_v26 = vld [vmem:[#allocation2 + $0x58] sm:$0xff] }
 0x1de   : > { %v3502_v12 = vpop.f32.mrb[69].mxu1 }
 0x1df   : > { %2226 = vst [vmem:[#allocation2 + $0x20] sm:$0xff] %v2208_v39  ;;  %v2209_v45 = vadd.f32 %v2153_v33, %v586_v7  ;;  %v3503_v48 = vadd.f32 %v3502_v12, %v3501_v42  ;;  %v3504_v49 = vpop.f32.mrb[70].mxu1  ;;  %v2165_v50 = vpop.f32.mrb[68].mxu0 }
 0x1e0   : > { %v3505_v41 = vpop.f32.mrb[71].mxu1  ;;  %v3601_v51 = vpop.f32.mrb[69].mxu0 }
 0x1e1   : > { %2227 = vst [vmem:[#allocation2 + $0x28] sm:$0xff] %v2209_v45  ;;  %v3506_v44 = vadd.f32 %v3505_v41, %v3504_v49  ;;  %v2053_v52 = vadd.f32 %v3503_v48, %v4583_v61  ;;  %v2168_v5 = vpop.f32.mrb[70].mxu0 }
 0x1e2   : > { %v3602_v53 = vpop.f32.mrb[71].mxu0 }
 0x1e3   : > { %v2158_v46 = vadd.f32 %v2157_v27, %v2053_v52  ;;  %v2056_v54 = vadd.f32 %v3506_v44, %v4585_v63  ;;  %v593_v44 = vld [vmem:[#allocation2 + $0x60] sm:$0xff] }
 0x1e5   : > { %v2210_v55 = vadd.f32 %v2158_v46, %v587_v47  ;;  %v2161_v11 = vadd.f32 %v2160_v32, %v2056_v54  ;;  %v3507_v57 = vpop.f32.mrb[72].mxu1  ;;  %v591_v32 = vld [vmem:[#allocation2 + $0x50] sm:$0xff]  ;;  %v594_v47 = vld [vmem:[#allocation2 + $0x68] sm:$0xff] }
 0x1e6   : > { %v3508_v24 = vpop.f32.mrb[73].mxu1 }
 0x1e7   : > { %2228 = vst [vmem:[#allocation2 + $0x30] sm:$0xff] %v2210_v55  ;;  %v2211_v62 = vadd.f32 %v2161_v11, %v588_v19  ;;  %v3509_v1 = vadd.f32 %v3508_v24, %v3507_v57  ;;  %v3510_v3 = vpop.f32.mrb[74].mxu1  ;;  %v2173_v6 = vpop.f32.mrb[72].mxu0 }
 0x1e8   : > { %v3511_v2 = vpop.f32.mrb[75].mxu1  ;;  %v3605_v8 = vpop.f32.mrb[73].mxu0 }
 0x1e9   : > { %2229 = vst [vmem:[#allocation2 + $0x38] sm:$0xff] %v2211_v62  ;;  %v3512_v61 = vadd.f32 %v3511_v2, %v3510_v3  ;;  %v2061_v9 = vadd.f32 %v3509_v1, %v4589_v18  ;;  %v2176_v17 = vpop.f32.mrb[74].mxu0  ;;  %v595_v2 = vld [vmem:[#allocation2 + $0x70] sm:$0xff] }
 0x1ea   : > { %v3606_v4 = vpop.f32.mrb[75].mxu0 }
 0x1eb   : > { %v2166_v63 = vadd.f32 %v2165_v50, %v2061_v9  ;;  %v2064_v13 = vadd.f32 %v3512_v61, %v4591_v21  ;;  %v596_v9 = vld [vmem:[#allocation2 + $0x78] sm:$0xff] }
 0x1ed   : > { %v2212_v14 = vadd.f32 %v2166_v63, %v589_v10  ;;  %v2169_v23 = vadd.f32 %v2168_v5, %v2064_v13  ;;  %v3513_v16 = vpop.f32.mrb[76].mxu1 }
 0x1ee   : > { %v3514_v37 = vpop.f32.mrb[77].mxu1 }
 0x1ef   : > { %2230 = vst [vmem:[#allocation2 + $0x40] sm:$0xff] %v2212_v14  ;;  %v2213_v20 = vadd.f32 %v2169_v23, %v590_v31  ;;  %v3515_v0 = vadd.f32 %v3514_v37, %v3513_v16  ;;  %v3516_v25 = vpop.f32.mrb[78].mxu1  ;;  %v2181_v27 = vpop.f32.mrb[76].mxu0  ;;  %v597_v37 = vld [vmem:[#allocation2 + $0x80] sm:$0xff] }
 0x1f0   : > { %v3517_v28 = vpop.f32.mrb[79].mxu1  ;;  %v3609_v30 = vpop.f32.mrb[77].mxu0 }
 0x1f1   : > { %2231 = vst [vmem:[#allocation2 + $0x48] sm:$0xff] %v2213_v20  ;;  %v3518_v18 = vadd.f32 %v3517_v28, %v3516_v25  ;;  %v2069_v22 = vadd.f32 %v3515_v0, %v4595_v40  ;;  %v2184_v29 = vpop.f32.mrb[78].mxu0  ;;  %v598_v25 = vld [vmem:[#allocation2 + $0x88] sm:$0xff]  ;;  %v3941_v30 = vld [vmem:[%s4906_s5] sm:$0xff] (!%p3141_p13)  }
 0x1f2   : > { %v3610_v34 = vpop.f32.mrb[79].mxu0 }
 0x1f3   : > { %v2174_v21 = vadd.f32 %v2173_v6, %v2069_v22  ;;  %v2072_v58 = vadd.f32 %v3518_v18, %v4597_v43  ;;  %v4049_v18 = vmov (!%p3141_p13), 0.0   ;;  %v3944_v22 = vld [vmem:[%s4906_s5 + $0x18] sm:$0xff] (!%p3141_p13)   ;;  %v3947_v34 = vld [vmem:[%s4344_s17 + $0x8] sm:$0xff] (!%p3141_p13)  }
 0x1f4   : > { %3619 = vmatprep.subr.bf16.mxu0 (!%p3141_p13), %v4049_v18  ;;  %3679 = vmatprep.subr.bf16.mxu1 (!%p3141_p13), %v4049_v18 }
 0x1f5   : > { %v2214_v35 = vadd.f32 %v2174_v21, %v591_v32  ;;  %v2177_v7 = vadd.f32 %v2176_v17, %v2072_v58  ;;  %v3519_v39 = vpop.f32.mrb[80].mxu1  ;;  %3620 = vmatpush3.bf16.msra.mxu0 (!%p3141_p13), %v3941_v30  ;;  %3683 = vmatpush3.bf16.msra.mxu1 (!%p3141_p13), %v3941_v30  ;;  %v3946_v32 = vld [vmem:[%s4344_s17 + $0x28] sm:$0xff] (!%p3141_p13)   ;;  %v3948_v21 = vld [vmem:[%s4344_s17 + $0x30] sm:$0xff] (!%p3141_p13)  }
 0x1f6   : > { %v3520_v33 = vpop.f32.mrb[81].mxu1  ;;  %3621 = vmatprep.subr.bf16.mxu0 (!%p3141_p13), %v4049_v18  ;;  %3680 = vmatprep.subr.bf16.mxu1 (!%p3141_p13), %v4049_v18  ;;  %v3949_v58 = vld [vmem:[%s4344_s17 + $0x10] sm:$0xff] (!%p3141_p13)  }
 0x1f7   : > { %2232 = vst [vmem:[#allocation2 + $0x50] sm:$0xff] %v2214_v35  ;;  %v2215_v42 = vadd.f32 %v2177_v7, %v592_v26  ;;  %v3521_v12 = vadd.f32 %v3520_v33, %v3519_v39  ;;  %v3522_v45 = vpop.f32.mrb[82].mxu1  ;;  %v2189_v48 = vpop.f32.mrb[80].mxu0  ;;  %3627 = vmatprep.mubr.msk.bf16.mxu0 (!%p3141_p13), %vm4050_vm1, %v4049_v18  ;;  %3647 = vmatprep.mubr.msk.bf16.mxu1 (!%p3141_p13), %vm4050_vm1, %v4049_v18  ;;  %v3950_v26 = vld [vmem:[%s4344_s17 + $0x38] sm:$0xff] (!%p3141_p13)   ;;  %v3952_v7 = vld [vmem:[%s4344_s17 + $0x40] sm:$0xff] (!%p3141_p13)  }
 0x1f8   : > { %v3523_v49 = vpop.f32.mrb[83].mxu1  ;;  %v3613_v50 = vpop.f32.mrb[81].mxu0  ;;  %v3951_v35 = vld [vmem:[%s4344_s17 + $0x18] sm:$0xff] (!%p3141_p13)   ;;  %v3953_v39 = vld [vmem:[%s4344_s17 + $0x20] sm:$0xff] (!%p3141_p13)  }
 0x1f9   : > { %2233 = vst [vmem:[#allocation2 + $0x58] sm:$0xff] %v2215_v42  ;;  %v3524_v40 = vadd.f32 %v3523_v49, %v3522_v45  ;;  %v2077_v41 = vadd.f32 %v3521_v12, %v4601_v56  ;;  %v2192_v51 = vpop.f32.mrb[82].mxu0  ;;  %v2244_v33 = vld [vmem:[#allocation2] sm:$0xff] (!%p3141_p13)  ;;  %v2245_v49 = vld [vmem:[#allocation2 + $0x8] sm:$0xff] (!%p3141_p13) }
 0x1fa   : > { %v3614_v52 = vpop.f32.mrb[83].mxu0  ;;  %v4678_v42 = vld [vmem:[%s4903_s2] ss:$0 sm:$0xff] (!%p3141_p13) }
 0x1fb   : > { %v2182_v43 = vadd.f32 %v2181_v27, %v2077_v41  ;;  %v2080_v5 = vadd.f32 %v3524_v40, %v4603_v59  ;;  %v2269_v45 = vmul.f32 (!%p3141_p13), %v4678_v42, %v2244_v33  ;;  %v4685_v40 = vld [vmem:[%s4904_s3] ss:$0 sm:$0xff] (!%p3141_p13)  ;;  %v2246_v41 = vld [vmem:[#allocation2 + $0x10] sm:$0xff] (!%p3141_p13) }
 0x1fd   : > { %v2216_v53 = vadd.f32 %v2182_v43, %v593_v44  ;;  %v2185_v46 = vadd.f32 %v2184_v29, %v2080_v5  ;;  %v3525_v54 = vpop.f32.mrb[84].mxu1  ;;  %v3945_v29 = vld [vmem:[%s4344_s17] sm:$0xff] (!%p3141_p13)   ;;  %v2294_v52 = vadd.f32 (!%p3141_p13), %v4685_v40, %v2269_v45 }
 0x1fe   : > { %v3526_v19 = vpop.f32.mrb[85].mxu1  ;;  %v2254_v12 = vld [vmem:[#allocation2 + $0x50] sm:$0xff] (!%p3141_p13) }
 0x1ff   : > { %2234 = vst [vmem:[#allocation2 + $0x60] sm:$0xff] %v2216_v53  ;;  %v2217_v55 = vadd.f32 %v2185_v46, %v594_v47  ;;  %v3527_v11 = vadd.f32 %v3526_v19, %v3525_v54  ;;  %v3528_v57 = vpop.f32.mrb[86].mxu1  ;;  %v2197_v24 = vpop.f32.mrb[84].mxu0  ;;  %v2271_v47 = vmul.f32 (!%p3141_p13), %v4678_v42, %v2246_v41  ;;  %v2247_v53 = vld [vmem:[#allocation2 + $0x18] sm:$0xff] (!%p3141_p13)  ;;  %v2248_v54 = vld [vmem:[#allocation2 + $0x20] sm:$0xff] (!%p3141_p13) }
 0x200   : > { %v3529_v62 = vpop.f32.mrb[87].mxu1  ;;  %v3617_v1 = vpop.f32.mrb[85].mxu0  ;;  %v2255_v50 = vld [vmem:[#allocation2 + $0x58] sm:$0xff] (!%p3141_p13) }
 0x201   : > { %2235 = vst [vmem:[#allocation2 + $0x68] sm:$0xff] %v2217_v55  ;;  %v3530_v56 = vadd.f32 %v3529_v62, %v3528_v57  ;;  %v2085_v3 = vadd.f32 %v3527_v11, %v4607_v15  ;;  %v2200_v6 = vpop.f32.mrb[86].mxu0  ;;  %v2280_v44 = vmul.f32 (!%p3141_p13), %v4678_v42, %v2255_v50  ;;  %v2249_v1 = vld [vmem:[#allocation2 + $0x28] sm:$0xff] (!%p3141_p13) }
 0x202   : > { %v3618_v8 = vpop.f32.mrb[87].mxu0 }
 0x203   : > { %v2190_v59 = vadd.f32 %v2189_v48, %v2085_v3  ;;  %v2088_v61 = vadd.f32 %v3530_v56, %v4609_v60  ;;  %v2279_v48 = vmul.f32 (!%p3141_p13), %v4678_v42, %v2254_v12  ;;  %v2305_v57 = vadd.f32 (!%p3141_p13), %v4685_v40, %v2280_v44 }
 0x204   : > { %v2272_v8 = vmul.f32 (!%p3141_p13), %v4678_v42, %v2247_v53 }
 0x205   : > { %v2218_v17 = vadd.f32 %v2190_v59, %v595_v2  ;;  %v2193_v10 = vadd.f32 %v2192_v51, %v2088_v61  ;;  %v3531_v4 = vpop.f32.mrb[88].mxu1  ;;  %v2270_v51 = vmul.f32 (!%p3141_p13), %v4678_v42, %v2245_v49  ;;  %v2304_v43 = vadd.f32 (!%p3141_p13), %v4685_v40, %v2279_v48  ;;  %v2252_v49 = vld [vmem:[#allocation2 + $0x40] sm:$0xff] (!%p3141_p13) }
 0x206   : > { %v3532_v63 = vpop.f32.mrb[89].mxu1  ;;  %v2256_v5 = vld [vmem:[#allocation2 + $0x60] sm:$0xff] (!%p3141_p13) }
 0x207   : > { %2236 = vst [vmem:[#allocation2 + $0x70] sm:$0xff] %v2218_v17  ;;  %v2219_v13 = vadd.f32 %v2193_v10, %v596_v9  ;;  %v3533_v31 = vadd.f32 %v3532_v63, %v3531_v4  ;;  %v3534_v14 = vpop.f32.mrb[90].mxu1  ;;  %v2295_v11 = vadd.f32 (!%p3141_p13), %v4685_v40, %v2270_v51  ;;  %v2296_v10 = vadd.f32 (!%p3141_p13), %v4685_v40, %v2271_v47 }
 0x208   : > { %v3535_v23 = vpop.f32.mrb[91].mxu1  ;;  %v2257_v46 = vld [vmem:[#allocation2 + $0x68] sm:$0xff] (!%p3141_p13)  ;;  %v2273_v4 = vmul.f32 (!%p3141_p13), %v4678_v42, %v2248_v54 }
 0x209   : > { %2237 = vst [vmem:[#allocation2 + $0x78] sm:$0xff] %v2219_v13  ;;  %v3536_v16 = vadd.f32 %v3535_v23, %v3534_v14  ;;  %v2093_v15 = vadd.f32 %v3533_v31, %v4613_v36  ;;  %v3942_v36 = vld [vmem:[%s4906_s5 + $0x8] sm:$0xff] (!%p3141_p13)   ;;  %v2282_v59 = vmul.f32 (!%p3141_p13), %v4678_v42, %v2257_v46  ;;  %v2274_v14 = vmul.f32 (!%p3141_p13), %v4678_v42, %v2249_v1  ;;  %v2250_v23 = vld [vmem:[#allocation2 + $0x30] sm:$0xff] (!%p3141_p13) }
 0x20a   : > { %3622 = vmatpush3.bf16.msra.mxu0 (!%p3141_p13), %v3942_v36  ;;  %3684 = vmatpush3.bf16.msra.mxu1 (!%p3141_p13), %v3942_v36 }
 0x20b   : > { %v2198_v20 = vadd.f32 %v2197_v24, %v2093_v15  ;;  %v2096_v0 = vadd.f32 %v3536_v16, %v4615_v38  ;;  %2243 = sbr.rel (%p3141_p13) target bundleno = 813 (0x32d), region = 78  ;;  %v3943_v38 = vld [vmem:[%s4906_s5 + $0x10] sm:$0xff] (!%p3141_p13)   ;;  %3623 = vmatprep.subr.bf16.mxu0 (!%p3141_p13), %v4049_v18  ;;  %3681 = vmatprep.subr.bf16.mxu1 (!%p3141_p13), %v4049_v18  ;;  %v2281_v24 = vmul.f32 (!%p3141_p13), %v4678_v42, %v2256_v5 }
 0x20c   : > { %v2307_v30 = vadd.f32 (!%p3141_p13), %v4685_v40, %v2282_v59 }
 0x20d   : > { %v2220_v60 = vadd.f32 %v2198_v20, %v597_v37  ;;  %v2201_v27 = vadd.f32 %v2200_v6, %v2096_v0  ;;  %v2306_v0 = vadd.f32 (!%p3141_p13), %v4685_v40, %v2281_v24  ;;  %v2277_v24 = vmul.f32 (!%p3141_p13), %v4678_v42, %v2252_v49 }
 0x20e   : > { %3624 = vmatpush3.bf16.msra.mxu0 (!%p3141_p13), %v3943_v38  ;;  %3685 = vmatpush3.bf16.msra.mxu1 (!%p3141_p13), %v3943_v38  ;;  %v2258_v62 = vld [vmem:[#allocation2 + $0x70] sm:$0xff] (!%p3141_p13) }
 0x20f   : > { %2238 = vst [vmem:[#allocation2 + $0x80] sm:$0xff] %v2220_v60  ;;  %v2221_v28 = vadd.f32 %v2201_v27, %v598_v25  ;;  %3625 = vmatprep.subr.bf16.mxu0 (!%p3141_p13), %v4049_v18  ;;  %3682 = vmatprep.subr.bf16.mxu1 (!%p3141_p13), %v4049_v18  ;;  %v2283_v31 = vmul.f32 (!%p3141_p13), %v4678_v42, %v2258_v62 }
 0x210   : > { %v2259_v61 = vld [vmem:[#allocation2 + $0x78] sm:$0xff] (!%p3141_p13) }
 0x211   : > { %2239 = vst [vmem:[#allocation2 + $0x88] sm:$0xff] %v2221_v28  ;;  %v2284_v25 = vmul.f32 (!%p3141_p13), %v4678_v42, %v2259_v61  ;;  %v2297_v28 = vadd.f32 (!%p3141_p13), %v4685_v40, %v2272_v8 }
 0x212   : > { %3626 = vmatpush3.bf16.msra.mxu0 %v3944_v22  ;;  %3686 = vmatpush3.bf16.msra.mxu1 %v3944_v22  ;;  %v2298_v22 = vadd.f32 %v4685_v40, %v2273_v4 }
 0x213   : > { %v4730_v12 = vadd.f32 %v4685_v40, %v2284_v25 }
 0x215   : > { %3628 = vmatmul.mubr.msk.bf16.vlgmr.msra.gmra.mrb[0].mxu0 %vm2407_vm2, %v3945_v29  ;;  %3648 = vmatmul.mubr.msk.bf16.vlgmr.msra.gmra.mrb[0].mxu1 %vm2407_vm2, %v3946_v32  ;;  %v2275_v29 = vmul.f32 %v4678_v42, %v2250_v23 }
 0x216   : > { %3631 = vmatprep.mubr.msk.bf16.mxu0 %vm4050_vm1, %v4049_v18  ;;  %3651 = vmatprep.mubr.msk.bf16.mxu1 %vm4050_vm1, %v4049_v18 }
 0x217   : > { %v4742_v54 = vadd.f32 %v4685_v40, %v2275_v29 }
 0x218   : > { %v2261_v48 = vld [vmem:[#allocation2 + $0x88] sm:$0xff] }
 0x21d   : > { %3632 = vmatmul.mubr.msk.bf16.gmra.mrb[4].mxu0 %vm2407_vm2, %v3947_v34  ;;  %3652 = vmatmul.mubr.msk.bf16.gmra.mrb[4].mxu1 %vm2407_vm2, %v3948_v21  ;;  %v2308_v21 = vadd.f32 %v4685_v40, %v2283_v31 }
 0x21e   : > { %3635 = vmatprep.mubr.msk.bf16.mxu0 %vm4050_vm1, %v4049_v18  ;;  %3655 = vmatprep.mubr.msk.bf16.mxu1 %vm4050_vm1, %v4049_v18 }
 0x225   : > { %3636 = vmatmul.mubr.msk.bf16.gmra.mrb[8].mxu0 %vm2407_vm2, %v3949_v58  ;;  %3656 = vmatmul.mubr.msk.bf16.gmra.mrb[8].mxu1 %vm2407_vm2, %v3950_v26  ;;  %v4725_v58 = vadd.f32 %v4685_v40, %v2274_v14  ;;  %v2251_v26 = vld [vmem:[#allocation2 + $0x38] sm:$0xff] }
 0x226   : > { %3639 = vmatprep.mubr.msk.bf16.mxu0 %vm4050_vm1, %v4049_v18  ;;  %3659 = vmatprep.mubr.msk.bf16.mxu1 %vm4050_vm1, %v4049_v18 }
 0x22d   : > { %3640 = vmatmul.mubr.msk.bf16.gmra.mrb[12].mxu0 %vm2407_vm2, %v3951_v35  ;;  %3660 = vmatmul.mubr.msk.bf16.gmra.mrb[12].mxu1 %vm2407_vm2, %v3952_v7 }
 0x22e   : > { %3643 = vmatprep.mubr.msk.bf16.mxu0 %vm4050_vm1, %v4049_v18  ;;  %v2260_v18 = vld [vmem:[#allocation2 + $0x80] sm:$0xff] }
 0x22f   : > { %v2285_v45 = vmul.f32 %v4678_v42, %v2260_v18 }
 0x235   : > { %3644 = vmatmul.mubr.msk.bf16.gmra.mrb[16].mxu0 %vm2407_vm2, %v3953_v39 }
 0x2e8   : > { %v2469_v19 = vpop.f32.mrb[0].mxu0  ;;  %v2509_v55 = vpop.f32.mrb[0].mxu1 }
 0x2e9   : > { %v4695_v56 = vadd.f32 %v2469_v19, %v2294_v52  ;;  %v4697_v3 = vadd.f32 %v2509_v55, %v2304_v43  ;;  %v3629_v6 = vpop.f32.mrb[1].mxu0  ;;  %v3649_v2 = vpop.f32.mrb[1].mxu1  ;;  %v2276_v19 = vmul.f32 %v4678_v42, %v2251_v26 }
 0x2ea   : > { %v2472_v9 = vpop.f32.mrb[2].mxu0  ;;  %v2512_v17 = vpop.f32.mrb[2].mxu1 }
 0x2eb   : > { %v2576_v63 = vmul.f32 0.044715, %v4695_v56  ;;  %v2586_v13 = vmul.f32 0.044715, %v4697_v3  ;;  %v4707_v16 = vadd.f32 %v2472_v9, %v2295_v11  ;;  %v4709_v15 = vadd.f32 %v2512_v17, %v2305_v57  ;;  %v3630_v37 = vpop.f32.mrb[3].mxu0  ;;  %v3650_v20 = vpop.f32.mrb[3].mxu1 }
 0x2ec   : > { %v2286_v57 = vmul.f32 %v4678_v42, %v2261_v48  ;;  %v4756_v17 = vadd.f32 %v4685_v40, %v2285_v45  ;;  %v4762_v14 = vadd.f32 %v4685_v40, %v2276_v19  ;;  %v2253_v37 = vld [vmem:[#allocation2 + $0x48] sm:$0xff] }
 0x2ed   : > { %v2594_v60 = vmul.f32 %v2576_v63, %v4695_v56  ;;  %v2604_v27 = vmul.f32 %v2586_v13, %v4697_v3  ;;  %v2577_v36 = vmul.f32 0.044715, %v4707_v16  ;;  %v2587_v38 = vmul.f32 0.044715, %v4709_v15 }
 0x2ee   : > { %v4765_v23 = vadd.f32 %v4685_v40, %v2286_v57 }
 0x2ef   : > { %v2612_v32 = vmul.f32 %v2594_v60, %v4695_v56  ;;  %v2622_v34 = vmul.f32 %v2604_v27, %v4697_v3  ;;  %v2595_v35 = vmul.f32 %v2577_v36, %v4707_v16  ;;  %v2605_v7 = vmul.f32 %v2587_v38, %v4709_v15 }
 0x2f0   : > { %v2477_v39 = vpop.f32.mrb[4].mxu0  ;;  %v2517_v33 = vpop.f32.mrb[4].mxu1  ;;  %v4770_v27 = vadd.f32 %v4685_v40, %v2277_v24 }
 0x2f1   : > { %v2630_v50 = vadd.f32 %v2612_v32, %v4695_v56  ;;  %v2640_v41 = vadd.f32 %v2622_v34, %v4697_v3  ;;  %v4735_v51 = vadd.f32 %v2477_v39, %v2296_v10  ;;  %v4737_v44 = vadd.f32 %v2517_v33, %v2306_v0  ;;  %v3633_v52 = vpop.f32.mrb[5].mxu0  ;;  %v3653_v43 = vpop.f32.mrb[5].mxu1 }
 0x2f2   : > { %v2613_v5 = vmul.f32 %v2595_v35, %v4707_v16  ;;  %v2623_v47 = vmul.f32 %v2605_v7, %v4709_v15  ;;  %v2480_v53 = vpop.f32.mrb[6].mxu0  ;;  %v2520_v46 = vpop.f32.mrb[6].mxu1  ;;  %v2278_v7 = vmul.f32 %v4678_v42, %v2253_v37  ;;  %v2558_v39 = vmul.f32 0.5, %v4695_v56 }
 0x2f3   : > { %v2648_v55 = vmul.f32 0.7978846, %v2630_v50  ;;  %v2658_v11 = vmul.f32 0.7978846, %v2640_v41  ;;  %v2578_v6 = vmul.f32 0.044715, %v4735_v51  ;;  %v4751_v61 = vadd.f32 %v2480_v53, %v2297_v28 }
 0x2f4   : > { %v2631_v62 = vadd.f32 %v2613_v5, %v4707_v16  ;;  %v2641_v1 = vadd.f32 %v2623_v47, %v4709_v15  ;;  %v2588_v2 = vmul.f32 0.044715, %v4737_v44  ;;  %v3634_v8 = vpop.f32.mrb[7].mxu0  ;;  %v3654_v59 = vpop.f32.mrb[7].mxu1  ;;  %v4753_v9 = vadd.f32 %v2520_v46, %v2307_v30 }
 0x2f5   : > { %3954 = vtanh.f32 %v2648_v55  ;;  %v2596_v63 = vmul.f32 %v2578_v6, %v4735_v51  ;;  %v2579_v31 = vmul.f32 0.044715, %v4751_v61  ;;  %v2568_v50 = vmul.f32 0.5, %v4697_v3 }
 0x2f6   : > { %3956 = vtanh.f32 %v2658_v11  ;;  %v2649_v10 = vmul.f32 0.7978846, %v2631_v62  ;;  %v2659_v4 = vmul.f32 0.7978846, %v2641_v1  ;;  %v2606_v13 = vmul.f32 %v2588_v2, %v4737_v44 }
 0x2f7   : > { %v2614_v20 = vmul.f32 %v2596_v63, %v4735_v51  ;;  %v2589_v0 = vmul.f32 0.044715, %v4753_v9  ;;  %v2597_v30 = vmul.f32 %v2579_v31, %v4751_v61  ;;  %v2559_v47 = vmul.f32 0.5, %v4707_v16 }
 0x2f8   : > { %3958 = vtanh.f32 %v2649_v10  ;;  %v2485_v25 = vpop.f32.mrb[8].mxu0  ;;  %v2525_v60 = vpop.f32.mrb[8].mxu1  ;;  %v2624_v28 = vmul.f32 %v2606_v13, %v4737_v44  ;;  %v2569_v6 = vmul.f32 0.5, %v4709_v15  ;;  %v2560_v2 = vmul.f32 0.5, %v4735_v51 }
 0x2f9   : > { %3960 = vtanh.f32 %v2659_v4  ;;  %v4774_v18 = vadd.f32 %v2485_v25, %v2298_v22  ;;  %v3637_v36 = vpop.f32.mrb[9].mxu0  ;;  %v3657_v38 = vpop.f32.mrb[9].mxu1  ;;  %v2632_v29 = vadd.f32 %v2614_v20, %v4735_v51  ;;  %v2607_v32 = vmul.f32 %v2589_v0, %v4753_v9 }
 0x2fa   : > { %v4778_v34 = vadd.f32 %v2525_v60, %v2308_v21  ;;  %v2488_v26 = vpop.f32.mrb[10].mxu0  ;;  %v2528_v35 = vpop.f32.mrb[10].mxu1  ;;  %v2642_v33 = vadd.f32 %v2624_v28, %v4737_v44  ;;  %v2615_v45 = vmul.f32 %v2597_v30, %v4751_v61  ;;  %v4809_v60 = vadd.f32 %v4685_v40, %v2278_v7 }
 0x2fb   : > { %v2580_v22 = vmul.f32 0.044715, %v4774_v18  ;;  %v3638_v48 = vpop.f32.mrb[11].mxu0  ;;  %v3658_v49 = vpop.f32.mrb[11].mxu1  ;;  %v2650_v41 = vmul.f32 0.7978846, %v2632_v29  ;;  %v2625_v21 = vmul.f32 %v2607_v32, %v4753_v9  ;;  %v4791_v5 = vadd.f32 %v2488_v26, %v4725_v58 }
 0x2fc   : > { %v2590_v52 = vmul.f32 0.044715, %v4778_v34  ;;  %v2660_v43 = vmul.f32 0.7978846, %v2642_v33  ;;  %v2633_v42 = vadd.f32 %v2615_v45, %v4751_v61  ;;  %v4798_v11 = vadd.f32 %v2528_v35, %v4730_v12 }
 0x2fd   : > { %v2598_v56 = vmul.f32 %v2580_v22, %v4774_v18  ;;  %3962 = vtanh.f32 %v2650_v41  ;;  %v2643_v53 = vadd.f32 %v2625_v21, %v4753_v9  ;;  %v2581_v16 = vmul.f32 0.044715, %v4791_v5 }
 0x2fe   : > { %v2608_v3 = vmul.f32 %v2590_v52, %v4778_v34  ;;  %3964 = vtanh.f32 %v2660_v43  ;;  %v2651_v19 = vmul.f32 0.7978846, %v2633_v42  ;;  %v2591_v15 = vmul.f32 0.044715, %v4798_v11 }
 0x2ff   : > { %v3955_v46 = vpop.eup %3954  ;;  %v2616_v55 = vmul.f32 %v2598_v56, %v4774_v18  ;;  %v2661_v62 = vmul.f32 0.7978846, %v2643_v53  ;;  %v2599_v13 = vmul.f32 %v2581_v16, %v4791_v5  ;;  %v2570_v48 = vmul.f32 0.5, %v4737_v44 }
 0x300   : > { %v3957_v57 = vpop.eup %3956  ;;  %v2684_v24 = vadd.f32 1.0, %v3955_v46  ;;  %v2626_v58 = vmul.f32 %v2608_v3, %v4778_v34  ;;  %v2493_v1 = vpop.f32.mrb[12].mxu0  ;;  %3966 = vtanh.f32 %v2651_v19  ;;  %v2609_v33 = vmul.f32 %v2591_v15, %v4798_v11 }
 0x301   : > { %v2634_v8 = vadd.f32 %v2616_v55, %v4774_v18  ;;  %v2533_v59 = vpop.f32.mrb[12].mxu1  ;;  %v3641_v10 = vpop.f32.mrb[13].mxu0  ;;  %v2694_v12 = vadd.f32 1.0, %v3957_v57  ;;  %3968 = vtanh.f32 %v2661_v62  ;;  %v2617_v36 = vmul.f32 %v2599_v13, %v4791_v5 }
 0x302   : > { %v3959_v4 = vpop.eup %3958  ;;  %v2644_v63 = vadd.f32 %v2626_v58, %v4778_v34  ;;  %v3661_v31 = vpop.f32.mrb[13].mxu1  ;;  %v2702_v28 = vmul.f32 %v2684_v24, %v2558_v39  ;;  %v4813_v38 = vadd.f32 %v2493_v1, %v4742_v54  ;;  %v4817_v45 = vadd.f32 %v2533_v59, %v4756_v17 }
 0x303   : > { %v2496_v37 = vpop.f32.mrb[14].mxu0  ;;  %v3961_v20 = vpop.eup %3960  ;;  %v2685_v0 = vadd.f32 1.0, %v3959_v4  ;;  %v2652_v25 = vmul.f32 0.7978846, %v2634_v8  ;;  %v2712_v22 = vmul.f32 %v2694_v12, %v2568_v50  ;;  %v2635_v7 = vadd.f32 %v2617_v36, %v4791_v5 }
 0x304   : > { %v2536_v51 = vpop.f32.mrb[14].mxu1  ;;  %v2695_v30 = vadd.f32 1.0, %v3961_v20  ;;  %v3642_v29 = vpop.f32.mrb[15].mxu0  ;;  %v2662_v35 = vmul.f32 0.7978846, %v2644_v63  ;;  %v2627_v54 = vmul.f32 %v2609_v33, %v4798_v11  ;;  %v4825_v43 = vadd.f32 %v2496_v37, %v4762_v14 }
 0x305   : > { %v3662_v32 = vpop.f32.mrb[15].mxu1  ;;  %v2703_v26 = vmul.f32 %v2685_v0, %v2559_v47  ;;  %3970 = vtanh.f32 %v2652_v25  ;;  %v2582_v49 = vmul.f32 0.044715, %v4813_v38  ;;  %v2653_v52 = vmul.f32 0.7978846, %v2635_v7 }
 0x306   : > { %v2713_v40 = vmul.f32 %v2695_v30, %v2569_v6  ;;  %v2592_v17 = vmul.f32 0.044715, %v4817_v45  ;;  %3972 = vtanh.f32 %v2662_v35  ;;  %v2645_v44 = vadd.f32 %v2627_v54, %v4798_v11 }
 0x307   : > { %v3207_v39 = vpack.c.bf16 %v2703_v26, %v2702_v28  ;;  %v3963_v41 = vpop.eup %3962  ;;  %v2600_v47 = vmul.f32 %v2582_v49, %v4813_v38  ;;  %3974 = vtanh.f32 %v2653_v52  ;;  %v4833_v19 = vadd.f32 %v2536_v51, %v4765_v23 }
 0x308   : > { %v3232_v21 = vpack.c.bf16 %v2713_v40, %v2712_v22  ;;  %v2501_v50 = vpop.f32.mrb[16].mxu0  ;;  %v3965_v42 = vpop.eup %3964  ;;  %v2686_v56 = vadd.f32 1.0, %v3963_v41  ;;  %v2610_v46 = vmul.f32 %v2592_v17, %v4817_v45  ;;  %v2561_v57 = vmul.f32 0.5, %v4751_v61 }
 0x309   : > { %3208 = vst [vmem:[%s4349_s19] sm:$0xff] %v3207_v39   ;;  %v3645_v53 = vpop.f32.mrb[17].mxu0  ;;  %v2696_v3 = vadd.f32 1.0, %v3965_v42  ;;  %v2663_v24 = vmul.f32 0.7978846, %v2645_v44  ;;  %v2618_v62 = vmul.f32 %v2600_v47, %v4813_v38  ;;  %v2583_v58 = vmul.f32 0.044715, %v4825_v43 }
 0x30a   : > { %3253 = vst [vmem:[%s4349_s19 + $0x28] sm:$0xff] %v3232_v21   ;;  %v2504_v14 = vpop.f32.mrb[18].mxu0  ;;  %v3967_v55 = vpop.eup %3966  ;;  %v2704_v6 = vmul.f32 %v2686_v56, %v2560_v2  ;;  %v2571_v59 = vmul.f32 0.5, %v4753_v9  ;;  %v2628_v10 = vmul.f32 %v2610_v46, %v4817_v45  ;;  %v2593_v31 = vmul.f32 0.044715, %v4833_v19 }
 0x30b   : > { %v3646_v16 = vpop.f32.mrb[19].mxu0  ;;  %v3969_v1 = vpop.eup %3968  ;;  %v2687_v8 = vadd.f32 1.0, %v3967_v55  ;;  %3976 = vtanh.f32 %v2663_v24  ;;  %v2636_v23 = vadd.f32 %v2618_v62, %v4813_v38  ;;  %v2601_v12 = vmul.f32 %v2583_v58, %v4825_v43 }
 0x30c   : > { %v2697_v4 = vadd.f32 1.0, %v3969_v1  ;;  %v2714_v61 = vmul.f32 %v2696_v3, %v2570_v48  ;;  %v2646_v13 = vadd.f32 %v2628_v10, %v4817_v45  ;;  %v4846_v20 = vadd.f32 %v2501_v50, %v4770_v27 }
 0x30d   : > { %v2705_v63 = vmul.f32 %v2687_v8, %v2561_v57  ;;  %v2654_v37 = vmul.f32 0.7978846, %v2636_v23  ;;  %v2619_v9 = vmul.f32 %v2601_v12, %v4825_v43  ;;  %v2611_v51 = vmul.f32 %v2593_v31, %v4833_v19 }
 0x30e   : > { %v2715_v2 = vmul.f32 %v2697_v4, %v2571_v59  ;;  %v2664_v15 = vmul.f32 0.7978846, %v2646_v13  ;;  %v4850_v28 = vadd.f32 %v2504_v14, %v4809_v60  ;;  %v2584_v35 = vmul.f32 0.044715, %v4846_v20 }
 0x30f   : > { %v3971_v0 = vpop.eup %3970  ;;  %v3212_v25 = vpack.c.bf16 %v2705_v63, %v2704_v6  ;;  %3978 = vtanh.f32 %v2654_v37  ;;  %v2637_v36 = vadd.f32 %v2619_v9, %v4825_v43  ;;  %v2629_v29 = vmul.f32 %v2611_v51, %v4833_v19 }
 0x310   : > { %v3237_v30 = vpack.c.bf16 %v2715_v2, %v2714_v61  ;;  %v3973_v32 = vpop.eup %3972  ;;  %v2688_v26 = vadd.f32 1.0, %v3971_v0  ;;  %v2562_v22 = vmul.f32 0.5, %v4774_v18  ;;  %3980 = vtanh.f32 %v2664_v15 }
 0x311   : > { %3249 = vst [vmem:[%s4349_s19 + $0x8] sm:$0xff] %v3212_v25   ;;  %v2655_v27 = vmul.f32 0.7978846, %v2637_v36  ;;  %v3975_v33 = vpop.eup %3974  ;;  %v2647_v60 = vadd.f32 %v2629_v29, %v4833_v19  ;;  %v2585_v40 = vmul.f32 0.044715, %v4850_v28  ;;  %v2563_v7 = vmul.f32 0.5, %v4791_v5 }
 0x312   : > { %3254 = vst [vmem:[%s4349_s19 + $0x30] sm:$0xff] %v3237_v30   ;;  %v2689_v39 = vadd.f32 1.0, %v3975_v33  ;;  %v2602_v48 = vmul.f32 %v2584_v35, %v4846_v20  ;;  %v2698_v54 = vadd.f32 1.0, %v3973_v32  ;;  %v2706_v52 = vmul.f32 %v2688_v26, %v2562_v22 }
 0x313   : > { %3982 = vtanh.f32 %v2655_v27  ;;  %v2665_v49 = vmul.f32 0.7978846, %v2647_v60  ;;  %v2603_v41 = vmul.f32 %v2585_v40, %v4850_v28  ;;  %v2572_v18 = vmul.f32 0.5, %v4778_v34 }
 0x314   : > { %v2707_v17 = vmul.f32 %v2689_v39, %v2563_v7  ;;  %v2620_v50 = vmul.f32 %v2602_v48, %v4846_v20  ;;  %v2573_v42 = vmul.f32 0.5, %v4798_v11  ;;  %v2564_v58 = vmul.f32 0.5, %v4813_v38 }
 0x315   : > { %v3977_v21 = vpop.eup %3976  ;;  %3984 = vtanh.f32 %v2665_v49  ;;  %v2621_v56 = vmul.f32 %v2603_v41, %v4850_v28  ;;  %v2716_v53 = vmul.f32 %v2698_v54, %v2572_v18  ;;  %v2565_v16 = vmul.f32 0.5, %v4825_v43 }
 0x316   : > { %v2699_v5 = vadd.f32 1.0, %v3977_v21  ;;  %v3217_v44 = vpack.c.bf16 %v2707_v17, %v2706_v52  ;;  %v2638_v47 = vadd.f32 %v2620_v50, %v4846_v20  ;;  %v2574_v4 = vmul.f32 0.5, %v4817_v45 }
 0x317   : > { %v2639_v46 = vadd.f32 %v2621_v56, %v4850_v28  ;;  %v2575_v23 = vmul.f32 0.5, %v4833_v19  ;;  %v2566_v37 = vmul.f32 0.5, %v4846_v20  ;;  %v2567_v9 = vmul.f32 0.5, %v4850_v28 }
 0x318   : > { %v2717_v3 = vmul.f32 %v2699_v5, %v2573_v42  ;;  %3250 = vst [vmem:[%s4349_s19 + $0x10] sm:$0xff] %v3217_v44   ;;  %v2656_v34 = vmul.f32 0.7978846, %v2638_v47 }
 0x319   : > { %v3979_v14 = vpop.eup %3978  ;;  %v2657_v57 = vmul.f32 0.7978846, %v2639_v46 }
 0x31a   : > { %v3242_v55 = vpack.c.bf16 %v2717_v3, %v2716_v53  ;;  %3986 = vtanh.f32 %v2656_v34  ;;  %v3981_v24 = vpop.eup %3980  ;;  %v2690_v11 = vadd.f32 1.0, %v3979_v14 }
 0x31b   : > { %3988 = vtanh.f32 %v2657_v57  ;;  %v2700_v6 = vadd.f32 1.0, %v3981_v24 }
 0x31c   : > { %3255 = vst [vmem:[%s4349_s19 + $0x38] sm:$0xff] %v3242_v55   ;;  %v2708_v59 = vmul.f32 %v2690_v11, %v2564_v58 }
 0x31d   : > { %v3983_v62 = vpop.eup %3982  ;;  %v2718_v63 = vmul.f32 %v2700_v6, %v2574_v4 }
 0x31e   : > { %v2691_v1 = vadd.f32 1.0, %v3983_v62 }
 0x31f   : > { %v3985_v8 = vpop.eup %3984 }
 0x320   : > { %v2709_v10 = vmul.f32 %v2691_v1, %v2565_v16  ;;  %v2701_v12 = vadd.f32 1.0, %v3985_v8 }
 0x322   : > { %v3222_v61 = vpack.c.bf16 %v2709_v10, %v2708_v59  ;;  %v2719_v13 = vmul.f32 %v2701_v12, %v2575_v23 }
 0x324   : > { %3251 = vst [vmem:[%s4349_s19 + $0x18] sm:$0xff] %v3222_v61   ;;  %v3987_v31 = vpop.eup %3986  ;;  %v3247_v38 = vpack.c.bf16 %v2719_v13, %v2718_v63 }
 0x325   : > { %v3989_v2 = vpop.eup %3988  ;;  %v2692_v43 = vadd.f32 1.0, %v3987_v31 }
 0x326   : > { %3256 = vst [vmem:[%s4349_s19 + $0x40] sm:$0xff] %v3247_v38   ;;  %v2693_v0 = vadd.f32 1.0, %v3989_v2 }
 0x327   : > { %v2710_v25 = vmul.f32 %v2692_v43, %v2566_v37 }
 0x328   : > { %v2711_v45 = vmul.f32 %v2693_v0, %v2567_v9 }
 0x32a   : > { %v3227_v15 = vpack.c.bf16 %v2711_v45, %v2710_v25 }
 0x32c   : > { %3252 = vst [vmem:[%s4349_s19 + $0x20] sm:$0xff] %v3227_v15  }
 0x32d PF: > { %s16_s27 = sadd.s32 1, %s4044_s27   ;;  %s4908_s21 = smov %s4024_s22 }
 0x32e   : > { %p13_p0 = scmp.ge.s32.totalorder %s16_s27, 8   ;;  %s4909_s22 = smov %s4137_s10 }
 0x32f   : > { %s4910_s23 = smov %s4036_s25  ;;  %s4911_s24 = smov %s4040_s26 }
 0x330   : > { %s4912_s25 = smov %s4915_s28  ;;  %s4913_s26 = smov %s4919_s29 }
 0x331   :  { %15 = sbr.rel (!%p13_p0) target bundleno = 4 (0x4), region = 125 }

// kernel: spatiotemporal_encoder.12
= control target key start
LH: loop header
LB: loop body
LE: loop exit
PB: predicated region body
PF: predicated region fallthrough
CT: control target
= control target key end

     0   :  { %s2680_s15 = smov 0   ;;  %s2682_s16 = smov 0   ;;  %s3090_s0 = inlined_call_operand.vmem [shape: bf16[2,40,3456], index: 0, kind: input, shape index: {}]   ;;  %s3091_s1 = inlined_call_operand.vmem [shape: bf16[3456,256], index: 1, kind: input, shape index: {}]   ;;  %s3092_s2 = inlined_call_operand.vmem [shape: f32[1,256], index: 2, kind: input, shape index: {}]   ;;  %s3093_s3 = inlined_call_operand.vmem [shape: f32[1,256], index: 3, kind: input, shape index: {}]   ;;  %s3094_s4 = inlined_call_operand.vmem [shape: bf16[2,40,256], index: 4, kind: output, shape index: {}]  }
   0x1   :  { %s2684_s17 = smov 0   ;;  %s2686_s18 = smov 0  }
   0x2   :  { %s2688_s19 = smov 0   ;;  %s2690_s20 = smov 0  }
   0x3   :  { %s2692_s21 = smov 0  }
   0x4 LB: > { %s26_s22 = sadd.s32 1, %s2643_s19  ;;  %s33_s23 = sadd.s32 1, %s2647_s20  ;;  %s2651_s21 = sphi %s2692_s21, %s14_s21   ;;  %s2647_s20 = sphi %s2690_s20, %s3100_s20   ;;  %s2643_s19 = sphi %s2688_s19, %s3099_s19   ;;  %s2639_s18 = sphi %s2686_s18, %s3098_s18   ;;  %s2635_s17 = sphi %s2684_s17, %s3097_s17   ;;  %s2631_s16 = sphi %s2682_s16, %s3096_s16   ;;  %s2627_s15 = sphi %s2680_s15, %s3095_s15  }
   0x5   : > { %p27_p0 = scmp.ge.s32.totalorder %s26_s22, 3  ;;  %p51_p1 = scmp.ne.s32.totalorder %s2631_s16, %s2627_s15 }
   0x6   : > { %p52_p2 = scmp.eq.s32.totalorder %s2651_s21, 0  ;;  %s44_s27 = sadd.s32 1, %s2631_s16 }
   0x7   : > { %s3102_s22 = smov (%p27_p0, %s26_s22), 0  ;;  %s3104_s23 = smov (!%p27_p0, %s33_s23), %s2647_s20 }
   0x8   : > { %p53_p3 = por %p52_p2, %p51_p1  ;;  %p35_p4 = scmp.ge.s32.totalorder %s3104_s23, 2 }
   0x9   : > { %s40_s24 = ssub.s32 %s2643_s19, %s3102_s22  ;;  %p2014_p6 = scmp.ge.s32.totalorder %s2651_s21, 6 }
   0xa   : > { %s3106_s23 = smov (%p35_p4, %s3104_s23), 0 }
   0xb   : > { %s37_s25 = ssub.s32 %s2647_s20, %s3106_s23  ;;  %179 = sbr.rel (%p2014_p6) target bundleno = 40 (0x28), region = 24 }
   0xc   : > { %s41_s26 = sor.u32 %s40_s24, %s37_s25 }
   0xd   : > { %p42_p5 = scmp.eq.s32.totalorder %s41_s26, 0 }
   0xf   : > { %s2731_s28 = scalar_select %p42_p5, %s2631_s16, %s44_s27  }
  0x12   : > { %182 = sbr.rel (!%p53_p3) target bundleno = 40 (0x28), region = 28  ;;  %s184_s29 = sand.u32 (%p53_p3), 1, %s2631_s16  }
  0x13   : > { %s188_s30 = smul.u32 (%p53_p3), 9, %s2643_s19 }
  0x14   : > { %s2264_s5 = smul.u32 (%p53_p3), 180, %s184_s29 }
  0x15   : > { %s2265_s6 = smul.u32 (%p53_p3), 135, %s2647_s20 }
  0x16   : > { %s2745_s12 = scalar_lea.vmem (%p53_p3), [#allocation3], %s2264_s5 }
  0x17   : > { %s192_s7 = sadd.s32 (%p53_p3), %s2265_s6, %s188_s30 }
  0x18   : > { %s2015_s8 = sshll.u32 (%p53_p3), %s192_s7, 2 }
  0x19   : > { %s2740_s11 = scalar_lea.vmem %s3090_s0, %s2015_s8 }
  0x1a   : > { %v209_v0 = vld [vmem:[%s2740_s11] sm:$0xff]  ;;  %v211_v1 = vld [vmem:[%s2740_s11 + $0x8] sm:$0xff]  ;;  %v213_v2 = vld [vmem:[%s2740_s11 + $0x10] sm:$0xff] }
  0x1b   : > { %210 = vst [vmem:[%s2745_s12] sm:$0xff] %v209_v0  ;;  %212 = vst [vmem:[%s2745_s12 + $0x8] sm:$0xff] %v211_v1  ;;  %v215_v3 = vld [vmem:[%s2740_s11 + $0x18] sm:$0xff]  ;;  %v217_v4 = vld [vmem:[%s2740_s11 + $0x6c] sm:$0xff] }
  0x1c   : > { %214 = vst [vmem:[%s2745_s12 + $0x10] sm:$0xff] %v213_v2  ;;  %v219_v5 = vld [vmem:[%s2740_s11 + $0x74] sm:$0xff]  ;;  %216 = vst [vmem:[%s2745_s12 + $0x18] sm:$0xff] %v215_v3  ;;  %v221_v6 = vld [vmem:[%s2740_s11 + $0x7c] sm:$0xff] }
  0x1d   : > { %218 = vst [vmem:[%s2745_s12 + $0x24] sm:$0xff] %v217_v4  ;;  %220 = vst [vmem:[%s2745_s12 + $0x2c] sm:$0xff] %v219_v5  ;;  %v223_v7 = vld [vmem:[%s2740_s11 + $0x84] sm:$0xff]  ;;  %v225_v8 = vld [vmem:[%s2740_s11 + $0xd8] sm:$0xff] }
  0x1e   : > { %222 = vst [vmem:[%s2745_s12 + $0x34] sm:$0xff] %v221_v6  ;;  %224 = vst [vmem:[%s2745_s12 + $0x3c] sm:$0xff] %v223_v7  ;;  %v227_v9 = vld [vmem:[%s2740_s11 + $0xe0] sm:$0xff]  ;;  %v229_v10 = vld [vmem:[%s2740_s11 + $0xe8] sm:$0xff] }
  0x1f   : > { %226 = vst [vmem:[%s2745_s12 + $0x48] sm:$0xff] %v225_v8  ;;  %v231_v11 = vld [vmem:[%s2740_s11 + $0xf0] sm:$0xff]  ;;  %228 = vst [vmem:[%s2745_s12 + $0x50] sm:$0xff] %v227_v9  ;;  %v233_v12 = vld [vmem:[%s2740_s11 + $0x144] sm:$0xff] }
  0x20   : > { %230 = vst [vmem:[%s2745_s12 + $0x58] sm:$0xff] %v229_v10  ;;  %232 = vst [vmem:[%s2745_s12 + $0x60] sm:$0xff] %v231_v11  ;;  %v235_v13 = vld [vmem:[%s2740_s11 + $0x14c] sm:$0xff]  ;;  %v237_v14 = vld [vmem:[%s2740_s11 + $0x154] sm:$0xff] }
  0x21   : > { %234 = vst [vmem:[%s2745_s12 + $0x6c] sm:$0xff] %v233_v12  ;;  %236 = vst [vmem:[%s2745_s12 + $0x74] sm:$0xff] %v235_v13  ;;  %v239_v15 = vld [vmem:[%s2740_s11 + $0x15c] sm:$0xff]  ;;  %v241_v16 = vld [vmem:[%s2740_s11 + $0x1b0] sm:$0xff] }
  0x22   : > { %238 = vst [vmem:[%s2745_s12 + $0x7c] sm:$0xff] %v237_v14  ;;  %v243_v17 = vld [vmem:[%s2740_s11 + $0x1b8] sm:$0xff]  ;;  %240 = vst [vmem:[%s2745_s12 + $0x84] sm:$0xff] %v239_v15  ;;  %v245_v18 = vld [vmem:[%s2740_s11 + $0x1c0] sm:$0xff] }
  0x23   : > { %242 = vst [vmem:[%s2745_s12 + $0x90] sm:$0xff] %v241_v16  ;;  %244 = vst [vmem:[%s2745_s12 + $0x98] sm:$0xff] %v243_v17  ;;  %v247_v19 = vld [vmem:[%s2740_s11 + $0x1c8] sm:$0xff]  ;;  %v2016_v20 = vld [vmem:[%s2740_s11 + $0x20] sm:$0xf] }
  0x24   : > { %246 = vst [vmem:[%s2745_s12 + $0xa0] sm:$0xff] %v245_v18  ;;  %248 = vst [vmem:[%s2745_s12 + $0xa8] sm:$0xff] %v247_v19  ;;  %v2018_v21 = vld [vmem:[%s2740_s11 + $0x8c] sm:$0xf]  ;;  %v2020_v22 = vld [vmem:[%s2740_s11 + $0xf8] sm:$0xf] }
  0x25   : > { %2017 = vst [vmem:[%s2745_s12 + $0x20] sm:$0xf] %v2016_v20  ;;  %v2022_v23 = vld [vmem:[%s2740_s11 + $0x164] sm:$0xf]  ;;  %2019 = vst [vmem:[%s2745_s12 + $0x44] sm:$0xf] %v2018_v21 }
  0x26   : > { %2021 = vst [vmem:[%s2745_s12 + $0x68] sm:$0xf] %v2020_v22  ;;  %2023 = vst [vmem:[%s2745_s12 + $0x8c] sm:$0xf] %v2022_v23  ;;  %v2024_v24 = vld [vmem:[%s2740_s11 + $0x1d0] sm:$0xf] }
  0x27   : > { %2025 = vst [vmem:[%s2745_s12 + $0xb0] sm:$0xf] %v2024_v24 }
  0x28 PF: > { %p2026_p7 = scmp.ge.s32.totalorder %s2651_s21, 1  ;;  %p280_p8 = scmp.lt.s32.totalorder %s2651_s21, 7 }
  0x2a   : > { %p281_p9 = pnand %p2026_p7, %p280_p8 }
  0x2b   : > { %s287_s13 = sand.u32 (!%p281_p9), 1, %s2627_s15   ;;  %s325_s14 = smul.u32 (!%p281_p9), 144, %s2635_s17 }
  0x2c   : > { %284 = sbr.rel (%p281_p9) target bundleno = 491 (0x1eb), region = 58  ;;  %p333_p10 = scmp.lt.s32.totalorder (!%p281_p9), %s2639_s18, 1 }
  0x2d   : > { %s2266_s24 = smul.u32 (!%p281_p9), 180, %s287_s13  ;;  %p326_p11 = scmp.lt.s32.totalorder (!%p281_p9), %s325_s14, 431 }
  0x2e   : > { %p2030_p12 = scmp.ne.s32.totalorder (!%p281_p9), %s2635_s17, 0 }
  0x2f   : > { %s2810_s8 = scalar_lea.vmem (!%p281_p9), [#allocation3], %s2266_s24 }
  0x33   : > { %s3108_s14 = smov (!%p326_p11, %s325_s14), 431  ;;  %s3110_s18 = smov (!%p333_p10, %s2639_s18), 1 }
  0x34   : > { %s2210_s25 = sshll.u32 %s3108_s14, 3  ;;  %s2267_s30 = smul.u32 40, %s3110_s18  ;;  %v2653_v25 = vmov (!%p2030_p12), 0.0  }
  0x35   : > { %s2803_s29 = scalar_lea.vmem %s3091_s1, %s2210_s25  ;;  %347 = sbr.rel (%p2030_p12) target bundleno = 60 (0x3c), region = 66  ;;  %348 = vst [vmem:[#allocation2] sm:$0xff] (!%p2030_p12), %v2653_v25  ;;  %349 = vst [vmem:[#allocation2 + $0x8] sm:$0xff] (!%p2030_p12), %v2653_v25 }
  0x36   : > { %s2808_s7 = scalar_lea.vmem %s3094_s4, %s2267_s30  ;;  %350 = vst [vmem:[#allocation2 + $0x10] sm:$0xff] (!%p2030_p12), %v2653_v25  ;;  %351 = vst [vmem:[#allocation2 + $0x18] sm:$0xff] (!%p2030_p12), %v2653_v25 }
  0x37   : > { %352 = vst [vmem:[#allocation2 + $0x20] sm:$0xff] (!%p2030_p12), %v2653_v25  ;;  %353 = vst [vmem:[#allocation2 + $0x28] sm:$0xff] (!%p2030_p12), %v2653_v25 }
  0x38   : > { %354 = vst [vmem:[#allocation2 + $0x30] sm:$0xff] (!%p2030_p12), %v2653_v25  ;;  %355 = vst [vmem:[#allocation2 + $0x38] sm:$0xff] (!%p2030_p12), %v2653_v25 }
  0x39   : > { %356 = vst [vmem:[#allocation2 + $0x40] sm:$0xff] (!%p2030_p12), %v2653_v25  ;;  %357 = vst [vmem:[#allocation2 + $0x48] sm:$0xff] (!%p2030_p12), %v2653_v25 }
  0x3c PF: > { %v2326_v26 = vld [vmem:[%s2803_s29 + $0x4] ss:$8 sps:$4 sm:$0xff]   ;;  %v2330_v28 = vld [vmem:[%s2803_s29] ss:$8 sps:$4 sm:$0xff]   ;;  %v2332_v30 = vld [vmem:[%s2803_s29 + $0x14] ss:$8 sps:$4 sm:$0xff]  }
  0x3d   : > { %v2328_v27 = vld [vmem:[%s2803_s29 + $0x204] ss:$8 sps:$4 sm:$0xff]   ;;  %1381 = vmatprep.subr.bf16.mxu1 %v2326_v26  ;;  %v2331_v29 = vld [vmem:[%s2803_s29 + $0x200] ss:$8 sps:$4 sm:$0xff]   ;;  %v2334_v31 = vld [vmem:[%s2803_s29 + $0x214] ss:$8 sps:$4 sm:$0xff]  }
  0x3e   : > { %1503 = vmatprep.subr.bf16.mxu0 %v2328_v27  ;;  %1382 = vmatpush1.bf16.msra.mxu1 %v2330_v28  ;;  %v2336_v32 = vld [vmem:[%s2803_s29 + $0x10] ss:$8 sps:$4 sm:$0xff]   ;;  %v2338_v34 = vld [vmem:[%s2803_s29 + $0x24] ss:$8 sps:$4 sm:$0xff]   ;;  %v2342_v36 = vld [vmem:[%s2803_s29 + $0x20] ss:$8 sps:$4 sm:$0xff]  }
  0x3f   : > { %1504 = vmatpush1.bf16.msra.mxu0 %v2331_v29  ;;  %1383 = vmatprep.subr.bf16.mxu1 %v2332_v30  ;;  %v2337_v33 = vld [vmem:[%s2803_s29 + $0x210] ss:$8 sps:$4 sm:$0xff]   ;;  %v2340_v35 = vld [vmem:[%s2803_s29 + $0x224] ss:$8 sps:$4 sm:$0xff]   ;;  %v2343_v37 = vld [vmem:[%s2803_s29 + $0x220] ss:$8 sps:$4 sm:$0xff]  }
  0x40   : > { %1505 = vmatprep.subr.bf16.mxu0 %v2334_v31  ;;  %v2344_v38 = vld [vmem:[%s2803_s29 + $0x34] ss:$8 sps:$4 sm:$0xff]   ;;  %v2348_v40 = vld [vmem:[%s2803_s29 + $0x30] ss:$8 sps:$4 sm:$0xff]   ;;  %v2350_v42 = vld [vmem:[%s2803_s29 + $0x44] ss:$8 sps:$4 sm:$0xff]  }
  0x41   : > { %v2346_v39 = vld [vmem:[%s2803_s29 + $0x234] ss:$8 sps:$4 sm:$0xff]   ;;  %v2349_v41 = vld [vmem:[%s2803_s29 + $0x230] ss:$8 sps:$4 sm:$0xff]   ;;  %v2352_v43 = vld [vmem:[%s2803_s29 + $0x244] ss:$8 sps:$4 sm:$0xff]  }
  0x42   : > { %1384 = vmatpush1.bf16.msra.mxu1 %v2336_v32  ;;  %v2354_v44 = vld [vmem:[%s2803_s29 + $0x40] ss:$8 sps:$4 sm:$0xff]   ;;  %v2356_v46 = vld [vmem:[%s2803_s29 + $0x54] ss:$8 sps:$4 sm:$0xff]   ;;  %v2360_v48 = vld [vmem:[%s2803_s29 + $0x50] ss:$8 sps:$4 sm:$0xff]  }
  0x43   : > { %1506 = vmatpush1.bf16.msra.mxu0 %v2337_v33  ;;  %1385 = vmatprep.subr.bf16.mxu1 %v2338_v34  ;;  %v2355_v45 = vld [vmem:[%s2803_s29 + $0x240] ss:$8 sps:$4 sm:$0xff]   ;;  %v2358_v47 = vld [vmem:[%s2803_s29 + $0x254] ss:$8 sps:$4 sm:$0xff]   ;;  %v2361_v49 = vld [vmem:[%s2803_s29 + $0x250] ss:$8 sps:$4 sm:$0xff]  }
  0x44   : > { %1507 = vmatprep.subr.bf16.mxu0 %v2340_v35  ;;  %v2362_v50 = vld [vmem:[%s2803_s29 + $0x64] ss:$8 sps:$4 sm:$0xff]   ;;  %v2366_v52 = vld [vmem:[%s2803_s29 + $0x60] ss:$8 sps:$4 sm:$0xff]   ;;  %v2368_v54 = vld [vmem:[%s2803_s29 + $0x74] ss:$8 sps:$4 sm:$0xff]  }
  0x45   : > { %v2364_v51 = vld [vmem:[%s2803_s29 + $0x264] ss:$8 sps:$4 sm:$0xff]   ;;  %v2367_v53 = vld [vmem:[%s2803_s29 + $0x260] ss:$8 sps:$4 sm:$0xff]   ;;  %v2370_v55 = vld [vmem:[%s2803_s29 + $0x274] ss:$8 sps:$4 sm:$0xff]  }
  0x46   : > { %1386 = vmatpush1.bf16.msra.mxu1 %v2342_v36  ;;  %v2372_v56 = vld [vmem:[%s2803_s29 + $0x70] ss:$8 sps:$4 sm:$0xff]   ;;  %v2374_v58 = vld [vmem:[%s2803_s29 + $0x84] ss:$8 sps:$4 sm:$0xff]   ;;  %v2378_v60 = vld [vmem:[%s2803_s29 + $0x80] ss:$8 sps:$4 sm:$0xff]  }
  0x47   : > { %1508 = vmatpush1.bf16.msra.mxu0 %v2343_v37  ;;  %1387 = vmatprep.subr.bf16.mxu1 %v2344_v38  ;;  %v2373_v57 = vld [vmem:[%s2803_s29 + $0x270] ss:$8 sps:$4 sm:$0xff]   ;;  %v2376_v59 = vld [vmem:[%s2803_s29 + $0x284] ss:$8 sps:$4 sm:$0xff]   ;;  %v2379_v61 = vld [vmem:[%s2803_s29 + $0x280] ss:$8 sps:$4 sm:$0xff]  }
  0x48   : > { %1509 = vmatprep.subr.bf16.mxu0 %v2346_v39  ;;  %v2380_v62 = vld [vmem:[%s2803_s29 + $0x94] ss:$8 sps:$4 sm:$0xff]   ;;  %v2384_v0 = vld [vmem:[%s2803_s29 + $0x90] ss:$8 sps:$4 sm:$0xff]   ;;  %v2386_v2 = vld [vmem:[%s2803_s29 + $0xa4] ss:$8 sps:$4 sm:$0xff]  }
  0x49   : > { %v2382_v63 = vld [vmem:[%s2803_s29 + $0x294] ss:$8 sps:$4 sm:$0xff]   ;;  %v2385_v1 = vld [vmem:[%s2803_s29 + $0x290] ss:$8 sps:$4 sm:$0xff]   ;;  %v2388_v3 = vld [vmem:[%s2803_s29 + $0x2a4] ss:$8 sps:$4 sm:$0xff]  }
  0x4a   : > { %1388 = vmatpush1.bf16.msra.mxu1 %v2348_v40  ;;  %v2390_v4 = vld [vmem:[%s2803_s29 + $0xa0] ss:$8 sps:$4 sm:$0xff]   ;;  %v2392_v6 = vld [vmem:[%s2803_s29 + $0xb4] ss:$8 sps:$4 sm:$0xff]   ;;  %v2396_v8 = vld [vmem:[%s2803_s29 + $0xb0] ss:$8 sps:$4 sm:$0xff]  }
  0x4b   : > { %1510 = vmatpush1.bf16.msra.mxu0 %v2349_v41  ;;  %1389 = vmatprep.subr.bf16.mxu1 %v2350_v42  ;;  %v2391_v5 = vld [vmem:[%s2803_s29 + $0x2a0] ss:$8 sps:$4 sm:$0xff]   ;;  %v2394_v7 = vld [vmem:[%s2803_s29 + $0x2b4] ss:$8 sps:$4 sm:$0xff]   ;;  %v2397_v9 = vld [vmem:[%s2803_s29 + $0x2b0] ss:$8 sps:$4 sm:$0xff]  }
  0x4c   : > { %1511 = vmatprep.subr.bf16.mxu0 %v2352_v43  ;;  %v2424_v10 = vld [vmem:[%s2810_s8 + $0x4] ss:$36 sps:$4 sm:$0xff]   ;;  %v2430_v13 = vld [vmem:[%s2810_s8 + $0x14] ss:$36 sps:$4 sm:$0xff]   ;;  %p2202_p13 = scmp.ne.s32.totalorder %s2635_s17, 2 }
  0x4d   : > { %v2398_v11 = vld [vmem:[%s2803_s29 + $0xc4] ss:$8 sps:$4 sm:$0xff]   ;;  %1413 = vmatprep.mubr.bf16.mxu1 %v2424_v10  ;;  %v2402_v14 = vld [vmem:[%s2803_s29 + $0xc0] ss:$8 sps:$4 sm:$0xff]   ;;  %v2404_v16 = vld [vmem:[%s2803_s29 + $0xd4] ss:$8 sps:$4 sm:$0xff]   ;;  %1535 = vmatprep.mubr.bf16.mxu0 %v2430_v13 }
  0x4e   : > { %1390 = vmatpush1.bf16.msra.mxu1 %v2354_v44  ;;  %v2400_v12 = vld [vmem:[%s2803_s29 + $0x2c4] ss:$8 sps:$4 sm:$0xff]   ;;  %v2403_v15 = vld [vmem:[%s2803_s29 + $0x2c0] ss:$8 sps:$4 sm:$0xff]   ;;  %v2406_v17 = vld [vmem:[%s2803_s29 + $0x2d4] ss:$8 sps:$4 sm:$0xff]  }
  0x4f   : > { %1512 = vmatpush1.bf16.msra.mxu0 %v2355_v45  ;;  %1391 = vmatprep.subr.bf16.mxu1 %v2356_v46  ;;  %v2408_v18 = vld [vmem:[%s2803_s29 + $0xd0] ss:$8 sps:$4 sm:$0xff]   ;;  %v2410_v20 = vld [vmem:[%s2803_s29 + $0xe4] ss:$8 sps:$4 sm:$0xff]   ;;  %v2414_v22 = vld [vmem:[%s2803_s29 + $0xe0] ss:$8 sps:$4 sm:$0xff]  }
  0x50   : > { %1513 = vmatprep.subr.bf16.mxu0 %v2358_v47  ;;  %v2409_v19 = vld [vmem:[%s2803_s29 + $0x2d0] ss:$8 sps:$4 sm:$0xff]   ;;  %v2412_v21 = vld [vmem:[%s2803_s29 + $0x2e4] ss:$8 sps:$4 sm:$0xff]   ;;  %v2415_v23 = vld [vmem:[%s2803_s29 + $0x2e0] ss:$8 sps:$4 sm:$0xff]  }
  0x51   : > { %v2416_v24 = vld [vmem:[%s2803_s29 + $0xf4] ss:$8 sps:$4 sm:$0xff]   ;;  %v2420_v26 = vld [vmem:[%s2803_s29 + $0xf0] ss:$8 sps:$4 sm:$0xff]   ;;  %v2427_v28 = vld [vmem:[%s2803_s29 + $0x104] ss:$8 sps:$4 sm:$0xff]  }
  0x52   : > { %1392 = vmatpush1.bf16.msra.mxu1 %v2360_v48  ;;  %v2418_v25 = vld [vmem:[%s2803_s29 + $0x2f4] ss:$8 sps:$4 sm:$0xff]   ;;  %v2421_v27 = vld [vmem:[%s2803_s29 + $0x2f0] ss:$8 sps:$4 sm:$0xff]   ;;  %v2433_v29 = vld [vmem:[%s2803_s29 + $0x304] ss:$8 sps:$4 sm:$0xff]  }
  0x53   : > { %1514 = vmatpush1.bf16.msra.mxu0 %v2361_v49  ;;  %1393 = vmatprep.subr.bf16.mxu1 %v2362_v50  ;;  %v2422_v30 = vld [vmem:[%s2810_s8] ss:$36 sps:$4 sm:$0xff]   ;;  %v2428_v32 = vld [vmem:[%s2810_s8 + $0x10] ss:$36 sps:$4 sm:$0xff]  }
  0x54   : > { %1515 = vmatprep.subr.bf16.mxu0 %v2364_v51  ;;  %v2425_v31 = vld [vmem:[%s2803_s29 + $0x100] ss:$8 sps:$4 sm:$0xff]   ;;  %v2436_v34 = vld [vmem:[%s2803_s29 + $0x114] ss:$8 sps:$4 sm:$0xff]   ;;  %v2434_v36 = vld [vmem:[%s2803_s29 + $0x110] ss:$8 sps:$4 sm:$0xff]  }
  0x55   : > { %v2431_v33 = vld [vmem:[%s2803_s29 + $0x300] ss:$8 sps:$4 sm:$0xff]   ;;  %v2439_v35 = vld [vmem:[%s2803_s29 + $0x314] ss:$8 sps:$4 sm:$0xff]   ;;  %v2437_v37 = vld [vmem:[%s2803_s29 + $0x310] ss:$8 sps:$4 sm:$0xff]  }
  0x56   : > { %1394 = vmatpush1.bf16.msra.mxu1 %v2366_v52  ;;  %v2442_v38 = vld [vmem:[%s2803_s29 + $0x124] ss:$8 sps:$4 sm:$0xff]   ;;  %v2440_v40 = vld [vmem:[%s2803_s29 + $0x120] ss:$8 sps:$4 sm:$0xff]   ;;  %v2448_v42 = vld [vmem:[%s2803_s29 + $0x134] ss:$8 sps:$4 sm:$0xff]  }
  0x57   : > { %1516 = vmatpush1.bf16.msra.mxu0 %v2367_v53  ;;  %1395 = vmatprep.subr.bf16.mxu1 %v2368_v54  ;;  %v2445_v39 = vld [vmem:[%s2803_s29 + $0x324] ss:$8 sps:$4 sm:$0xff]   ;;  %v2443_v41 = vld [vmem:[%s2803_s29 + $0x320] ss:$8 sps:$4 sm:$0xff]   ;;  %v2451_v43 = vld [vmem:[%s2803_s29 + $0x334] ss:$8 sps:$4 sm:$0xff]  }
  0x58   : > { %1517 = vmatprep.subr.bf16.mxu0 %v2370_v55  ;;  %v2446_v44 = vld [vmem:[%s2803_s29 + $0x130] ss:$8 sps:$4 sm:$0xff]   ;;  %v2454_v46 = vld [vmem:[%s2803_s29 + $0x144] ss:$8 sps:$4 sm:$0xff]   ;;  %v2452_v48 = vld [vmem:[%s2803_s29 + $0x140] ss:$8 sps:$4 sm:$0xff]  }
  0x59   : > { %v2449_v45 = vld [vmem:[%s2803_s29 + $0x330] ss:$8 sps:$4 sm:$0xff]   ;;  %v2457_v47 = vld [vmem:[%s2803_s29 + $0x344] ss:$8 sps:$4 sm:$0xff]   ;;  %v2455_v49 = vld [vmem:[%s2803_s29 + $0x340] ss:$8 sps:$4 sm:$0xff]  }
  0x5a   : > { %1396 = vmatpush1.bf16.msra.mxu1 %v2372_v56  ;;  %v2500_v50 = vld [vmem:[%s2810_s8 + $0x4c] ss:$36 sps:$4 sm:$0xff]   ;;  %v2503_v52 = vld [vmem:[%s2810_s8 + $0x5c] ss:$36 sps:$4 sm:$0xff]  }
  0x5b   : > { %1518 = vmatpush1.bf16.msra.mxu0 %v2373_v57  ;;  %1397 = vmatprep.subr.bf16.mxu1 %v2374_v58  ;;  %v2502_v51 = vld [vmem:[%s2810_s8 + $0x48] ss:$36 sps:$4 sm:$0xff]   ;;  %v2508_v55 = vld [vmem:[%s2810_s8 + $0x58] ss:$36 sps:$4 sm:$0xff]  }
  0x5c   : > { %1519 = vmatprep.subr.bf16.mxu0 %v2376_v59  ;;  %v2460_v53 = vld [vmem:[%s2803_s29 + $0x154] ss:$8 sps:$4 sm:$0xff]   ;;  %v2458_v56 = vld [vmem:[%s2803_s29 + $0x150] ss:$8 sps:$4 sm:$0xff]   ;;  %v2466_v58 = vld [vmem:[%s2803_s29 + $0x164] ss:$8 sps:$4 sm:$0xff]  }
  0x5d   : > { %v2463_v54 = vld [vmem:[%s2803_s29 + $0x354] ss:$8 sps:$4 sm:$0xff]   ;;  %v2461_v57 = vld [vmem:[%s2803_s29 + $0x350] ss:$8 sps:$4 sm:$0xff]   ;;  %v2469_v59 = vld [vmem:[%s2803_s29 + $0x364] ss:$8 sps:$4 sm:$0xff]  }
  0x5e   : > { %1398 = vmatpush1.bf16.msra.mxu1 %v2378_v60  ;;  %v388_v60 = vld [vmem:[%s2810_s8 + $0x90] sm:$0xff] }
  0x5f   : > { %1520 = vmatpush1.bf16.msra.mxu0 %v2379_v61  ;;  %1399 = vmatprep.subr.bf16.mxu1 %v2380_v62  ;;  %v390_v61 = vld [vmem:[%s2810_s8 + $0xa0] sm:$0xff]  ;;  %v2050_v62 = vcombine.high %v388_v60, %v388_v60 }
  0x60   : > { %1521 = vmatprep.subr.bf16.mxu0 %v2382_v63  ;;  %v2054_v63 = vcombine.high %v390_v61, %v390_v61  ;;  %v2481_v10 = vld [vmem:[%s2803_s29 + $0x384] ss:$8 sps:$4 sm:$0xff]   ;;  %v2479_v13 = vld [vmem:[%s2803_s29 + $0x380] ss:$8 sps:$4 sm:$0xff]  }
  0x62   : > { %1400 = vmatpush1.bf16.msra.mxu1 %v2384_v0  ;;  %v2049_v0 = vcombine.low %v388_v60, %v388_v60  ;;  %v2562_v60 = vld [vmem:[%s2803_s29 + $0x444] ss:$8 sps:$4 sm:$0xff]  }
  0x63   : > { %1522 = vmatpush1.bf16.msra.mxu0 %v2385_v1  ;;  %1401 = vmatprep.subr.bf16.mxu1 %v2386_v2  ;;  %v2053_v1 = vcombine.low %v390_v61, %v390_v61  ;;  %v2464_v2 = vld [vmem:[%s2803_s29 + $0x160] ss:$8 sps:$4 sm:$0xff]  }
  0x64   : > { %1523 = vmatprep.subr.bf16.mxu0 %v2388_v3  ;;  %v2467_v3 = vld [vmem:[%s2803_s29 + $0x360] ss:$8 sps:$4 sm:$0xff]  }
  0x66   : > { %1402 = vmatpush1.bf16.msra.mxu1 %v2390_v4  ;;  %v2472_v4 = vld [vmem:[%s2803_s29 + $0x174] ss:$8 sps:$4 sm:$0xff]  }
  0x67   : > { %1524 = vmatpush1.bf16.msra.mxu0 %v2391_v5  ;;  %1403 = vmatprep.subr.bf16.mxu1 %v2392_v6  ;;  %v2475_v5 = vld [vmem:[%s2803_s29 + $0x374] ss:$8 sps:$4 sm:$0xff]   ;;  %v2470_v6 = vld [vmem:[%s2803_s29 + $0x170] ss:$8 sps:$4 sm:$0xff]  }
  0x68   : > { %1525 = vmatprep.subr.bf16.mxu0 %v2394_v7  ;;  %v2473_v7 = vld [vmem:[%s2803_s29 + $0x370] ss:$8 sps:$4 sm:$0xff]  }
  0x6a   : > { %1404 = vmatpush1.bf16.msra.mxu1 %v2396_v8  ;;  %v2478_v8 = vld [vmem:[%s2803_s29 + $0x184] ss:$8 sps:$4 sm:$0xff]  }
  0x6b   : > { %1526 = vmatpush1.bf16.msra.mxu0 %v2397_v9  ;;  %1405 = vmatprep.subr.bf16.mxu1 %v2398_v11  ;;  %v2536_v9 = vld [vmem:[%s2810_s8 + $0xc] ss:$36 sps:$4 sm:$0xff]   ;;  %v2539_v11 = vld [vmem:[%s2810_s8 + $0x1c] ss:$36 sps:$4 sm:$0xff]  }
  0x6c   : > { %1527 = vmatprep.subr.bf16.mxu0 %v2400_v12  ;;  %v2476_v12 = vld [vmem:[%s2803_s29 + $0x180] ss:$8 sps:$4 sm:$0xff]  }
  0x6e   : > { %1406 = vmatpush1.bf16.msra.mxu1 %v2402_v14  ;;  %v2484_v14 = vld [vmem:[%s2803_s29 + $0x194] ss:$8 sps:$4 sm:$0xff]  }
  0x6f   : > { %1528 = vmatpush1.bf16.msra.mxu0 %v2403_v15  ;;  %1407 = vmatprep.subr.bf16.mxu1 %v2404_v16  ;;  %v2487_v15 = vld [vmem:[%s2803_s29 + $0x394] ss:$8 sps:$4 sm:$0xff]   ;;  %v2482_v16 = vld [vmem:[%s2803_s29 + $0x190] ss:$8 sps:$4 sm:$0xff]  }
  0x70   : > { %1529 = vmatprep.subr.bf16.mxu0 %v2406_v17  ;;  %v2485_v17 = vld [vmem:[%s2803_s29 + $0x390] ss:$8 sps:$4 sm:$0xff]  }
  0x72   : > { %1408 = vmatpush1.bf16.msra.mxu1 %v2408_v18  ;;  %v2490_v18 = vld [vmem:[%s2803_s29 + $0x1a4] ss:$8 sps:$4 sm:$0xff]  }
  0x73   : > { %1530 = vmatpush1.bf16.msra.mxu0 %v2409_v19  ;;  %1409 = vmatprep.subr.bf16.mxu1 %v2410_v20  ;;  %v2493_v19 = vld [vmem:[%s2803_s29 + $0x3a4] ss:$8 sps:$4 sm:$0xff]   ;;  %v2488_v20 = vld [vmem:[%s2803_s29 + $0x1a0] ss:$8 sps:$4 sm:$0xff]  }
  0x74   : > { %1531 = vmatprep.subr.bf16.mxu0 %v2412_v21  ;;  %v2491_v21 = vld [vmem:[%s2803_s29 + $0x3a0] ss:$8 sps:$4 sm:$0xff]  }
  0x76   : > { %1410 = vmatpush1.bf16.msra.mxu1 %v2414_v22  ;;  %v2496_v22 = vld [vmem:[%s2803_s29 + $0x1b4] ss:$8 sps:$4 sm:$0xff]  }
  0x77   : > { %1532 = vmatpush1.bf16.msra.mxu0 %v2415_v23  ;;  %1411 = vmatprep.subr.bf16.mxu1 %v2416_v24  ;;  %v2499_v23 = vld [vmem:[%s2803_s29 + $0x3b4] ss:$8 sps:$4 sm:$0xff]   ;;  %v2494_v24 = vld [vmem:[%s2803_s29 + $0x1b0] ss:$8 sps:$4 sm:$0xff]  }
  0x78   : > { %1533 = vmatprep.subr.bf16.mxu0 %v2418_v25  ;;  %v2497_v25 = vld [vmem:[%s2803_s29 + $0x3b0] ss:$8 sps:$4 sm:$0xff]  }
  0x7a   : > { %1412 = vmatpush1.bf16.msra.mxu1 %v2420_v26  ;;  %v2507_v26 = vld [vmem:[%s2803_s29 + $0x1c4] ss:$8 sps:$4 sm:$0xff]  }
  0x7b   : > { %1534 = vmatpush1.bf16.msra.mxu0 %v2421_v27  ;;  %1442 = vmatprep.subr.bf16.mxu1 %v2427_v28  ;;  %v2511_v27 = vld [vmem:[%s2803_s29 + $0x3c4] ss:$8 sps:$4 sm:$0xff]   ;;  %v2505_v28 = vld [vmem:[%s2803_s29 + $0x1c0] ss:$8 sps:$4 sm:$0xff]  }
  0x7c   : > { %1564 = vmatprep.subr.bf16.mxu0 %v2433_v29  ;;  %v2509_v29 = vld [vmem:[%s2803_s29 + $0x3c0] ss:$8 sps:$4 sm:$0xff]  }
  0x7d   : > { %1414 = vmatmul.mubr.bf16.vlgmr.msra.gmra.mrb[0].mxu1 %v2422_v30  ;;  %v2514_v30 = vld [vmem:[%s2803_s29 + $0x1d4] ss:$8 sps:$4 sm:$0xff]  }
  0x7e   : > { %1536 = vmatmul.mubr.bf16.vlgmr.msra.gmra.mrb[0].mxu0 %v2428_v32  ;;  %1443 = vmatpush1.bf16.msra.mxu1 %v2425_v31  ;;  %v2517_v31 = vld [vmem:[%s2803_s29 + $0x3d4] ss:$8 sps:$4 sm:$0xff]   ;;  %v2512_v32 = vld [vmem:[%s2803_s29 + $0x1d0] ss:$8 sps:$4 sm:$0xff]  }
  0x7f   : > { %1565 = vmatpush1.bf16.msra.mxu0 %v2431_v33  ;;  %1444 = vmatprep.subr.bf16.mxu1 %v2436_v34  ;;  %v2515_v33 = vld [vmem:[%s2803_s29 + $0x3d0] ss:$8 sps:$4 sm:$0xff]   ;;  %v2523_v34 = vld [vmem:[%s2803_s29 + $0x1e4] ss:$8 sps:$4 sm:$0xff]  }
  0x80   : > { %1566 = vmatprep.subr.bf16.mxu0 %v2439_v35  ;;  %1423 = vmatprep.mubr.bf16.mxu1 %v2500_v50  ;;  %v2527_v35 = vld [vmem:[%s2803_s29 + $0x3e4] ss:$8 sps:$4 sm:$0xff]  }
  0x81   : > { %1545 = vmatprep.mubr.bf16.mxu0 %v2503_v52  ;;  %v2554_v50 = vld [vmem:[%s2803_s29 + $0x424] ss:$8 sps:$4 sm:$0xff]  }
  0x82   : > { %1445 = vmatpush1.bf16.msra.mxu1 %v2434_v36  ;;  %v2521_v36 = vld [vmem:[%s2803_s29 + $0x1e0] ss:$8 sps:$4 sm:$0xff]  }
  0x83   : > { %1567 = vmatpush1.bf16.msra.mxu0 %v2437_v37  ;;  %1446 = vmatprep.subr.bf16.mxu1 %v2442_v38  ;;  %v2525_v37 = vld [vmem:[%s2803_s29 + $0x3e0] ss:$8 sps:$4 sm:$0xff]   ;;  %v2530_v38 = vld [vmem:[%s2803_s29 + $0x1f4] ss:$8 sps:$4 sm:$0xff]  }
  0x84   : > { %1568 = vmatprep.subr.bf16.mxu0 %v2445_v39  ;;  %v2533_v39 = vld [vmem:[%s2803_s29 + $0x3f4] ss:$8 sps:$4 sm:$0xff]  }
  0x85   : > { %1424 = vmatmul.mubr.bf16.gmra.mrb[4].mxu1 %v2502_v51  ;;  %v2550_v51 = vld [vmem:[%s2810_s8 + $0x50] ss:$36 sps:$4 sm:$0xff]   ;;  %v2551_v52 = vld [vmem:[%s2810_s8 + $0x60] ss:$36 sps:$4 sm:$0xff]  }
  0x86   : > { %1447 = vmatpush1.bf16.msra.mxu1 %v2440_v40  ;;  %1546 = vmatmul.mubr.bf16.gmra.mrb[4].mxu0 %v2508_v55  ;;  %v2528_v40 = vld [vmem:[%s2803_s29 + $0x1f0] ss:$8 sps:$4 sm:$0xff]   ;;  %v2552_v55 = vld [vmem:[%s2803_s29 + $0x420] ss:$8 sps:$4 sm:$0xff]  }
  0x87   : > { %1569 = vmatpush1.bf16.msra.mxu0 %v2443_v41  ;;  %1448 = vmatprep.subr.bf16.mxu1 %v2448_v42  ;;  %v2531_v41 = vld [vmem:[%s2803_s29 + $0x3f0] ss:$8 sps:$4 sm:$0xff]   ;;  %v2542_v42 = vld [vmem:[%s2803_s29 + $0x404] ss:$8 sps:$4 sm:$0xff]  }
  0x88   : > { %1570 = vmatprep.subr.bf16.mxu0 %v2451_v43  ;;  %1433 = vmatprep.mubr.bf16.mxu1 %v2050_v62  ;;  %v2534_v43 = vld [vmem:[%s2810_s8 + $0x8] ss:$36 sps:$4 sm:$0xff]  }
  0x89   : > { %1555 = vmatprep.mubr.bf16.mxu0 %v2054_v63  ;;  %v2560_v63 = vld [vmem:[%s2803_s29 + $0x440] ss:$8 sps:$4 sm:$0xff]  }
  0x8a   : > { %1449 = vmatpush1.bf16.msra.mxu1 %v2446_v44  ;;  %v2537_v44 = vld [vmem:[%s2810_s8 + $0x18] ss:$36 sps:$4 sm:$0xff]  }
  0x8b   : > { %1571 = vmatpush1.bf16.msra.mxu0 %v2449_v45  ;;  %1450 = vmatprep.subr.bf16.mxu1 %v2454_v46  ;;  %v2540_v45 = vld [vmem:[%s2803_s29 + $0x400] ss:$8 sps:$4 sm:$0xff]   ;;  %v2545_v46 = vld [vmem:[%s2803_s29 + $0x414] ss:$8 sps:$4 sm:$0xff]  }
  0x8c   : > { %1572 = vmatprep.subr.bf16.mxu0 %v2457_v47  ;;  %v2546_v47 = vld [vmem:[%s2810_s8 + $0x54] ss:$36 sps:$4 sm:$0xff]  }
  0x8d   : > { %1434 = vmatmul.mubr.bf16.gmra.mrb[8].mxu1 %v2049_v0  ;;  %v2567_v0 = vld [vmem:[%s2803_s29 + $0x454] ss:$8 sps:$4 sm:$0xff]  }
  0x8e   : > { %1451 = vmatpush1.bf16.msra.mxu1 %v2452_v48  ;;  %1556 = vmatmul.mubr.bf16.gmra.mrb[8].mxu0 %v2053_v1  ;;  %v2548_v48 = vld [vmem:[%s2810_s8 + $0x64] ss:$36 sps:$4 sm:$0xff]  }
  0x8f   : > { %1573 = vmatpush1.bf16.msra.mxu0 %v2455_v49  ;;  %1452 = vmatprep.subr.bf16.mxu1 %v2460_v53  ;;  %v2543_v49 = vld [vmem:[%s2803_s29 + $0x410] ss:$8 sps:$4 sm:$0xff]   ;;  %v389_v53 = vld [vmem:[%s2810_s8 + $0x98] sm:$0xff] }
  0x90   : > { %1574 = vmatprep.subr.bf16.mxu0 %v2463_v54  ;;  %1474 = vmatprep.mubr.bf16.mxu1 %v2536_v9  ;;  %v391_v54 = vld [vmem:[%s2810_s8 + $0xa8] sm:$0xff]  ;;  %v2051_v61 = vcombine.low %v389_v53, %v389_v53  ;;  %v2576_v9 = vld [vmem:[%s2810_s8 + $0xb0] ss:$0 sps:$4 sm:$0xff]  }
  0x91   : > { %1596 = vmatprep.mubr.bf16.mxu0 %v2539_v11  ;;  %v2055_v62 = vcombine.low %v391_v54, %v391_v54  ;;  %v2565_v1 = vld [vmem:[%s2803_s29 + $0x450] ss:$8 sps:$4 sm:$0xff]  }
  0x92   : > { %1453 = vmatpush1.bf16.msra.mxu1 %v2458_v56  ;;  %v2557_v56 = vld [vmem:[%s2803_s29 + $0x434] ss:$8 sps:$4 sm:$0xff]  }
  0x93   : > { %1575 = vmatpush1.bf16.msra.mxu0 %v2461_v57  ;;  %1454 = vmatprep.subr.bf16.mxu1 %v2466_v58  ;;  %v2052_v57 = vcombine.high %v389_v53, %v389_v53  ;;  %v2056_v58 = vcombine.high %v391_v54, %v391_v54  ;;  %v359_v54 = vld [vmem:[#allocation2 + $0x8] sm:$0xff] }
  0x94   : > { %1576 = vmatprep.subr.bf16.mxu0 %v2469_v59  ;;  %v2555_v59 = vld [vmem:[%s2803_s29 + $0x430] ss:$8 sps:$4 sm:$0xff]  }
  0x96   : > { %1455 = vmatpush1.bf16.msra.mxu1 %v2464_v2  ;;  %v2570_v2 = vld [vmem:[%s2803_s29 + $0x464] ss:$8 sps:$4 sm:$0xff]  }
  0x97   : > { %1577 = vmatpush1.bf16.msra.mxu0 %v2467_v3  ;;  %1456 = vmatprep.subr.bf16.mxu1 %v2472_v4  ;;  %v2654_v3 = vmov 0   ;;  %v2568_v4 = vld [vmem:[%s2803_s29 + $0x460] ss:$8 sps:$4 sm:$0xff]  }
  0x98   : > { %1578 = vmatprep.subr.bf16.mxu0 %v2475_v5  ;;  %v2573_v5 = vld [vmem:[%s2803_s29 + $0x474] ss:$8 sps:$4 sm:$0xff]  }
  0x9a   : > { %1457 = vmatpush1.bf16.msra.mxu1 %v2470_v6  ;;  %v2571_v6 = vld [vmem:[%s2803_s29 + $0x470] ss:$8 sps:$4 sm:$0xff]  }
  0x9b   : > { %1579 = vmatpush1.bf16.msra.mxu0 %v2473_v7  ;;  %1458 = vmatprep.subr.bf16.mxu1 %v2478_v8  ;;  %v2574_v7 = vld [vmem:[%s2810_s8 + $0x20] ss:$36 sps:$4 sm:$0xff]   ;;  %v2575_v8 = vld [vmem:[%s2810_s8 + $0x68] ss:$36 sps:$4 sm:$0xff]  }
  0x9c   : > { %1580 = vmatprep.subr.bf16.mxu0 %v2481_v10 }
  0x9e   : > { %1459 = vmatpush1.bf16.msra.mxu1 %v2476_v12 }
  0x9f   : > { %1581 = vmatpush1.bf16.msra.mxu0 %v2479_v13  ;;  %1460 = vmatprep.subr.bf16.mxu1 %v2484_v14 }
  0xa0   : > { %1582 = vmatprep.subr.bf16.mxu0 %v2487_v15 }
  0xa2   : > { %1461 = vmatpush1.bf16.msra.mxu1 %v2482_v16 }
  0xa3   : > { %1583 = vmatpush1.bf16.msra.mxu0 %v2485_v17  ;;  %1462 = vmatprep.subr.bf16.mxu1 %v2490_v18 }
  0xa4   : > { %1584 = vmatprep.subr.bf16.mxu0 %v2493_v19 }
  0xa6   : > { %1463 = vmatpush1.bf16.msra.mxu1 %v2488_v20 }
  0xa7   : > { %1585 = vmatpush1.bf16.msra.mxu0 %v2491_v21  ;;  %1464 = vmatprep.subr.bf16.mxu1 %v2496_v22 }
  0xa8   : > { %1586 = vmatprep.subr.bf16.mxu0 %v2499_v23 }
  0xaa   : > { %1465 = vmatpush1.bf16.msra.mxu1 %v2494_v24 }
  0xab   : > { %1587 = vmatpush1.bf16.msra.mxu0 %v2497_v25  ;;  %1466 = vmatprep.subr.bf16.mxu1 %v2507_v26 }
  0xac   : > { %1588 = vmatprep.subr.bf16.mxu0 %v2511_v27 }
  0xae   : > { %1467 = vmatpush1.bf16.msra.mxu1 %v2505_v28 }
  0xaf   : > { %1589 = vmatpush1.bf16.msra.mxu0 %v2509_v29  ;;  %1468 = vmatprep.subr.bf16.mxu1 %v2514_v30 }
  0xb0   : > { %1590 = vmatprep.subr.bf16.mxu0 %v2517_v31 }
  0xb2   : > { %1469 = vmatpush1.bf16.msra.mxu1 %v2512_v32 }
  0xb3   : > { %1591 = vmatpush1.bf16.msra.mxu0 %v2515_v33  ;;  %1470 = vmatprep.subr.bf16.mxu1 %v2523_v34 }
  0xb4   : > { %1592 = vmatprep.subr.bf16.mxu0 %v2527_v35 }
  0xb6   : > { %1471 = vmatpush1.bf16.msra.mxu1 %v2521_v36 }
  0xb7   : > { %1593 = vmatpush1.bf16.msra.mxu0 %v2525_v37  ;;  %1472 = vmatprep.subr.bf16.mxu1 %v2530_v38 }
  0xb8   : > { %1594 = vmatprep.subr.bf16.mxu0 %v2533_v39 }
  0xba   : > { %1473 = vmatpush1.bf16.msra.mxu1 %v2528_v40 }
  0xbb   : > { %1595 = vmatpush1.bf16.msra.mxu0 %v2531_v41  ;;  %2216 = vmatprep.subr.bf16.mxu1 %v2542_v42 }
  0xbc   : > { %1625 = vmatprep.subr.bf16.mxu0 %v2542_v42 }
  0xbd   : > { %1475 = vmatmul.mubr.bf16.vlgmr.msra.gmra.mrb[0].mxu1 %v2534_v43 }
  0xbe   : > { %1597 = vmatmul.mubr.bf16.vlgmr.msra.gmra.mrb[0].mxu0 %v2537_v44  ;;  %2224 = vmatpush1.bf16.msra.mxu1 %v2540_v45 }
  0xbf   : > { %1626 = vmatpush1.bf16.msra.mxu0 %v2540_v45  ;;  %2217 = vmatprep.subr.bf16.mxu1 %v2545_v46 }
  0xc0   : > { %1627 = vmatprep.subr.bf16.mxu0 %v2545_v46  ;;  %1484 = vmatprep.mubr.bf16.mxu1 %v2546_v47 }
  0xc1   : > { %1606 = vmatprep.mubr.bf16.mxu0 %v2548_v48  ;;  %v358_v48 = vld [vmem:[#allocation2] sm:$0xff] }
  0xc2   : > { %2225 = vmatpush1.bf16.msra.mxu1 %v2543_v49 }
  0xc3   : > { %1628 = vmatpush1.bf16.msra.mxu0 %v2543_v49  ;;  %2218 = vmatprep.subr.bf16.mxu1 %v2554_v50 }
  0xc4   : > { %1629 = vmatprep.subr.bf16.mxu0 %v2554_v50  ;;  %v362_v50 = vld [vmem:[#allocation2 + $0x20] sm:$0xff] }
  0xc5   : > { %1485 = vmatmul.mubr.bf16.gmra.mrb[4].mxu1 %v2550_v51 }
  0xc6   : > { %1607 = vmatmul.mubr.bf16.gmra.mrb[4].mxu0 %v2551_v52  ;;  %2226 = vmatpush1.bf16.msra.mxu1 %v2552_v55 }
  0xc7   : > { %1630 = vmatpush1.bf16.msra.mxu0 %v2552_v55  ;;  %2219 = vmatprep.subr.bf16.mxu1 %v2557_v56 }
  0xc8   : > { %1631 = vmatprep.subr.bf16.mxu0 %v2557_v56  ;;  %1494 = vmatprep.mubr.bf16.mxu1 %v2052_v57  ;;  %v363_v56 = vld [vmem:[#allocation2 + $0x28] sm:$0xff] }
  0xc9   : > { %1616 = vmatprep.mubr.bf16.mxu0 %v2056_v58 }
  0xca   : > { %2227 = vmatpush1.bf16.msra.mxu1 %v2555_v59 }
  0xcb   : > { %1632 = vmatpush1.bf16.msra.mxu0 %v2555_v59  ;;  %2220 = vmatprep.subr.bf16.mxu1 %v2562_v60 }
  0xcc   : > { %1633 = vmatprep.subr.bf16.mxu0 %v2562_v60  ;;  %v360_v60 = vld [vmem:[#allocation2 + $0x10] sm:$0xff] }
  0xcd   : > { %1495 = vmatmul.mubr.bf16.gmra.mrb[12].mxu1 %v2051_v61 }
  0xce   : > { %1617 = vmatmul.mubr.bf16.gmra.mrb[12].mxu0 %v2055_v62  ;;  %2228 = vmatpush1.bf16.msra.mxu1 %v2560_v63  ;;  %v364_v62 = vld [vmem:[#allocation2 + $0x30] sm:$0xff] }
  0xcf   : > { %1634 = vmatpush1.bf16.msra.mxu0 %v2560_v63  ;;  %2221 = vmatprep.subr.bf16.mxu1 %v2567_v0 }
  0xd0   : > { %1635 = vmatprep.subr.bf16.mxu0 %v2567_v0  ;;  %1657 = vmatprep.mubr.bf16.mxu0 %v2654_v3 }
  0xd1   : > { %1667 = vmatprep.mubr.bf16.mxu1 %v2654_v3 }
  0xd2   : > { %2229 = vmatpush1.bf16.msra.mxu1 %v2565_v1 }
  0xd3   : > { %1636 = vmatpush1.bf16.msra.mxu0 %v2565_v1  ;;  %2222 = vmatprep.subr.bf16.mxu1 %v2570_v2 }
  0xd4   : > { %1637 = vmatprep.subr.bf16.mxu0 %v2570_v2 }
  0xd6   : > { %2230 = vmatpush1.bf16.msra.mxu1 %v2568_v4 }
  0xd7   : > { %1638 = vmatpush1.bf16.msra.mxu0 %v2568_v4  ;;  %2223 = vmatprep.subr.bf16.mxu1 %v2573_v5  ;;  %v361_v4 = vld [vmem:[#allocation2 + $0x18] sm:$0xff] }
  0xd8   : > { %1639 = vmatprep.subr.bf16.mxu0 %v2573_v5 }
  0xda   : > { %2231 = vmatpush1.bf16.msra.mxu1 %v2571_v6 }
  0xdb   : > { %1640 = vmatpush1.bf16.msra.mxu0 %v2571_v6  ;;  %v365_v6 = vld [vmem:[#allocation2 + $0x38] sm:$0xff] }
  0xdd   : > { %1668 = vmatmul.mubr.bf16.vlgmr.msra.gmra.mrb[16].mxu1 %v2575_v8 }
  0xde   : > { %1658 = vmatmul.mubr.bf16.vlgmr.msra.gmra.mrb[0].mxu0 %v2574_v7  ;;  %1677 = vmatprep.mubr.bf16.mxu1 %v2654_v3 }
  0xe5   : > { %1678 = vmatmul.mubr.bf16.gmra.mrb[20].mxu1 %v2576_v9 }
 0x160   : > { %v1435_v10 = vpop.f32.mrb[8].mxu1 }
 0x161   : > { %v1557_v11 = vpop.f32.mrb[8].mxu0  ;;  %v1437_v12 = vpop.f32.mrb[9].mxu1 }
 0x162   : > { %v1559_v13 = vpop.f32.mrb[9].mxu0  ;;  %v1439_v14 = vpop.f32.mrb[10].mxu1 }
 0x163   : > { %v1561_v15 = vpop.f32.mrb[10].mxu0  ;;  %v1440_v16 = vpop.f32.mrb[11].mxu1 }
 0x164   : > { %v1562_v17 = vpop.f32.mrb[11].mxu0  ;;  %v366_v16 = vld [vmem:[#allocation2 + $0x40] sm:$0xff] }
 0x190   : > { %v1476_v18 = vpop.f32.mrb[0].mxu1 }
 0x191   : > { %v1478_v19 = vpop.f32.mrb[1].mxu1 }
 0x192   : > { %v1480_v20 = vpop.f32.mrb[2].mxu1 }
 0x193   : > { %v1482_v21 = vpop.f32.mrb[3].mxu1 }
 0x198   : > { %v1486_v22 = vpop.f32.mrb[4].mxu1 }
 0x199   : > { %v1608_v23 = vpop.f32.mrb[4].mxu0  ;;  %v1488_v25 = vpop.f32.mrb[5].mxu1 }
 0x19a   : > { %v2236_v24 = vadd.f32 %v1608_v23, %v1486_v22  ;;  %v1610_v26 = vpop.f32.mrb[5].mxu0  ;;  %v1490_v28 = vpop.f32.mrb[6].mxu1 }
 0x19b   : > { %v2238_v27 = vadd.f32 %v1610_v26, %v1488_v25  ;;  %v1612_v29 = vpop.f32.mrb[6].mxu0  ;;  %v1492_v31 = vpop.f32.mrb[7].mxu1  ;;  %v1722_v26 = vlaneseq (!%p2202_p13) }
 0x19c   : > { %v2240_v30 = vadd.f32 %v1612_v29, %v1490_v28  ;;  %v1614_v32 = vpop.f32.mrb[7].mxu0  ;;  %v1720_v28 = vld [vmem:[%s3092_s2] sm:$0x3] (!%p2202_p13) }
 0x19d   : > { %v2242_v33 = vadd.f32 %v1614_v32, %v1492_v31  ;;  %v1742_v29 = vld [vmem:[%s3093_s3] sm:$0x3] (!%p2202_p13) }
 0x1a0   : > { %v1496_v34 = vpop.f32.mrb[12].mxu1 }
 0x1a1   : > { %v1618_v35 = vpop.f32.mrb[12].mxu0  ;;  %v1497_v36 = vadd.f32 %v1496_v34, %v1435_v10  ;;  %v1498_v37 = vpop.f32.mrb[13].mxu1 }
 0x1a2   : > { %v1620_v38 = vpop.f32.mrb[13].mxu0  ;;  %v1499_v39 = vadd.f32 %v1498_v37, %v1437_v12  ;;  %v1500_v40 = vpop.f32.mrb[14].mxu1 }
 0x1a3   : > { %v1622_v41 = vpop.f32.mrb[14].mxu0  ;;  %v1558_v42 = vadd.f32 %v1557_v11, %v1497_v36  ;;  %v1501_v43 = vpop.f32.mrb[15].mxu1 }
 0x1a4   : > { %v1623_v44 = vpop.f32.mrb[15].mxu0  ;;  %v1560_v45 = vadd.f32 %v1559_v13, %v1499_v39 }
 0x1a5   : > { %v1619_v46 = vadd.f32 %v1618_v35, %v1558_v42 }
 0x1a6   : > { %v1621_v47 = vadd.f32 %v1620_v38, %v1560_v45 }
 0x1b0   : > { %v1669_v51 = vpop.f32.mrb[16].mxu1 }
 0x1b1   : > { %v1659_v49 = vpop.f32.mrb[0].mxu0  ;;  %v2237_v53 = vadd.f32 %v2236_v24, %v1669_v51  ;;  %v1671_v57 = vpop.f32.mrb[17].mxu1 }
 0x1b2   : > { %v2232_v52 = vadd.f32 %v1659_v49, %v1476_v18  ;;  %v1661_v55 = vpop.f32.mrb[1].mxu0  ;;  %v2239_v59 = vadd.f32 %v2238_v27, %v1671_v57  ;;  %v1673_v63 = vpop.f32.mrb[18].mxu1  ;;  %v1723_v27 = vshrl.u32 (!%p2202_p13), %v1722_v26, 7 }
 0x1b3   : > { %v2233_v58 = vadd.f32 %v1661_v55, %v1478_v19  ;;  %v1663_v61 = vpop.f32.mrb[2].mxu0  ;;  %v1690_v1 = vadd.f32 %v2237_v53, %v362_v50  ;;  %v2241_v3 = vadd.f32 %v2240_v30, %v1673_v63  ;;  %v1675_v7 = vpop.f32.mrb[19].mxu1  ;;  %v367_v19 = vld [vmem:[#allocation2 + $0x48] sm:$0xff] }
 0x1b4   : > { %v1686_v0 = vadd.f32 %v2232_v52, %v358_v48  ;;  %v2234_v2 = vadd.f32 %v1663_v61, %v1480_v20  ;;  %v1665_v5 = vpop.f32.mrb[3].mxu0  ;;  %v1691_v9 = vadd.f32 %v2239_v59, %v363_v56  ;;  %v2243_v11 = vadd.f32 %v2242_v33, %v1675_v7 }
 0x1b5   : > { %v1687_v8 = vadd.f32 %v2233_v58, %v359_v54  ;;  %v2235_v10 = vadd.f32 %v1665_v5, %v1482_v21  ;;  %1700 = vst [vmem:[#allocation2 + $0x20] sm:$0xff] %v1690_v1  ;;  %v1692_v13 = vadd.f32 %v2241_v3, %v364_v62  ;;  %v1724_v32 = vsub.s32 (!%p2202_p13), 0, %v1723_v27 }
 0x1b6   : > { %1696 = vst [vmem:[#allocation2] sm:$0xff] %v1686_v0  ;;  %v1688_v12 = vadd.f32 %v2234_v2, %v360_v60  ;;  %1701 = vst [vmem:[#allocation2 + $0x28] sm:$0xff] %v1691_v9  ;;  %v1693_v15 = vadd.f32 %v2243_v11, %v365_v6  ;;  %v1728_v33 = vsub.s32 (!%p2202_p13), 1, %v1723_v27 }
 0x1b7   : > { %1697 = vst [vmem:[#allocation2 + $0x8] sm:$0xff] %v1687_v8  ;;  %v1689_v14 = vadd.f32 %v2235_v10, %v361_v4  ;;  %1702 = vst [vmem:[#allocation2 + $0x30] sm:$0xff] %v1692_v13  ;;  %v1725_v37 = vrot.slane (!%p2202_p13), %v1720_v28, %v1724_v32  ;;  %v2989_v39 = vrot.slane (!%p2202_p13), %v1742_v29, %v1724_v32 }
 0x1b8   : > { %1698 = vst [vmem:[#allocation2 + $0x10] sm:$0xff] %v1688_v12  ;;  %1703 = vst [vmem:[#allocation2 + $0x38] sm:$0xff] %v1693_v15  ;;  %v1679_v17 = vpop.f32.mrb[20].mxu1  ;;  %1709 = sbr.rel (%p2202_p13) target bundleno = 491 (0x1eb), region = 70  ;;  %v2987_v38 = vrot.slane (!%p2202_p13), %v1720_v28, %v1728_v33  ;;  %v2991_v40 = vrot.slane (!%p2202_p13), %v1742_v29, %v1728_v33 }
 0x1b9   : > { %1699 = vst [vmem:[#allocation2 + $0x18] sm:$0xff] %v1689_v14  ;;  %v1680_v18 = vadd.f32 %v1679_v17, %v1619_v46  ;;  %v1681_v20 = vpop.f32.mrb[21].mxu1 }
 0x1ba   : > { %v1682_v22 = vadd.f32 %v1681_v20, %v1621_v47  ;;  %v1683_v21 = vpop.f32.mrb[22].mxu1 }
 0x1bb   : > { %v1694_v23 = vadd.f32 %v1680_v18, %v366_v16  ;;  %v1684_v24 = vpop.f32.mrb[23].mxu1 }
 0x1bc   : > { %v1695_v25 = vadd.f32 %v1682_v22, %v367_v19  ;;  %v1714_v36 = vld [vmem:[#allocation2 + $0x20] sm:$0xff] (!%p2202_p13) }
 0x1bd   : > { %1704 = vst [vmem:[#allocation2 + $0x40] sm:$0xff] %v1694_v23  ;;  %v1710_v30 = vld [vmem:[#allocation2] sm:$0xff] (!%p2202_p13)  ;;  %v1715_v41 = vld [vmem:[#allocation2 + $0x28] sm:$0xff] (!%p2202_p13)  ;;  %v1736_v48 = vmul.f32 (!%p2202_p13), %v1725_v37, %v1714_v36 }
 0x1be   : > { %1705 = vst [vmem:[#allocation2 + $0x48] sm:$0xff] %v1695_v25  ;;  %v1711_v31 = vld [vmem:[#allocation2 + $0x8] sm:$0xff] (!%p2202_p13)  ;;  %v1716_v42 = vld [vmem:[#allocation2 + $0x30] sm:$0xff] (!%p2202_p13)  ;;  %v1732_v44 = vmul.f32 (!%p2202_p13), %v1725_v37, %v1710_v30  ;;  %v1737_v49 = vmul.f32 (!%p2202_p13), %v2987_v38, %v1715_v41 }
 0x1bf   : > { %v1712_v34 = vld [vmem:[#allocation2 + $0x10] sm:$0xff]  ;;  %v1717_v43 = vld [vmem:[#allocation2 + $0x38] sm:$0xff]  ;;  %v1733_v45 = vmul.f32 %v2987_v38, %v1711_v31  ;;  %v1738_v50 = vmul.f32 %v1725_v37, %v1716_v42  ;;  %v3010_v56 = vadd.f32 %v2989_v39, %v1736_v48 }
 0x1c0   : > { %v1713_v35 = vld [vmem:[#allocation2 + $0x18] sm:$0xff]  ;;  %v1734_v46 = vmul.f32 %v1725_v37, %v1712_v34  ;;  %v1739_v51 = vmul.f32 %v2987_v38, %v1717_v43  ;;  %v2998_v52 = vadd.f32 %v2989_v39, %v1732_v44  ;;  %v3013_v57 = vadd.f32 %v2991_v40, %v1737_v49 }
 0x1c1   : > { %v1735_v47 = vmul.f32 %v2987_v38, %v1713_v35  ;;  %v3001_v53 = vadd.f32 %v2991_v40, %v1733_v45  ;;  %v3022_v0 = vadd.f32 %v2989_v39, %v1738_v50  ;;  %v1778_v4 = vmul.f32 0.044715, %v3010_v56 }
 0x1c2   : > { %v3004_v54 = vadd.f32 %v2989_v39, %v1734_v46  ;;  %v1774_v58 = vmul.f32 0.044715, %v2998_v52  ;;  %v3025_v1 = vadd.f32 %v2991_v40, %v1739_v51  ;;  %v1779_v5 = vmul.f32 0.044715, %v3013_v57 }
 0x1c3   : > { %v3007_v55 = vadd.f32 %v2991_v40, %v1735_v47  ;;  %v1775_v59 = vmul.f32 0.044715, %v3001_v53  ;;  %v1788_v10 = vmul.f32 %v1778_v4, %v3010_v56  ;;  %v1780_v14 = vmul.f32 0.044715, %v3022_v0 }
 0x1c4   : > { %v1776_v60 = vmul.f32 0.044715, %v3004_v54  ;;  %v1784_v62 = vmul.f32 %v1774_v58, %v2998_v52  ;;  %v1789_v11 = vmul.f32 %v1779_v5, %v3013_v57  ;;  %v1781_v15 = vmul.f32 0.044715, %v3025_v1  ;;  %v1718_v20 = vld [vmem:[#allocation2 + $0x40] sm:$0xff] }
 0x1c5   : > { %v1777_v61 = vmul.f32 0.044715, %v3007_v55  ;;  %v1785_v63 = vmul.f32 %v1775_v59, %v3001_v53  ;;  %v1798_v18 = vmul.f32 %v1788_v10, %v3010_v56  ;;  %v1790_v23 = vmul.f32 %v1780_v14, %v3022_v0  ;;  %v1719_v25 = vld [vmem:[#allocation2 + $0x48] sm:$0xff] }
 0x1c6   : > { %v1786_v2 = vmul.f32 %v1776_v60, %v3004_v54  ;;  %v1794_v6 = vmul.f32 %v1784_v62, %v2998_v52  ;;  %v1799_v19 = vmul.f32 %v1789_v11, %v3013_v57  ;;  %v1791_v24 = vmul.f32 %v1781_v15, %v3025_v1 }
 0x1c7   : > { %v1787_v3 = vmul.f32 %v1777_v61, %v3007_v55  ;;  %v1795_v7 = vmul.f32 %v1785_v63, %v3001_v53  ;;  %v1808_v28 = vadd.f32 %v1798_v18, %v3010_v56  ;;  %v1800_v30 = vmul.f32 %v1790_v23, %v3022_v0 }
 0x1c8   : > { %v1796_v8 = vmul.f32 %v1786_v2, %v3004_v54  ;;  %v1804_v12 = vadd.f32 %v1794_v6, %v2998_v52  ;;  %v1809_v29 = vadd.f32 %v1799_v19, %v3013_v57  ;;  %v1801_v31 = vmul.f32 %v1791_v24, %v3025_v1 }
 0x1c9   : > { %v1797_v9 = vmul.f32 %v1787_v3, %v3007_v55  ;;  %v1805_v13 = vadd.f32 %v1795_v7, %v3001_v53  ;;  %v1740_v32 = vmul.f32 %v1725_v37, %v1718_v20  ;;  %v1818_v33 = vmul.f32 0.7978846, %v1808_v28 }
 0x1ca   : > { %v1806_v16 = vadd.f32 %v1796_v8, %v3004_v54  ;;  %v1814_v22 = vmul.f32 0.7978846, %v1804_v12  ;;  %v1819_v34 = vmul.f32 0.7978846, %v1809_v29  ;;  %v1741_v35 = vmul.f32 %v2987_v38, %v1719_v25 }
 0x1cb   : > { %v1807_v17 = vadd.f32 %v1797_v9, %v3007_v55  ;;  %v1815_v21 = vmul.f32 0.7978846, %v1805_v13  ;;  %v1810_v36 = vadd.f32 %v1800_v30, %v3022_v0  ;;  %v1811_v41 = vadd.f32 %v1801_v31, %v3025_v1 }
 0x1cc   : > { %v1816_v26 = vmul.f32 0.7978846, %v1806_v16  ;;  %2577 = vtanh.f32 %v1814_v22  ;;  %v1762_v42 = vadd.f32 %v2989_v39, %v1740_v32  ;;  %v1763_v43 = vadd.f32 %v2991_v40, %v1741_v35 }
 0x1cd   : > { %v1817_v27 = vmul.f32 0.7978846, %v1807_v17  ;;  %2579 = vtanh.f32 %v1815_v21  ;;  %v1820_v44 = vmul.f32 0.7978846, %v1810_v36  ;;  %v1821_v45 = vmul.f32 0.7978846, %v1811_v41 }
 0x1ce   : > { %2581 = vtanh.f32 %v1816_v26  ;;  %v1782_v37 = vmul.f32 0.044715, %v1762_v42  ;;  %v1783_v46 = vmul.f32 0.044715, %v1763_v43  ;;  %v1764_v48 = vmul.f32 0.5, %v2998_v52 }
 0x1cf   : > { %2583 = vtanh.f32 %v1817_v27  ;;  %v1765_v39 = vmul.f32 0.5, %v3001_v53  ;;  %v1766_v40 = vmul.f32 0.5, %v3004_v54  ;;  %v1767_v2 = vmul.f32 0.5, %v3007_v55 }
 0x1d0   : > { %2585 = vtanh.f32 %v1818_v33  ;;  %v1792_v47 = vmul.f32 %v1782_v37, %v1762_v42  ;;  %v1793_v38 = vmul.f32 %v1783_v46, %v1763_v43  ;;  %v1768_v3 = vmul.f32 0.5, %v3010_v56 }
 0x1d1   : > { %2587 = vtanh.f32 %v1819_v34  ;;  %v1769_v10 = vmul.f32 0.5, %v3013_v57  ;;  %v1770_v54 = vmul.f32 0.5, %v3022_v0  ;;  %v1771_v55 = vmul.f32 0.5, %v3025_v1 }
 0x1d2   : > { %2589 = vtanh.f32 %v1820_v44  ;;  %v1802_v49 = vmul.f32 %v1792_v47, %v1762_v42  ;;  %v1803_v50 = vmul.f32 %v1793_v38, %v1763_v43  ;;  %v1772_v24 = vmul.f32 0.5, %v1762_v42 }
 0x1d3   : > { %2591 = vtanh.f32 %v1821_v45  ;;  %v1773_v26 = vmul.f32 0.5, %v1763_v43 }
 0x1d4   : > { %v1812_v60 = vadd.f32 %v1802_v49, %v1762_v42  ;;  %v1813_v61 = vadd.f32 %v1803_v50, %v1763_v43 }
 0x1d6   : > { %v2578_v51 = vpop.eup %2577  ;;  %v1822_v6 = vmul.f32 0.7978846, %v1812_v60  ;;  %v1823_v7 = vmul.f32 0.7978846, %v1813_v61 }
 0x1d7   : > { %v2580_v58 = vpop.eup %2579  ;;  %v1834_v59 = vadd.f32 1.0, %v2578_v51 }
 0x1d8   : > { %v2582_v62 = vpop.eup %2581  ;;  %v1835_v63 = vadd.f32 1.0, %v2580_v58  ;;  %2593 = vtanh.f32 %v1822_v6 }
 0x1d9   : > { %v2584_v4 = vpop.eup %2583  ;;  %v1844_v5 = vmul.f32 %v1834_v59, %v1764_v48  ;;  %v1836_v52 = vadd.f32 1.0, %v2582_v62  ;;  %2595 = vtanh.f32 %v1823_v7 }
 0x1da   : > { %v2586_v8 = vpop.eup %2585  ;;  %v1845_v9 = vmul.f32 %v1835_v63, %v1765_v39  ;;  %v1837_v53 = vadd.f32 1.0, %v2584_v4 }
 0x1db   : > { %v2588_v11 = vpop.eup %2587  ;;  %v1846_v12 = vmul.f32 %v1836_v52, %v1766_v40  ;;  %v1838_v13 = vadd.f32 1.0, %v2586_v8 }
 0x1dc   : > { %v2590_v56 = vpop.eup %2589  ;;  %v2211_v14 = vpack.c.bf16 %v1845_v9, %v1844_v5  ;;  %v1847_v15 = vmul.f32 %v1837_v53, %v1767_v2  ;;  %v1839_v16 = vadd.f32 1.0, %v2588_v11 }
 0x1dd   : > { %v2592_v17 = vpop.eup %2591  ;;  %v1848_v18 = vmul.f32 %v1838_v13, %v1768_v3  ;;  %v1840_v19 = vadd.f32 1.0, %v2590_v56 }
 0x1de   : > { %1886 = vst [vmem:[%s2808_s7] sm:$0xff] %v2211_v14  ;;  %v2212_v57 = vpack.c.bf16 %v1847_v15, %v1846_v12  ;;  %v1849_v0 = vmul.f32 %v1839_v16, %v1769_v10  ;;  %v1841_v20 = vadd.f32 1.0, %v2592_v17 }
 0x1df   : > { %v1850_v22 = vmul.f32 %v1840_v19, %v1770_v54 }
 0x1e0   : > { %1887 = vst [vmem:[%s2808_s7 + $0x8] sm:$0xff] %v2212_v57  ;;  %v2213_v21 = vpack.c.bf16 %v1849_v0, %v1848_v18  ;;  %v1851_v1 = vmul.f32 %v1841_v20, %v1771_v55 }
 0x1e2   : > { %1888 = vst [vmem:[%s2808_s7 + $0x10] sm:$0xff] %v2213_v21  ;;  %v2214_v23 = vpack.c.bf16 %v1851_v1, %v1850_v22  ;;  %v2594_v25 = vpop.eup %2593 }
 0x1e3   : > { %v2596_v27 = vpop.eup %2595  ;;  %v1842_v28 = vadd.f32 1.0, %v2594_v25 }
 0x1e4   : > { %1889 = vst [vmem:[%s2808_s7 + $0x18] sm:$0xff] %v2214_v23  ;;  %v1843_v29 = vadd.f32 1.0, %v2596_v27 }
 0x1e5   : > { %v1852_v30 = vmul.f32 %v1842_v28, %v1772_v24 }
 0x1e6   : > { %v1853_v31 = vmul.f32 %v1843_v29, %v1773_v26 }
 0x1e8   : > { %v2215_v32 = vpack.c.bf16 %v1853_v31, %v1852_v30 }
 0x1ea   : > { %1890 = vst [vmem:[%s2808_s7 + $0x20] sm:$0xff] %v2215_v32 }
 0x1eb PF: > { %s14_s21 = sadd.s32 1, %s2651_s21   ;;  %s3095_s15 = smov %s2631_s16 }
 0x1ec   : > { %p11_p0 = scmp.ge.s32.totalorder %s14_s21, 8   ;;  %s3096_s16 = smov %s2731_s28 }
 0x1ed   : > { %s3097_s17 = smov %s2643_s19  ;;  %s3098_s18 = smov %s2647_s20 }
 0x1ee   : > { %s3099_s19 = smov %s3102_s22  ;;  %s3100_s20 = smov %s3106_s23 }
 0x1ef   :  { %13 = sbr.rel (!%p11_p0) target bundleno = 4 (0x4), region = 114 }

// kernel: spatiotemporal_encoder.13
= control target key start
LH: loop header
LB: loop body
LE: loop exit
PB: predicated region body
PF: predicated region fallthrough
CT: control target
= control target key end

     0   :  { %s3052_s21 = smov 0   ;;  %s3054_s22 = smov 0   ;;  %s3511_s0 = inlined_call_operand.vmem [shape: bf16[2,40,6912], index: 0, kind: input, shape index: {}]   ;;  %s3512_s1 = inlined_call_operand.vmem [shape: bf16[6912,256], index: 1, kind: input, shape index: {}]   ;;  %s3513_s2 = inlined_call_operand.vmem [shape: f32[1,256], index: 2, kind: input, shape index: {}]   ;;  %s3514_s3 = inlined_call_operand.vmem [shape: f32[1,256], index: 3, kind: input, shape index: {}]   ;;  %s3515_s4 = inlined_call_operand.vmem [shape: bf16[2,40,128], index: 4, kind: input, shape index: {}]   ;;  %s3516_s5 = inlined_call_operand.vmem [shape: bf16[128,256], index: 5, kind: input, shape index: {}]   ;;  %s3517_s6 = inlined_call_operand.vmem [shape: bf16[2,40,256], index: 6, kind: output, shape index: {}]  }
   0x1   :  { %s3056_s23 = smov 0   ;;  %s3058_s24 = smov 0  }
   0x2   :  { %s3060_s25 = smov 0   ;;  %s3062_s26 = smov 0  }
   0x3   :  { %s3064_s27 = smov 0  }
   0x4 LB: > { %s28_s28 = sadd.s32 1, %s3004_s25  ;;  %s35_s29 = sadd.s32 1, %s3008_s26  ;;  %s3012_s27 = sphi %s3064_s27, %s16_s27   ;;  %s3008_s26 = sphi %s3062_s26, %s3523_s26   ;;  %s3004_s25 = sphi %s3060_s25, %s3522_s25   ;;  %s3000_s24 = sphi %s3058_s24, %s3521_s24   ;;  %s2996_s23 = sphi %s3056_s23, %s3520_s23   ;;  %s2992_s22 = sphi %s3054_s22, %s3519_s22   ;;  %s2988_s21 = sphi %s3052_s21, %s3518_s21  }
   0x5   : > { %p29_p0 = scmp.ge.s32.totalorder %s28_s28, 6  ;;  %p53_p1 = scmp.ne.s32.totalorder %s2992_s22, %s2988_s21 }
   0x6   : > { %p54_p2 = scmp.eq.s32.totalorder %s3012_s27, 0  ;;  %s46_s9 = sadd.s32 1, %s2992_s22 }
   0x7   : > { %s3525_s28 = smov (%p29_p0, %s28_s28), 0  ;;  %s3527_s29 = smov (!%p29_p0, %s35_s29), %s3008_s26 }
   0x8   : > { %p55_p3 = por %p54_p2, %p53_p1  ;;  %p37_p4 = scmp.ge.s32.totalorder %s3527_s29, 2 }
   0x9   : > { %s42_s30 = ssub.s32 %s3004_s25, %s3525_s28  ;;  %p2310_p6 = scmp.ge.s32.totalorder %s3012_s27, 12 }
   0xa   : > { %s3529_s29 = smov (%p37_p4, %s3527_s29), 0 }
   0xb   : > { %s39_s7 = ssub.s32 %s3008_s26, %s3529_s29  ;;  %233 = sbr.rel (%p2310_p6) target bundleno = 40 (0x28), region = 28 }
   0xc   : > { %s43_s8 = sor.u32 %s42_s30, %s39_s7 }
   0xd   : > { %p44_p5 = scmp.eq.s32.totalorder %s43_s8, 0 }
   0xf   : > { %s3103_s10 = scalar_select %p44_p5, %s2992_s22, %s46_s9  }
  0x12   : > { %236 = sbr.rel (!%p55_p3) target bundleno = 40 (0x28), region = 32  ;;  %s238_s11 = sand.u32 (%p55_p3), 1, %s2992_s22  }
  0x13   : > { %s242_s12 = smul.u32 (%p55_p3), 9, %s3004_s25 }
  0x14   : > { %s2596_s13 = smul.u32 (%p55_p3), 180, %s238_s11 }
  0x15   : > { %s2597_s14 = smul.u32 (%p55_p3), 270, %s3008_s26 }
  0x16   : > { %s3117_s20 = scalar_lea.vmem (%p55_p3), [#allocation3], %s2596_s13 }
  0x17   : > { %s246_s15 = sadd.s32 (%p55_p3), %s2597_s14, %s242_s12 }
  0x18   : > { %s2311_s16 = sshll.u32 (%p55_p3), %s246_s15, 2 }
  0x19   : > { %s3112_s19 = scalar_lea.vmem %s3511_s0, %s2311_s16 }
  0x1a   : > { %v263_v0 = vld [vmem:[%s3112_s19] sm:$0xff]  ;;  %v265_v1 = vld [vmem:[%s3112_s19 + $0x8] sm:$0xff]  ;;  %v267_v2 = vld [vmem:[%s3112_s19 + $0x10] sm:$0xff] }
  0x1b   : > { %264 = vst [vmem:[%s3117_s20] sm:$0xff] %v263_v0  ;;  %266 = vst [vmem:[%s3117_s20 + $0x8] sm:$0xff] %v265_v1  ;;  %v269_v3 = vld [vmem:[%s3112_s19 + $0x18] sm:$0xff]  ;;  %v273_v5 = vld [vmem:[%s3112_s19 + $0xe0] sm:$0xff] }
  0x1c   : > { %268 = vst [vmem:[%s3117_s20 + $0x10] sm:$0xff] %v267_v2  ;;  %v271_v4 = vld [vmem:[%s3112_s19 + $0xd8] sm:$0xff]  ;;  %270 = vst [vmem:[%s3117_s20 + $0x18] sm:$0xff] %v269_v3  ;;  %v275_v6 = vld [vmem:[%s3112_s19 + $0xe8] sm:$0xff] }
  0x1d   : > { %272 = vst [vmem:[%s3117_s20 + $0x24] sm:$0xff] %v271_v4  ;;  %274 = vst [vmem:[%s3117_s20 + $0x2c] sm:$0xff] %v273_v5  ;;  %v277_v7 = vld [vmem:[%s3112_s19 + $0xf0] sm:$0xff]  ;;  %v281_v9 = vld [vmem:[%s3112_s19 + $0x1b8] sm:$0xff] }
  0x1e   : > { %v279_v8 = vld [vmem:[%s3112_s19 + $0x1b0] sm:$0xff]  ;;  %276 = vst [vmem:[%s3117_s20 + $0x34] sm:$0xff] %v275_v6  ;;  %278 = vst [vmem:[%s3117_s20 + $0x3c] sm:$0xff] %v277_v7  ;;  %v283_v10 = vld [vmem:[%s3112_s19 + $0x1c0] sm:$0xff] }
  0x1f   : > { %280 = vst [vmem:[%s3117_s20 + $0x48] sm:$0xff] %v279_v8  ;;  %v285_v11 = vld [vmem:[%s3112_s19 + $0x1c8] sm:$0xff]  ;;  %282 = vst [vmem:[%s3117_s20 + $0x50] sm:$0xff] %v281_v9  ;;  %v289_v13 = vld [vmem:[%s3112_s19 + $0x290] sm:$0xff] }
  0x20   : > { %284 = vst [vmem:[%s3117_s20 + $0x58] sm:$0xff] %v283_v10  ;;  %286 = vst [vmem:[%s3117_s20 + $0x60] sm:$0xff] %v285_v11  ;;  %v287_v12 = vld [vmem:[%s3112_s19 + $0x288] sm:$0xff]  ;;  %v291_v14 = vld [vmem:[%s3112_s19 + $0x298] sm:$0xff] }
  0x21   : > { %288 = vst [vmem:[%s3117_s20 + $0x6c] sm:$0xff] %v287_v12  ;;  %290 = vst [vmem:[%s3117_s20 + $0x74] sm:$0xff] %v289_v13  ;;  %v293_v15 = vld [vmem:[%s3112_s19 + $0x2a0] sm:$0xff]  ;;  %v297_v17 = vld [vmem:[%s3112_s19 + $0x368] sm:$0xff] }
  0x22   : > { %292 = vst [vmem:[%s3117_s20 + $0x7c] sm:$0xff] %v291_v14  ;;  %v295_v16 = vld [vmem:[%s3112_s19 + $0x360] sm:$0xff]  ;;  %294 = vst [vmem:[%s3117_s20 + $0x84] sm:$0xff] %v293_v15  ;;  %v299_v18 = vld [vmem:[%s3112_s19 + $0x370] sm:$0xff] }
  0x23   : > { %296 = vst [vmem:[%s3117_s20 + $0x90] sm:$0xff] %v295_v16  ;;  %298 = vst [vmem:[%s3117_s20 + $0x98] sm:$0xff] %v297_v17  ;;  %v301_v19 = vld [vmem:[%s3112_s19 + $0x378] sm:$0xff]  ;;  %v2312_v20 = vld [vmem:[%s3112_s19 + $0x20] sm:$0xf] }
  0x24   : > { %300 = vst [vmem:[%s3117_s20 + $0xa0] sm:$0xff] %v299_v18  ;;  %302 = vst [vmem:[%s3117_s20 + $0xa8] sm:$0xff] %v301_v19  ;;  %v2314_v21 = vld [vmem:[%s3112_s19 + $0xf8] sm:$0xf]  ;;  %v2316_v22 = vld [vmem:[%s3112_s19 + $0x1d0] sm:$0xf] }
  0x25   : > { %2313 = vst [vmem:[%s3117_s20 + $0x20] sm:$0xf] %v2312_v20  ;;  %v2318_v23 = vld [vmem:[%s3112_s19 + $0x2a8] sm:$0xf]  ;;  %2315 = vst [vmem:[%s3117_s20 + $0x44] sm:$0xf] %v2314_v21 }
  0x26   : > { %2317 = vst [vmem:[%s3117_s20 + $0x68] sm:$0xf] %v2316_v22  ;;  %2319 = vst [vmem:[%s3117_s20 + $0x8c] sm:$0xf] %v2318_v23  ;;  %v2320_v24 = vld [vmem:[%s3112_s19 + $0x380] sm:$0xf] }
  0x27   : > { %2321 = vst [vmem:[%s3117_s20 + $0xb0] sm:$0xf] %v2320_v24 }
  0x28 PF: > { %p2322_p7 = scmp.ge.s32.totalorder %s3012_s27, 1  ;;  %p347_p8 = scmp.lt.s32.totalorder %s3012_s27, 13 }
  0x2a   : > { %p348_p9 = pnand %p2322_p7, %p347_p8 }
  0x2b   : > { %s354_s30 = sand.u32 (!%p348_p9), 1, %s2988_s21   ;;  %s405_s7 = smul.u32 (!%p348_p9), 144, %s2996_s23 }
  0x2c   : > { %351 = sbr.rel (%p348_p9) target bundleno = 720 (0x2d0), region = 66  ;;  %p413_p10 = scmp.lt.s32.totalorder (!%p348_p9), %s3000_s24, 1 }
  0x2d   : > { %s2598_s8 = smul.u32 (!%p348_p9), 180, %s354_s30  ;;  %p406_p11 = scmp.lt.s32.totalorder (!%p348_p9), %s405_s7, 863 }
  0x2e   : > { %p2327_p12 = scmp.ne.s32.totalorder (!%p348_p9), %s2996_s23, 0 }
  0x2f   : > { %s3187_s30 = scalar_lea.vmem (!%p348_p9), [#allocation3], %s2598_s8 }
  0x33   : > { %s3531_s7 = smov (!%p406_p11, %s405_s7), 863  ;;  %s3533_s24 = smov (!%p413_p10, %s3000_s24), 1 }
  0x34   : > { %s2526_s9 = sshll.u32 %s3531_s7, 3  ;;  %s2599_s14 = smul.u32 20, %s3533_s24  ;;  %v3014_v25 = vmov (!%p2327_p12), 0.0  }
  0x35   : > { %s3175_s13 = scalar_lea.vmem %s3512_s1, %s2526_s9  ;;  %s2600_s15 = smul.u32 40, %s3533_s24  ;;  %438 = vst [vmem:[#allocation2] sm:$0xff] (!%p2327_p12), %v3014_v25  ;;  %439 = vst [vmem:[#allocation2 + $0x8] sm:$0xff] (!%p2327_p12), %v3014_v25 }
  0x36   : > { %s3180_s18 = scalar_lea.vmem %s3515_s4, %s2599_s14  ;;  %437 = sbr.rel (%p2327_p12) target bundleno = 61 (0x3d), region = 74  ;;  %440 = vst [vmem:[#allocation2 + $0x10] sm:$0xff] (!%p2327_p12), %v3014_v25  ;;  %441 = vst [vmem:[#allocation2 + $0x18] sm:$0xff] (!%p2327_p12), %v3014_v25 }
  0x37   : > { %s3185_s20 = scalar_lea.vmem %s3517_s6, %s2600_s15  ;;  %442 = vst [vmem:[#allocation2 + $0x20] sm:$0xff] (!%p2327_p12), %v3014_v25  ;;  %443 = vst [vmem:[#allocation2 + $0x28] sm:$0xff] (!%p2327_p12), %v3014_v25 }
  0x38   : > { %444 = vst [vmem:[#allocation2 + $0x30] sm:$0xff] (!%p2327_p12), %v3014_v25  ;;  %445 = vst [vmem:[#allocation2 + $0x38] sm:$0xff] (!%p2327_p12), %v3014_v25 }
  0x39   : > { %446 = vst [vmem:[#allocation2 + $0x40] sm:$0xff] (!%p2327_p12), %v3014_v25  ;;  %447 = vst [vmem:[#allocation2 + $0x48] sm:$0xff] (!%p2327_p12), %v3014_v25 }
  0x3d PF: > { %v2660_v26 = vld [vmem:[%s3175_s13 + $0x4] ss:$8 sps:$4 sm:$0xff]   ;;  %v2664_v28 = vld [vmem:[%s3175_s13] ss:$8 sps:$4 sm:$0xff]   ;;  %v2666_v30 = vld [vmem:[%s3175_s13 + $0x14] ss:$8 sps:$4 sm:$0xff]  }
  0x3e   : > { %v2662_v27 = vld [vmem:[%s3175_s13 + $0x204] ss:$8 sps:$4 sm:$0xff]   ;;  %1471 = vmatprep.subr.bf16.mxu1 %v2660_v26  ;;  %v2665_v29 = vld [vmem:[%s3175_s13 + $0x200] ss:$8 sps:$4 sm:$0xff]   ;;  %v2668_v31 = vld [vmem:[%s3175_s13 + $0x214] ss:$8 sps:$4 sm:$0xff]  }
  0x3f   : > { %1593 = vmatprep.subr.bf16.mxu0 %v2662_v27  ;;  %1472 = vmatpush1.bf16.msra.mxu1 %v2664_v28  ;;  %v2670_v32 = vld [vmem:[%s3175_s13 + $0x10] ss:$8 sps:$4 sm:$0xff]   ;;  %v2672_v34 = vld [vmem:[%s3175_s13 + $0x24] ss:$8 sps:$4 sm:$0xff]   ;;  %v2676_v36 = vld [vmem:[%s3175_s13 + $0x20] ss:$8 sps:$4 sm:$0xff]  }
  0x40   : > { %1594 = vmatpush1.bf16.msra.mxu0 %v2665_v29  ;;  %1473 = vmatprep.subr.bf16.mxu1 %v2666_v30  ;;  %v2671_v33 = vld [vmem:[%s3175_s13 + $0x210] ss:$8 sps:$4 sm:$0xff]   ;;  %v2674_v35 = vld [vmem:[%s3175_s13 + $0x224] ss:$8 sps:$4 sm:$0xff]   ;;  %v2677_v37 = vld [vmem:[%s3175_s13 + $0x220] ss:$8 sps:$4 sm:$0xff]  }
  0x41   : > { %1595 = vmatprep.subr.bf16.mxu0 %v2668_v31  ;;  %v2678_v38 = vld [vmem:[%s3175_s13 + $0x34] ss:$8 sps:$4 sm:$0xff]   ;;  %v2682_v40 = vld [vmem:[%s3175_s13 + $0x30] ss:$8 sps:$4 sm:$0xff]   ;;  %v2684_v42 = vld [vmem:[%s3175_s13 + $0x44] ss:$8 sps:$4 sm:$0xff]  }
  0x42   : > { %v2680_v39 = vld [vmem:[%s3175_s13 + $0x234] ss:$8 sps:$4 sm:$0xff]   ;;  %v2683_v41 = vld [vmem:[%s3175_s13 + $0x230] ss:$8 sps:$4 sm:$0xff]   ;;  %v2686_v43 = vld [vmem:[%s3175_s13 + $0x244] ss:$8 sps:$4 sm:$0xff]  }
  0x43   : > { %1474 = vmatpush1.bf16.msra.mxu1 %v2670_v32  ;;  %v2688_v44 = vld [vmem:[%s3175_s13 + $0x40] ss:$8 sps:$4 sm:$0xff]   ;;  %v2690_v46 = vld [vmem:[%s3175_s13 + $0x54] ss:$8 sps:$4 sm:$0xff]   ;;  %v2694_v48 = vld [vmem:[%s3175_s13 + $0x50] ss:$8 sps:$4 sm:$0xff]  }
  0x44   : > { %1596 = vmatpush1.bf16.msra.mxu0 %v2671_v33  ;;  %1475 = vmatprep.subr.bf16.mxu1 %v2672_v34  ;;  %v2689_v45 = vld [vmem:[%s3175_s13 + $0x240] ss:$8 sps:$4 sm:$0xff]   ;;  %v2692_v47 = vld [vmem:[%s3175_s13 + $0x254] ss:$8 sps:$4 sm:$0xff]   ;;  %v2695_v49 = vld [vmem:[%s3175_s13 + $0x250] ss:$8 sps:$4 sm:$0xff]  }
  0x45   : > { %1597 = vmatprep.subr.bf16.mxu0 %v2674_v35  ;;  %v2696_v50 = vld [vmem:[%s3175_s13 + $0x64] ss:$8 sps:$4 sm:$0xff]   ;;  %v2700_v52 = vld [vmem:[%s3175_s13 + $0x60] ss:$8 sps:$4 sm:$0xff]   ;;  %v2702_v54 = vld [vmem:[%s3175_s13 + $0x74] ss:$8 sps:$4 sm:$0xff]  }
  0x46   : > { %v2698_v51 = vld [vmem:[%s3175_s13 + $0x264] ss:$8 sps:$4 sm:$0xff]   ;;  %v2701_v53 = vld [vmem:[%s3175_s13 + $0x260] ss:$8 sps:$4 sm:$0xff]   ;;  %v2704_v55 = vld [vmem:[%s3175_s13 + $0x274] ss:$8 sps:$4 sm:$0xff]  }
  0x47   : > { %1476 = vmatpush1.bf16.msra.mxu1 %v2676_v36  ;;  %v2706_v56 = vld [vmem:[%s3175_s13 + $0x70] ss:$8 sps:$4 sm:$0xff]   ;;  %v2708_v58 = vld [vmem:[%s3175_s13 + $0x84] ss:$8 sps:$4 sm:$0xff]   ;;  %v2712_v60 = vld [vmem:[%s3175_s13 + $0x80] ss:$8 sps:$4 sm:$0xff]  }
  0x48   : > { %1598 = vmatpush1.bf16.msra.mxu0 %v2677_v37  ;;  %1477 = vmatprep.subr.bf16.mxu1 %v2678_v38  ;;  %v2707_v57 = vld [vmem:[%s3175_s13 + $0x270] ss:$8 sps:$4 sm:$0xff]   ;;  %v2710_v59 = vld [vmem:[%s3175_s13 + $0x284] ss:$8 sps:$4 sm:$0xff]   ;;  %v2713_v61 = vld [vmem:[%s3175_s13 + $0x280] ss:$8 sps:$4 sm:$0xff]  }
  0x49   : > { %1599 = vmatprep.subr.bf16.mxu0 %v2680_v39  ;;  %v2714_v62 = vld [vmem:[%s3175_s13 + $0x94] ss:$8 sps:$4 sm:$0xff]   ;;  %v2718_v0 = vld [vmem:[%s3175_s13 + $0x90] ss:$8 sps:$4 sm:$0xff]   ;;  %v2720_v2 = vld [vmem:[%s3175_s13 + $0xa4] ss:$8 sps:$4 sm:$0xff]  }
  0x4a   : > { %v2716_v63 = vld [vmem:[%s3175_s13 + $0x294] ss:$8 sps:$4 sm:$0xff]   ;;  %v2719_v1 = vld [vmem:[%s3175_s13 + $0x290] ss:$8 sps:$4 sm:$0xff]   ;;  %v2722_v3 = vld [vmem:[%s3175_s13 + $0x2a4] ss:$8 sps:$4 sm:$0xff]  }
  0x4b   : > { %1478 = vmatpush1.bf16.msra.mxu1 %v2682_v40  ;;  %v2724_v4 = vld [vmem:[%s3175_s13 + $0xa0] ss:$8 sps:$4 sm:$0xff]   ;;  %v2726_v6 = vld [vmem:[%s3175_s13 + $0xb4] ss:$8 sps:$4 sm:$0xff]   ;;  %v2730_v8 = vld [vmem:[%s3175_s13 + $0xb0] ss:$8 sps:$4 sm:$0xff]  }
  0x4c   : > { %1600 = vmatpush1.bf16.msra.mxu0 %v2683_v41  ;;  %1479 = vmatprep.subr.bf16.mxu1 %v2684_v42  ;;  %v2725_v5 = vld [vmem:[%s3175_s13 + $0x2a0] ss:$8 sps:$4 sm:$0xff]   ;;  %v2728_v7 = vld [vmem:[%s3175_s13 + $0x2b4] ss:$8 sps:$4 sm:$0xff]   ;;  %v2731_v9 = vld [vmem:[%s3175_s13 + $0x2b0] ss:$8 sps:$4 sm:$0xff]  }
  0x4d   : > { %1601 = vmatprep.subr.bf16.mxu0 %v2686_v43  ;;  %v2758_v10 = vld [vmem:[%s3187_s30 + $0x4] ss:$36 sps:$4 sm:$0xff]   ;;  %v2764_v13 = vld [vmem:[%s3187_s30 + $0x14] ss:$36 sps:$4 sm:$0xff]   ;;  %p2499_p13 = scmp.ne.s32.totalorder %s2996_s23, 5 }
  0x4e   : > { %v2732_v11 = vld [vmem:[%s3175_s13 + $0xc4] ss:$8 sps:$4 sm:$0xff]   ;;  %1503 = vmatprep.mubr.bf16.mxu1 %v2758_v10  ;;  %v2736_v14 = vld [vmem:[%s3175_s13 + $0xc0] ss:$8 sps:$4 sm:$0xff]   ;;  %v2738_v16 = vld [vmem:[%s3175_s13 + $0xd4] ss:$8 sps:$4 sm:$0xff]   ;;  %1625 = vmatprep.mubr.bf16.mxu0 %v2764_v13 }
  0x4f   : > { %1480 = vmatpush1.bf16.msra.mxu1 %v2688_v44  ;;  %v2734_v12 = vld [vmem:[%s3175_s13 + $0x2c4] ss:$8 sps:$4 sm:$0xff]   ;;  %v2737_v15 = vld [vmem:[%s3175_s13 + $0x2c0] ss:$8 sps:$4 sm:$0xff]   ;;  %v2740_v17 = vld [vmem:[%s3175_s13 + $0x2d4] ss:$8 sps:$4 sm:$0xff]  }
  0x50   : > { %1602 = vmatpush1.bf16.msra.mxu0 %v2689_v45  ;;  %1481 = vmatprep.subr.bf16.mxu1 %v2690_v46  ;;  %v2742_v18 = vld [vmem:[%s3175_s13 + $0xd0] ss:$8 sps:$4 sm:$0xff]   ;;  %v2744_v20 = vld [vmem:[%s3175_s13 + $0xe4] ss:$8 sps:$4 sm:$0xff]   ;;  %v2748_v22 = vld [vmem:[%s3175_s13 + $0xe0] ss:$8 sps:$4 sm:$0xff]  }
  0x51   : > { %1603 = vmatprep.subr.bf16.mxu0 %v2692_v47  ;;  %v2743_v19 = vld [vmem:[%s3175_s13 + $0x2d0] ss:$8 sps:$4 sm:$0xff]   ;;  %v2746_v21 = vld [vmem:[%s3175_s13 + $0x2e4] ss:$8 sps:$4 sm:$0xff]   ;;  %v2749_v23 = vld [vmem:[%s3175_s13 + $0x2e0] ss:$8 sps:$4 sm:$0xff]  }
  0x52   : > { %v2750_v24 = vld [vmem:[%s3175_s13 + $0xf4] ss:$8 sps:$4 sm:$0xff]   ;;  %v2754_v26 = vld [vmem:[%s3175_s13 + $0xf0] ss:$8 sps:$4 sm:$0xff]   ;;  %v2761_v28 = vld [vmem:[%s3175_s13 + $0x104] ss:$8 sps:$4 sm:$0xff]  }
  0x53   : > { %1482 = vmatpush1.bf16.msra.mxu1 %v2694_v48  ;;  %v2752_v25 = vld [vmem:[%s3175_s13 + $0x2f4] ss:$8 sps:$4 sm:$0xff]   ;;  %v2755_v27 = vld [vmem:[%s3175_s13 + $0x2f0] ss:$8 sps:$4 sm:$0xff]   ;;  %v2767_v29 = vld [vmem:[%s3175_s13 + $0x304] ss:$8 sps:$4 sm:$0xff]  }
  0x54   : > { %1604 = vmatpush1.bf16.msra.mxu0 %v2695_v49  ;;  %1483 = vmatprep.subr.bf16.mxu1 %v2696_v50  ;;  %v2756_v30 = vld [vmem:[%s3187_s30] ss:$36 sps:$4 sm:$0xff]   ;;  %v2762_v32 = vld [vmem:[%s3187_s30 + $0x10] ss:$36 sps:$4 sm:$0xff]  }
  0x55   : > { %1605 = vmatprep.subr.bf16.mxu0 %v2698_v51  ;;  %v2759_v31 = vld [vmem:[%s3175_s13 + $0x100] ss:$8 sps:$4 sm:$0xff]   ;;  %v2770_v34 = vld [vmem:[%s3175_s13 + $0x114] ss:$8 sps:$4 sm:$0xff]   ;;  %v2768_v36 = vld [vmem:[%s3175_s13 + $0x110] ss:$8 sps:$4 sm:$0xff]  }
  0x56   : > { %v2765_v33 = vld [vmem:[%s3175_s13 + $0x300] ss:$8 sps:$4 sm:$0xff]   ;;  %v2773_v35 = vld [vmem:[%s3175_s13 + $0x314] ss:$8 sps:$4 sm:$0xff]   ;;  %v2771_v37 = vld [vmem:[%s3175_s13 + $0x310] ss:$8 sps:$4 sm:$0xff]  }
  0x57   : > { %1484 = vmatpush1.bf16.msra.mxu1 %v2700_v52  ;;  %v2776_v38 = vld [vmem:[%s3175_s13 + $0x124] ss:$8 sps:$4 sm:$0xff]   ;;  %v2774_v40 = vld [vmem:[%s3175_s13 + $0x120] ss:$8 sps:$4 sm:$0xff]   ;;  %v2782_v42 = vld [vmem:[%s3175_s13 + $0x134] ss:$8 sps:$4 sm:$0xff]  }
  0x58   : > { %1606 = vmatpush1.bf16.msra.mxu0 %v2701_v53  ;;  %1485 = vmatprep.subr.bf16.mxu1 %v2702_v54  ;;  %v2779_v39 = vld [vmem:[%s3175_s13 + $0x324] ss:$8 sps:$4 sm:$0xff]   ;;  %v2777_v41 = vld [vmem:[%s3175_s13 + $0x320] ss:$8 sps:$4 sm:$0xff]   ;;  %v2785_v43 = vld [vmem:[%s3175_s13 + $0x334] ss:$8 sps:$4 sm:$0xff]  }
  0x59   : > { %1607 = vmatprep.subr.bf16.mxu0 %v2704_v55  ;;  %v2780_v44 = vld [vmem:[%s3175_s13 + $0x130] ss:$8 sps:$4 sm:$0xff]   ;;  %v2788_v46 = vld [vmem:[%s3175_s13 + $0x144] ss:$8 sps:$4 sm:$0xff]   ;;  %v2786_v48 = vld [vmem:[%s3175_s13 + $0x140] ss:$8 sps:$4 sm:$0xff]  }
  0x5a   : > { %v2783_v45 = vld [vmem:[%s3175_s13 + $0x330] ss:$8 sps:$4 sm:$0xff]   ;;  %v2791_v47 = vld [vmem:[%s3175_s13 + $0x344] ss:$8 sps:$4 sm:$0xff]   ;;  %v2789_v49 = vld [vmem:[%s3175_s13 + $0x340] ss:$8 sps:$4 sm:$0xff]  }
  0x5b   : > { %1486 = vmatpush1.bf16.msra.mxu1 %v2706_v56  ;;  %v2834_v50 = vld [vmem:[%s3187_s30 + $0x4c] ss:$36 sps:$4 sm:$0xff]   ;;  %v2837_v52 = vld [vmem:[%s3187_s30 + $0x5c] ss:$36 sps:$4 sm:$0xff]  }
  0x5c   : > { %1608 = vmatpush1.bf16.msra.mxu0 %v2707_v57  ;;  %1487 = vmatprep.subr.bf16.mxu1 %v2708_v58  ;;  %v2836_v51 = vld [vmem:[%s3187_s30 + $0x48] ss:$36 sps:$4 sm:$0xff]   ;;  %v2842_v55 = vld [vmem:[%s3187_s30 + $0x58] ss:$36 sps:$4 sm:$0xff]  }
  0x5d   : > { %1609 = vmatprep.subr.bf16.mxu0 %v2710_v59  ;;  %v2794_v53 = vld [vmem:[%s3175_s13 + $0x154] ss:$8 sps:$4 sm:$0xff]   ;;  %v2792_v56 = vld [vmem:[%s3175_s13 + $0x150] ss:$8 sps:$4 sm:$0xff]   ;;  %v2800_v58 = vld [vmem:[%s3175_s13 + $0x164] ss:$8 sps:$4 sm:$0xff]  }
  0x5e   : > { %v2797_v54 = vld [vmem:[%s3175_s13 + $0x354] ss:$8 sps:$4 sm:$0xff]   ;;  %v2795_v57 = vld [vmem:[%s3175_s13 + $0x350] ss:$8 sps:$4 sm:$0xff]   ;;  %v2803_v59 = vld [vmem:[%s3175_s13 + $0x364] ss:$8 sps:$4 sm:$0xff]  }
  0x5f   : > { %1488 = vmatpush1.bf16.msra.mxu1 %v2712_v60  ;;  %v478_v60 = vld [vmem:[%s3187_s30 + $0x90] sm:$0xff] }
  0x60   : > { %1610 = vmatpush1.bf16.msra.mxu0 %v2713_v61  ;;  %1489 = vmatprep.subr.bf16.mxu1 %v2714_v62  ;;  %v480_v61 = vld [vmem:[%s3187_s30 + $0xa0] sm:$0xff]  ;;  %v2347_v62 = vcombine.high %v478_v60, %v478_v60 }
  0x61   : > { %1611 = vmatprep.subr.bf16.mxu0 %v2716_v63  ;;  %v2351_v63 = vcombine.high %v480_v61, %v480_v61  ;;  %v2815_v10 = vld [vmem:[%s3175_s13 + $0x384] ss:$8 sps:$4 sm:$0xff]   ;;  %v2813_v13 = vld [vmem:[%s3175_s13 + $0x380] ss:$8 sps:$4 sm:$0xff]  }
  0x63   : > { %1490 = vmatpush1.bf16.msra.mxu1 %v2718_v0  ;;  %v2346_v0 = vcombine.low %v478_v60, %v478_v60  ;;  %v2896_v60 = vld [vmem:[%s3175_s13 + $0x444] ss:$8 sps:$4 sm:$0xff]  }
  0x64   : > { %1612 = vmatpush1.bf16.msra.mxu0 %v2719_v1  ;;  %1491 = vmatprep.subr.bf16.mxu1 %v2720_v2  ;;  %v2350_v1 = vcombine.low %v480_v61, %v480_v61  ;;  %v2798_v2 = vld [vmem:[%s3175_s13 + $0x160] ss:$8 sps:$4 sm:$0xff]  }
  0x65   : > { %1613 = vmatprep.subr.bf16.mxu0 %v2722_v3  ;;  %v2801_v3 = vld [vmem:[%s3175_s13 + $0x360] ss:$8 sps:$4 sm:$0xff]  }
  0x67   : > { %1492 = vmatpush1.bf16.msra.mxu1 %v2724_v4  ;;  %v2806_v4 = vld [vmem:[%s3175_s13 + $0x174] ss:$8 sps:$4 sm:$0xff]  }
  0x68   : > { %1614 = vmatpush1.bf16.msra.mxu0 %v2725_v5  ;;  %1493 = vmatprep.subr.bf16.mxu1 %v2726_v6  ;;  %v2809_v5 = vld [vmem:[%s3175_s13 + $0x374] ss:$8 sps:$4 sm:$0xff]   ;;  %v2804_v6 = vld [vmem:[%s3175_s13 + $0x170] ss:$8 sps:$4 sm:$0xff]  }
  0x69   : > { %1615 = vmatprep.subr.bf16.mxu0 %v2728_v7  ;;  %v2807_v7 = vld [vmem:[%s3175_s13 + $0x370] ss:$8 sps:$4 sm:$0xff]  }
  0x6b   : > { %1494 = vmatpush1.bf16.msra.mxu1 %v2730_v8  ;;  %v2812_v8 = vld [vmem:[%s3175_s13 + $0x184] ss:$8 sps:$4 sm:$0xff]  }
  0x6c   : > { %1616 = vmatpush1.bf16.msra.mxu0 %v2731_v9  ;;  %1495 = vmatprep.subr.bf16.mxu1 %v2732_v11  ;;  %v2870_v9 = vld [vmem:[%s3187_s30 + $0xc] ss:$36 sps:$4 sm:$0xff]   ;;  %v2873_v11 = vld [vmem:[%s3187_s30 + $0x1c] ss:$36 sps:$4 sm:$0xff]  }
  0x6d   : > { %1617 = vmatprep.subr.bf16.mxu0 %v2734_v12  ;;  %v2810_v12 = vld [vmem:[%s3175_s13 + $0x180] ss:$8 sps:$4 sm:$0xff]  }
  0x6f   : > { %1496 = vmatpush1.bf16.msra.mxu1 %v2736_v14  ;;  %v2818_v14 = vld [vmem:[%s3175_s13 + $0x194] ss:$8 sps:$4 sm:$0xff]  }
  0x70   : > { %1618 = vmatpush1.bf16.msra.mxu0 %v2737_v15  ;;  %1497 = vmatprep.subr.bf16.mxu1 %v2738_v16  ;;  %v2821_v15 = vld [vmem:[%s3175_s13 + $0x394] ss:$8 sps:$4 sm:$0xff]   ;;  %v2816_v16 = vld [vmem:[%s3175_s13 + $0x190] ss:$8 sps:$4 sm:$0xff]  }
  0x71   : > { %1619 = vmatprep.subr.bf16.mxu0 %v2740_v17  ;;  %v2819_v17 = vld [vmem:[%s3175_s13 + $0x390] ss:$8 sps:$4 sm:$0xff]  }
  0x73   : > { %1498 = vmatpush1.bf16.msra.mxu1 %v2742_v18  ;;  %v2824_v18 = vld [vmem:[%s3175_s13 + $0x1a4] ss:$8 sps:$4 sm:$0xff]  }
  0x74   : > { %1620 = vmatpush1.bf16.msra.mxu0 %v2743_v19  ;;  %1499 = vmatprep.subr.bf16.mxu1 %v2744_v20  ;;  %v2827_v19 = vld [vmem:[%s3175_s13 + $0x3a4] ss:$8 sps:$4 sm:$0xff]   ;;  %v2822_v20 = vld [vmem:[%s3175_s13 + $0x1a0] ss:$8 sps:$4 sm:$0xff]  }
  0x75   : > { %1621 = vmatprep.subr.bf16.mxu0 %v2746_v21  ;;  %v2825_v21 = vld [vmem:[%s3175_s13 + $0x3a0] ss:$8 sps:$4 sm:$0xff]  }
  0x77   : > { %1500 = vmatpush1.bf16.msra.mxu1 %v2748_v22  ;;  %v2830_v22 = vld [vmem:[%s3175_s13 + $0x1b4] ss:$8 sps:$4 sm:$0xff]  }
  0x78   : > { %1622 = vmatpush1.bf16.msra.mxu0 %v2749_v23  ;;  %1501 = vmatprep.subr.bf16.mxu1 %v2750_v24  ;;  %v2833_v23 = vld [vmem:[%s3175_s13 + $0x3b4] ss:$8 sps:$4 sm:$0xff]   ;;  %v2828_v24 = vld [vmem:[%s3175_s13 + $0x1b0] ss:$8 sps:$4 sm:$0xff]  }
  0x79   : > { %1623 = vmatprep.subr.bf16.mxu0 %v2752_v25  ;;  %v2831_v25 = vld [vmem:[%s3175_s13 + $0x3b0] ss:$8 sps:$4 sm:$0xff]  }
  0x7b   : > { %1502 = vmatpush1.bf16.msra.mxu1 %v2754_v26  ;;  %v2841_v26 = vld [vmem:[%s3175_s13 + $0x1c4] ss:$8 sps:$4 sm:$0xff]  }
  0x7c   : > { %1624 = vmatpush1.bf16.msra.mxu0 %v2755_v27  ;;  %1532 = vmatprep.subr.bf16.mxu1 %v2761_v28  ;;  %v2845_v27 = vld [vmem:[%s3175_s13 + $0x3c4] ss:$8 sps:$4 sm:$0xff]   ;;  %v2839_v28 = vld [vmem:[%s3175_s13 + $0x1c0] ss:$8 sps:$4 sm:$0xff]  }
  0x7d   : > { %1654 = vmatprep.subr.bf16.mxu0 %v2767_v29  ;;  %v2843_v29 = vld [vmem:[%s3175_s13 + $0x3c0] ss:$8 sps:$4 sm:$0xff]  }
  0x7e   : > { %1504 = vmatmul.mubr.bf16.vlgmr.msra.gmra.mrb[0].mxu1 %v2756_v30  ;;  %v2848_v30 = vld [vmem:[%s3175_s13 + $0x1d4] ss:$8 sps:$4 sm:$0xff]  }
  0x7f   : > { %1626 = vmatmul.mubr.bf16.vlgmr.msra.gmra.mrb[0].mxu0 %v2762_v32  ;;  %1533 = vmatpush1.bf16.msra.mxu1 %v2759_v31  ;;  %v2851_v31 = vld [vmem:[%s3175_s13 + $0x3d4] ss:$8 sps:$4 sm:$0xff]   ;;  %v2846_v32 = vld [vmem:[%s3175_s13 + $0x1d0] ss:$8 sps:$4 sm:$0xff]  }
  0x80   : > { %1655 = vmatpush1.bf16.msra.mxu0 %v2765_v33  ;;  %1534 = vmatprep.subr.bf16.mxu1 %v2770_v34  ;;  %v2849_v33 = vld [vmem:[%s3175_s13 + $0x3d0] ss:$8 sps:$4 sm:$0xff]   ;;  %v2857_v34 = vld [vmem:[%s3175_s13 + $0x1e4] ss:$8 sps:$4 sm:$0xff]  }
  0x81   : > { %1656 = vmatprep.subr.bf16.mxu0 %v2773_v35  ;;  %1513 = vmatprep.mubr.bf16.mxu1 %v2834_v50  ;;  %v2861_v35 = vld [vmem:[%s3175_s13 + $0x3e4] ss:$8 sps:$4 sm:$0xff]  }
  0x82   : > { %1635 = vmatprep.mubr.bf16.mxu0 %v2837_v52  ;;  %v2888_v50 = vld [vmem:[%s3175_s13 + $0x424] ss:$8 sps:$4 sm:$0xff]  }
  0x83   : > { %1535 = vmatpush1.bf16.msra.mxu1 %v2768_v36  ;;  %v2855_v36 = vld [vmem:[%s3175_s13 + $0x1e0] ss:$8 sps:$4 sm:$0xff]  }
  0x84   : > { %1657 = vmatpush1.bf16.msra.mxu0 %v2771_v37  ;;  %1536 = vmatprep.subr.bf16.mxu1 %v2776_v38  ;;  %v2859_v37 = vld [vmem:[%s3175_s13 + $0x3e0] ss:$8 sps:$4 sm:$0xff]   ;;  %v2864_v38 = vld [vmem:[%s3175_s13 + $0x1f4] ss:$8 sps:$4 sm:$0xff]  }
  0x85   : > { %1658 = vmatprep.subr.bf16.mxu0 %v2779_v39  ;;  %v2867_v39 = vld [vmem:[%s3175_s13 + $0x3f4] ss:$8 sps:$4 sm:$0xff]  }
  0x86   : > { %1514 = vmatmul.mubr.bf16.gmra.mrb[4].mxu1 %v2836_v51  ;;  %v2884_v51 = vld [vmem:[%s3187_s30 + $0x50] ss:$36 sps:$4 sm:$0xff]   ;;  %v2885_v52 = vld [vmem:[%s3187_s30 + $0x60] ss:$36 sps:$4 sm:$0xff]  }
  0x87   : > { %1537 = vmatpush1.bf16.msra.mxu1 %v2774_v40  ;;  %1636 = vmatmul.mubr.bf16.gmra.mrb[4].mxu0 %v2842_v55  ;;  %v2862_v40 = vld [vmem:[%s3175_s13 + $0x1f0] ss:$8 sps:$4 sm:$0xff]   ;;  %v2886_v55 = vld [vmem:[%s3175_s13 + $0x420] ss:$8 sps:$4 sm:$0xff]  }
  0x88   : > { %1659 = vmatpush1.bf16.msra.mxu0 %v2777_v41  ;;  %1538 = vmatprep.subr.bf16.mxu1 %v2782_v42  ;;  %v2865_v41 = vld [vmem:[%s3175_s13 + $0x3f0] ss:$8 sps:$4 sm:$0xff]   ;;  %v2876_v42 = vld [vmem:[%s3175_s13 + $0x404] ss:$8 sps:$4 sm:$0xff]  }
  0x89   : > { %1660 = vmatprep.subr.bf16.mxu0 %v2785_v43  ;;  %1523 = vmatprep.mubr.bf16.mxu1 %v2347_v62  ;;  %v2868_v43 = vld [vmem:[%s3187_s30 + $0x8] ss:$36 sps:$4 sm:$0xff]  }
  0x8a   : > { %1645 = vmatprep.mubr.bf16.mxu0 %v2351_v63  ;;  %v2894_v63 = vld [vmem:[%s3175_s13 + $0x440] ss:$8 sps:$4 sm:$0xff]  }
  0x8b   : > { %1539 = vmatpush1.bf16.msra.mxu1 %v2780_v44  ;;  %v2871_v44 = vld [vmem:[%s3187_s30 + $0x18] ss:$36 sps:$4 sm:$0xff]  }
  0x8c   : > { %1661 = vmatpush1.bf16.msra.mxu0 %v2783_v45  ;;  %1540 = vmatprep.subr.bf16.mxu1 %v2788_v46  ;;  %v2874_v45 = vld [vmem:[%s3175_s13 + $0x400] ss:$8 sps:$4 sm:$0xff]   ;;  %v2879_v46 = vld [vmem:[%s3175_s13 + $0x414] ss:$8 sps:$4 sm:$0xff]  }
  0x8d   : > { %1662 = vmatprep.subr.bf16.mxu0 %v2791_v47  ;;  %v2880_v47 = vld [vmem:[%s3187_s30 + $0x54] ss:$36 sps:$4 sm:$0xff]  }
  0x8e   : > { %1524 = vmatmul.mubr.bf16.gmra.mrb[8].mxu1 %v2346_v0  ;;  %v2901_v0 = vld [vmem:[%s3175_s13 + $0x454] ss:$8 sps:$4 sm:$0xff]  }
  0x8f   : > { %1541 = vmatpush1.bf16.msra.mxu1 %v2786_v48  ;;  %1646 = vmatmul.mubr.bf16.gmra.mrb[8].mxu0 %v2350_v1  ;;  %v2882_v48 = vld [vmem:[%s3187_s30 + $0x64] ss:$36 sps:$4 sm:$0xff]  }
  0x90   : > { %1663 = vmatpush1.bf16.msra.mxu0 %v2789_v49  ;;  %1542 = vmatprep.subr.bf16.mxu1 %v2794_v53  ;;  %v2877_v49 = vld [vmem:[%s3175_s13 + $0x410] ss:$8 sps:$4 sm:$0xff]   ;;  %v479_v53 = vld [vmem:[%s3187_s30 + $0x98] sm:$0xff] }
  0x91   : > { %1664 = vmatprep.subr.bf16.mxu0 %v2797_v54  ;;  %1564 = vmatprep.mubr.bf16.mxu1 %v2870_v9  ;;  %v481_v54 = vld [vmem:[%s3187_s30 + $0xa8] sm:$0xff]  ;;  %v2348_v61 = vcombine.low %v479_v53, %v479_v53  ;;  %v2910_v9 = vld [vmem:[%s3187_s30 + $0xb0] ss:$0 sps:$4 sm:$0xff]  }
  0x92   : > { %1686 = vmatprep.mubr.bf16.mxu0 %v2873_v11  ;;  %v2352_v62 = vcombine.low %v481_v54, %v481_v54  ;;  %v2899_v1 = vld [vmem:[%s3175_s13 + $0x450] ss:$8 sps:$4 sm:$0xff]  }
  0x93   : > { %1543 = vmatpush1.bf16.msra.mxu1 %v2792_v56  ;;  %v2891_v56 = vld [vmem:[%s3175_s13 + $0x434] ss:$8 sps:$4 sm:$0xff]  }
  0x94   : > { %1665 = vmatpush1.bf16.msra.mxu0 %v2795_v57  ;;  %1544 = vmatprep.subr.bf16.mxu1 %v2800_v58  ;;  %v2349_v57 = vcombine.high %v479_v53, %v479_v53  ;;  %v2353_v58 = vcombine.high %v481_v54, %v481_v54  ;;  %v449_v54 = vld [vmem:[#allocation2 + $0x8] sm:$0xff] }
  0x95   : > { %1666 = vmatprep.subr.bf16.mxu0 %v2803_v59  ;;  %v2889_v59 = vld [vmem:[%s3175_s13 + $0x430] ss:$8 sps:$4 sm:$0xff]  }
  0x97   : > { %1545 = vmatpush1.bf16.msra.mxu1 %v2798_v2  ;;  %v2904_v2 = vld [vmem:[%s3175_s13 + $0x464] ss:$8 sps:$4 sm:$0xff]  }
  0x98   : > { %1667 = vmatpush1.bf16.msra.mxu0 %v2801_v3  ;;  %1546 = vmatprep.subr.bf16.mxu1 %v2806_v4  ;;  %v3015_v3 = vmov 0   ;;  %v2902_v4 = vld [vmem:[%s3175_s13 + $0x460] ss:$8 sps:$4 sm:$0xff]  }
  0x99   : > { %1668 = vmatprep.subr.bf16.mxu0 %v2809_v5  ;;  %v2907_v5 = vld [vmem:[%s3175_s13 + $0x474] ss:$8 sps:$4 sm:$0xff]  }
  0x9b   : > { %1547 = vmatpush1.bf16.msra.mxu1 %v2804_v6  ;;  %v2905_v6 = vld [vmem:[%s3175_s13 + $0x470] ss:$8 sps:$4 sm:$0xff]  }
  0x9c   : > { %1669 = vmatpush1.bf16.msra.mxu0 %v2807_v7  ;;  %1548 = vmatprep.subr.bf16.mxu1 %v2812_v8  ;;  %v2908_v7 = vld [vmem:[%s3187_s30 + $0x20] ss:$36 sps:$4 sm:$0xff]   ;;  %v2909_v8 = vld [vmem:[%s3187_s30 + $0x68] ss:$36 sps:$4 sm:$0xff]  }
  0x9d   : > { %1670 = vmatprep.subr.bf16.mxu0 %v2815_v10 }
  0x9f   : > { %1549 = vmatpush1.bf16.msra.mxu1 %v2810_v12 }
  0xa0   : > { %1671 = vmatpush1.bf16.msra.mxu0 %v2813_v13  ;;  %1550 = vmatprep.subr.bf16.mxu1 %v2818_v14 }
  0xa1   : > { %1672 = vmatprep.subr.bf16.mxu0 %v2821_v15 }
  0xa3   : > { %1551 = vmatpush1.bf16.msra.mxu1 %v2816_v16 }
  0xa4   : > { %1673 = vmatpush1.bf16.msra.mxu0 %v2819_v17  ;;  %1552 = vmatprep.subr.bf16.mxu1 %v2824_v18 }
  0xa5   : > { %1674 = vmatprep.subr.bf16.mxu0 %v2827_v19 }
  0xa7   : > { %1553 = vmatpush1.bf16.msra.mxu1 %v2822_v20 }
  0xa8   : > { %1675 = vmatpush1.bf16.msra.mxu0 %v2825_v21  ;;  %1554 = vmatprep.subr.bf16.mxu1 %v2830_v22 }
  0xa9   : > { %1676 = vmatprep.subr.bf16.mxu0 %v2833_v23 }
  0xab   : > { %1555 = vmatpush1.bf16.msra.mxu1 %v2828_v24 }
  0xac   : > { %1677 = vmatpush1.bf16.msra.mxu0 %v2831_v25  ;;  %1556 = vmatprep.subr.bf16.mxu1 %v2841_v26 }
  0xad   : > { %1678 = vmatprep.subr.bf16.mxu0 %v2845_v27 }
  0xaf   : > { %1557 = vmatpush1.bf16.msra.mxu1 %v2839_v28 }
  0xb0   : > { %1679 = vmatpush1.bf16.msra.mxu0 %v2843_v29  ;;  %1558 = vmatprep.subr.bf16.mxu1 %v2848_v30 }
  0xb1   : > { %1680 = vmatprep.subr.bf16.mxu0 %v2851_v31 }
  0xb3   : > { %1559 = vmatpush1.bf16.msra.mxu1 %v2846_v32 }
  0xb4   : > { %1681 = vmatpush1.bf16.msra.mxu0 %v2849_v33  ;;  %1560 = vmatprep.subr.bf16.mxu1 %v2857_v34 }
  0xb5   : > { %1682 = vmatprep.subr.bf16.mxu0 %v2861_v35 }
  0xb7   : > { %1561 = vmatpush1.bf16.msra.mxu1 %v2855_v36 }
  0xb8   : > { %1683 = vmatpush1.bf16.msra.mxu0 %v2859_v37  ;;  %1562 = vmatprep.subr.bf16.mxu1 %v2864_v38 }
  0xb9   : > { %1684 = vmatprep.subr.bf16.mxu0 %v2867_v39 }
  0xbb   : > { %1563 = vmatpush1.bf16.msra.mxu1 %v2862_v40 }
  0xbc   : > { %1685 = vmatpush1.bf16.msra.mxu0 %v2865_v41  ;;  %2532 = vmatprep.subr.bf16.mxu1 %v2876_v42 }
  0xbd   : > { %1715 = vmatprep.subr.bf16.mxu0 %v2876_v42 }
  0xbe   : > { %1565 = vmatmul.mubr.bf16.vlgmr.msra.gmra.mrb[0].mxu1 %v2868_v43 }
  0xbf   : > { %1687 = vmatmul.mubr.bf16.vlgmr.msra.gmra.mrb[0].mxu0 %v2871_v44  ;;  %2540 = vmatpush1.bf16.msra.mxu1 %v2874_v45 }
  0xc0   : > { %1716 = vmatpush1.bf16.msra.mxu0 %v2874_v45  ;;  %2533 = vmatprep.subr.bf16.mxu1 %v2879_v46 }
  0xc1   : > { %1717 = vmatprep.subr.bf16.mxu0 %v2879_v46  ;;  %1574 = vmatprep.mubr.bf16.mxu1 %v2880_v47 }
  0xc2   : > { %1696 = vmatprep.mubr.bf16.mxu0 %v2882_v48  ;;  %v448_v48 = vld [vmem:[#allocation2] sm:$0xff] }
  0xc3   : > { %2541 = vmatpush1.bf16.msra.mxu1 %v2877_v49 }
  0xc4   : > { %1718 = vmatpush1.bf16.msra.mxu0 %v2877_v49  ;;  %2534 = vmatprep.subr.bf16.mxu1 %v2888_v50 }
  0xc5   : > { %1719 = vmatprep.subr.bf16.mxu0 %v2888_v50  ;;  %v452_v50 = vld [vmem:[#allocation2 + $0x20] sm:$0xff] }
  0xc6   : > { %1575 = vmatmul.mubr.bf16.gmra.mrb[4].mxu1 %v2884_v51 }
  0xc7   : > { %1697 = vmatmul.mubr.bf16.gmra.mrb[4].mxu0 %v2885_v52  ;;  %2542 = vmatpush1.bf16.msra.mxu1 %v2886_v55 }
  0xc8   : > { %1720 = vmatpush1.bf16.msra.mxu0 %v2886_v55  ;;  %2535 = vmatprep.subr.bf16.mxu1 %v2891_v56 }
  0xc9   : > { %1721 = vmatprep.subr.bf16.mxu0 %v2891_v56  ;;  %1584 = vmatprep.mubr.bf16.mxu1 %v2349_v57  ;;  %v453_v56 = vld [vmem:[#allocation2 + $0x28] sm:$0xff] }
  0xca   : > { %1706 = vmatprep.mubr.bf16.mxu0 %v2353_v58 }
  0xcb   : > { %2543 = vmatpush1.bf16.msra.mxu1 %v2889_v59 }
  0xcc   : > { %1722 = vmatpush1.bf16.msra.mxu0 %v2889_v59  ;;  %2536 = vmatprep.subr.bf16.mxu1 %v2896_v60 }
  0xcd   : > { %1723 = vmatprep.subr.bf16.mxu0 %v2896_v60  ;;  %v450_v60 = vld [vmem:[#allocation2 + $0x10] sm:$0xff] }
  0xce   : > { %1585 = vmatmul.mubr.bf16.gmra.mrb[12].mxu1 %v2348_v61 }
  0xcf   : > { %1707 = vmatmul.mubr.bf16.gmra.mrb[12].mxu0 %v2352_v62  ;;  %2544 = vmatpush1.bf16.msra.mxu1 %v2894_v63  ;;  %v454_v62 = vld [vmem:[#allocation2 + $0x30] sm:$0xff] }
  0xd0   : > { %1724 = vmatpush1.bf16.msra.mxu0 %v2894_v63  ;;  %2537 = vmatprep.subr.bf16.mxu1 %v2901_v0 }
  0xd1   : > { %1725 = vmatprep.subr.bf16.mxu0 %v2901_v0  ;;  %1747 = vmatprep.mubr.bf16.mxu0 %v3015_v3 }
  0xd2   : > { %1757 = vmatprep.mubr.bf16.mxu1 %v3015_v3 }
  0xd3   : > { %2545 = vmatpush1.bf16.msra.mxu1 %v2899_v1 }
  0xd4   : > { %1726 = vmatpush1.bf16.msra.mxu0 %v2899_v1  ;;  %2538 = vmatprep.subr.bf16.mxu1 %v2904_v2 }
  0xd5   : > { %1727 = vmatprep.subr.bf16.mxu0 %v2904_v2 }
  0xd7   : > { %2546 = vmatpush1.bf16.msra.mxu1 %v2902_v4 }
  0xd8   : > { %1728 = vmatpush1.bf16.msra.mxu0 %v2902_v4  ;;  %2539 = vmatprep.subr.bf16.mxu1 %v2907_v5  ;;  %v451_v4 = vld [vmem:[#allocation2 + $0x18] sm:$0xff] }
  0xd9   : > { %1729 = vmatprep.subr.bf16.mxu0 %v2907_v5 }
  0xdb   : > { %2547 = vmatpush1.bf16.msra.mxu1 %v2905_v6 }
  0xdc   : > { %1730 = vmatpush1.bf16.msra.mxu0 %v2905_v6  ;;  %v455_v6 = vld [vmem:[#allocation2 + $0x38] sm:$0xff] }
  0xde   : > { %1758 = vmatmul.mubr.bf16.vlgmr.msra.gmra.mrb[16].mxu1 %v2909_v8 }
  0xdf   : > { %1748 = vmatmul.mubr.bf16.vlgmr.msra.gmra.mrb[0].mxu0 %v2908_v7  ;;  %1767 = vmatprep.mubr.bf16.mxu1 %v3015_v3 }
  0xe6   : > { %1768 = vmatmul.mubr.bf16.gmra.mrb[20].mxu1 %v2910_v9 }
 0x161   : > { %v1525_v10 = vpop.f32.mrb[8].mxu1 }
 0x162   : > { %v1647_v11 = vpop.f32.mrb[8].mxu0  ;;  %v1527_v12 = vpop.f32.mrb[9].mxu1 }
 0x163   : > { %v1649_v13 = vpop.f32.mrb[9].mxu0  ;;  %v1529_v14 = vpop.f32.mrb[10].mxu1 }
 0x164   : > { %v1651_v15 = vpop.f32.mrb[10].mxu0  ;;  %v1530_v16 = vpop.f32.mrb[11].mxu1 }
 0x165   : > { %v1652_v17 = vpop.f32.mrb[11].mxu0  ;;  %v456_v16 = vld [vmem:[#allocation2 + $0x40] sm:$0xff] }
 0x191   : > { %v1566_v18 = vpop.f32.mrb[0].mxu1 }
 0x192   : > { %v1568_v19 = vpop.f32.mrb[1].mxu1 }
 0x193   : > { %v1570_v20 = vpop.f32.mrb[2].mxu1 }
 0x194   : > { %v1572_v21 = vpop.f32.mrb[3].mxu1 }
 0x199   : > { %v1576_v22 = vpop.f32.mrb[4].mxu1 }
 0x19a   : > { %v1698_v23 = vpop.f32.mrb[4].mxu0  ;;  %v1578_v25 = vpop.f32.mrb[5].mxu1 }
 0x19b   : > { %v2552_v24 = vadd.f32 %v1698_v23, %v1576_v22  ;;  %v1700_v26 = vpop.f32.mrb[5].mxu0  ;;  %v1580_v28 = vpop.f32.mrb[6].mxu1 }
 0x19c   : > { %v2554_v27 = vadd.f32 %v1700_v26, %v1578_v25  ;;  %v1702_v29 = vpop.f32.mrb[6].mxu0  ;;  %v1582_v31 = vpop.f32.mrb[7].mxu1  ;;  %v2911_v26 = vld [vmem:[%s3516_s5 + $0x4] ss:$8 sps:$4 sm:$0xff] (!%p2499_p13)  }
 0x19d   : > { %v2556_v30 = vadd.f32 %v1702_v29, %v1580_v28  ;;  %v1704_v32 = vpop.f32.mrb[7].mxu0  ;;  %v3016_v28 = vmov (!%p2499_p13), 0   ;;  %1971 = vmatprep.subr.bf16.mxu0 (!%p2499_p13), %v2911_v26  ;;  %2580 = vmatprep.subr.bf16.mxu1 (!%p2499_p13), %v2911_v26  ;;  %v2914_v29 = vld [vmem:[%s3516_s5 + $0x14] ss:$8 sps:$4 sm:$0xff] (!%p2499_p13)  }
 0x19e   : > { %v2558_v33 = vadd.f32 %v1704_v32, %v1582_v31  ;;  %2003 = vmatprep.mubr.bf16.mxu0 (!%p2499_p13), %v3016_v28  ;;  %2013 = vmatprep.mubr.bf16.mxu1 (!%p2499_p13), %v3016_v28  ;;  %v2917_v31 = vld [vmem:[%s3516_s5 + $0x24] ss:$8 sps:$4 sm:$0xff] (!%p2499_p13)   ;;  %v2919_v32 = vld [vmem:[%s3516_s5 + $0x20] ss:$8 sps:$4 sm:$0xff] (!%p2499_p13)  }
 0x1a1   : > { %v1586_v34 = vpop.f32.mrb[12].mxu1 }
 0x1a2   : > { %v1708_v35 = vpop.f32.mrb[12].mxu0  ;;  %v1587_v36 = vadd.f32 %v1586_v34, %v1525_v10  ;;  %v1588_v37 = vpop.f32.mrb[13].mxu1  ;;  %v2922_v34 = vld [vmem:[%s3516_s5 + $0x30] ss:$8 sps:$4 sm:$0xff] (!%p2499_p13)  }
 0x1a3   : > { %v1710_v38 = vpop.f32.mrb[13].mxu0  ;;  %v1589_v39 = vadd.f32 %v1588_v37, %v1527_v12  ;;  %v1590_v40 = vpop.f32.mrb[14].mxu1  ;;  %v2926_v37 = vld [vmem:[%s3516_s5 + $0x54] ss:$8 sps:$4 sm:$0xff] (!%p2499_p13)  }
 0x1a4   : > { %v1712_v41 = vpop.f32.mrb[14].mxu0  ;;  %v1648_v42 = vadd.f32 %v1647_v11, %v1587_v36  ;;  %v1591_v43 = vpop.f32.mrb[15].mxu1  ;;  %v2925_v36 = vld [vmem:[%s3516_s5 + $0x40] ss:$8 sps:$4 sm:$0xff] (!%p2499_p13)  }
 0x1a5   : > { %v1713_v44 = vpop.f32.mrb[15].mxu0  ;;  %v1650_v45 = vadd.f32 %v1649_v13, %v1589_v39  ;;  %v2929_v39 = vld [vmem:[%s3516_s5 + $0x64] ss:$8 sps:$4 sm:$0xff] (!%p2499_p13)   ;;  %v2931_v40 = vld [vmem:[%s3516_s5 + $0x60] ss:$8 sps:$4 sm:$0xff] (!%p2499_p13)  }
 0x1a6   : > { %v1709_v46 = vadd.f32 %v1708_v35, %v1648_v42  ;;  %v2923_v35 = vld [vmem:[%s3516_s5 + $0x44] ss:$8 sps:$4 sm:$0xff] (!%p2499_p13)   ;;  %v2932_v41 = vld [vmem:[%s3516_s5 + $0x74] ss:$8 sps:$4 sm:$0xff] (!%p2499_p13)   ;;  %v2934_v42 = vld [vmem:[%s3516_s5 + $0x70] ss:$8 sps:$4 sm:$0xff] (!%p2499_p13)  }
 0x1a7   : > { %v1711_v47 = vadd.f32 %v1710_v38, %v1650_v45  ;;  %v2928_v38 = vld [vmem:[%s3516_s5 + $0x50] ss:$8 sps:$4 sm:$0xff] (!%p2499_p13)   ;;  %v2935_v43 = vld [vmem:[%s3180_s18] sm:$0xff] (!%p2499_p13)   ;;  %v2936_v44 = vld [vmem:[%s3180_s18 + $0x8] sm:$0xff] (!%p2499_p13)  }
 0x1a8   : > { %v2937_v45 = vld [vmem:[%s3180_s18 + $0x10] ss:$0 sps:$4 sm:$0xff] (!%p2499_p13)  }
 0x1b1   : > { %v1759_v51 = vpop.f32.mrb[16].mxu1 }
 0x1b2   : > { %v1749_v49 = vpop.f32.mrb[0].mxu0  ;;  %v2553_v53 = vadd.f32 %v2552_v24, %v1759_v51  ;;  %v1761_v57 = vpop.f32.mrb[17].mxu1 }
 0x1b3   : > { %v2548_v52 = vadd.f32 %v1749_v49, %v1566_v18  ;;  %v1751_v55 = vpop.f32.mrb[1].mxu0  ;;  %v2555_v59 = vadd.f32 %v2554_v27, %v1761_v57  ;;  %v1763_v63 = vpop.f32.mrb[18].mxu1  ;;  %v2913_v27 = vld [vmem:[%s3516_s5] ss:$8 sps:$4 sm:$0xff] (!%p2499_p13)  }
 0x1b4   : > { %v2549_v58 = vadd.f32 %v1751_v55, %v1568_v19  ;;  %v1753_v61 = vpop.f32.mrb[2].mxu0  ;;  %v1780_v1 = vadd.f32 %v2553_v53, %v452_v50  ;;  %v2557_v3 = vadd.f32 %v2556_v30, %v1763_v63  ;;  %v1765_v7 = vpop.f32.mrb[19].mxu1  ;;  %v457_v19 = vld [vmem:[#allocation2 + $0x48] sm:$0xff]  ;;  %1972 = vmatpush1.bf16.msra.mxu0 (!%p2499_p13), %v2913_v27  ;;  %2588 = vmatpush1.bf16.msra.mxu1 (!%p2499_p13), %v2913_v27  ;;  %v2916_v30 = vld [vmem:[%s3516_s5 + $0x10] ss:$8 sps:$4 sm:$0xff] (!%p2499_p13)  }
 0x1b5   : > { %v1776_v0 = vadd.f32 %v2548_v52, %v448_v48  ;;  %v2550_v2 = vadd.f32 %v1753_v61, %v1570_v20  ;;  %v1755_v5 = vpop.f32.mrb[3].mxu0  ;;  %v1781_v9 = vadd.f32 %v2555_v59, %v453_v56  ;;  %v2559_v11 = vadd.f32 %v2558_v33, %v1765_v7  ;;  %1973 = vmatprep.subr.bf16.mxu0 (!%p2499_p13), %v2914_v29  ;;  %v2920_v33 = vld [vmem:[%s3516_s5 + $0x34] ss:$8 sps:$4 sm:$0xff] (!%p2499_p13)   ;;  %v1810_v49 = vld [vmem:[%s3513_s2] sm:$0x3] (!%p2499_p13) }
 0x1b6   : > { %v1777_v8 = vadd.f32 %v2549_v58, %v449_v54  ;;  %v2551_v10 = vadd.f32 %v1755_v5, %v1572_v21  ;;  %1790 = vst [vmem:[#allocation2 + $0x20] sm:$0xff] %v1780_v1  ;;  %v1782_v13 = vadd.f32 %v2557_v3, %v454_v62  ;;  %2581 = vmatprep.subr.bf16.mxu1 (!%p2499_p13), %v2914_v29  ;;  %v1832_v53 = vld [vmem:[%s3514_s3] sm:$0x3] (!%p2499_p13) }
 0x1b7   : > { %1786 = vst [vmem:[#allocation2] sm:$0xff] %v1776_v0  ;;  %v1778_v12 = vadd.f32 %v2550_v2, %v450_v60  ;;  %1791 = vst [vmem:[#allocation2 + $0x28] sm:$0xff] %v1781_v9  ;;  %v1783_v15 = vadd.f32 %v2559_v11, %v455_v6 }
 0x1b8   : > { %1787 = vst [vmem:[#allocation2 + $0x8] sm:$0xff] %v1777_v8  ;;  %v1779_v14 = vadd.f32 %v2551_v10, %v451_v4  ;;  %1792 = vst [vmem:[#allocation2 + $0x30] sm:$0xff] %v1782_v13  ;;  %1974 = vmatpush1.bf16.msra.mxu0 (!%p2499_p13), %v2916_v30  ;;  %2589 = vmatpush1.bf16.msra.mxu1 (!%p2499_p13), %v2916_v30 }
 0x1b9   : > { %1788 = vst [vmem:[#allocation2 + $0x10] sm:$0xff] %v1778_v12  ;;  %1793 = vst [vmem:[#allocation2 + $0x38] sm:$0xff] %v1783_v15  ;;  %v1769_v17 = vpop.f32.mrb[20].mxu1  ;;  %1799 = sbr.rel (%p2499_p13) target bundleno = 720 (0x2d0), region = 78  ;;  %1975 = vmatprep.subr.bf16.mxu0 (!%p2499_p13), %v2917_v31  ;;  %2582 = vmatprep.subr.bf16.mxu1 (!%p2499_p13), %v2917_v31 }
 0x1ba   : > { %1789 = vst [vmem:[#allocation2 + $0x18] sm:$0xff] %v1779_v14  ;;  %v1770_v18 = vadd.f32 %v1769_v17, %v1709_v46  ;;  %v1771_v20 = vpop.f32.mrb[21].mxu1  ;;  %v1812_v46 = vlaneseq (!%p2499_p13) }
 0x1bb   : > { %v1772_v22 = vadd.f32 %v1771_v20, %v1711_v47  ;;  %v1773_v21 = vpop.f32.mrb[22].mxu1 }
 0x1bc   : > { %v1784_v23 = vadd.f32 %v1770_v18, %v456_v16  ;;  %v1774_v24 = vpop.f32.mrb[23].mxu1  ;;  %1976 = vmatpush1.bf16.msra.mxu0 (!%p2499_p13), %v2919_v32  ;;  %2590 = vmatpush1.bf16.msra.mxu1 (!%p2499_p13), %v2919_v32  ;;  %v1813_v47 = vshrl.u32 (!%p2499_p13), %v1812_v46, 7 }
 0x1bd   : > { %v1785_v25 = vadd.f32 %v1772_v22, %v457_v19  ;;  %1977 = vmatprep.subr.bf16.mxu0 (!%p2499_p13), %v2920_v33  ;;  %2583 = vmatprep.subr.bf16.mxu1 (!%p2499_p13), %v2920_v33  ;;  %v1804_v54 = vld [vmem:[#allocation2 + $0x20] sm:$0xff] (!%p2499_p13) }
 0x1be   : > { %1794 = vst [vmem:[#allocation2 + $0x40] sm:$0xff] %v1784_v23  ;;  %v1814_v48 = vsub.s32 (!%p2499_p13), 0, %v1813_v47  ;;  %v1818_v50 = vsub.s32 (!%p2499_p13), 1, %v1813_v47  ;;  %v1800_v52 = vld [vmem:[#allocation2] sm:$0xff] (!%p2499_p13)  ;;  %v1805_v57 = vld [vmem:[#allocation2 + $0x28] sm:$0xff] (!%p2499_p13) }
 0x1bf   : > { %1795 = vst [vmem:[#allocation2 + $0x48] sm:$0xff] %v1785_v25  ;;  %v1801_v56 = vld [vmem:[#allocation2 + $0x8] sm:$0xff] (!%p2499_p13)  ;;  %v1806_v1 = vld [vmem:[#allocation2 + $0x30] sm:$0xff] (!%p2499_p13) }
 0x1c0   : > { %1978 = vmatpush1.bf16.msra.mxu0 %v2922_v34  ;;  %2591 = vmatpush1.bf16.msra.mxu1 %v2922_v34  ;;  %v1815_v51 = vrot.slane %v1810_v49, %v1814_v48  ;;  %v1819_v55 = vrot.slane %v1810_v49, %v1818_v50  ;;  %v1837_v59 = vrot.slane %v1832_v53, %v1814_v48  ;;  %v1802_v0 = vld [vmem:[#allocation2 + $0x10] sm:$0xff]  ;;  %v1807_v7 = vld [vmem:[#allocation2 + $0x38] sm:$0xff] }
 0x1c1   : > { %1979 = vmatprep.subr.bf16.mxu0 %v2923_v35  ;;  %2584 = vmatprep.subr.bf16.mxu1 %v2923_v35  ;;  %v1841_v62 = vrot.slane %v1832_v53, %v1818_v50  ;;  %v1803_v2 = vld [vmem:[#allocation2 + $0x18] sm:$0xff] }
 0x1c2   : > { %v1822_v58 = vmul.f32 %v1815_v51, %v1800_v52  ;;  %v1826_v60 = vmul.f32 %v1815_v51, %v1804_v54  ;;  %v1823_v61 = vmul.f32 %v1819_v55, %v1801_v56  ;;  %v1827_v63 = vmul.f32 %v1819_v55, %v1805_v57 }
 0x1c3   : > { %v1824_v5 = vmul.f32 %v1815_v51, %v1802_v0  ;;  %v1828_v6 = vmul.f32 %v1815_v51, %v1806_v1  ;;  %v1825_v10 = vmul.f32 %v1819_v55, %v1803_v2  ;;  %v1829_v13 = vmul.f32 %v1819_v55, %v1807_v7 }
 0x1c4   : > { %1980 = vmatpush1.bf16.msra.mxu0 %v2925_v36  ;;  %2592 = vmatpush1.bf16.msra.mxu1 %v2925_v36  ;;  %v1844_v3 = vadd.f32 %v1837_v59, %v1822_v58  ;;  %v1848_v4 = vadd.f32 %v1837_v59, %v1826_v60  ;;  %v1845_v8 = vadd.f32 %v1841_v62, %v1823_v61 }
 0x1c5   : > { %1981 = vmatprep.subr.bf16.mxu0 %v2926_v37  ;;  %2585 = vmatprep.subr.bf16.mxu1 %v2926_v37  ;;  %v1849_v9 = vadd.f32 %v1841_v62, %v1827_v63  ;;  %v1808_v14 = vld [vmem:[#allocation2 + $0x40] sm:$0xff]  ;;  %v1846_v19 = vadd.f32 %v1837_v59, %v1824_v5  ;;  %v1850_v20 = vadd.f32 %v1837_v59, %v1828_v6 }
 0x1c6   : > { %v1809_v22 = vld [vmem:[#allocation2 + $0x48] sm:$0xff]  ;;  %v1847_v26 = vadd.f32 %v1841_v62, %v1825_v10  ;;  %v1830_v29 = vmul.f32 %v1815_v51, %v1808_v14  ;;  %v1851_v32 = vadd.f32 %v1841_v62, %v1829_v13 }
 0x1c7   : > { %v1831_v33 = vmul.f32 %v1819_v55, %v1809_v22 }
 0x1c8   : > { %1982 = vmatpush1.bf16.msra.mxu0 %v2928_v38  ;;  %2593 = vmatpush1.bf16.msra.mxu1 %v2928_v38  ;;  %v1852_v46 = vadd.f32 %v1837_v59, %v1830_v29 }
 0x1c9   : > { %1983 = vmatprep.subr.bf16.mxu0 %v2929_v39  ;;  %2586 = vmatprep.subr.bf16.mxu1 %v2929_v39  ;;  %v1853_v51 = vadd.f32 %v1841_v62, %v1831_v33 }
 0x1cc   : > { %1984 = vmatpush1.bf16.msra.mxu0 %v2931_v40  ;;  %2594 = vmatpush1.bf16.msra.mxu1 %v2931_v40 }
 0x1cd   : > { %1985 = vmatprep.subr.bf16.mxu0 %v2932_v41  ;;  %2587 = vmatprep.subr.bf16.mxu1 %v2932_v41 }
 0x1d0   : > { %1986 = vmatpush1.bf16.msra.mxu0 %v2934_v42  ;;  %2595 = vmatpush1.bf16.msra.mxu1 %v2934_v42 }
 0x1d3   : > { %2004 = vmatmul.mubr.bf16.vlgmr.msra.gmra.mrb[0].mxu0 %v2935_v43  ;;  %2014 = vmatmul.mubr.bf16.vlgmr.msra.gmra.mrb[0].mxu1 %v2936_v44 }
 0x1d4   : > { %2023 = vmatprep.mubr.bf16.mxu1 %v3016_v28 }
 0x1db   : > { %2024 = vmatmul.mubr.bf16.gmra.mrb[4].mxu1 %v2937_v45 }
 0x2a6   : > { %v2005_v11 = vpop.f32.mrb[0].mxu0  ;;  %v2015_v12 = vpop.f32.mrb[0].mxu1 }
 0x2a7   : > { %v3415_v15 = vadd.f32 %v2005_v11, %v1844_v3  ;;  %v3417_v16 = vadd.f32 %v2015_v12, %v1848_v4  ;;  %v2007_v17 = vpop.f32.mrb[1].mxu0  ;;  %v2017_v18 = vpop.f32.mrb[1].mxu1 }
 0x2a8   : > { %v3419_v21 = vadd.f32 %v2007_v17, %v1845_v8  ;;  %v3421_v23 = vadd.f32 %v2017_v18, %v1849_v9  ;;  %v2009_v24 = vpop.f32.mrb[2].mxu0  ;;  %v2019_v25 = vpop.f32.mrb[2].mxu1 }
 0x2a9   : > { %v2052_v27 = vmul.f32 0.044715, %v3415_v15  ;;  %v2056_v28 = vmul.f32 0.044715, %v3417_v16  ;;  %v3429_v36 = vadd.f32 %v2009_v24, %v1846_v19  ;;  %v3431_v37 = vadd.f32 %v2019_v25, %v1850_v20  ;;  %v2011_v38 = vpop.f32.mrb[3].mxu0  ;;  %v2021_v39 = vpop.f32.mrb[3].mxu1 }
 0x2aa   : > { %v2053_v30 = vmul.f32 0.044715, %v3419_v21  ;;  %v2057_v31 = vmul.f32 0.044715, %v3421_v23  ;;  %v3435_v42 = vadd.f32 %v2011_v38, %v1847_v26  ;;  %v3446_v55 = vadd.f32 %v2021_v39, %v1851_v32 }
 0x2ab   : > { %v2062_v34 = vmul.f32 %v2052_v27, %v3415_v15  ;;  %v2066_v35 = vmul.f32 %v2056_v28, %v3417_v16  ;;  %v2054_v45 = vmul.f32 0.044715, %v3429_v36  ;;  %v2058_v49 = vmul.f32 0.044715, %v3431_v37 }
 0x2ac   : > { %v2063_v40 = vmul.f32 %v2053_v30, %v3419_v21  ;;  %v2067_v41 = vmul.f32 %v2057_v31, %v3421_v23  ;;  %v2055_v60 = vmul.f32 0.044715, %v3435_v42  ;;  %v2059_v7 = vmul.f32 0.044715, %v3446_v55 }
 0x2ad   : > { %v2072_v43 = vmul.f32 %v2062_v34, %v3415_v15  ;;  %v2076_v44 = vmul.f32 %v2066_v35, %v3417_v16  ;;  %v2064_v54 = vmul.f32 %v2054_v45, %v3429_v36  ;;  %v2068_v59 = vmul.f32 %v2058_v49, %v3431_v37 }
 0x2ae   : > { %v2073_v47 = vmul.f32 %v2063_v40, %v3419_v21  ;;  %v2077_v48 = vmul.f32 %v2067_v41, %v3421_v23  ;;  %v2025_v50 = vpop.f32.mrb[4].mxu1  ;;  %v2065_v5 = vmul.f32 %v2055_v60, %v3435_v42  ;;  %v2069_v13 = vmul.f32 %v2059_v7, %v3446_v55 }
 0x2af   : > { %v2082_v52 = vadd.f32 %v2072_v43, %v3415_v15  ;;  %v2086_v53 = vadd.f32 %v2076_v44, %v3417_v16  ;;  %v2027_v56 = vpop.f32.mrb[5].mxu1  ;;  %v2074_v0 = vmul.f32 %v2064_v54, %v3429_v36  ;;  %v2078_v4 = vmul.f32 %v2068_v59, %v3431_v37 }
 0x2b0   : > { %v2083_v57 = vadd.f32 %v2073_v47, %v3419_v21  ;;  %v2087_v58 = vadd.f32 %v2077_v48, %v3421_v23  ;;  %v2029_v61 = vpop.f32.mrb[6].mxu1  ;;  %v3457_v8 = vadd.f32 %v2025_v50, %v1852_v46  ;;  %v2075_v10 = vmul.f32 %v2065_v5, %v3435_v42 }
 0x2b1   : > { %v2092_v63 = vmul.f32 0.7978846, %v2082_v52  ;;  %v2096_v62 = vmul.f32 0.7978846, %v2086_v53  ;;  %v2030_v1 = vpop.f32.mrb[7].mxu1  ;;  %v2084_v6 = vadd.f32 %v2074_v0, %v3429_v36  ;;  %v2088_v9 = vadd.f32 %v2078_v4, %v3431_v37 }
 0x2b2   : > { %v2093_v2 = vmul.f32 0.7978846, %v2083_v57  ;;  %v2097_v3 = vmul.f32 0.7978846, %v2087_v58  ;;  %v3461_v11 = vadd.f32 %v2027_v56, %v1853_v51  ;;  %v2085_v17 = vadd.f32 %v2075_v10, %v3435_v42 }
 0x2b3   : > { %2938 = vtanh.f32 %v2092_v63  ;;  %v2094_v12 = vmul.f32 0.7978846, %v2084_v6  ;;  %v2098_v14 = vmul.f32 0.7978846, %v2088_v9  ;;  %v2060_v18 = vmul.f32 0.044715, %v3457_v8 }
 0x2b4   : > { %2940 = vtanh.f32 %v2096_v62  ;;  %v2079_v19 = vmul.f32 %v2069_v13, %v3446_v55  ;;  %v2061_v20 = vmul.f32 0.044715, %v3461_v11  ;;  %v2095_v22 = vmul.f32 0.7978846, %v2085_v17 }
 0x2b5   : > { %2942 = vtanh.f32 %v2093_v2  ;;  %v2070_v24 = vmul.f32 %v2060_v18, %v3457_v8  ;;  %v2042_v34 = vmul.f32 0.5, %v3415_v15  ;;  %v2046_v40 = vmul.f32 0.5, %v3417_v16 }
 0x2b6   : > { %2944 = vtanh.f32 %v2097_v3  ;;  %v2089_v25 = vadd.f32 %v2079_v19, %v3446_v55  ;;  %v2071_v26 = vmul.f32 %v2061_v20, %v3461_v11  ;;  %v2043_v46 = vmul.f32 0.5, %v3419_v21 }
 0x2b7   : > { %2946 = vtanh.f32 %v2094_v12  ;;  %v2080_v27 = vmul.f32 %v2070_v24, %v3457_v8  ;;  %v2047_v50 = vmul.f32 0.5, %v3421_v23  ;;  %v2044_v54 = vmul.f32 0.5, %v3429_v36 }
 0x2b8   : > { %2948 = vtanh.f32 %v2098_v14  ;;  %v2099_v28 = vmul.f32 0.7978846, %v2089_v25  ;;  %v2081_v29 = vmul.f32 %v2071_v26, %v3461_v11  ;;  %v2045_v60 = vmul.f32 0.5, %v3435_v42 }
 0x2b9   : > { %2950 = vtanh.f32 %v2095_v22  ;;  %v2090_v30 = vadd.f32 %v2080_v27, %v3457_v8  ;;  %v2048_v23 = vmul.f32 0.5, %v3431_v37  ;;  %v2049_v1 = vmul.f32 0.5, %v3446_v55 }
 0x2ba   : > { %2952 = vtanh.f32 %v2099_v28  ;;  %v2091_v32 = vadd.f32 %v2081_v29, %v3461_v11  ;;  %v2050_v42 = vmul.f32 0.5, %v3457_v8  ;;  %v2051_v37 = vmul.f32 0.5, %v3461_v11 }
 0x2bb   : > { %v2100_v38 = vmul.f32 0.7978846, %v2090_v30 }
 0x2bc   : > { %v2101_v43 = vmul.f32 0.7978846, %v2091_v32 }
 0x2bd   : > { %v2939_v31 = vpop.eup %2938  ;;  %2954 = vtanh.f32 %v2100_v38 }
 0x2be   : > { %v2941_v33 = vpop.eup %2940  ;;  %v2112_v35 = vadd.f32 1.0, %v2939_v31  ;;  %2956 = vtanh.f32 %v2101_v43 }
 0x2bf   : > { %v2943_v39 = vpop.eup %2942  ;;  %v2116_v41 = vadd.f32 1.0, %v2941_v33 }
 0x2c0   : > { %v2945_v44 = vpop.eup %2944  ;;  %v2122_v45 = vmul.f32 %v2112_v35, %v2042_v34  ;;  %v2113_v47 = vadd.f32 1.0, %v2943_v39 }
 0x2c1   : > { %v2947_v48 = vpop.eup %2946  ;;  %v2126_v49 = vmul.f32 %v2116_v41, %v2046_v40  ;;  %v2117_v51 = vadd.f32 1.0, %v2945_v44 }
 0x2c2   : > { %v2949_v15 = vpop.eup %2948  ;;  %v2123_v52 = vmul.f32 %v2113_v47, %v2043_v46  ;;  %v2114_v53 = vadd.f32 1.0, %v2947_v48 }
 0x2c3   : > { %v2127_v16 = vmul.f32 %v2117_v51, %v2047_v50  ;;  %v2951_v56 = vpop.eup %2950  ;;  %v2118_v58 = vadd.f32 1.0, %v2949_v15 }
 0x2c4   : > { %v2527_v57 = vpack.c.bf16 %v2123_v52, %v2122_v45  ;;  %v2124_v59 = vmul.f32 %v2114_v53, %v2044_v54  ;;  %v2115_v61 = vadd.f32 1.0, %v2951_v56  ;;  %v2953_v63 = vpop.eup %2952 }
 0x2c5   : > { %v2529_v21 = vpack.c.bf16 %v2127_v16, %v2126_v49  ;;  %v2128_v0 = vmul.f32 %v2118_v58, %v2048_v23  ;;  %v2119_v36 = vadd.f32 1.0, %v2953_v63 }
 0x2c6   : > { %2164 = vst [vmem:[%s3185_s20] sm:$0xff] %v2527_v57  ;;  %v2125_v62 = vmul.f32 %v2115_v61, %v2045_v60 }
 0x2c7   : > { %2166 = vst [vmem:[%s3185_s20 + $0x10] sm:$0xff] %v2529_v21  ;;  %v2955_v3 = vpop.eup %2954  ;;  %v2129_v4 = vmul.f32 %v2119_v36, %v2049_v1 }
 0x2c8   : > { %v2528_v2 = vpack.c.bf16 %v2125_v62, %v2124_v59  ;;  %v2957_v5 = vpop.eup %2956  ;;  %v2120_v6 = vadd.f32 1.0, %v2955_v3 }
 0x2c9   : > { %v2530_v7 = vpack.c.bf16 %v2129_v4, %v2128_v0  ;;  %v2121_v9 = vadd.f32 1.0, %v2957_v5 }
 0x2ca   : > { %2165 = vst [vmem:[%s3185_s20 + $0x8] sm:$0xff] %v2528_v2  ;;  %v2130_v10 = vmul.f32 %v2120_v6, %v2050_v42 }
 0x2cb   : > { %2167 = vst [vmem:[%s3185_s20 + $0x18] sm:$0xff] %v2530_v7  ;;  %v2131_v12 = vmul.f32 %v2121_v9, %v2051_v37 }
 0x2cd   : > { %v2531_v13 = vpack.c.bf16 %v2131_v12, %v2130_v10 }
 0x2cf   : > { %2168 = vst [vmem:[%s3185_s20 + $0x20] sm:$0xff] %v2531_v13 }
 0x2d0 PF: > { %s16_s27 = sadd.s32 1, %s3012_s27   ;;  %s3518_s21 = smov %s2992_s22 }
 0x2d1   : > { %p13_p0 = scmp.ge.s32.totalorder %s16_s27, 14   ;;  %s3519_s22 = smov %s3103_s10 }
 0x2d2   : > { %s3520_s23 = smov %s3004_s25  ;;  %s3521_s24 = smov %s3008_s26 }
 0x2d3   : > { %s3522_s25 = smov %s3525_s28  ;;  %s3523_s26 = smov %s3529_s29 }
 0x2d4   :  { %15 = sbr.rel (!%p13_p0) target bundleno = 4 (0x4), region = 125 }

// kernel: spatiotemporal_encoder.14
= control target key start
LH: loop header
LB: loop body
LE: loop exit
PB: predicated region body
PF: predicated region fallthrough
CT: control target
= control target key end

     0   :  { %s1029_s9 = smov 0   ;;  %s1031_s10 = smov 0   ;;  %s1264_s0 = inlined_call_operand.vmem [shape: bf16[144,12], index: 0, kind: input, shape index: {}]   ;;  %s1265_s1 = inlined_call_operand.vmem [shape: bf16[2,12,768], index: 1, kind: input, shape index: {}]   ;;  %s1266_s2 = inlined_call_operand.vmem [shape: f32[2,144,768], index: 2, kind: output, shape index: {}]  }
   0x1   :  { %s1033_s11 = smov 0  }
   0x2 LB: > { %s24_s12 = sadd.s32 1, %s1007_s10  ;;  %p892_p0 = scmp.ge.s32.totalorder %s1011_s11, 1  ;;  %s1011_s11 = sphi %s1033_s11, %s12_s11   ;;  %s1007_s10 = sphi %s1031_s10, %s1268_s10   ;;  %s1003_s9 = sphi %s1029_s9, %s1267_s9  }
   0x3   : > { %p26_p1 = scmp.ge.s32.totalorder %s24_s12, 2  ;;  %p133_p2 = scmp.lt.s32.totalorder %s1011_s11, 3 }
   0x5   : > { %s1270_s12 = smov (%p26_p1, %s24_s12), 0  ;;  %p134_p3 = pnand %p892_p0, %p133_p2 }
   0x6   : > { %p164_p4 = scmp.lt.s32.totalorder (!%p134_p3), %s1003_s9, 1  ;;  %v1013_v0 = vmov (!%p134_p3), 0   ;;  %vm305_vm0 = vcmask (!%p134_p3), 1045504   ;;  %v974_v3 = vld [vmem:[%s1264_s0] sm:$0xff] (!%p134_p3)   ;;  %v978_v7 = vld [vmem:[%s1264_s0 + $0x28] sm:$0xff] (!%p134_p3)   ;;  %vm277_vm1 = vcmask (!%p134_p3), 97280  }
   0x7   : > { %137 = sbr.rel (%p134_p3) target bundleno = 344 (0x158), region = 28  ;;  %356 = vmatprep.mubr.bf16.mxu0 (!%p134_p3), %v1013_v0  ;;  %406 = vmatprep.mubr.bf16.mxu1 (!%p134_p3), %v1013_v0  ;;  %v979_v12 = vld [vmem:[%s1264_s0 + $0x8] sm:$0xff] (!%p134_p3)   ;;  %v983_v13 = vld [vmem:[%s1264_s0 + $0x30] sm:$0xff] (!%p134_p3)   ;;  %v985_v15 = vld [vmem:[%s1264_s0 + $0x38] sm:$0xff] (!%p134_p3)  }
   0x8   : > { %v984_v14 = vld [vmem:[%s1264_s0 + $0x10] sm:$0xff] (!%p134_p3)   ;;  %v986_v16 = vld [vmem:[%s1264_s0 + $0x18] sm:$0xff] (!%p134_p3)   ;;  %v987_v17 = vld [vmem:[%s1264_s0 + $0x40] sm:$0xff] (!%p134_p3)  }
   0x9   : > { %v988_v18 = vld [vmem:[%s1264_s0 + $0x20] sm:$0xff] (!%p134_p3)  }
   0xe   : > { %s1272_s9 = smov (!%p164_p4, %s1003_s9), 1 }
   0xf   : > { %s944_s13 = smul.u32 48, %s1272_s9 }
  0x10   : > { %s945_s7 = smul.u32 864, %s1272_s9 }
  0x11   : > { %s171_s16 = scalar_lea.vmem %s1265_s1, %s944_s13 }
  0x12   : > { %v971_v1 = vld [vmem:[%s171_s16 + $0x4] ss:$24 sps:$4 sm:$0x3f]   ;;  %v973_v2 = vld [vmem:[%s171_s16] ss:$24 sps:$4 sm:$0x3f]   ;;  %s1145_s14 = scalar_lea.vmem %s1266_s2, %s945_s7 }
  0x13   : > { %910 = vmatprep.subr.msk.bf16.mxu0 %vm305_vm0, %v971_v1  ;;  %v975_v4 = vld [vmem:[%s171_s16 + $0x14] ss:$24 sps:$4 sm:$0x3f]   ;;  %v977_v5 = vld [vmem:[%s171_s16 + $0x10] ss:$24 sps:$4 sm:$0x3f]   ;;  %942 = vmatprep.subr.msk.bf16.mxu1 %vm305_vm0, %v971_v1 }
  0x14   : > { %v307_v6 = vsel %vm305_vm0, %v973_v2, 0  ;;  %v980_v8 = vld [vmem:[%s171_s16 + $0xc] ss:$24 sps:$4 sm:$0x3f]   ;;  %v319_v9 = vsel %vm305_vm0, %v977_v5, 0 }
  0x15   : > { %325 = vmatpush1.bf16.msra.mxu0 %v307_v6  ;;  %943 = vmatpush1.bf16.msra.mxu1 %v307_v6  ;;  %v982_v10 = vld [vmem:[%s171_s16 + $0x8] ss:$24 sps:$4 sm:$0x3f]  }
  0x16   : > { %930 = vmatprep.subr.msk.bf16.mxu0 %vm305_vm0, %v975_v4  ;;  %920 = vmatprep.subr.msk.bf16.mxu1 %vm305_vm0, %v980_v8  ;;  %v313_v11 = vsel %vm305_vm0, %v982_v10, 0 }
  0x18   : > { %911 = vmatmul.mubr.msk.bf16.vlgmr.msra.gmra.mrb[0].mxu0 %vm277_vm1, %v974_v3  ;;  %916 = vmatmul.mubr.msk.bf16.vlgmr.msra.gmra.mrb[0].mxu1 %vm277_vm1, %v978_v7 }
  0x19   : > { %571 = vmatpush1.bf16.msra.mxu0 %v319_v9  ;;  %366 = vmatprep.mubr.bf16.mxu0 %v1013_v0 }
  0x1a   : > { %448 = vmatpush1.bf16.msra.mxu1 %v313_v11  ;;  %416 = vmatprep.mubr.bf16.mxu1 %v1013_v0 }
  0x20   : > { %912 = vmatmul.mubr.msk.bf16.gmra.mrb[4].mxu0 %vm277_vm1, %v979_v12  ;;  %917 = vmatmul.mubr.msk.bf16.gmra.mrb[4].mxu1 %vm277_vm1, %v983_v13 }
  0x21   : > { %376 = vmatprep.mubr.bf16.mxu0 %v1013_v0  ;;  %426 = vmatprep.mubr.bf16.mxu1 %v1013_v0 }
  0x28   : > { %913 = vmatmul.mubr.msk.bf16.gmra.mrb[8].mxu0 %vm277_vm1, %v984_v14  ;;  %918 = vmatmul.mubr.msk.bf16.gmra.mrb[8].mxu1 %vm277_vm1, %v985_v15 }
  0x29   : > { %386 = vmatprep.mubr.bf16.mxu0 %v1013_v0  ;;  %436 = vmatprep.mubr.bf16.mxu1 %v1013_v0 }
  0x30   : > { %914 = vmatmul.mubr.msk.bf16.gmra.mrb[12].mxu0 %vm277_vm1, %v986_v16  ;;  %919 = vmatmul.mubr.msk.bf16.gmra.mrb[12].mxu1 %vm277_vm1, %v987_v17 }
  0x31   : > { %396 = vmatprep.mubr.bf16.mxu0 %v1013_v0  ;;  %479 = vmatprep.mubr.bf16.mxu1 %v1013_v0 }
  0x38   : > { %915 = vmatmul.mubr.msk.bf16.gmra.mrb[16].mxu0 %vm277_vm1, %v988_v18  ;;  %921 = vmatmul.mubr.msk.bf16.vlgmr.msra.gmra.mrb[16].mxu1 %vm277_vm1, %v974_v3 }
  0x39   : > { %602 = vmatprep.mubr.bf16.mxu0 %v1013_v0  ;;  %489 = vmatprep.mubr.bf16.mxu1 %v1013_v0 }
  0x40   : > { %931 = vmatmul.mubr.msk.bf16.vlgmr.msra.gmra.mrb[20].mxu0 %vm277_vm1, %v974_v3  ;;  %922 = vmatmul.mubr.msk.bf16.gmra.mrb[20].mxu1 %vm277_vm1, %v979_v12 }
  0x41   : > { %612 = vmatprep.mubr.bf16.mxu0 %v1013_v0  ;;  %499 = vmatprep.mubr.bf16.mxu1 %v1013_v0 }
  0x48   : > { %932 = vmatmul.mubr.msk.bf16.gmra.mrb[24].mxu0 %vm277_vm1, %v979_v12  ;;  %923 = vmatmul.mubr.msk.bf16.gmra.mrb[24].mxu1 %vm277_vm1, %v984_v14 }
  0x49   : > { %622 = vmatprep.mubr.bf16.mxu0 %v1013_v0  ;;  %509 = vmatprep.mubr.bf16.mxu1 %v1013_v0 }
  0x50   : > { %933 = vmatmul.mubr.msk.bf16.gmra.mrb[28].mxu0 %vm277_vm1, %v984_v14  ;;  %924 = vmatmul.mubr.msk.bf16.gmra.mrb[28].mxu1 %vm277_vm1, %v986_v16 }
  0x51   : > { %632 = vmatprep.mubr.bf16.mxu0 %v1013_v0  ;;  %519 = vmatprep.mubr.bf16.mxu1 %v1013_v0 }
  0x58   : > { %934 = vmatmul.mubr.msk.bf16.gmra.mrb[32].mxu0 %vm277_vm1, %v986_v16  ;;  %925 = vmatmul.mubr.msk.bf16.gmra.mrb[32].mxu1 %vm277_vm1, %v988_v18 }
  0x59   : > { %642 = vmatprep.mubr.bf16.mxu0 %v1013_v0  ;;  %529 = vmatprep.mubr.bf16.mxu1 %v1013_v0 }
  0x60   : > { %935 = vmatmul.mubr.msk.bf16.gmra.mrb[36].mxu0 %vm277_vm1, %v988_v18  ;;  %926 = vmatmul.mubr.msk.bf16.gmra.mrb[36].mxu1 %vm277_vm1, %v978_v7 }
  0x61   : > { %652 = vmatprep.mubr.bf16.mxu0 %v1013_v0  ;;  %539 = vmatprep.mubr.bf16.mxu1 %v1013_v0 }
  0x68   : > { %936 = vmatmul.mubr.msk.bf16.gmra.mrb[40].mxu0 %vm277_vm1, %v978_v7  ;;  %927 = vmatmul.mubr.msk.bf16.gmra.mrb[40].mxu1 %vm277_vm1, %v983_v13 }
  0x69   : > { %662 = vmatprep.mubr.bf16.mxu0 %v1013_v0  ;;  %549 = vmatprep.mubr.bf16.mxu1 %v1013_v0 }
  0x70   : > { %937 = vmatmul.mubr.msk.bf16.gmra.mrb[44].mxu0 %vm277_vm1, %v983_v13  ;;  %928 = vmatmul.mubr.msk.bf16.gmra.mrb[44].mxu1 %vm277_vm1, %v985_v15 }
  0x71   : > { %672 = vmatprep.mubr.bf16.mxu0 %v1013_v0  ;;  %559 = vmatprep.mubr.bf16.mxu1 %v1013_v0 }
  0x78   : > { %938 = vmatmul.mubr.msk.bf16.gmra.mrb[48].mxu0 %vm277_vm1, %v985_v15  ;;  %929 = vmatmul.mubr.msk.bf16.gmra.mrb[48].mxu1 %vm277_vm1, %v987_v17 }
  0x79   : > { %682 = vmatprep.mubr.bf16.mxu0 %v1013_v0 }
  0x80   : > { %939 = vmatmul.mubr.msk.bf16.gmra.mrb[52].mxu0 %vm277_vm1, %v987_v17 }
  0xeb   : > { %v358_v19 = vpop.f32.mrb[0].mxu0  ;;  %v408_v20 = vpop.f32.mrb[0].mxu1 }
  0xec   : > { %693 = vst [vmem:[%s1145_s14] sm:$0xff] %v358_v19  ;;  %v360_v21 = vpop.f32.mrb[1].mxu0  ;;  %753 = vst [vmem:[%s1145_s14 + $0x1e0] sm:$0xff] %v408_v20  ;;  %v410_v22 = vpop.f32.mrb[1].mxu1 }
  0xed   : > { %694 = vst [vmem:[%s1145_s14 + $0x8] sm:$0xff] %v360_v21  ;;  %v362_v23 = vpop.f32.mrb[2].mxu0  ;;  %754 = vst [vmem:[%s1145_s14 + $0x1e8] sm:$0xff] %v410_v22  ;;  %v412_v24 = vpop.f32.mrb[2].mxu1 }
  0xee   : > { %699 = vst [vmem:[%s1145_s14 + $0x30] sm:$0xff] %v362_v23  ;;  %v364_v25 = vpop.f32.mrb[3].mxu0  ;;  %759 = vst [vmem:[%s1145_s14 + $0x210] sm:$0xff] %v412_v24  ;;  %v414_v26 = vpop.f32.mrb[3].mxu1 }
  0xef   : > { %700 = vst [vmem:[%s1145_s14 + $0x38] sm:$0xff] %v364_v25  ;;  %760 = vst [vmem:[%s1145_s14 + $0x218] sm:$0xff] %v414_v26 }
  0xf3   : > { %v368_v27 = vpop.f32.mrb[4].mxu0  ;;  %v418_v28 = vpop.f32.mrb[4].mxu1 }
  0xf4   : > { %705 = vst [vmem:[%s1145_s14 + $0x60] sm:$0xff] %v368_v27  ;;  %v370_v29 = vpop.f32.mrb[5].mxu0  ;;  %765 = vst [vmem:[%s1145_s14 + $0x240] sm:$0xff] %v418_v28  ;;  %v420_v30 = vpop.f32.mrb[5].mxu1 }
  0xf5   : > { %706 = vst [vmem:[%s1145_s14 + $0x68] sm:$0xff] %v370_v29  ;;  %v372_v31 = vpop.f32.mrb[6].mxu0  ;;  %766 = vst [vmem:[%s1145_s14 + $0x248] sm:$0xff] %v420_v30  ;;  %v422_v32 = vpop.f32.mrb[6].mxu1 }
  0xf6   : > { %711 = vst [vmem:[%s1145_s14 + $0x90] sm:$0xff] %v372_v31  ;;  %v374_v33 = vpop.f32.mrb[7].mxu0  ;;  %771 = vst [vmem:[%s1145_s14 + $0x270] sm:$0xff] %v422_v32  ;;  %v424_v34 = vpop.f32.mrb[7].mxu1 }
  0xf7   : > { %712 = vst [vmem:[%s1145_s14 + $0x98] sm:$0xff] %v374_v33  ;;  %772 = vst [vmem:[%s1145_s14 + $0x278] sm:$0xff] %v424_v34 }
  0xfb   : > { %v378_v35 = vpop.f32.mrb[8].mxu0  ;;  %v428_v36 = vpop.f32.mrb[8].mxu1 }
  0xfc   : > { %717 = vst [vmem:[%s1145_s14 + $0xc0] sm:$0xff] %v378_v35  ;;  %v380_v37 = vpop.f32.mrb[9].mxu0  ;;  %777 = vst [vmem:[%s1145_s14 + $0x2a0] sm:$0xff] %v428_v36  ;;  %v430_v38 = vpop.f32.mrb[9].mxu1 }
  0xfd   : > { %718 = vst [vmem:[%s1145_s14 + $0xc8] sm:$0xff] %v380_v37  ;;  %v382_v39 = vpop.f32.mrb[10].mxu0  ;;  %778 = vst [vmem:[%s1145_s14 + $0x2a8] sm:$0xff] %v430_v38  ;;  %v432_v40 = vpop.f32.mrb[10].mxu1 }
  0xfe   : > { %723 = vst [vmem:[%s1145_s14 + $0xf0] sm:$0xff] %v382_v39  ;;  %v384_v41 = vpop.f32.mrb[11].mxu0  ;;  %783 = vst [vmem:[%s1145_s14 + $0x2d0] sm:$0xff] %v432_v40  ;;  %v434_v42 = vpop.f32.mrb[11].mxu1 }
  0xff   : > { %724 = vst [vmem:[%s1145_s14 + $0xf8] sm:$0xff] %v384_v41  ;;  %784 = vst [vmem:[%s1145_s14 + $0x2d8] sm:$0xff] %v434_v42 }
 0x103   : > { %v388_v43 = vpop.f32.mrb[12].mxu0  ;;  %v438_v44 = vpop.f32.mrb[12].mxu1 }
 0x104   : > { %729 = vst [vmem:[%s1145_s14 + $0x120] sm:$0xff] %v388_v43  ;;  %v390_v45 = vpop.f32.mrb[13].mxu0  ;;  %789 = vst [vmem:[%s1145_s14 + $0x300] sm:$0xff] %v438_v44  ;;  %v440_v46 = vpop.f32.mrb[13].mxu1 }
 0x105   : > { %730 = vst [vmem:[%s1145_s14 + $0x128] sm:$0xff] %v390_v45  ;;  %v392_v47 = vpop.f32.mrb[14].mxu0  ;;  %790 = vst [vmem:[%s1145_s14 + $0x308] sm:$0xff] %v440_v46  ;;  %v442_v48 = vpop.f32.mrb[14].mxu1 }
 0x106   : > { %735 = vst [vmem:[%s1145_s14 + $0x150] sm:$0xff] %v392_v47  ;;  %v394_v49 = vpop.f32.mrb[15].mxu0  ;;  %795 = vst [vmem:[%s1145_s14 + $0x330] sm:$0xff] %v442_v48  ;;  %v444_v50 = vpop.f32.mrb[15].mxu1 }
 0x107   : > { %736 = vst [vmem:[%s1145_s14 + $0x158] sm:$0xff] %v394_v49  ;;  %796 = vst [vmem:[%s1145_s14 + $0x338] sm:$0xff] %v444_v50 }
 0x10b   : > { %v398_v51 = vpop.f32.mrb[16].mxu0  ;;  %v481_v52 = vpop.f32.mrb[16].mxu1 }
 0x10c   : > { %741 = vst [vmem:[%s1145_s14 + $0x180] sm:$0xff] %v398_v51  ;;  %v400_v53 = vpop.f32.mrb[17].mxu0  ;;  %695 = vst [vmem:[%s1145_s14 + $0x10] sm:$0xff] %v481_v52  ;;  %v483_v54 = vpop.f32.mrb[17].mxu1 }
 0x10d   : > { %742 = vst [vmem:[%s1145_s14 + $0x188] sm:$0xff] %v400_v53  ;;  %v402_v55 = vpop.f32.mrb[18].mxu0  ;;  %696 = vst [vmem:[%s1145_s14 + $0x18] sm:$0xff] %v483_v54  ;;  %v485_v56 = vpop.f32.mrb[18].mxu1 }
 0x10e   : > { %747 = vst [vmem:[%s1145_s14 + $0x1b0] sm:$0xff] %v402_v55  ;;  %v404_v57 = vpop.f32.mrb[19].mxu0  ;;  %701 = vst [vmem:[%s1145_s14 + $0x40] sm:$0xff] %v485_v56  ;;  %v487_v58 = vpop.f32.mrb[19].mxu1 }
 0x10f   : > { %748 = vst [vmem:[%s1145_s14 + $0x1b8] sm:$0xff] %v404_v57  ;;  %702 = vst [vmem:[%s1145_s14 + $0x48] sm:$0xff] %v487_v58 }
 0x113   : > { %v604_v59 = vpop.f32.mrb[20].mxu0  ;;  %v491_v60 = vpop.f32.mrb[20].mxu1 }
 0x114   : > { %697 = vst [vmem:[%s1145_s14 + $0x20] sm:$0xff] %v604_v59  ;;  %v606_v61 = vpop.f32.mrb[21].mxu0  ;;  %707 = vst [vmem:[%s1145_s14 + $0x70] sm:$0xff] %v491_v60  ;;  %v493_v62 = vpop.f32.mrb[21].mxu1 }
 0x115   : > { %698 = vst [vmem:[%s1145_s14 + $0x28] sm:$0xff] %v606_v61  ;;  %v608_v63 = vpop.f32.mrb[22].mxu0  ;;  %708 = vst [vmem:[%s1145_s14 + $0x78] sm:$0xff] %v493_v62  ;;  %v495_v0 = vpop.f32.mrb[22].mxu1 }
 0x116   : > { %703 = vst [vmem:[%s1145_s14 + $0x50] sm:$0xff] %v608_v63  ;;  %v610_v1 = vpop.f32.mrb[23].mxu0  ;;  %713 = vst [vmem:[%s1145_s14 + $0xa0] sm:$0xff] %v495_v0  ;;  %v497_v2 = vpop.f32.mrb[23].mxu1 }
 0x117   : > { %704 = vst [vmem:[%s1145_s14 + $0x58] sm:$0xff] %v610_v1  ;;  %714 = vst [vmem:[%s1145_s14 + $0xa8] sm:$0xff] %v497_v2 }
 0x11b   : > { %v614_v3 = vpop.f32.mrb[24].mxu0  ;;  %v501_v4 = vpop.f32.mrb[24].mxu1 }
 0x11c   : > { %709 = vst [vmem:[%s1145_s14 + $0x80] sm:$0xff] %v614_v3  ;;  %v616_v5 = vpop.f32.mrb[25].mxu0  ;;  %719 = vst [vmem:[%s1145_s14 + $0xd0] sm:$0xff] %v501_v4  ;;  %v503_v6 = vpop.f32.mrb[25].mxu1 }
 0x11d   : > { %710 = vst [vmem:[%s1145_s14 + $0x88] sm:$0xff] %v616_v5  ;;  %v618_v7 = vpop.f32.mrb[26].mxu0  ;;  %720 = vst [vmem:[%s1145_s14 + $0xd8] sm:$0xff] %v503_v6  ;;  %v505_v8 = vpop.f32.mrb[26].mxu1 }
 0x11e   : > { %715 = vst [vmem:[%s1145_s14 + $0xb0] sm:$0xff] %v618_v7  ;;  %v620_v9 = vpop.f32.mrb[27].mxu0  ;;  %725 = vst [vmem:[%s1145_s14 + $0x100] sm:$0xff] %v505_v8  ;;  %v507_v10 = vpop.f32.mrb[27].mxu1 }
 0x11f   : > { %716 = vst [vmem:[%s1145_s14 + $0xb8] sm:$0xff] %v620_v9  ;;  %726 = vst [vmem:[%s1145_s14 + $0x108] sm:$0xff] %v507_v10 }
 0x123   : > { %v624_v11 = vpop.f32.mrb[28].mxu0  ;;  %v511_v12 = vpop.f32.mrb[28].mxu1 }
 0x124   : > { %721 = vst [vmem:[%s1145_s14 + $0xe0] sm:$0xff] %v624_v11  ;;  %v626_v13 = vpop.f32.mrb[29].mxu0  ;;  %731 = vst [vmem:[%s1145_s14 + $0x130] sm:$0xff] %v511_v12  ;;  %v513_v14 = vpop.f32.mrb[29].mxu1 }
 0x125   : > { %722 = vst [vmem:[%s1145_s14 + $0xe8] sm:$0xff] %v626_v13  ;;  %v628_v15 = vpop.f32.mrb[30].mxu0  ;;  %732 = vst [vmem:[%s1145_s14 + $0x138] sm:$0xff] %v513_v14  ;;  %v515_v16 = vpop.f32.mrb[30].mxu1 }
 0x126   : > { %727 = vst [vmem:[%s1145_s14 + $0x110] sm:$0xff] %v628_v15  ;;  %v630_v17 = vpop.f32.mrb[31].mxu0  ;;  %737 = vst [vmem:[%s1145_s14 + $0x160] sm:$0xff] %v515_v16  ;;  %v517_v18 = vpop.f32.mrb[31].mxu1 }
 0x127   : > { %728 = vst [vmem:[%s1145_s14 + $0x118] sm:$0xff] %v630_v17  ;;  %738 = vst [vmem:[%s1145_s14 + $0x168] sm:$0xff] %v517_v18 }
 0x12b   : > { %v634_v19 = vpop.f32.mrb[32].mxu0  ;;  %v521_v20 = vpop.f32.mrb[32].mxu1 }
 0x12c   : > { %733 = vst [vmem:[%s1145_s14 + $0x140] sm:$0xff] %v634_v19  ;;  %v636_v21 = vpop.f32.mrb[33].mxu0  ;;  %743 = vst [vmem:[%s1145_s14 + $0x190] sm:$0xff] %v521_v20  ;;  %v523_v22 = vpop.f32.mrb[33].mxu1 }
 0x12d   : > { %734 = vst [vmem:[%s1145_s14 + $0x148] sm:$0xff] %v636_v21  ;;  %v638_v23 = vpop.f32.mrb[34].mxu0  ;;  %744 = vst [vmem:[%s1145_s14 + $0x198] sm:$0xff] %v523_v22  ;;  %v525_v24 = vpop.f32.mrb[34].mxu1 }
 0x12e   : > { %739 = vst [vmem:[%s1145_s14 + $0x170] sm:$0xff] %v638_v23  ;;  %v640_v25 = vpop.f32.mrb[35].mxu0  ;;  %749 = vst [vmem:[%s1145_s14 + $0x1c0] sm:$0xff] %v525_v24  ;;  %v527_v26 = vpop.f32.mrb[35].mxu1 }
 0x12f   : > { %740 = vst [vmem:[%s1145_s14 + $0x178] sm:$0xff] %v640_v25  ;;  %750 = vst [vmem:[%s1145_s14 + $0x1c8] sm:$0xff] %v527_v26 }
 0x133   : > { %v644_v27 = vpop.f32.mrb[36].mxu0  ;;  %v531_v28 = vpop.f32.mrb[36].mxu1 }
 0x134   : > { %745 = vst [vmem:[%s1145_s14 + $0x1a0] sm:$0xff] %v644_v27  ;;  %v646_v29 = vpop.f32.mrb[37].mxu0  ;;  %755 = vst [vmem:[%s1145_s14 + $0x1f0] sm:$0xff] %v531_v28  ;;  %v533_v30 = vpop.f32.mrb[37].mxu1 }
 0x135   : > { %746 = vst [vmem:[%s1145_s14 + $0x1a8] sm:$0xff] %v646_v29  ;;  %v648_v31 = vpop.f32.mrb[38].mxu0  ;;  %756 = vst [vmem:[%s1145_s14 + $0x1f8] sm:$0xff] %v533_v30  ;;  %v535_v32 = vpop.f32.mrb[38].mxu1 }
 0x136   : > { %751 = vst [vmem:[%s1145_s14 + $0x1d0] sm:$0xff] %v648_v31  ;;  %v650_v33 = vpop.f32.mrb[39].mxu0  ;;  %761 = vst [vmem:[%s1145_s14 + $0x220] sm:$0xff] %v535_v32  ;;  %v537_v34 = vpop.f32.mrb[39].mxu1 }
 0x137   : > { %752 = vst [vmem:[%s1145_s14 + $0x1d8] sm:$0xff] %v650_v33  ;;  %762 = vst [vmem:[%s1145_s14 + $0x228] sm:$0xff] %v537_v34 }
 0x13b   : > { %v654_v35 = vpop.f32.mrb[40].mxu0  ;;  %v541_v36 = vpop.f32.mrb[40].mxu1 }
 0x13c   : > { %757 = vst [vmem:[%s1145_s14 + $0x200] sm:$0xff] %v654_v35  ;;  %v656_v37 = vpop.f32.mrb[41].mxu0  ;;  %767 = vst [vmem:[%s1145_s14 + $0x250] sm:$0xff] %v541_v36  ;;  %v543_v38 = vpop.f32.mrb[41].mxu1 }
 0x13d   : > { %758 = vst [vmem:[%s1145_s14 + $0x208] sm:$0xff] %v656_v37  ;;  %v658_v39 = vpop.f32.mrb[42].mxu0  ;;  %768 = vst [vmem:[%s1145_s14 + $0x258] sm:$0xff] %v543_v38  ;;  %v545_v40 = vpop.f32.mrb[42].mxu1 }
 0x13e   : > { %763 = vst [vmem:[%s1145_s14 + $0x230] sm:$0xff] %v658_v39  ;;  %v660_v41 = vpop.f32.mrb[43].mxu0  ;;  %773 = vst [vmem:[%s1145_s14 + $0x280] sm:$0xff] %v545_v40  ;;  %v547_v42 = vpop.f32.mrb[43].mxu1 }
 0x13f   : > { %764 = vst [vmem:[%s1145_s14 + $0x238] sm:$0xff] %v660_v41  ;;  %774 = vst [vmem:[%s1145_s14 + $0x288] sm:$0xff] %v547_v42 }
 0x143   : > { %v664_v43 = vpop.f32.mrb[44].mxu0  ;;  %v551_v44 = vpop.f32.mrb[44].mxu1 }
 0x144   : > { %769 = vst [vmem:[%s1145_s14 + $0x260] sm:$0xff] %v664_v43  ;;  %v666_v45 = vpop.f32.mrb[45].mxu0  ;;  %779 = vst [vmem:[%s1145_s14 + $0x2b0] sm:$0xff] %v551_v44  ;;  %v553_v46 = vpop.f32.mrb[45].mxu1 }
 0x145   : > { %770 = vst [vmem:[%s1145_s14 + $0x268] sm:$0xff] %v666_v45  ;;  %v668_v47 = vpop.f32.mrb[46].mxu0  ;;  %780 = vst [vmem:[%s1145_s14 + $0x2b8] sm:$0xff] %v553_v46  ;;  %v555_v48 = vpop.f32.mrb[46].mxu1 }
 0x146   : > { %775 = vst [vmem:[%s1145_s14 + $0x290] sm:$0xff] %v668_v47  ;;  %v670_v49 = vpop.f32.mrb[47].mxu0  ;;  %785 = vst [vmem:[%s1145_s14 + $0x2e0] sm:$0xff] %v555_v48  ;;  %v557_v50 = vpop.f32.mrb[47].mxu1 }
 0x147   : > { %776 = vst [vmem:[%s1145_s14 + $0x298] sm:$0xff] %v670_v49  ;;  %786 = vst [vmem:[%s1145_s14 + $0x2e8] sm:$0xff] %v557_v50 }
 0x14b   : > { %v674_v51 = vpop.f32.mrb[48].mxu0  ;;  %v561_v52 = vpop.f32.mrb[48].mxu1 }
 0x14c   : > { %781 = vst [vmem:[%s1145_s14 + $0x2c0] sm:$0xff] %v674_v51  ;;  %v676_v53 = vpop.f32.mrb[49].mxu0  ;;  %791 = vst [vmem:[%s1145_s14 + $0x310] sm:$0xff] %v561_v52  ;;  %v563_v54 = vpop.f32.mrb[49].mxu1 }
 0x14d   : > { %782 = vst [vmem:[%s1145_s14 + $0x2c8] sm:$0xff] %v676_v53  ;;  %v678_v55 = vpop.f32.mrb[50].mxu0  ;;  %792 = vst [vmem:[%s1145_s14 + $0x318] sm:$0xff] %v563_v54  ;;  %v565_v56 = vpop.f32.mrb[50].mxu1 }
 0x14e   : > { %787 = vst [vmem:[%s1145_s14 + $0x2f0] sm:$0xff] %v678_v55  ;;  %v680_v57 = vpop.f32.mrb[51].mxu0  ;;  %797 = vst [vmem:[%s1145_s14 + $0x340] sm:$0xff] %v565_v56  ;;  %v567_v58 = vpop.f32.mrb[51].mxu1 }
 0x14f   : > { %788 = vst [vmem:[%s1145_s14 + $0x2f8] sm:$0xff] %v680_v57  ;;  %798 = vst [vmem:[%s1145_s14 + $0x348] sm:$0xff] %v567_v58 }
 0x153   : > { %v684_v59 = vpop.f32.mrb[52].mxu0 }
 0x154   : > { %793 = vst [vmem:[%s1145_s14 + $0x320] sm:$0xff] %v684_v59  ;;  %v686_v60 = vpop.f32.mrb[53].mxu0 }
 0x155   : > { %794 = vst [vmem:[%s1145_s14 + $0x328] sm:$0xff] %v686_v60  ;;  %v688_v61 = vpop.f32.mrb[54].mxu0 }
 0x156   : > { %799 = vst [vmem:[%s1145_s14 + $0x350] sm:$0xff] %v688_v61  ;;  %v690_v62 = vpop.f32.mrb[55].mxu0 }
 0x157   : > { %800 = vst [vmem:[%s1145_s14 + $0x358] sm:$0xff] %v690_v62 }
 0x158 PF: > { %s12_s11 = sadd.s32 1, %s1011_s11   ;;  %s1267_s9 = smov %s1007_s10 }
 0x159   : > { %p9_p5 = scmp.ge.s32.totalorder %s12_s11, 4   ;;  %s1268_s10 = smov %s1270_s12 }
 0x15b   :  { %11 = sbr.rel (!%p9_p5) target bundleno = 2 (0x2), region = 58 }

// kernel: spatiotemporal_encoder.15
= control target key start
LH: loop header
LB: loop body
LE: loop exit
PB: predicated region body
PF: predicated region fallthrough
CT: control target
= control target key end

     0   :  { %s2360_s9 = smov 0   ;;  %s2362_s10 = smov 0   ;;  %s2748_s0 = inlined_call_operand.vmem [shape: f32[20,3], index: 0, kind: input, shape index: {}]   ;;  %s2749_s1 = inlined_call_operand.vmem [shape: f32[2,144,3,256], index: 1, kind: input, shape index: {}]   ;;  %s2750_s2 = inlined_call_operand.vmem [shape: f32[2,144,20,256], index: 2, kind: output, shape index: {}]  }
   0x1   :  { %s2364_s11 = smov 0   ;;  %s2366_s12 = smov 0  }
   0x2   :  { %s2368_s13 = smov 0  }
   0x3 LB: > { %s21_s14 = sadd.s32 1, %s2334_s11  ;;  %s24_s15 = sadd.s32 1, %s2338_s12  ;;  %s2342_s13 = sphi %s2368_s13, %s12_s13   ;;  %s2338_s12 = sphi %s2366_s12, %s2754_s12   ;;  %s2334_s11 = sphi %s2364_s11, %s2753_s11   ;;  %s2330_s10 = sphi %s2362_s10, %s2752_s10   ;;  %s2326_s9 = sphi %s2360_s9, %s2751_s9  }
   0x4   : > { %p22_p0 = scmp.ge.s32.totalorder %s21_s14, 9  ;;  %p2051_p1 = scmp.ge.s32.totalorder %s2342_s13, 1 }
   0x5   : > { %p134_p2 = scmp.lt.s32.totalorder %s2342_s13, 19 }
   0x6   : > { %s2756_s14 = smov (%p22_p0, %s21_s14), 0  ;;  %s2758_s15 = smov (!%p22_p0, %s24_s15), %s2338_s12 }
   0x7   : > { %p135_p3 = pnand %p2051_p1, %p134_p2  ;;  %p26_p4 = scmp.ge.s32.totalorder %s2758_s15, 2 }
   0x8   : > { %s2052_s16 = sshll.u32 (!%p135_p3), %s2326_s9, 4  ;;  %p167_p5 = scmp.lt.s32.totalorder (!%p135_p3), %s2330_s10, 1  ;;  %v2344_v0 = vmov (!%p135_p3), 0.0   ;;  %vm204_vm0 = vcmask (!%p135_p3), 1042432   ;;  %v2406_v7 = vld [vmem:[%s2748_s0] sm:$0xff] (!%p135_p3)  ;;  %vm194_vm1 = vcmask (!%p135_p3), 23552  }
   0x9   : > { %s2760_s15 = smov (%p26_p4, %s2758_s15), 0  ;;  %138 = sbr.rel (%p135_p3) target bundleno = 333 (0x14d), region = 28 }
   0xa   : > { %p169_p6 = scmp.lt.s32.totalorder (!%p135_p3), %s2052_s16, 143  ;;  %273 = vmatprep.mubr.f32.mxu0 (!%p135_p3), %v2344_v0  ;;  %382 = vmatprep.mubr.f32.mxu1 (!%p135_p3), %v2344_v0  ;;  %v2423_v12 = vld [vmem:[%s2748_s0 + $0x8] sm:$0xff] (!%p135_p3)  ;;  %v190_v15 = vld [vmem:[%s2748_s0 + $0x10] sm:$0xf] (!%p135_p3) }
   0xb   : > { %v300_v16 = vld [vmem:[%s2748_s0 + $0x10] sm:$0xf] (!%p135_p3) }
   0xc   : > { %v410_v21 = vld [vmem:[%s2748_s0 + $0x10] sm:$0xf] (!%p135_p3) }
   0xd   : > { %v520_v22 = vld [vmem:[%s2748_s0 + $0x10] sm:$0xf] (!%p135_p3) }
   0xe   : > { %v630_v27 = vld [vmem:[%s2748_s0 + $0x10] sm:$0xf] (!%p135_p3) }
   0xf   : > { %v740_v28 = vld [vmem:[%s2748_s0 + $0x10] sm:$0xf] (!%p135_p3) }
  0x10   : > { %s2762_s10 = smov (!%p167_p5, %s2330_s10), 1  ;;  %s2764_s16 = smov (!%p169_p6, %s2052_s16), 143  ;;  %v850_v33 = vld [vmem:[%s2748_s0 + $0x10] sm:$0xf] }
  0x11   : > { %s2244_s17 = smul.u32 288, %s2762_s10  ;;  %s2053_s18 = sshll.u32 %s2764_s16, 1  ;;  %v960_v34 = vld [vmem:[%s2748_s0 + $0x10] sm:$0xf] }
  0x12   : > { %s2245_s19 = smul.u32 6, %s2764_s16  ;;  %v1070_v39 = vld [vmem:[%s2748_s0 + $0x10] sm:$0xf] }
  0x13   : > { %s173_s20 = sadd.s32 %s2244_s17, %s2053_s18  ;;  %s2246_s21 = smul.u32 864, %s2762_s10  ;;  %v1180_v40 = vld [vmem:[%s2748_s0 + $0x10] sm:$0xf] }
  0x14   : > { %s2054_s22 = sshll.u32 %s173_s20, 2  ;;  %v1290_v45 = vld [vmem:[%s2748_s0 + $0x10] sm:$0xf] }
  0x15   : > { %s2395_s25 = scalar_lea.vmem %s2749_s1, %s2054_s22  ;;  %s2397_s26 = sadd.s32 %s2246_s21, %s2245_s19  ;;  %v1400_v46 = vld [vmem:[%s2748_s0 + $0x10] sm:$0xf] }
  0x16   : > { %v191_v1 = vld [vmem:[%s2395_s25] sm:$0x77]  ;;  %v2062_v2 = vld [vmem:[%s2395_s25 + $0x8] sm:$0x77]  ;;  %v2074_v5 = vld [vmem:[%s2395_s25 + $0x10] sm:$0x77] }
  0x17   : > { %v193_v3 = vcombine.high %v191_v1, %v191_v1  ;;  %v304_v4 = vcombine.high %v2062_v2, %v2062_v2  ;;  %v2086_v6 = vld [vmem:[%s2395_s25 + $0x18] sm:$0x77]  ;;  %v414_v8 = vcombine.high %v2074_v5, %v2074_v5  ;;  %v2098_v10 = vld [vmem:[%s2395_s25 + $0x20] sm:$0x77]  ;;  %v2110_v11 = vld [vmem:[%s2395_s25 + $0x28] sm:$0x77] }
  0x18   : > { %v524_v9 = vcombine.high %v2086_v6, %v2086_v6  ;;  %v634_v13 = vcombine.high %v2098_v10, %v2098_v10  ;;  %v744_v14 = vcombine.high %v2110_v11, %v2110_v11  ;;  %v2122_v17 = vld [vmem:[%s2395_s25 + $0x30] sm:$0x77]  ;;  %v2134_v18 = vld [vmem:[%s2395_s25 + $0x38] sm:$0x77]  ;;  %v2146_v23 = vld [vmem:[%s2395_s25 + $0x40] sm:$0x77] }
  0x19   : > { %2057 = vmatprep.subr.msk.mxu0 %vm204_vm0, %v193_v3  ;;  %2063 = vmatprep.subr.msk.mxu1 %vm204_vm0, %v304_v4  ;;  %v854_v19 = vcombine.high %v2122_v17, %v2122_v17  ;;  %v964_v20 = vcombine.high %v2134_v18, %v2134_v18  ;;  %v2158_v24 = vld [vmem:[%s2395_s25 + $0x48] sm:$0x77]  ;;  %v1074_v25 = vcombine.high %v2146_v23, %v2146_v23  ;;  %v2170_v29 = vld [vmem:[%s2395_s25 + $0x50] sm:$0x77]  ;;  %v2182_v30 = vld [vmem:[%s2395_s25 + $0x58] sm:$0x77] }
  0x1a   : > { %2058 = vmatpush1.msk.msra.mxu0 %vm204_vm0, %v191_v1  ;;  %2064 = vmatpush1.msk.msra.mxu1 %vm204_vm0, %v2062_v2  ;;  %v1184_v26 = vcombine.high %v2158_v24, %v2158_v24  ;;  %v1294_v31 = vcombine.high %v2170_v29, %v2170_v29  ;;  %v1404_v32 = vcombine.high %v2182_v30, %v2182_v30  ;;  %v2194_v35 = vld [vmem:[%s2395_s25 + $0x60] sm:$0x77]  ;;  %v2206_v36 = vld [vmem:[%s2395_s25 + $0x68] sm:$0x77]  ;;  %v2218_v41 = vld [vmem:[%s2395_s25 + $0x70] sm:$0x77] }
  0x1b   : > { %2059 = vmatmul.mubr.msk.f32.vlgmr.msra.gmra.mrb[0].mxu0 %vm194_vm1, %v2406_v7  ;;  %2065 = vmatmul.mubr.msk.f32.vlgmr.msra.gmra.mrb[0].mxu1 %vm194_vm1, %v2406_v7  ;;  %v1514_v37 = vcombine.high %v2194_v35, %v2194_v35  ;;  %v1624_v38 = vcombine.high %v2206_v36, %v2206_v36  ;;  %v2230_v42 = vld [vmem:[%s2395_s25 + $0x78] sm:$0x77]  ;;  %v1734_v43 = vcombine.high %v2218_v41, %v2218_v41  ;;  %v1510_v47 = vld [vmem:[%s2748_s0 + $0x10] sm:$0xf]  ;;  %s2056_s18 = sshll.u32 %s2397_s26, 3 }
  0x1c   : > { %2075 = vmatprep.subr.msk.mxu0 %vm204_vm0, %v414_v8  ;;  %2087 = vmatprep.subr.msk.mxu1 %vm204_vm0, %v524_v9  ;;  %v1844_v44 = vcombine.high %v2230_v42, %v2230_v42  ;;  %v1620_v48 = vld [vmem:[%s2748_s0 + $0x10] sm:$0xf]  ;;  %s2635_s21 = scalar_lea.vmem %s2750_s2, %s2056_s18 }
  0x1d   : > { %2076 = vmatpush1.msk.msra.mxu0 %vm204_vm0, %v2074_v5  ;;  %2088 = vmatpush1.msk.msra.mxu1 %vm204_vm0, %v2086_v6  ;;  %v1730_v49 = vld [vmem:[%s2748_s0 + $0x10] sm:$0xf] }
  0x1e   : > { %279 = vmatprep.mubr.f32.mxu0 %v2344_v0  ;;  %388 = vmatprep.mubr.f32.mxu1 %v2344_v0  ;;  %v1840_v50 = vld [vmem:[%s2748_s0 + $0x10] sm:$0xf] }
  0x1f   : > { %2060 = vmatmul.mubr.msk.f32.gmra.mrb[2].mxu0 %vm194_vm1, %v2423_v12  ;;  %2066 = vmatmul.mubr.msk.f32.gmra.mrb[2].mxu1 %vm194_vm1, %v2423_v12 }
  0x20   : > { %285 = vmatprep.mubr.f32.mxu0 %v2344_v0  ;;  %394 = vmatprep.mubr.f32.mxu1 %v2344_v0 }
  0x21   : > { %2099 = vmatprep.subr.msk.mxu0 %vm204_vm0, %v634_v13  ;;  %2111 = vmatprep.subr.msk.mxu1 %vm204_vm0, %v744_v14 }
  0x23   : > { %2061 = vmatmul.mubr.msk.f32.gmra.mrb[4].mxu0 %vm194_vm1, %v190_v15  ;;  %2067 = vmatmul.mubr.msk.f32.gmra.mrb[4].mxu1 %vm194_vm1, %v300_v16 }
  0x24   : > { %492 = vmatprep.mubr.f32.mxu0 %v2344_v0  ;;  %602 = vmatprep.mubr.f32.mxu1 %v2344_v0 }
  0x27   : > { %2077 = vmatmul.mubr.msk.f32.vlgmr.msra.gmra.mrb[6].mxu0 %vm194_vm1, %v2406_v7  ;;  %2089 = vmatmul.mubr.msk.f32.vlgmr.msra.gmra.mrb[6].mxu1 %vm194_vm1, %v2406_v7 }
  0x28   : > { %2100 = vmatpush1.msk.msra.mxu0 %vm204_vm0, %v2098_v10  ;;  %2112 = vmatpush1.msk.msra.mxu1 %vm204_vm0, %v2110_v11 }
  0x29   : > { %498 = vmatprep.mubr.f32.mxu0 %v2344_v0  ;;  %608 = vmatprep.mubr.f32.mxu1 %v2344_v0 }
  0x2a   : > { %2123 = vmatprep.subr.msk.mxu0 %vm204_vm0, %v854_v19  ;;  %2135 = vmatprep.subr.msk.mxu1 %vm204_vm0, %v964_v20 }
  0x2b   : > { %2078 = vmatmul.mubr.msk.f32.gmra.mrb[8].mxu0 %vm194_vm1, %v2423_v12  ;;  %2090 = vmatmul.mubr.msk.f32.gmra.mrb[8].mxu1 %vm194_vm1, %v2423_v12 }
  0x2c   : > { %504 = vmatprep.mubr.f32.mxu0 %v2344_v0  ;;  %614 = vmatprep.mubr.f32.mxu1 %v2344_v0 }
  0x2f   : > { %2079 = vmatmul.mubr.msk.f32.gmra.mrb[10].mxu0 %vm194_vm1, %v410_v21  ;;  %2091 = vmatmul.mubr.msk.f32.gmra.mrb[10].mxu1 %vm194_vm1, %v520_v22 }
  0x30   : > { %712 = vmatprep.mubr.f32.mxu0 %v2344_v0  ;;  %822 = vmatprep.mubr.f32.mxu1 %v2344_v0 }
  0x33   : > { %2101 = vmatmul.mubr.msk.f32.vlgmr.msra.gmra.mrb[12].mxu0 %vm194_vm1, %v2406_v7  ;;  %2113 = vmatmul.mubr.msk.f32.vlgmr.msra.gmra.mrb[12].mxu1 %vm194_vm1, %v2406_v7 }
  0x34   : > { %2124 = vmatpush1.msk.msra.mxu0 %vm204_vm0, %v2122_v17  ;;  %2136 = vmatpush1.msk.msra.mxu1 %vm204_vm0, %v2134_v18 }
  0x35   : > { %718 = vmatprep.mubr.f32.mxu0 %v2344_v0  ;;  %828 = vmatprep.mubr.f32.mxu1 %v2344_v0 }
  0x36   : > { %2147 = vmatprep.subr.msk.mxu0 %vm204_vm0, %v1074_v25  ;;  %2159 = vmatprep.subr.msk.mxu1 %vm204_vm0, %v1184_v26 }
  0x37   : > { %2102 = vmatmul.mubr.msk.f32.gmra.mrb[14].mxu0 %vm194_vm1, %v2423_v12  ;;  %2114 = vmatmul.mubr.msk.f32.gmra.mrb[14].mxu1 %vm194_vm1, %v2423_v12 }
  0x38   : > { %724 = vmatprep.mubr.f32.mxu0 %v2344_v0  ;;  %834 = vmatprep.mubr.f32.mxu1 %v2344_v0 }
  0x3b   : > { %2103 = vmatmul.mubr.msk.f32.gmra.mrb[16].mxu0 %vm194_vm1, %v630_v27  ;;  %2115 = vmatmul.mubr.msk.f32.gmra.mrb[16].mxu1 %vm194_vm1, %v740_v28 }
  0x3c   : > { %932 = vmatprep.mubr.f32.mxu0 %v2344_v0  ;;  %1042 = vmatprep.mubr.f32.mxu1 %v2344_v0 }
  0x3f   : > { %2125 = vmatmul.mubr.msk.f32.vlgmr.msra.gmra.mrb[18].mxu0 %vm194_vm1, %v2406_v7  ;;  %2137 = vmatmul.mubr.msk.f32.vlgmr.msra.gmra.mrb[18].mxu1 %vm194_vm1, %v2406_v7 }
  0x40   : > { %2148 = vmatpush1.msk.msra.mxu0 %vm204_vm0, %v2146_v23  ;;  %2160 = vmatpush1.msk.msra.mxu1 %vm204_vm0, %v2158_v24 }
  0x41   : > { %938 = vmatprep.mubr.f32.mxu0 %v2344_v0  ;;  %1048 = vmatprep.mubr.f32.mxu1 %v2344_v0 }
  0x42   : > { %2171 = vmatprep.subr.msk.mxu0 %vm204_vm0, %v1294_v31  ;;  %2183 = vmatprep.subr.msk.mxu1 %vm204_vm0, %v1404_v32 }
  0x43   : > { %2126 = vmatmul.mubr.msk.f32.gmra.mrb[20].mxu0 %vm194_vm1, %v2423_v12  ;;  %2138 = vmatmul.mubr.msk.f32.gmra.mrb[20].mxu1 %vm194_vm1, %v2423_v12 }
  0x44   : > { %944 = vmatprep.mubr.f32.mxu0 %v2344_v0  ;;  %1054 = vmatprep.mubr.f32.mxu1 %v2344_v0 }
  0x47   : > { %2127 = vmatmul.mubr.msk.f32.gmra.mrb[22].mxu0 %vm194_vm1, %v850_v33  ;;  %2139 = vmatmul.mubr.msk.f32.gmra.mrb[22].mxu1 %vm194_vm1, %v960_v34 }
  0x48   : > { %1152 = vmatprep.mubr.f32.mxu0 %v2344_v0  ;;  %1262 = vmatprep.mubr.f32.mxu1 %v2344_v0 }
  0x4b   : > { %2149 = vmatmul.mubr.msk.f32.vlgmr.msra.gmra.mrb[24].mxu0 %vm194_vm1, %v2406_v7  ;;  %2161 = vmatmul.mubr.msk.f32.vlgmr.msra.gmra.mrb[24].mxu1 %vm194_vm1, %v2406_v7 }
  0x4c   : > { %2172 = vmatpush1.msk.msra.mxu0 %vm204_vm0, %v2170_v29  ;;  %2184 = vmatpush1.msk.msra.mxu1 %vm204_vm0, %v2182_v30 }
  0x4d   : > { %1158 = vmatprep.mubr.f32.mxu0 %v2344_v0  ;;  %1268 = vmatprep.mubr.f32.mxu1 %v2344_v0 }
  0x4e   : > { %2195 = vmatprep.subr.msk.mxu0 %vm204_vm0, %v1514_v37  ;;  %2207 = vmatprep.subr.msk.mxu1 %vm204_vm0, %v1624_v38 }
  0x4f   : > { %2150 = vmatmul.mubr.msk.f32.gmra.mrb[26].mxu0 %vm194_vm1, %v2423_v12  ;;  %2162 = vmatmul.mubr.msk.f32.gmra.mrb[26].mxu1 %vm194_vm1, %v2423_v12 }
  0x50   : > { %1164 = vmatprep.mubr.f32.mxu0 %v2344_v0  ;;  %1274 = vmatprep.mubr.f32.mxu1 %v2344_v0 }
  0x53   : > { %2151 = vmatmul.mubr.msk.f32.gmra.mrb[28].mxu0 %vm194_vm1, %v1070_v39  ;;  %2163 = vmatmul.mubr.msk.f32.gmra.mrb[28].mxu1 %vm194_vm1, %v1180_v40 }
  0x54   : > { %1372 = vmatprep.mubr.f32.mxu0 %v2344_v0  ;;  %1482 = vmatprep.mubr.f32.mxu1 %v2344_v0 }
  0x57   : > { %2173 = vmatmul.mubr.msk.f32.vlgmr.msra.gmra.mrb[30].mxu0 %vm194_vm1, %v2406_v7  ;;  %2185 = vmatmul.mubr.msk.f32.vlgmr.msra.gmra.mrb[30].mxu1 %vm194_vm1, %v2406_v7 }
  0x58   : > { %2196 = vmatpush1.msk.msra.mxu0 %vm204_vm0, %v2194_v35  ;;  %2208 = vmatpush1.msk.msra.mxu1 %vm204_vm0, %v2206_v36 }
  0x59   : > { %1378 = vmatprep.mubr.f32.mxu0 %v2344_v0  ;;  %1488 = vmatprep.mubr.f32.mxu1 %v2344_v0 }
  0x5a   : > { %2219 = vmatprep.subr.msk.mxu0 %vm204_vm0, %v1734_v43  ;;  %2231 = vmatprep.subr.msk.mxu1 %vm204_vm0, %v1844_v44 }
  0x5b   : > { %2174 = vmatmul.mubr.msk.f32.gmra.mrb[32].mxu0 %vm194_vm1, %v2423_v12  ;;  %2186 = vmatmul.mubr.msk.f32.gmra.mrb[32].mxu1 %vm194_vm1, %v2423_v12 }
  0x5c   : > { %1384 = vmatprep.mubr.f32.mxu0 %v2344_v0  ;;  %1494 = vmatprep.mubr.f32.mxu1 %v2344_v0 }
  0x5f   : > { %2175 = vmatmul.mubr.msk.f32.gmra.mrb[34].mxu0 %vm194_vm1, %v1290_v45  ;;  %2187 = vmatmul.mubr.msk.f32.gmra.mrb[34].mxu1 %vm194_vm1, %v1400_v46 }
  0x60   : > { %1592 = vmatprep.mubr.f32.mxu0 %v2344_v0  ;;  %1702 = vmatprep.mubr.f32.mxu1 %v2344_v0 }
  0x63   : > { %2197 = vmatmul.mubr.msk.f32.vlgmr.msra.gmra.mrb[36].mxu0 %vm194_vm1, %v2406_v7  ;;  %2209 = vmatmul.mubr.msk.f32.vlgmr.msra.gmra.mrb[36].mxu1 %vm194_vm1, %v2406_v7 }
  0x64   : > { %2220 = vmatpush1.msk.msra.mxu0 %vm204_vm0, %v2218_v41  ;;  %2232 = vmatpush1.msk.msra.mxu1 %vm204_vm0, %v2230_v42 }
  0x65   : > { %1598 = vmatprep.mubr.f32.mxu0 %v2344_v0  ;;  %1708 = vmatprep.mubr.f32.mxu1 %v2344_v0 }
  0x67   : > { %2198 = vmatmul.mubr.msk.f32.gmra.mrb[38].mxu0 %vm194_vm1, %v2423_v12  ;;  %2210 = vmatmul.mubr.msk.f32.gmra.mrb[38].mxu1 %vm194_vm1, %v2423_v12 }
  0x68   : > { %1604 = vmatprep.mubr.f32.mxu0 %v2344_v0  ;;  %1714 = vmatprep.mubr.f32.mxu1 %v2344_v0 }
  0x6b   : > { %2199 = vmatmul.mubr.msk.f32.gmra.mrb[40].mxu0 %vm194_vm1, %v1510_v47  ;;  %2211 = vmatmul.mubr.msk.f32.gmra.mrb[40].mxu1 %vm194_vm1, %v1620_v48 }
  0x6c   : > { %1812 = vmatprep.mubr.f32.mxu0 %v2344_v0  ;;  %1922 = vmatprep.mubr.f32.mxu1 %v2344_v0 }
  0x6f   : > { %2221 = vmatmul.mubr.msk.f32.vlgmr.msra.gmra.mrb[42].mxu0 %vm194_vm1, %v2406_v7  ;;  %2233 = vmatmul.mubr.msk.f32.vlgmr.msra.gmra.mrb[42].mxu1 %vm194_vm1, %v2406_v7 }
  0x70   : > { %1818 = vmatprep.mubr.f32.mxu0 %v2344_v0  ;;  %1928 = vmatprep.mubr.f32.mxu1 %v2344_v0 }
  0x73   : > { %2222 = vmatmul.mubr.msk.f32.gmra.mrb[44].mxu0 %vm194_vm1, %v2423_v12  ;;  %2234 = vmatmul.mubr.msk.f32.gmra.mrb[44].mxu1 %vm194_vm1, %v2423_v12 }
  0x74   : > { %1824 = vmatprep.mubr.f32.mxu0 %v2344_v0  ;;  %1934 = vmatprep.mubr.f32.mxu1 %v2344_v0 }
  0x77   : > { %2223 = vmatmul.mubr.msk.f32.gmra.mrb[46].mxu0 %vm194_vm1, %v1730_v49  ;;  %2235 = vmatmul.mubr.msk.f32.gmra.mrb[46].mxu1 %vm194_vm1, %v1840_v50 }
  0xee   : > { %v275_v51 = vpop.f32.mrb[0].mxu0  ;;  %v384_v52 = vpop.f32.mrb[0].mxu1 }
  0xef   : > { %292 = vst [vmem:[%s2635_s21] sm:$0xff] %v275_v51  ;;  %2068 = vst [vmem:[%s2635_s21 + $0x30] sm:$0xff] %v384_v52  ;;  %v277_v53 = vpop.f32.mrb[1].mxu0  ;;  %v386_v54 = vpop.f32.mrb[1].mxu1 }
  0xf0   : > { %293 = vst [vmem:[%s2635_s21 + $0x8] sm:$0xff] %v277_v53  ;;  %2069 = vst [vmem:[%s2635_s21 + $0x38] sm:$0xff] %v386_v54 }
  0xf2   : > { %v281_v55 = vpop.f32.mrb[2].mxu0  ;;  %v390_v56 = vpop.f32.mrb[2].mxu1 }
  0xf3   : > { %294 = vst [vmem:[%s2635_s21 + $0x10] sm:$0xff] %v281_v55  ;;  %2070 = vst [vmem:[%s2635_s21 + $0x40] sm:$0xff] %v390_v56  ;;  %v283_v57 = vpop.f32.mrb[3].mxu0  ;;  %v392_v58 = vpop.f32.mrb[3].mxu1 }
  0xf4   : > { %295 = vst [vmem:[%s2635_s21 + $0x18] sm:$0xff] %v283_v57  ;;  %2071 = vst [vmem:[%s2635_s21 + $0x48] sm:$0xff] %v392_v58 }
  0xf6   : > { %v287_v59 = vpop.f32.mrb[4].mxu0  ;;  %v396_v60 = vpop.f32.mrb[4].mxu1 }
  0xf7   : > { %296 = vst [vmem:[%s2635_s21 + $0x20] sm:$0xf] %v287_v59  ;;  %2072 = vst [vmem:[%s2635_s21 + $0x50] sm:$0xf] %v396_v60  ;;  %v289_v61 = vpop.f32.mrb[5].mxu0  ;;  %v398_v62 = vpop.f32.mrb[5].mxu1 }
  0xf8   : > { %297 = vst [vmem:[%s2635_s21 + $0x28] sm:$0xf] %v289_v61  ;;  %2073 = vst [vmem:[%s2635_s21 + $0x58] sm:$0xf] %v398_v62 }
  0xfa   : > { %v494_v63 = vpop.f32.mrb[6].mxu0  ;;  %v604_v0 = vpop.f32.mrb[6].mxu1 }
  0xfb   : > { %2080 = vst [vmem:[%s2635_s21 + $0x60] sm:$0xff] %v494_v63  ;;  %2092 = vst [vmem:[%s2635_s21 + $0x90] sm:$0xff] %v604_v0  ;;  %v496_v1 = vpop.f32.mrb[7].mxu0  ;;  %v606_v2 = vpop.f32.mrb[7].mxu1 }
  0xfc   : > { %2081 = vst [vmem:[%s2635_s21 + $0x68] sm:$0xff] %v496_v1  ;;  %2093 = vst [vmem:[%s2635_s21 + $0x98] sm:$0xff] %v606_v2 }
  0xfe   : > { %v500_v3 = vpop.f32.mrb[8].mxu0  ;;  %v610_v4 = vpop.f32.mrb[8].mxu1 }
  0xff   : > { %2082 = vst [vmem:[%s2635_s21 + $0x70] sm:$0xff] %v500_v3  ;;  %2094 = vst [vmem:[%s2635_s21 + $0xa0] sm:$0xff] %v610_v4  ;;  %v502_v5 = vpop.f32.mrb[9].mxu0  ;;  %v612_v6 = vpop.f32.mrb[9].mxu1 }
 0x100   : > { %2083 = vst [vmem:[%s2635_s21 + $0x78] sm:$0xff] %v502_v5  ;;  %2095 = vst [vmem:[%s2635_s21 + $0xa8] sm:$0xff] %v612_v6 }
 0x102   : > { %v506_v7 = vpop.f32.mrb[10].mxu0  ;;  %v616_v8 = vpop.f32.mrb[10].mxu1 }
 0x103   : > { %2084 = vst [vmem:[%s2635_s21 + $0x80] sm:$0xf] %v506_v7  ;;  %2096 = vst [vmem:[%s2635_s21 + $0xb0] sm:$0xf] %v616_v8  ;;  %v508_v9 = vpop.f32.mrb[11].mxu0  ;;  %v618_v10 = vpop.f32.mrb[11].mxu1 }
 0x104   : > { %2085 = vst [vmem:[%s2635_s21 + $0x88] sm:$0xf] %v508_v9  ;;  %2097 = vst [vmem:[%s2635_s21 + $0xb8] sm:$0xf] %v618_v10 }
 0x106   : > { %v714_v11 = vpop.f32.mrb[12].mxu0  ;;  %v824_v12 = vpop.f32.mrb[12].mxu1 }
 0x107   : > { %2104 = vst [vmem:[%s2635_s21 + $0xc0] sm:$0xff] %v714_v11  ;;  %2116 = vst [vmem:[%s2635_s21 + $0xf0] sm:$0xff] %v824_v12  ;;  %v716_v13 = vpop.f32.mrb[13].mxu0  ;;  %v826_v14 = vpop.f32.mrb[13].mxu1 }
 0x108   : > { %2105 = vst [vmem:[%s2635_s21 + $0xc8] sm:$0xff] %v716_v13  ;;  %2117 = vst [vmem:[%s2635_s21 + $0xf8] sm:$0xff] %v826_v14 }
 0x10a   : > { %v720_v15 = vpop.f32.mrb[14].mxu0  ;;  %v830_v16 = vpop.f32.mrb[14].mxu1 }
 0x10b   : > { %2106 = vst [vmem:[%s2635_s21 + $0xd0] sm:$0xff] %v720_v15  ;;  %2118 = vst [vmem:[%s2635_s21 + $0x100] sm:$0xff] %v830_v16  ;;  %v722_v17 = vpop.f32.mrb[15].mxu0  ;;  %v832_v18 = vpop.f32.mrb[15].mxu1 }
 0x10c   : > { %2107 = vst [vmem:[%s2635_s21 + $0xd8] sm:$0xff] %v722_v17  ;;  %2119 = vst [vmem:[%s2635_s21 + $0x108] sm:$0xff] %v832_v18 }
 0x10e   : > { %v726_v19 = vpop.f32.mrb[16].mxu0  ;;  %v836_v20 = vpop.f32.mrb[16].mxu1 }
 0x10f   : > { %2108 = vst [vmem:[%s2635_s21 + $0xe0] sm:$0xf] %v726_v19  ;;  %2120 = vst [vmem:[%s2635_s21 + $0x110] sm:$0xf] %v836_v20  ;;  %v728_v21 = vpop.f32.mrb[17].mxu0  ;;  %v838_v22 = vpop.f32.mrb[17].mxu1 }
 0x110   : > { %2109 = vst [vmem:[%s2635_s21 + $0xe8] sm:$0xf] %v728_v21  ;;  %2121 = vst [vmem:[%s2635_s21 + $0x118] sm:$0xf] %v838_v22 }
 0x112   : > { %v934_v23 = vpop.f32.mrb[18].mxu0  ;;  %v1044_v24 = vpop.f32.mrb[18].mxu1 }
 0x113   : > { %2128 = vst [vmem:[%s2635_s21 + $0x120] sm:$0xff] %v934_v23  ;;  %2140 = vst [vmem:[%s2635_s21 + $0x150] sm:$0xff] %v1044_v24  ;;  %v936_v25 = vpop.f32.mrb[19].mxu0  ;;  %v1046_v26 = vpop.f32.mrb[19].mxu1 }
 0x114   : > { %2129 = vst [vmem:[%s2635_s21 + $0x128] sm:$0xff] %v936_v25  ;;  %2141 = vst [vmem:[%s2635_s21 + $0x158] sm:$0xff] %v1046_v26 }
 0x116   : > { %v940_v27 = vpop.f32.mrb[20].mxu0  ;;  %v1050_v28 = vpop.f32.mrb[20].mxu1 }
 0x117   : > { %2130 = vst [vmem:[%s2635_s21 + $0x130] sm:$0xff] %v940_v27  ;;  %2142 = vst [vmem:[%s2635_s21 + $0x160] sm:$0xff] %v1050_v28  ;;  %v942_v29 = vpop.f32.mrb[21].mxu0  ;;  %v1052_v30 = vpop.f32.mrb[21].mxu1 }
 0x118   : > { %2131 = vst [vmem:[%s2635_s21 + $0x138] sm:$0xff] %v942_v29  ;;  %2143 = vst [vmem:[%s2635_s21 + $0x168] sm:$0xff] %v1052_v30 }
 0x11a   : > { %v946_v31 = vpop.f32.mrb[22].mxu0  ;;  %v1056_v32 = vpop.f32.mrb[22].mxu1 }
 0x11b   : > { %2132 = vst [vmem:[%s2635_s21 + $0x140] sm:$0xf] %v946_v31  ;;  %2144 = vst [vmem:[%s2635_s21 + $0x170] sm:$0xf] %v1056_v32  ;;  %v948_v33 = vpop.f32.mrb[23].mxu0  ;;  %v1058_v34 = vpop.f32.mrb[23].mxu1 }
 0x11c   : > { %2133 = vst [vmem:[%s2635_s21 + $0x148] sm:$0xf] %v948_v33  ;;  %2145 = vst [vmem:[%s2635_s21 + $0x178] sm:$0xf] %v1058_v34 }
 0x11e   : > { %v1154_v35 = vpop.f32.mrb[24].mxu0  ;;  %v1264_v36 = vpop.f32.mrb[24].mxu1 }
 0x11f   : > { %2152 = vst [vmem:[%s2635_s21 + $0x180] sm:$0xff] %v1154_v35  ;;  %2164 = vst [vmem:[%s2635_s21 + $0x1b0] sm:$0xff] %v1264_v36  ;;  %v1156_v37 = vpop.f32.mrb[25].mxu0  ;;  %v1266_v38 = vpop.f32.mrb[25].mxu1 }
 0x120   : > { %2153 = vst [vmem:[%s2635_s21 + $0x188] sm:$0xff] %v1156_v37  ;;  %2165 = vst [vmem:[%s2635_s21 + $0x1b8] sm:$0xff] %v1266_v38 }
 0x122   : > { %v1160_v39 = vpop.f32.mrb[26].mxu0  ;;  %v1270_v40 = vpop.f32.mrb[26].mxu1 }
 0x123   : > { %2154 = vst [vmem:[%s2635_s21 + $0x190] sm:$0xff] %v1160_v39  ;;  %2166 = vst [vmem:[%s2635_s21 + $0x1c0] sm:$0xff] %v1270_v40  ;;  %v1162_v41 = vpop.f32.mrb[27].mxu0  ;;  %v1272_v42 = vpop.f32.mrb[27].mxu1 }
 0x124   : > { %2155 = vst [vmem:[%s2635_s21 + $0x198] sm:$0xff] %v1162_v41  ;;  %2167 = vst [vmem:[%s2635_s21 + $0x1c8] sm:$0xff] %v1272_v42 }
 0x126   : > { %v1166_v43 = vpop.f32.mrb[28].mxu0  ;;  %v1276_v44 = vpop.f32.mrb[28].mxu1 }
 0x127   : > { %2156 = vst [vmem:[%s2635_s21 + $0x1a0] sm:$0xf] %v1166_v43  ;;  %2168 = vst [vmem:[%s2635_s21 + $0x1d0] sm:$0xf] %v1276_v44  ;;  %v1168_v45 = vpop.f32.mrb[29].mxu0  ;;  %v1278_v46 = vpop.f32.mrb[29].mxu1 }
 0x128   : > { %2157 = vst [vmem:[%s2635_s21 + $0x1a8] sm:$0xf] %v1168_v45  ;;  %2169 = vst [vmem:[%s2635_s21 + $0x1d8] sm:$0xf] %v1278_v46 }
 0x12a   : > { %v1374_v47 = vpop.f32.mrb[30].mxu0  ;;  %v1484_v48 = vpop.f32.mrb[30].mxu1 }
 0x12b   : > { %2176 = vst [vmem:[%s2635_s21 + $0x1e0] sm:$0xff] %v1374_v47  ;;  %2188 = vst [vmem:[%s2635_s21 + $0x210] sm:$0xff] %v1484_v48  ;;  %v1376_v49 = vpop.f32.mrb[31].mxu0  ;;  %v1486_v50 = vpop.f32.mrb[31].mxu1 }
 0x12c   : > { %2177 = vst [vmem:[%s2635_s21 + $0x1e8] sm:$0xff] %v1376_v49  ;;  %2189 = vst [vmem:[%s2635_s21 + $0x218] sm:$0xff] %v1486_v50 }
 0x12e   : > { %v1380_v51 = vpop.f32.mrb[32].mxu0  ;;  %v1490_v52 = vpop.f32.mrb[32].mxu1 }
 0x12f   : > { %2178 = vst [vmem:[%s2635_s21 + $0x1f0] sm:$0xff] %v1380_v51  ;;  %2190 = vst [vmem:[%s2635_s21 + $0x220] sm:$0xff] %v1490_v52  ;;  %v1382_v53 = vpop.f32.mrb[33].mxu0  ;;  %v1492_v54 = vpop.f32.mrb[33].mxu1 }
 0x130   : > { %2179 = vst [vmem:[%s2635_s21 + $0x1f8] sm:$0xff] %v1382_v53  ;;  %2191 = vst [vmem:[%s2635_s21 + $0x228] sm:$0xff] %v1492_v54 }
 0x132   : > { %v1386_v55 = vpop.f32.mrb[34].mxu0  ;;  %v1496_v56 = vpop.f32.mrb[34].mxu1 }
 0x133   : > { %2180 = vst [vmem:[%s2635_s21 + $0x200] sm:$0xf] %v1386_v55  ;;  %2192 = vst [vmem:[%s2635_s21 + $0x230] sm:$0xf] %v1496_v56  ;;  %v1388_v57 = vpop.f32.mrb[35].mxu0  ;;  %v1498_v58 = vpop.f32.mrb[35].mxu1 }
 0x134   : > { %2181 = vst [vmem:[%s2635_s21 + $0x208] sm:$0xf] %v1388_v57  ;;  %2193 = vst [vmem:[%s2635_s21 + $0x238] sm:$0xf] %v1498_v58 }
 0x136   : > { %v1594_v59 = vpop.f32.mrb[36].mxu0  ;;  %v1704_v60 = vpop.f32.mrb[36].mxu1 }
 0x137   : > { %2200 = vst [vmem:[%s2635_s21 + $0x240] sm:$0xff] %v1594_v59  ;;  %2212 = vst [vmem:[%s2635_s21 + $0x270] sm:$0xff] %v1704_v60  ;;  %v1596_v61 = vpop.f32.mrb[37].mxu0  ;;  %v1706_v62 = vpop.f32.mrb[37].mxu1 }
 0x138   : > { %2201 = vst [vmem:[%s2635_s21 + $0x248] sm:$0xff] %v1596_v61  ;;  %2213 = vst [vmem:[%s2635_s21 + $0x278] sm:$0xff] %v1706_v62 }
 0x13a   : > { %v1600_v63 = vpop.f32.mrb[38].mxu0  ;;  %v1710_v0 = vpop.f32.mrb[38].mxu1 }
 0x13b   : > { %2202 = vst [vmem:[%s2635_s21 + $0x250] sm:$0xff] %v1600_v63  ;;  %2214 = vst [vmem:[%s2635_s21 + $0x280] sm:$0xff] %v1710_v0  ;;  %v1602_v1 = vpop.f32.mrb[39].mxu0  ;;  %v1712_v2 = vpop.f32.mrb[39].mxu1 }
 0x13c   : > { %2203 = vst [vmem:[%s2635_s21 + $0x258] sm:$0xff] %v1602_v1  ;;  %2215 = vst [vmem:[%s2635_s21 + $0x288] sm:$0xff] %v1712_v2 }
 0x13e   : > { %v1606_v3 = vpop.f32.mrb[40].mxu0  ;;  %v1716_v4 = vpop.f32.mrb[40].mxu1 }
 0x13f   : > { %2204 = vst [vmem:[%s2635_s21 + $0x260] sm:$0xf] %v1606_v3  ;;  %2216 = vst [vmem:[%s2635_s21 + $0x290] sm:$0xf] %v1716_v4  ;;  %v1608_v5 = vpop.f32.mrb[41].mxu0  ;;  %v1718_v6 = vpop.f32.mrb[41].mxu1 }
 0x140   : > { %2205 = vst [vmem:[%s2635_s21 + $0x268] sm:$0xf] %v1608_v5  ;;  %2217 = vst [vmem:[%s2635_s21 + $0x298] sm:$0xf] %v1718_v6 }
 0x142   : > { %v1814_v7 = vpop.f32.mrb[42].mxu0  ;;  %v1924_v8 = vpop.f32.mrb[42].mxu1 }
 0x143   : > { %2224 = vst [vmem:[%s2635_s21 + $0x2a0] sm:$0xff] %v1814_v7  ;;  %2236 = vst [vmem:[%s2635_s21 + $0x2d0] sm:$0xff] %v1924_v8  ;;  %v1816_v9 = vpop.f32.mrb[43].mxu0  ;;  %v1926_v10 = vpop.f32.mrb[43].mxu1 }
 0x144   : > { %2225 = vst [vmem:[%s2635_s21 + $0x2a8] sm:$0xff] %v1816_v9  ;;  %2237 = vst [vmem:[%s2635_s21 + $0x2d8] sm:$0xff] %v1926_v10 }
 0x146   : > { %v1820_v11 = vpop.f32.mrb[44].mxu0  ;;  %v1930_v12 = vpop.f32.mrb[44].mxu1 }
 0x147   : > { %2226 = vst [vmem:[%s2635_s21 + $0x2b0] sm:$0xff] %v1820_v11  ;;  %2238 = vst [vmem:[%s2635_s21 + $0x2e0] sm:$0xff] %v1930_v12  ;;  %v1822_v13 = vpop.f32.mrb[45].mxu0  ;;  %v1932_v14 = vpop.f32.mrb[45].mxu1 }
 0x148   : > { %2227 = vst [vmem:[%s2635_s21 + $0x2b8] sm:$0xff] %v1822_v13  ;;  %2239 = vst [vmem:[%s2635_s21 + $0x2e8] sm:$0xff] %v1932_v14 }
 0x14a   : > { %v1826_v15 = vpop.f32.mrb[46].mxu0  ;;  %v1936_v16 = vpop.f32.mrb[46].mxu1 }
 0x14b   : > { %2228 = vst [vmem:[%s2635_s21 + $0x2c0] sm:$0xf] %v1826_v15  ;;  %2240 = vst [vmem:[%s2635_s21 + $0x2f0] sm:$0xf] %v1936_v16  ;;  %v1828_v17 = vpop.f32.mrb[47].mxu0  ;;  %v1938_v18 = vpop.f32.mrb[47].mxu1 }
 0x14c   : > { %2229 = vst [vmem:[%s2635_s21 + $0x2c8] sm:$0xf] %v1828_v17  ;;  %2241 = vst [vmem:[%s2635_s21 + $0x2f8] sm:$0xf] %v1938_v18 }
 0x14d PF: > { %s12_s13 = sadd.s32 1, %s2342_s13   ;;  %s2751_s9 = smov %s2334_s11 }
 0x14e   : > { %p9_p7 = scmp.ge.s32.totalorder %s12_s13, 20   ;;  %s2752_s10 = smov %s2338_s12 }
 0x14f   : > { %s2753_s11 = smov %s2756_s14  ;;  %s2754_s12 = smov %s2760_s15 }
 0x150   :  { %11 = sbr.rel (!%p9_p7) target bundleno = 3 (0x3), region = 88 }

</bundles_post_ra>
